<compile_context>
chip_gen: v7x
topology: tpu7x:2x2x1
jax: 0.10.0
libtpu: 0.0.40
codegen_flags: <defaults>
</compile_context>

<pallas_src>
import random
from functools import partial

import jax
import jax.numpy as jnp
from jax.experimental import pallas as pl
from jax.experimental.pallas import tpu as pltpu

_SUBLANE = 8
_LANE = 128


def _round_up(x, m):
    return ((x + m - 1) // m) * m


# ----------------------------- shared GRU gate math --------------------------
def _gru_gates(gx, gh, h, bhn, hp):
    """PyTorch GRU cell given pre-computed projections.

    gx = x @ W_i + b_x  (b_x packs b_ir+b_hr | b_iz+b_hz | b_in), gh = h @ W_h.
    The three gates (r|z|n) are packed along the last dim in H_pad-sized blocks.
    """
    r = jax.nn.sigmoid(gx[:, 0 * hp:1 * hp] + gh[:, 0 * hp:1 * hp])
    z = jax.nn.sigmoid(gx[:, 1 * hp:2 * hp] + gh[:, 1 * hp:2 * hp])
    n = jnp.tanh(gx[:, 2 * hp:3 * hp] + r * (gh[:, 2 * hp:3 * hp] + bhn))
    return (1.0 - z) * n + z * h


# ----------------- fused encoder kernel (single grid step, loop inside) ------
def _encoder_kernel(x_ref, wi_ref, wh_ref, bx_ref, bhn_ref, wk_ref, bk_ref,
                    enc_out_ref, pk_ref, gx_scr, *, hp, bp, fp, seq_len, unroll):
    # (a) hoisted, non-recurrent input projection for ALL timesteps: one big matmul.
    x_all = x_ref[...].reshape(seq_len * bp, fp)                         # f32, K = F_pad (tiny)
    gx_all = (jnp.dot(x_all, wi_ref[...], preferred_element_type=jnp.float32)
              + bx_ref[...])
    gx_scr[...] = gx_all.reshape(seq_len, bp, 3 * hp)

    wh = wh_ref[...]                                                     # bf16, VMEM resident
    bhn = bhn_ref[...]

    # (b) recurrent part: only h @ W_h per step remains on the serial chain.
    def step(t, h):
        gh = jnp.dot(h.astype(wh.dtype), wh, preferred_element_type=jnp.float32)
        h_new = _gru_gates(gx_scr[t], gh, h, bhn, hp)
        enc_out_ref[t] = h_new
        return h_new

    jax.lax.fori_loop(0, seq_len, step, jnp.zeros((bp, hp), jnp.float32), unroll=unroll)

    # (c) hoisted key projection over the whole encoder-output slab: one big matmul.
    wk = wk_ref[...]                                                     # bf16
    enc_all = enc_out_ref[...].reshape(seq_len * bp, hp)
    pk = (jnp.dot(enc_all.astype(wk.dtype), wk, preferred_element_type=jnp.float32)
          + bk_ref[...])
    pk_ref[...] = pk.reshape(seq_len, bp, hp)


def _encoder_call(X_tm, enc_wi, enc_wh, enc_bx, enc_bhn, wk, bk, *, bp, fp, hp, seq_len):
    kernel = partial(_encoder_kernel, hp=hp, bp=bp, fp=fp, seq_len=seq_len,
                     unroll=bool(seq_len <= 32))
    out_shape = (jax.ShapeDtypeStruct((seq_len, bp, hp), jnp.float32),
                 jax.ShapeDtypeStruct((seq_len, bp, hp), jnp.float32))
    grid_spec = pltpu.PrefetchScalarGridSpec(
        num_scalar_prefetch=0,
        grid=(1,),                                                # single step, loop in-kernel
        in_specs=[
            pl.BlockSpec((seq_len, bp, fp), lambda i: (0, 0, 0)),  # X (time-major)
            pl.BlockSpec((fp, 3 * hp), lambda i: (0, 0)),          # W_i  (f32, tiny K)
            pl.BlockSpec((hp, 3 * hp), lambda i: (0, 0)),          # W_h  (bf16)
            pl.BlockSpec((1, 3 * hp), lambda i: (0, 0)),           # b_x
            pl.BlockSpec((1, hp), lambda i: (0, 0)),               # b_hn
            pl.BlockSpec((hp, hp), lambda i: (0, 0)),              # Wk   (bf16)
            pl.BlockSpec((1, hp), lambda i: (0, 0)),               # bk
        ],
        out_specs=[
            pl.BlockSpec((seq_len, bp, hp), lambda i: (0, 0, 0)),  # encoder_outputs (t-major)
            pl.BlockSpec((seq_len, bp, hp), lambda i: (0, 0, 0)),  # proj_keys       (t-major)
        ],
        scratch_shapes=[pltpu.VMEM((seq_len, bp, 3 * hp), jnp.float32)],  # hoisted gx slab
    )
    return pl.pallas_call(
        kernel,
        out_shape=out_shape,
        grid_spec=grid_spec,
        compiler_params=pltpu.CompilerParams(
            dimension_semantics=("arbitrary",),
            vmem_limit_bytes=32 * 1024 * 1024),
    )(X_tm, enc_wi, enc_wh, enc_bx, enc_bhn, wk, bk)


# ----------------- fused decoder kernel (single grid step, loop inside) ------
def _decoder_kernel(tf_ref, keys_ref, values_ref, tgt_ref, x0_ref, h0_ref,
                    wi_ref, wh_ref, bx_ref, bhn_ref,
                    wq_ref, bq_ref, wrc_ref, wrq_ref, br_ref,
                    out_ref, alphas_ref, *, hp, l_pad, l_real, target_len, unroll):
    # loop-invariant loads / constants hoisted out of the per-step loop
    keys = keys_ref[...]                                   # (Bp, Lp, Hp) bf16, resident
    values = values_ref[...]                               # (Bp, Lp, Hp) bf16, resident
    wi, wh = wi_ref[...], wh_ref[...]
    bx, bhn = bx_ref[...], bhn_ref[...]
    wq, bq = wq_ref[...], bq_ref[...]                      # 1/sqrt(H) already folded in
    wrc, wrq, br = wrc_ref[...], wrq_ref[...], br_ref[...]
    if l_pad > l_real:                                     # mask built once, not per step
        pos = jax.lax.broadcasted_iota(jnp.int32, (1, 1, l_pad), 2)
        score_bias = jnp.where(pos < l_real, 0.0, -1e30).astype(jnp.float32)
    else:
        score_bias = None

    def step(i, carry):
        h, x_in = carry
        # GRU step; the new hidden state is the attention query.
        gx = jnp.dot(x_in, wi, preferred_element_type=jnp.float32) + bx      # K = F_pad, f32
        gh = jnp.dot(h.astype(wh.dtype), wh, preferred_element_type=jnp.float32)
        q = _gru_gates(gx, gh, h, bhn, hp)

        # --- dot-product attention: bf16 MXU operands, f32 accumulate / softmax ---
        pq = jnp.dot(q.astype(wq.dtype), wq, preferred_element_type=jnp.float32) + bq
        scores = jnp.einsum('bqh,blh->bql', pq[:, None, :].astype(keys.dtype), keys,
                            preferred_element_type=jnp.float32)              # (Bp,1,Lp)
        if score_bias is not None:
            scores = scores + score_bias                                      # mask L padding
        m = jnp.max(scores, axis=-1, keepdims=True)
        e = jnp.exp(scores - m)
        denom = jnp.sum(e, axis=-1, keepdims=True)
        alphas = e * pl.reciprocal(denom, approx=True)
        alphas_ref[i] = alphas[:, 0, :]

        context = jnp.einsum('bql,blh->bqh', alphas.astype(values.dtype), values,
                             preferred_element_type=jnp.float32)[:, 0, :]    # (Bp,Hp)

        # regression on concat([context, query]) as a split matmul (avoids the concat)
        out = (jnp.dot(context.astype(wrc.dtype), wrc, preferred_element_type=jnp.float32)
               + jnp.dot(q.astype(wrq.dtype), wrq, preferred_element_type=jnp.float32)
               + br)
        out_ref[i] = out

        # next decoder input: teacher-forcing select via host-precomputed mask (SMEM scalar)
        m_tf = (tf_ref[i] > 0).astype(jnp.float32)
        x_next = m_tf * tgt_ref[i] + (1.0 - m_tf) * out
        return q, x_next

    jax.lax.fori_loop(0, target_len, step, (h0_ref[...], x0_ref[...]), unroll=unroll)


def _decoder_call(tf_mask, proj_keys, values, tgt_tm, x0, h0,
                  dec_wi, dec_wh, dec_bx, dec_bhn, wq, bq, wrc, wrq, br,
                  *, bp, fp, hp, lp, l_real, target_len):
    kernel = partial(_decoder_kernel, hp=hp, l_pad=lp, l_real=l_real,
                     target_len=target_len, unroll=bool(target_len <= 32))
    out_shape = (jax.ShapeDtypeStruct((target_len, bp, fp), jnp.float32),
                 jax.ShapeDtypeStruct((target_len, bp, lp), jnp.float32))
    grid_spec = pltpu.PrefetchScalarGridSpec(
        num_scalar_prefetch=1,                                    # teacher-forcing mask -> SMEM
        grid=(1,),                                                # single step, loop in-kernel
        in_specs=[
            pl.BlockSpec((bp, lp, hp), lambda i, tf: (0, 0, 0)),          # proj_keys (bf16)
            pl.BlockSpec((bp, lp, hp), lambda i, tf: (0, 0, 0)),          # values    (bf16)
            pl.BlockSpec((target_len, bp, fp), lambda i, tf: (0, 0, 0)),  # targets (t-major)
            pl.BlockSpec((bp, fp), lambda i, tf: (0, 0)),                 # x0
            pl.BlockSpec((bp, hp), lambda i, tf: (0, 0)),                 # h0
            pl.BlockSpec((fp, 3 * hp), lambda i, tf: (0, 0)),             # dec W_i (f32)
            pl.BlockSpec((hp, 3 * hp), lambda i, tf: (0, 0)),             # dec W_h (bf16)
            pl.BlockSpec((1, 3 * hp), lambda i, tf: (0, 0)),              # dec b_x
            pl.BlockSpec((1, hp), lambda i, tf: (0, 0)),                  # dec b_hn
            pl.BlockSpec((hp, hp), lambda i, tf: (0, 0)),                 # Wq (bf16, scaled)
            pl.BlockSpec((1, hp), lambda i, tf: (0, 0)),                  # bq (scaled)
            pl.BlockSpec((hp, fp), lambda i, tf: (0, 0)),                 # Wrc (bf16)
            pl.BlockSpec((hp, fp), lambda i, tf: (0, 0)),                 # Wrq (bf16)
            pl.BlockSpec((1, fp), lambda i, tf: (0, 0)),                  # br
        ],
        out_specs=[
            pl.BlockSpec((target_len, bp, fp), lambda i, tf: (0, 0, 0)),  # outputs (t-major)
            pl.BlockSpec((target_len, bp, lp), lambda i, tf: (0, 0, 0)),  # alphas  (t-major)
        ],
    )
    return pl.pallas_call(
        kernel,
        out_shape=out_shape,
        grid_spec=grid_spec,
        compiler_params=pltpu.CompilerParams(
            dimension_semantics=("arbitrary",),
            vmem_limit_bytes=32 * 1024 * 1024),
    )(tf_mask, proj_keys, values, tgt_tm, x0, h0,
      dec_wi, dec_wh, dec_bx, dec_bhn, wq, bq, wrc, wrq, br)


# ------------------------------ parameter packing -----------------------------
def _pad_2d(a, rows, cols):
    return jnp.zeros((rows, cols), jnp.float32).at[:a.shape[0], :a.shape[1]].set(a)


def _make_gru_params(key, in_dim, hidden, in_pad, h_pad, s):
    """PyTorch-style GRU weights packed as W_i:(Fp,3Hp), W_h:(Hp,3Hp), b_x:(1,3Hp), b_hn:(1,Hp)."""
    ks = jax.random.split(key, 12)
    w = lambda k, shp: (s * jax.random.normal(k, shp)).astype(jnp.float32)
    wir, wiz, win = w(ks[0], (in_dim, hidden)), w(ks[1], (in_dim, hidden)), w(ks[2], (in_dim, hidden))
    whr, whz, whn = w(ks[3], (hidden, hidden)), w(ks[4], (hidden, hidden)), w(ks[5], (hidden, hidden))
    bir, biz, bin_ = w(ks[6], (1, hidden)), w(ks[7], (1, hidden)), w(ks[8], (1, hidden))
    bhr, bhz, bhn = w(ks[9], (1, hidden)), w(ks[10], (1, hidden)), w(ks[11], (1, hidden))

    wi = jnp.zeros((in_pad, 3 * h_pad), jnp.float32)
    wh = jnp.zeros((h_pad, 3 * h_pad), jnp.float32)
    for g, (wig, whg) in enumerate(((wir, whr), (wiz, whz), (win, whn))):
        wi = wi.at[:in_dim, g * h_pad:g * h_pad + hidden].set(wig)
        wh = wh.at[:hidden, g * h_pad:g * h_pad + hidden].set(whg)
    bx = jnp.zeros((1, 3 * h_pad), jnp.float32)
    bx = bx.at[0, 0 * h_pad:0 * h_pad + hidden].set((bir + bhr)[0])   # r: b_ir + b_hr
    bx = bx.at[0, 1 * h_pad:1 * h_pad + hidden].set((biz + bhz)[0])   # z: b_iz + b_hz
    bx = bx.at[0, 2 * h_pad:2 * h_pad + hidden].set(bin_[0])          # n: b_in only
    bhn_p = jnp.zeros((1, h_pad), jnp.float32).at[0, :hidden].set(bhn[0])
    return wi, wh, bx, bhn_p


# ------------------------------ jitted forward --------------------------------
def _forward_impl(params, X, target, tf_mask, *, n_features, f_pad, h_pad, l_pad,
                  input_len, target_len):
    B = X.shape[0]
    bp = _round_up(max(B, 1), _SUBLANE)

    # encoder input: time-major, zero-padded to (L, Bp, Fp)
    X_tm = jnp.zeros((input_len, bp, f_pad), jnp.float32)
    X_tm = X_tm.at[:, :B, :n_features].set(jnp.transpose(X.astype(jnp.float32), (1, 0, 2)))

    enc_out_tm, pk_tm = _encoder_call(
        X_tm, params['enc_wi'], params['enc_wh'], params['enc_bx'], params['enc_bhn'],
        params['wk'], params['bk'], bp=bp, fp=f_pad, hp=h_pad, seq_len=input_len)

    # re-layout to (Bp, Lp, Hp) for the attention einsums.  L-pad rows stay zero so padded
    # positions (alphas == 0 there) can never poison the context.  bf16 => MXU operands and
    # half the resident attention-state VMEM / DMA bytes.
    values = jnp.zeros((bp, l_pad, h_pad), jnp.float32)
    values = values.at[:, :input_len, :].set(jnp.transpose(enc_out_tm, (1, 0, 2)))
    proj_keys = jnp.zeros((bp, l_pad, h_pad), jnp.float32)
    proj_keys = proj_keys.at[:, :input_len, :].set(jnp.transpose(pk_tm, (1, 0, 2)))
    values = values.astype(jnp.bfloat16)
    proj_keys = proj_keys.astype(jnp.bfloat16)

    h0 = enc_out_tm[input_len - 1]     # decoder init hidden = last encoder output   (Bp, Hp)
    x0 = X_tm[input_len - 1]           # first decoder input  = X[:, -1, :]          (Bp, Fp)

    tgt_tm = jnp.zeros((target_len, bp, f_pad), jnp.float32)
    tgt_tm = tgt_tm.at[:, :B, :n_features].set(
        jnp.transpose(target.astype(jnp.float32), (1, 0, 2)))

    outs_tm, alphas_tm = _decoder_call(
        tf_mask, proj_keys, values, tgt_tm, x0, h0,
        params['dec_wi'], params['dec_wh'], params['dec_bx'], params['dec_bhn'],
        params['wq'], params['bq'], params['wrc'], params['wrq'], params['br'],
        bp=bp, fp=f_pad, hp=h_pad, lp=l_pad, l_real=input_len, target_len=target_len)

    outputs = jnp.transpose(outs_tm, (1, 0, 2))[:B, :, :n_features]   # (B, T, F)
    alphas = jnp.transpose(alphas_tm, (1, 0, 2))[:B, :, :input_len]   # (B, T, L)
    return outputs, alphas


# ------------------------------ module wrapper --------------------------------
class EncoderDecoderAttnPallas:
    def __init__(self, n_features, hidden_dim, input_len, target_len,
                 teacher_forcing_prob=0.5, seed=0):
        self.F = n_features
        self.H = hidden_dim
        self.input_len = input_len
        self.target_len = target_len
        self.teacher_forcing_prob = teacher_forcing_prob
        self.alphas = None
        self.outputs = None
        # persistent host RNG: teacher-forcing draws differ across forward() calls,
        # mirroring PyTorch's per-call torch.rand (not a fixed pattern).
        self._tf_rng = random.Random(seed)

        # padding: H -> lane multiple (128); F and L only need sublane granularity (8).
        self.F_pad = _round_up(max(n_features, 1), _SUBLANE)
        self.H_pad = _round_up(hidden_dim, _LANE)
        self.L_pad = _round_up(input_len, _SUBLANE)
        scale = float(1.0 / (hidden_dim ** 0.5))

        key = jax.random.PRNGKey(seed)
        k_enc, k_dec, k_attn = jax.random.split(key, 3)
        s = 0.1
        enc_wi, enc_wh, enc_bx, enc_bhn = _make_gru_params(
            k_enc, n_features, hidden_dim, self.F_pad, self.H_pad, s)
        dec_wi, dec_wh, dec_bx, dec_bhn = _make_gru_params(
            k_dec, n_features, hidden_dim, self.F_pad, self.H_pad, s)

        ka = jax.random.split(k_attn, 7)
        w = lambda k, shp: (s * jax.random.normal(k, shp)).astype(jnp.float32)
        bf16 = jnp.bfloat16
        self.params = dict(
            # K = H matmul weights are bf16 MXU operands; biases and the tiny-K W_i stay f32.
            enc_wi=enc_wi, enc_wh=enc_wh.astype(bf16), enc_bx=enc_bx, enc_bhn=enc_bhn,
            dec_wi=dec_wi, dec_wh=dec_wh.astype(bf16), dec_bx=dec_bx, dec_bhn=dec_bhn,
            # 1/sqrt(H) folded into the query projection (removes the per-step scale multiply)
            wq=(_pad_2d(w(ka[0], (hidden_dim, hidden_dim)), self.H_pad, self.H_pad)
                * scale).astype(bf16),
            bq=_pad_2d(w(ka[1], (1, hidden_dim)), 1, self.H_pad) * scale,
            wk=_pad_2d(w(ka[2], (hidden_dim, hidden_dim)),
                       self.H_pad, self.H_pad).astype(bf16),
            bk=_pad_2d(w(ka[3], (1, hidden_dim)), 1, self.H_pad),
            wrc=_pad_2d(w(ka[4], (hidden_dim, n_features)),
                        self.H_pad, self.F_pad).astype(bf16),
            wrq=_pad_2d(w(ka[5], (hidden_dim, n_features)),
                        self.H_pad, self.F_pad).astype(bf16),
            br=_pad_2d(w(ka[6], (1, n_features)), 1, self.F_pad),
        )

        self._fwd = jax.jit(partial(
            _forward_impl,
            n_features=self.F, f_pad=self.F_pad, h_pad=self.H_pad, l_pad=self.L_pad,
            input_len=self.input_len, target_len=self.target_len))

    def forward(self, X, target=None):
        B = X.shape[0]
        # Teacher-forcing randomness hoisted out of the traced path (host RNG like torch.rand);
        # short-circuits exactly like the PyTorch loop when target is None.
        tf_draws = [1 if (target is not None and
                          self._tf_rng.random() < self.teacher_forcing_prob) else 0
                    for _ in range(self.target_len)]
        tf_mask = jnp.asarray(tf_draws, dtype=jnp.int32)
        if target is None:
            target_arr = jnp.zeros((B, self.target_len, self.F), jnp.float32)
        else:
            target_arr = jnp.asarray(target, jnp.float32)

        outputs, alphas = self._fwd(self.params, X, target_arr, tf_mask)
        self.outputs = outputs                                  # (B, target_len, F)
        self.alphas = alphas                                    # (B, target_len, input_len)
        return outputs

    __call__ = forward


if __name__ == "__main__":
    B, F, H = 2, 4, 32
    input_len, target_len = 8, 4

    model = EncoderDecoderAttnPallas(n_features=F, hidden_dim=H,
                                     input_len=input_len, target_len=target_len,
                                     teacher_forcing_prob=0.5, seed=0)

    kx, kt = jax.random.split(jax.random.PRNGKey(0))
    X = jax.random.normal(kx, (B, input_len, F), dtype=jnp.float32)
    tgt = jax.random.normal(kt, (B, target_len, F), dtype=jnp.float32)

    # free-running decode (no teacher forcing)
    out = jax.block_until_ready(model.forward(X, target=None))
    alphas = jax.block_until_ready(model.alphas)

    assert out.shape == (B, target_len, F)
    assert alphas.shape == (B, target_len, input_len)
    assert bool(jnp.all(jnp.isfinite(out)))
    # attention weights sum to ~1 over the (unpadded) input positions
    assert bool(jnp.allclose(jnp.sum(alphas, axis=-1), 1.0, atol=5e-2))

    # teacher-forcing path (same kernels, scalar-prefetched mask flips the input select)
    out_tf = jax.block_until_ready(model.forward(X, target=tgt))
    assert out_tf.shape == (B, target_len, F)
    assert bool(jnp.all(jnp.isfinite(out_tf)))

    print("KERNEL_OK")
</pallas_src>

<mosaic_0001>
module attributes {stable_mosaic.version = 11 : i64} {
  func.func @_encoder_kernel(%arg0: i32, %arg1: memref<8x8x8xf32, #tpu.memory_space<vmem>>, %arg2: memref<8x384xf32, #tpu.memory_space<vmem>>, %arg3: memref<128x384xbf16, #tpu.memory_space<vmem>>, %arg4: memref<1x384xf32, #tpu.memory_space<vmem>>, %arg5: memref<1x128xf32, #tpu.memory_space<vmem>>, %arg6: memref<128x128xbf16, #tpu.memory_space<vmem>>, %arg7: memref<1x128xf32, #tpu.memory_space<vmem>>, %arg8: memref<8x8x128xf32, #tpu.memory_space<vmem>>, %arg9: memref<8x8x128xf32, #tpu.memory_space<vmem>>, %arg10: memref<8x8x384xf32, #tpu.memory_space<vmem>>) attributes {dimension_semantics = [#tpu.dimension_semantics<arbitrary>], iteration_bounds = array<i64: 1>, scalar_prefetch = 0 : i64, scratch_operands = 1 : i64, tpu.core_type = #tpu.core_type<tc>, window_params = [{pipeline_mode = #tpu.pipeline_mode<synchronous>, transform_indices = @transform_0, window_bounds = array<i64: 8, 8, 8>}, {pipeline_mode = #tpu.pipeline_mode<synchronous>, transform_indices = @transform_1, window_bounds = array<i64: 8, 384>}, {pipeline_mode = #tpu.pipeline_mode<synchronous>, transform_indices = @transform_2, window_bounds = array<i64: 128, 384>}, {pipeline_mode = #tpu.pipeline_mode<synchronous>, transform_indices = @transform_3, window_bounds = array<i64: 1, 384>}, {pipeline_mode = #tpu.pipeline_mode<synchronous>, transform_indices = @transform_4, window_bounds = array<i64: 1, 128>}, {pipeline_mode = #tpu.pipeline_mode<synchronous>, transform_indices = @transform_5, window_bounds = array<i64: 128, 128>}, {pipeline_mode = #tpu.pipeline_mode<synchronous>, transform_indices = @transform_6, window_bounds = array<i64: 1, 128>}, {pipeline_mode = #tpu.pipeline_mode<synchronous>, transform_indices = @transform_7, window_bounds = array<i64: 8, 8, 128>}, {pipeline_mode = #tpu.pipeline_mode<synchronous>, transform_indices = @transform_8, window_bounds = array<i64: 8, 8, 128>}]} {
    %c0 = arith.constant 0 : index
    %c0_0 = arith.constant 0 : index
    %c0_1 = arith.constant 0 : index
    %0 = vector.load %arg1[%c0, %c0_0, %c0_1] : memref<8x8x8xf32, #tpu.memory_space<vmem>>, vector<8x8x8xf32>
    %1 = vector.shape_cast %0 : vector<8x8x8xf32> to vector<64x8xf32>
    %c0_2 = arith.constant 0 : index
    %c0_3 = arith.constant 0 : index
    %2 = vector.load %arg2[%c0_2, %c0_3] : memref<8x384xf32, #tpu.memory_space<vmem>>, vector<8x384xf32>
    %cst = arith.constant dense<0.000000e+00> : vector<64x384xf32>
    %3 = tpu.matmul %1, %2, %cst {dimension_numbers = #tpu.dot_dimension_numbers<[1], [0], [0], [1], [0, 0, 1, 1], [], []>} : vector<64x8xf32>, vector<8x384xf32>, vector<64x384xf32> -> vector<64x384xf32>
    %c0_4 = arith.constant 0 : index
    %c0_5 = arith.constant 0 : index
    %4 = vector.load %arg4[%c0_4, %c0_5] : memref<1x384xf32, #tpu.memory_space<vmem>>, vector<1x384xf32>
    %5 = vector.broadcast %4 : vector<1x384xf32> to vector<64x384xf32>
    %6 = arith.addf %3, %5 : vector<64x384xf32>
    %7 = vector.shape_cast %6 : vector<64x384xf32> to vector<8x8x384xf32>
    %c0_6 = arith.constant 0 : index
    %c0_7 = arith.constant 0 : index
    %c0_8 = arith.constant 0 : index
    %8 = vector.load %arg10[%c0_6, %c0_7, %c0_8] : memref<8x8x384xf32, #tpu.memory_space<vmem>>, vector<8x8x384xf32>
    tpu.vector_store %arg10[%c0_6, %c0_7, %c0_8], %7 {strides = array<i32>} : memref<8x8x384xf32, #tpu.memory_space<vmem>>, vector<8x8x384xf32>,
    %c0_9 = arith.constant 0 : index
    %c0_10 = arith.constant 0 : index
    %9 = vector.load %arg3[%c0_9, %c0_10] : memref<128x384xbf16, #tpu.memory_space<vmem>>, vector<128x384xbf16>
    %c0_11 = arith.constant 0 : index
    %c0_12 = arith.constant 0 : index
    %10 = vector.load %arg5[%c0_11, %c0_12] : memref<1x128xf32, #tpu.memory_space<vmem>>, vector<1x128xf32>
    %cst_13 = arith.constant 0.000000e+00 : f32
    %11 = vector.broadcast %cst_13 : f32 to vector<8x128xf32>
    %c0_i32 = arith.constant 0 : i32
    %12 = arith.truncf %11 : vector<8x128xf32> to vector<8x128xbf16>
    %cst_14 = arith.constant dense<0.000000e+00> : vector<8x384xf32>
    %13 = tpu.matmul %12, %9, %cst_14 {dimension_numbers = #tpu.dot_dimension_numbers<[1], [0], [0], [1], [0, 0, 1, 1], [], []>} : vector<8x128xbf16>, vector<128x384xbf16>, vector<8x384xf32> -> vector<8x384xf32>
    %14 = arith.index_cast %c0_i32 : i32 to index
    %c0_15 = arith.constant 0 : index
    %c0_16 = arith.constant 0 : index
    %15 = vector.load %arg10[%14, %c0_15, %c0_16] : memref<8x8x384xf32, #tpu.memory_space<vmem>>, vector<1x8x384xf32>
    %16 = vector.shape_cast %15 : vector<1x8x384xf32> to vector<8x384xf32>
    %17 = vector.extract_strided_slice %16 {offsets = [0, 0], sizes = [8, 128], strides = [1, 1]} : vector<8x384xf32> to vector<8x128xf32>
    %18 = vector.extract_strided_slice %13 {offsets = [0, 0], sizes = [8, 128], strides = [1, 1]} : vector<8x384xf32> to vector<8x128xf32>
    %19 = arith.addf %17, %18 : vector<8x128xf32>
    %20 = arith.negf %19 : vector<8x128xf32>
    %21 = math.exp %20 : vector<8x128xf32>
    %cst_17 = arith.constant 1.000000e+00 : f32
    %22 = vector.broadcast %cst_17 : f32 to vector<8x128xf32>
    %23 = arith.addf %22, %21 : vector<8x128xf32>
    %24 = arith.divf %22, %23 : vector<8x128xf32>
    %25 = vector.extract_strided_slice %16 {offsets = [0, 128], sizes = [8, 128], strides = [1, 1]} : vector<8x384xf32> to vector<8x128xf32>
    %26 = vector.extract_strided_slice %13 {offsets = [0, 128], sizes = [8, 128], strides = [1, 1]} : vector<8x384xf32> to vector<8x128xf32>
    %27 = arith.addf %25, %26 : vector<8x128xf32>
    %28 = arith.negf %27 : vector<8x128xf32>
    %29 = math.exp %28 : vector<8x128xf32>
    %cst_18 = arith.constant 1.000000e+00 : f32
    %30 = vector.broadcast %cst_18 : f32 to vector<8x128xf32>
    %31 = arith.addf %30, %29 : vector<8x128xf32>
    %32 = arith.divf %30, %31 : vector<8x128xf32>
    %33 = vector.extract_strided_slice %16 {offsets = [0, 256], sizes = [8, 128], strides = [1, 1]} : vector<8x384xf32> to vector<8x128xf32>
    %34 = vector.extract_strided_slice %13 {offsets = [0, 256], sizes = [8, 128], strides = [1, 1]} : vector<8x384xf32> to vector<8x128xf32>
    %35 = vector.broadcast %10 : vector<1x128xf32> to vector<8x128xf32>
    %36 = arith.addf %34, %35 : vector<8x128xf32>
    %37 = arith.mulf %24, %36 : vector<8x128xf32>
    %38 = arith.addf %33, %37 : vector<8x128xf32>
    %39 = math.tanh %38 : vector<8x128xf32>
    %cst_19 = arith.constant 1.000000e+00 : f32
    %40 = vector.broadcast %cst_19 : f32 to vector<8x128xf32>
    %41 = arith.subf %40, %32 : vector<8x128xf32>
    %42 = arith.mulf %41, %39 : vector<8x128xf32>
    %43 = arith.mulf %32, %11 : vector<8x128xf32>
    %44 = arith.addf %42, %43 : vector<8x128xf32>
    %45 = arith.index_cast %c0_i32 : i32 to index
    %c0_20 = arith.constant 0 : index
    %c0_21 = arith.constant 0 : index
    %46 = vector.load %arg8[%45, %c0_20, %c0_21] : memref<8x8x128xf32, #tpu.memory_space<vmem>>, vector<1x8x128xf32>
    %47 = vector.shape_cast %46 : vector<1x8x128xf32> to vector<8x128xf32>
    %48 = vector.shape_cast %44 : vector<8x128xf32> to vector<1x8x128xf32>
    tpu.vector_store %arg8[%45, %c0_20, %c0_21], %48 {strides = array<i32>} : memref<8x8x128xf32, #tpu.memory_space<vmem>>, vector<1x8x128xf32>,
    %c1_i32 = arith.constant 1 : i32
    %49 = arith.truncf %44 : vector<8x128xf32> to vector<8x128xbf16>
    %cst_22 = arith.constant dense<0.000000e+00> : vector<8x384xf32>
    %50 = tpu.matmul %49, %9, %cst_22 {dimension_numbers = #tpu.dot_dimension_numbers<[1], [0], [0], [1], [0, 0, 1, 1], [], []>} : vector<8x128xbf16>, vector<128x384xbf16>, vector<8x384xf32> -> vector<8x384xf32>
    %51 = arith.index_cast %c1_i32 : i32 to index
    %c0_23 = arith.constant 0 : index
    %c0_24 = arith.constant 0 : index
    %52 = vector.load %arg10[%51, %c0_23, %c0_24] : memref<8x8x384xf32, #tpu.memory_space<vmem>>, vector<1x8x384xf32>
    %53 = vector.shape_cast %52 : vector<1x8x384xf32> to vector<8x384xf32>
    %54 = vector.extract_strided_slice %53 {offsets = [0, 0], sizes = [8, 128], strides = [1, 1]} : vector<8x384xf32> to vector<8x128xf32>
    %55 = vector.extract_strided_slice %50 {offsets = [0, 0], sizes = [8, 128], strides = [1, 1]} : vector<8x384xf32> to vector<8x128xf32>
    %56 = arith.addf %54, %55 : vector<8x128xf32>
    %57 = arith.negf %56 : vector<8x128xf32>
    %58 = math.exp %57 : vector<8x128xf32>
    %cst_25 = arith.constant 1.000000e+00 : f32
    %59 = vector.broadcast %cst_25 : f32 to vector<8x128xf32>
    %60 = arith.addf %59, %58 : vector<8x128xf32>
    %61 = arith.divf %59, %60 : vector<8x128xf32>
    %62 = vector.extract_strided_slice %53 {offsets = [0, 128], sizes = [8, 128], strides = [1, 1]} : vector<8x384xf32> to vector<8x128xf32>
    %63 = vector.extract_strided_slice %50 {offsets = [0, 128], sizes = [8, 128], strides = [1, 1]} : vector<8x384xf32> to vector<8x128xf32>
    %64 = arith.addf %62, %63 : vector<8x128xf32>
    %65 = arith.negf %64 : vector<8x128xf32>
    %66 = math.exp %65 : vector<8x128xf32>
    %cst_26 = arith.constant 1.000000e+00 : f32
    %67 = vector.broadcast %cst_26 : f32 to vector<8x128xf32>
    %68 = arith.addf %67, %66 : vector<8x128xf32>
    %69 = arith.divf %67, %68 : vector<8x128xf32>
    %70 = vector.extract_strided_slice %53 {offsets = [0, 256], sizes = [8, 128], strides = [1, 1]} : vector<8x384xf32> to vector<8x128xf32>
    %71 = vector.extract_strided_slice %50 {offsets = [0, 256], sizes = [8, 128], strides = [1, 1]} : vector<8x384xf32> to vector<8x128xf32>
    %72 = vector.broadcast %10 : vector<1x128xf32> to vector<8x128xf32>
    %73 = arith.addf %71, %72 : vector<8x128xf32>
    %74 = arith.mulf %61, %73 : vector<8x128xf32>
    %75 = arith.addf %70, %74 : vector<8x128xf32>
    %76 = math.tanh %75 : vector<8x128xf32>
    %cst_27 = arith.constant 1.000000e+00 : f32
    %77 = vector.broadcast %cst_27 : f32 to vector<8x128xf32>
    %78 = arith.subf %77, %69 : vector<8x128xf32>
    %79 = arith.mulf %78, %76 : vector<8x128xf32>
    %80 = arith.mulf %69, %44 : vector<8x128xf32>
    %81 = arith.addf %79, %80 : vector<8x128xf32>
    %82 = arith.index_cast %c1_i32 : i32 to index
    %c0_28 = arith.constant 0 : index
    %c0_29 = arith.constant 0 : index
    %83 = vector.load %arg8[%82, %c0_28, %c0_29] : memref<8x8x128xf32, #tpu.memory_space<vmem>>, vector<1x8x128xf32>
    %84 = vector.shape_cast %83 : vector<1x8x128xf32> to vector<8x128xf32>
    %85 = vector.shape_cast %81 : vector<8x128xf32> to vector<1x8x128xf32>
    tpu.vector_store %arg8[%82, %c0_28, %c0_29], %85 {strides = array<i32>} : memref<8x8x128xf32, #tpu.memory_space<vmem>>, vector<1x8x128xf32>,
    %c2_i32 = arith.constant 2 : i32
    %86 = arith.truncf %81 : vector<8x128xf32> to vector<8x128xbf16>
    %cst_30 = arith.constant dense<0.000000e+00> : vector<8x384xf32>
    %87 = tpu.matmul %86, %9, %cst_30 {dimension_numbers = #tpu.dot_dimension_numbers<[1], [0], [0], [1], [0, 0, 1, 1], [], []>} : vector<8x128xbf16>, vector<128x384xbf16>, vector<8x384xf32> -> vector<8x384xf32>
    %88 = arith.index_cast %c2_i32 : i32 to index
    %c0_31 = arith.constant 0 : index
    %c0_32 = arith.constant 0 : index
    %89 = vector.load %arg10[%88, %c0_31, %c0_32] : memref<8x8x384xf32, #tpu.memory_space<vmem>>, vector<1x8x384xf32>
    %90 = vector.shape_cast %89 : vector<1x8x384xf32> to vector<8x384xf32>
    %91 = vector.extract_strided_slice %90 {offsets = [0, 0], sizes = [8, 128], strides = [1, 1]} : vector<8x384xf32> to vector<8x128xf32>
    %92 = vector.extract_strided_slice %87 {offsets = [0, 0], sizes = [8, 128], strides = [1, 1]} : vector<8x384xf32> to vector<8x128xf32>
    %93 = arith.addf %91, %92 : vector<8x128xf32>
    %94 = arith.negf %93 : vector<8x128xf32>
    %95 = math.exp %94 : vector<8x128xf32>
    %cst_33 = arith.constant 1.000000e+00 : f32
    %96 = vector.broadcast %cst_33 : f32 to vector<8x128xf32>
    %97 = arith.addf %96, %95 : vector<8x128xf32>
    %98 = arith.divf %96, %97 : vector<8x128xf32>
    %99 = vector.extract_strided_slice %90 {offsets = [0, 128], sizes = [8, 128], strides = [1, 1]} : vector<8x384xf32> to vector<8x128xf32>
    %100 = vector.extract_strided_slice %87 {offsets = [0, 128], sizes = [8, 128], strides = [1, 1]} : vector<8x384xf32> to vector<8x128xf32>
    %101 = arith.addf %99, %100 : vector<8x128xf32>
    %102 = arith.negf %101 : vector<8x128xf32>
    %103 = math.exp %102 : vector<8x128xf32>
    %cst_34 = arith.constant 1.000000e+00 : f32
    %104 = vector.broadcast %cst_34 : f32 to vector<8x128xf32>
    %105 = arith.addf %104, %103 : vector<8x128xf32>
    %106 = arith.divf %104, %105 : vector<8x128xf32>
    %107 = vector.extract_strided_slice %90 {offsets = [0, 256], sizes = [8, 128], strides = [1, 1]} : vector<8x384xf32> to vector<8x128xf32>
    %108 = vector.extract_strided_slice %87 {offsets = [0, 256], sizes = [8, 128], strides = [1, 1]} : vector<8x384xf32> to vector<8x128xf32>
    %109 = vector.broadcast %10 : vector<1x128xf32> to vector<8x128xf32>
    %110 = arith.addf %108, %109 : vector<8x128xf32>
    %111 = arith.mulf %98, %110 : vector<8x128xf32>
    %112 = arith.addf %107, %111 : vector<8x128xf32>
    %113 = math.tanh %112 : vector<8x128xf32>
    %cst_35 = arith.constant 1.000000e+00 : f32
    %114 = vector.broadcast %cst_35 : f32 to vector<8x128xf32>
    %115 = arith.subf %114, %106 : vector<8x128xf32>
    %116 = arith.mulf %115, %113 : vector<8x128xf32>
    %117 = arith.mulf %106, %81 : vector<8x128xf32>
    %118 = arith.addf %116, %117 : vector<8x128xf32>
    %119 = arith.index_cast %c2_i32 : i32 to index
    %c0_36 = arith.constant 0 : index
    %c0_37 = arith.constant 0 : index
    %120 = vector.load %arg8[%119, %c0_36, %c0_37] : memref<8x8x128xf32, #tpu.memory_space<vmem>>, vector<1x8x128xf32>
    %121 = vector.shape_cast %120 : vector<1x8x128xf32> to vector<8x128xf32>
    %122 = vector.shape_cast %118 : vector<8x128xf32> to vector<1x8x128xf32>
    tpu.vector_store %arg8[%119, %c0_36, %c0_37], %122 {strides = array<i32>} : memref<8x8x128xf32, #tpu.memory_space<vmem>>, vector<1x8x128xf32>,
    %c3_i32 = arith.constant 3 : i32
    %123 = arith.truncf %118 : vector<8x128xf32> to vector<8x128xbf16>
    %cst_38 = arith.constant dense<0.000000e+00> : vector<8x384xf32>
    %124 = tpu.matmul %123, %9, %cst_38 {dimension_numbers = #tpu.dot_dimension_numbers<[1], [0], [0], [1], [0, 0, 1, 1], [], []>} : vector<8x128xbf16>, vector<128x384xbf16>, vector<8x384xf32> -> vector<8x384xf32>
    %125 = arith.index_cast %c3_i32 : i32 to index
    %c0_39 = arith.constant 0 : index
    %c0_40 = arith.constant 0 : index
    %126 = vector.load %arg10[%125, %c0_39, %c0_40] : memref<8x8x384xf32, #tpu.memory_space<vmem>>, vector<1x8x384xf32>
    %127 = vector.shape_cast %126 : vector<1x8x384xf32> to vector<8x384xf32>
    %128 = vector.extract_strided_slice %127 {offsets = [0, 0], sizes = [8, 128], strides = [1, 1]} : vector<8x384xf32> to vector<8x128xf32>
    %129 = vector.extract_strided_slice %124 {offsets = [0, 0], sizes = [8, 128], strides = [1, 1]} : vector<8x384xf32> to vector<8x128xf32>
    %130 = arith.addf %128, %129 : vector<8x128xf32>
    %131 = arith.negf %130 : vector<8x128xf32>
    %132 = math.exp %131 : vector<8x128xf32>
    %cst_41 = arith.constant 1.000000e+00 : f32
    %133 = vector.broadcast %cst_41 : f32 to vector<8x128xf32>
    %134 = arith.addf %133, %132 : vector<8x128xf32>
    %135 = arith.divf %133, %134 : vector<8x128xf32>
    %136 = vector.extract_strided_slice %127 {offsets = [0, 128], sizes = [8, 128], strides = [1, 1]} : vector<8x384xf32> to vector<8x128xf32>
    %137 = vector.extract_strided_slice %124 {offsets = [0, 128], sizes = [8, 128], strides = [1, 1]} : vector<8x384xf32> to vector<8x128xf32>
    %138 = arith.addf %136, %137 : vector<8x128xf32>
    %139 = arith.negf %138 : vector<8x128xf32>
    %140 = math.exp %139 : vector<8x128xf32>
    %cst_42 = arith.constant 1.000000e+00 : f32
    %141 = vector.broadcast %cst_42 : f32 to vector<8x128xf32>
    %142 = arith.addf %141, %140 : vector<8x128xf32>
    %143 = arith.divf %141, %142 : vector<8x128xf32>
    %144 = vector.extract_strided_slice %127 {offsets = [0, 256], sizes = [8, 128], strides = [1, 1]} : vector<8x384xf32> to vector<8x128xf32>
    %145 = vector.extract_strided_slice %124 {offsets = [0, 256], sizes = [8, 128], strides = [1, 1]} : vector<8x384xf32> to vector<8x128xf32>
    %146 = vector.broadcast %10 : vector<1x128xf32> to vector<8x128xf32>
    %147 = arith.addf %145, %146 : vector<8x128xf32>
    %148 = arith.mulf %135, %147 : vector<8x128xf32>
    %149 = arith.addf %144, %148 : vector<8x128xf32>
    %150 = math.tanh %149 : vector<8x128xf32>
    %cst_43 = arith.constant 1.000000e+00 : f32
    %151 = vector.broadcast %cst_43 : f32 to vector<8x128xf32>
    %152 = arith.subf %151, %143 : vector<8x128xf32>
    %153 = arith.mulf %152, %150 : vector<8x128xf32>
    %154 = arith.mulf %143, %118 : vector<8x128xf32>
    %155 = arith.addf %153, %154 : vector<8x128xf32>
    %156 = arith.index_cast %c3_i32 : i32 to index
    %c0_44 = arith.constant 0 : index
    %c0_45 = arith.constant 0 : index
    %157 = vector.load %arg8[%156, %c0_44, %c0_45] : memref<8x8x128xf32, #tpu.memory_space<vmem>>, vector<1x8x128xf32>
    %158 = vector.shape_cast %157 : vector<1x8x128xf32> to vector<8x128xf32>
    %159 = vector.shape_cast %155 : vector<8x128xf32> to vector<1x8x128xf32>
    tpu.vector_store %arg8[%156, %c0_44, %c0_45], %159 {strides = array<i32>} : memref<8x8x128xf32, #tpu.memory_space<vmem>>, vector<1x8x128xf32>,
    %c4_i32 = arith.constant 4 : i32
    %160 = arith.truncf %155 : vector<8x128xf32> to vector<8x128xbf16>
    %cst_46 = arith.constant dense<0.000000e+00> : vector<8x384xf32>
    %161 = tpu.matmul %160, %9, %cst_46 {dimension_numbers = #tpu.dot_dimension_numbers<[1], [0], [0], [1], [0, 0, 1, 1], [], []>} : vector<8x128xbf16>, vector<128x384xbf16>, vector<8x384xf32> -> vector<8x384xf32>
    %162 = arith.index_cast %c4_i32 : i32 to index
    %c0_47 = arith.constant 0 : index
    %c0_48 = arith.constant 0 : index
    %163 = vector.load %arg10[%162, %c0_47, %c0_48] : memref<8x8x384xf32, #tpu.memory_space<vmem>>, vector<1x8x384xf32>
    %164 = vector.shape_cast %163 : vector<1x8x384xf32> to vector<8x384xf32>
    %165 = vector.extract_strided_slice %164 {offsets = [0, 0], sizes = [8, 128], strides = [1, 1]} : vector<8x384xf32> to vector<8x128xf32>
    %166 = vector.extract_strided_slice %161 {offsets = [0, 0], sizes = [8, 128], strides = [1, 1]} : vector<8x384xf32> to vector<8x128xf32>
    %167 = arith.addf %165, %166 : vector<8x128xf32>
    %168 = arith.negf %167 : vector<8x128xf32>
    %169 = math.exp %168 : vector<8x128xf32>
    %cst_49 = arith.constant 1.000000e+00 : f32
    %170 = vector.broadcast %cst_49 : f32 to vector<8x128xf32>
    %171 = arith.addf %170, %169 : vector<8x128xf32>
    %172 = arith.divf %170, %171 : vector<8x128xf32>
    %173 = vector.extract_strided_slice %164 {offsets = [0, 128], sizes = [8, 128], strides = [1, 1]} : vector<8x384xf32> to vector<8x128xf32>
    %174 = vector.extract_strided_slice %161 {offsets = [0, 128], sizes = [8, 128], strides = [1, 1]} : vector<8x384xf32> to vector<8x128xf32>
    %175 = arith.addf %173, %174 : vector<8x128xf32>
    %176 = arith.negf %175 : vector<8x128xf32>
    %177 = math.exp %176 : vector<8x128xf32>
    %cst_50 = arith.constant 1.000000e+00 : f32
    %178 = vector.broadcast %cst_50 : f32 to vector<8x128xf32>
    %179 = arith.addf %178, %177 : vector<8x128xf32>
    %180 = arith.divf %178, %179 : vector<8x128xf32>
    %181 = vector.extract_strided_slice %164 {offsets = [0, 256], sizes = [8, 128], strides = [1, 1]} : vector<8x384xf32> to vector<8x128xf32>
    %182 = vector.extract_strided_slice %161 {offsets = [0, 256], sizes = [8, 128], strides = [1, 1]} : vector<8x384xf32> to vector<8x128xf32>
    %183 = vector.broadcast %10 : vector<1x128xf32> to vector<8x128xf32>
    %184 = arith.addf %182, %183 : vector<8x128xf32>
    %185 = arith.mulf %172, %184 : vector<8x128xf32>
    %186 = arith.addf %181, %185 : vector<8x128xf32>
    %187 = math.tanh %186 : vector<8x128xf32>
    %cst_51 = arith.constant 1.000000e+00 : f32
    %188 = vector.broadcast %cst_51 : f32 to vector<8x128xf32>
    %189 = arith.subf %188, %180 : vector<8x128xf32>
    %190 = arith.mulf %189, %187 : vector<8x128xf32>
    %191 = arith.mulf %180, %155 : vector<8x128xf32>
    %192 = arith.addf %190, %191 : vector<8x128xf32>
    %193 = arith.index_cast %c4_i32 : i32 to index
    %c0_52 = arith.constant 0 : index
    %c0_53 = arith.constant 0 : index
    %194 = vector.load %arg8[%193, %c0_52, %c0_53] : memref<8x8x128xf32, #tpu.memory_space<vmem>>, vector<1x8x128xf32>
    %195 = vector.shape_cast %194 : vector<1x8x128xf32> to vector<8x128xf32>
    %196 = vector.shape_cast %192 : vector<8x128xf32> to vector<1x8x128xf32>
    tpu.vector_store %arg8[%193, %c0_52, %c0_53], %196 {strides = array<i32>} : memref<8x8x128xf32, #tpu.memory_space<vmem>>, vector<1x8x128xf32>,
    %c5_i32 = arith.constant 5 : i32
    %197 = arith.truncf %192 : vector<8x128xf32> to vector<8x128xbf16>
    %cst_54 = arith.constant dense<0.000000e+00> : vector<8x384xf32>
    %198 = tpu.matmul %197, %9, %cst_54 {dimension_numbers = #tpu.dot_dimension_numbers<[1], [0], [0], [1], [0, 0, 1, 1], [], []>} : vector<8x128xbf16>, vector<128x384xbf16>, vector<8x384xf32> -> vector<8x384xf32>
    %199 = arith.index_cast %c5_i32 : i32 to index
    %c0_55 = arith.constant 0 : index
    %c0_56 = arith.constant 0 : index
    %200 = vector.load %arg10[%199, %c0_55, %c0_56] : memref<8x8x384xf32, #tpu.memory_space<vmem>>, vector<1x8x384xf32>
    %201 = vector.shape_cast %200 : vector<1x8x384xf32> to vector<8x384xf32>
    %202 = vector.extract_strided_slice %201 {offsets = [0, 0], sizes = [8, 128], strides = [1, 1]} : vector<8x384xf32> to vector<8x128xf32>
    %203 = vector.extract_strided_slice %198 {offsets = [0, 0], sizes = [8, 128], strides = [1, 1]} : vector<8x384xf32> to vector<8x128xf32>
    %204 = arith.addf %202, %203 : vector<8x128xf32>
    %205 = arith.negf %204 : vector<8x128xf32>
    %206 = math.exp %205 : vector<8x128xf32>
    %cst_57 = arith.constant 1.000000e+00 : f32
    %207 = vector.broadcast %cst_57 : f32 to vector<8x128xf32>
    %208 = arith.addf %207, %206 : vector<8x128xf32>
    %209 = arith.divf %207, %208 : vector<8x128xf32>
    %210 = vector.extract_strided_slice %201 {offsets = [0, 128], sizes = [8, 128], strides = [1, 1]} : vector<8x384xf32> to vector<8x128xf32>
    %211 = vector.extract_strided_slice %198 {offsets = [0, 128], sizes = [8, 128], strides = [1, 1]} : vector<8x384xf32> to vector<8x128xf32>
    %212 = arith.addf %210, %211 : vector<8x128xf32>
    %213 = arith.negf %212 : vector<8x128xf32>
    %214 = math.exp %213 : vector<8x128xf32>
    %cst_58 = arith.constant 1.000000e+00 : f32
    %215 = vector.broadcast %cst_58 : f32 to vector<8x128xf32>
    %216 = arith.addf %215, %214 : vector<8x128xf32>
    %217 = arith.divf %215, %216 : vector<8x128xf32>
    %218 = vector.extract_strided_slice %201 {offsets = [0, 256], sizes = [8, 128], strides = [1, 1]} : vector<8x384xf32> to vector<8x128xf32>
    %219 = vector.extract_strided_slice %198 {offsets = [0, 256], sizes = [8, 128], strides = [1, 1]} : vector<8x384xf32> to vector<8x128xf32>
    %220 = vector.broadcast %10 : vector<1x128xf32> to vector<8x128xf32>
    %221 = arith.addf %219, %220 : vector<8x128xf32>
    %222 = arith.mulf %209, %221 : vector<8x128xf32>
    %223 = arith.addf %218, %222 : vector<8x128xf32>
    %224 = math.tanh %223 : vector<8x128xf32>
    %cst_59 = arith.constant 1.000000e+00 : f32
    %225 = vector.broadcast %cst_59 : f32 to vector<8x128xf32>
    %226 = arith.subf %225, %217 : vector<8x128xf32>
    %227 = arith.mulf %226, %224 : vector<8x128xf32>
    %228 = arith.mulf %217, %192 : vector<8x128xf32>
    %229 = arith.addf %227, %228 : vector<8x128xf32>
    %230 = arith.index_cast %c5_i32 : i32 to index
    %c0_60 = arith.constant 0 : index
    %c0_61 = arith.constant 0 : index
    %231 = vector.load %arg8[%230, %c0_60, %c0_61] : memref<8x8x128xf32, #tpu.memory_space<vmem>>, vector<1x8x128xf32>
    %232 = vector.shape_cast %231 : vector<1x8x128xf32> to vector<8x128xf32>
    %233 = vector.shape_cast %229 : vector<8x128xf32> to vector<1x8x128xf32>
    tpu.vector_store %arg8[%230, %c0_60, %c0_61], %233 {strides = array<i32>} : memref<8x8x128xf32, #tpu.memory_space<vmem>>, vector<1x8x128xf32>,
    %c6_i32 = arith.constant 6 : i32
    %234 = arith.truncf %229 : vector<8x128xf32> to vector<8x128xbf16>
    %cst_62 = arith.constant dense<0.000000e+00> : vector<8x384xf32>
    %235 = tpu.matmul %234, %9, %cst_62 {dimension_numbers = #tpu.dot_dimension_numbers<[1], [0], [0], [1], [0, 0, 1, 1], [], []>} : vector<8x128xbf16>, vector<128x384xbf16>, vector<8x384xf32> -> vector<8x384xf32>
    %236 = arith.index_cast %c6_i32 : i32 to index
    %c0_63 = arith.constant 0 : index
    %c0_64 = arith.constant 0 : index
    %237 = vector.load %arg10[%236, %c0_63, %c0_64] : memref<8x8x384xf32, #tpu.memory_space<vmem>>, vector<1x8x384xf32>
    %238 = vector.shape_cast %237 : vector<1x8x384xf32> to vector<8x384xf32>
    %239 = vector.extract_strided_slice %238 {offsets = [0, 0], sizes = [8, 128], strides = [1, 1]} : vector<8x384xf32> to vector<8x128xf32>
    %240 = vector.extract_strided_slice %235 {offsets = [0, 0], sizes = [8, 128], strides = [1, 1]} : vector<8x384xf32> to vector<8x128xf32>
    %241 = arith.addf %239, %240 : vector<8x128xf32>
    %242 = arith.negf %241 : vector<8x128xf32>
    %243 = math.exp %242 : vector<8x128xf32>
    %cst_65 = arith.constant 1.000000e+00 : f32
    %244 = vector.broadcast %cst_65 : f32 to vector<8x128xf32>
    %245 = arith.addf %244, %243 : vector<8x128xf32>
    %246 = arith.divf %244, %245 : vector<8x128xf32>
    %247 = vector.extract_strided_slice %238 {offsets = [0, 128], sizes = [8, 128], strides = [1, 1]} : vector<8x384xf32> to vector<8x128xf32>
    %248 = vector.extract_strided_slice %235 {offsets = [0, 128], sizes = [8, 128], strides = [1, 1]} : vector<8x384xf32> to vector<8x128xf32>
    %249 = arith.addf %247, %248 : vector<8x128xf32>
    %250 = arith.negf %249 : vector<8x128xf32>
    %251 = math.exp %250 : vector<8x128xf32>
    %cst_66 = arith.constant 1.000000e+00 : f32
    %252 = vector.broadcast %cst_66 : f32 to vector<8x128xf32>
    %253 = arith.addf %252, %251 : vector<8x128xf32>
    %254 = arith.divf %252, %253 : vector<8x128xf32>
    %255 = vector.extract_strided_slice %238 {offsets = [0, 256], sizes = [8, 128], strides = [1, 1]} : vector<8x384xf32> to vector<8x128xf32>
    %256 = vector.extract_strided_slice %235 {offsets = [0, 256], sizes = [8, 128], strides = [1, 1]} : vector<8x384xf32> to vector<8x128xf32>
    %257 = vector.broadcast %10 : vector<1x128xf32> to vector<8x128xf32>
    %258 = arith.addf %256, %257 : vector<8x128xf32>
    %259 = arith.mulf %246, %258 : vector<8x128xf32>
    %260 = arith.addf %255, %259 : vector<8x128xf32>
    %261 = math.tanh %260 : vector<8x128xf32>
    %cst_67 = arith.constant 1.000000e+00 : f32
    %262 = vector.broadcast %cst_67 : f32 to vector<8x128xf32>
    %263 = arith.subf %262, %254 : vector<8x128xf32>
    %264 = arith.mulf %263, %261 : vector<8x128xf32>
    %265 = arith.mulf %254, %229 : vector<8x128xf32>
    %266 = arith.addf %264, %265 : vector<8x128xf32>
    %267 = arith.index_cast %c6_i32 : i32 to index
    %c0_68 = arith.constant 0 : index
    %c0_69 = arith.constant 0 : index
    %268 = vector.load %arg8[%267, %c0_68, %c0_69] : memref<8x8x128xf32, #tpu.memory_space<vmem>>, vector<1x8x128xf32>
    %269 = vector.shape_cast %268 : vector<1x8x128xf32> to vector<8x128xf32>
    %270 = vector.shape_cast %266 : vector<8x128xf32> to vector<1x8x128xf32>
    tpu.vector_store %arg8[%267, %c0_68, %c0_69], %270 {strides = array<i32>} : memref<8x8x128xf32, #tpu.memory_space<vmem>>, vector<1x8x128xf32>,
    %c7_i32 = arith.constant 7 : i32
    %271 = arith.truncf %266 : vector<8x128xf32> to vector<8x128xbf16>
    %cst_70 = arith.constant dense<0.000000e+00> : vector<8x384xf32>
    %272 = tpu.matmul %271, %9, %cst_70 {dimension_numbers = #tpu.dot_dimension_numbers<[1], [0], [0], [1], [0, 0, 1, 1], [], []>} : vector<8x128xbf16>, vector<128x384xbf16>, vector<8x384xf32> -> vector<8x384xf32>
    %273 = arith.index_cast %c7_i32 : i32 to index
    %c0_71 = arith.constant 0 : index
    %c0_72 = arith.constant 0 : index
    %274 = vector.load %arg10[%273, %c0_71, %c0_72] : memref<8x8x384xf32, #tpu.memory_space<vmem>>, vector<1x8x384xf32>
    %275 = vector.shape_cast %274 : vector<1x8x384xf32> to vector<8x384xf32>
    %276 = vector.extract_strided_slice %275 {offsets = [0, 0], sizes = [8, 128], strides = [1, 1]} : vector<8x384xf32> to vector<8x128xf32>
    %277 = vector.extract_strided_slice %272 {offsets = [0, 0], sizes = [8, 128], strides = [1, 1]} : vector<8x384xf32> to vector<8x128xf32>
    %278 = arith.addf %276, %277 : vector<8x128xf32>
    %279 = arith.negf %278 : vector<8x128xf32>
    %280 = math.exp %279 : vector<8x128xf32>
    %cst_73 = arith.constant 1.000000e+00 : f32
    %281 = vector.broadcast %cst_73 : f32 to vector<8x128xf32>
    %282 = arith.addf %281, %280 : vector<8x128xf32>
    %283 = arith.divf %281, %282 : vector<8x128xf32>
    %284 = vector.extract_strided_slice %275 {offsets = [0, 128], sizes = [8, 128], strides = [1, 1]} : vector<8x384xf32> to vector<8x128xf32>
    %285 = vector.extract_strided_slice %272 {offsets = [0, 128], sizes = [8, 128], strides = [1, 1]} : vector<8x384xf32> to vector<8x128xf32>
    %286 = arith.addf %284, %285 : vector<8x128xf32>
    %287 = arith.negf %286 : vector<8x128xf32>
    %288 = math.exp %287 : vector<8x128xf32>
    %cst_74 = arith.constant 1.000000e+00 : f32
    %289 = vector.broadcast %cst_74 : f32 to vector<8x128xf32>
    %290 = arith.addf %289, %288 : vector<8x128xf32>
    %291 = arith.divf %289, %290 : vector<8x128xf32>
    %292 = vector.extract_strided_slice %275 {offsets = [0, 256], sizes = [8, 128], strides = [1, 1]} : vector<8x384xf32> to vector<8x128xf32>
    %293 = vector.extract_strided_slice %272 {offsets = [0, 256], sizes = [8, 128], strides = [1, 1]} : vector<8x384xf32> to vector<8x128xf32>
    %294 = vector.broadcast %10 : vector<1x128xf32> to vector<8x128xf32>
    %295 = arith.addf %293, %294 : vector<8x128xf32>
    %296 = arith.mulf %283, %295 : vector<8x128xf32>
    %297 = arith.addf %292, %296 : vector<8x128xf32>
    %298 = math.tanh %297 : vector<8x128xf32>
    %cst_75 = arith.constant 1.000000e+00 : f32
    %299 = vector.broadcast %cst_75 : f32 to vector<8x128xf32>
    %300 = arith.subf %299, %291 : vector<8x128xf32>
    %301 = arith.mulf %300, %298 : vector<8x128xf32>
    %302 = arith.mulf %291, %266 : vector<8x128xf32>
    %303 = arith.addf %301, %302 : vector<8x128xf32>
    %304 = arith.index_cast %c7_i32 : i32 to index
    %c0_76 = arith.constant 0 : index
    %c0_77 = arith.constant 0 : index
    %305 = vector.load %arg8[%304, %c0_76, %c0_77] : memref<8x8x128xf32, #tpu.memory_space<vmem>>, vector<1x8x128xf32>
    %306 = vector.shape_cast %305 : vector<1x8x128xf32> to vector<8x128xf32>
    %307 = vector.shape_cast %303 : vector<8x128xf32> to vector<1x8x128xf32>
    tpu.vector_store %arg8[%304, %c0_76, %c0_77], %307 {strides = array<i32>} : memref<8x8x128xf32, #tpu.memory_space<vmem>>, vector<1x8x128xf32>,
    %c8_i32 = arith.constant 8 : i32
    %c0_78 = arith.constant 0 : index
    %c0_79 = arith.constant 0 : index
    %308 = vector.load %arg6[%c0_78, %c0_79] : memref<128x128xbf16, #tpu.memory_space<vmem>>, vector<128x128xbf16>
    %c0_80 = arith.constant 0 : index
    %c0_81 = arith.constant 0 : index
    %c0_82 = arith.constant 0 : index
    %309 = vector.load %arg8[%c0_80, %c0_81, %c0_82] : memref<8x8x128xf32, #tpu.memory_space<vmem>>, vector<8x8x128xf32>
    %310 = vector.shape_cast %309 : vector<8x8x128xf32> to vector<64x128xf32>
    %311 = arith.truncf %310 : vector<64x128xf32> to vector<64x128xbf16>
    %cst_83 = arith.constant dense<0.000000e+00> : vector<64x128xf32>
    %312 = tpu.matmul %311, %308, %cst_83 {dimension_numbers = #tpu.dot_dimension_numbers<[1], [0], [0], [1], [0, 0, 1, 1], [], []>} : vector<64x128xbf16>, vector<128x128xbf16>, vector<64x128xf32> -> vector<64x128xf32>
    %c0_84 = arith.constant 0 : index
    %c0_85 = arith.constant 0 : index
    %313 = vector.load %arg7[%c0_84, %c0_85] : memref<1x128xf32, #tpu.memory_space<vmem>>, vector<1x128xf32>
    %314 = vector.broadcast %313 : vector<1x128xf32> to vector<64x128xf32>
    %315 = arith.addf %312, %314 : vector<64x128xf32>
    %316 = vector.shape_cast %315 : vector<64x128xf32> to vector<8x8x128xf32>
    %c0_86 = arith.constant 0 : index
    %c0_87 = arith.constant 0 : index
    %c0_88 = arith.constant 0 : index
    %317 = vector.load %arg9[%c0_86, %c0_87, %c0_88] : memref<8x8x128xf32, #tpu.memory_space<vmem>>, vector<8x8x128xf32>
    tpu.vector_store %arg9[%c0_86, %c0_87, %c0_88], %316 {strides = array<i32>} : memref<8x8x128xf32, #tpu.memory_space<vmem>>, vector<8x8x128xf32>,
    return
  }
  func.func @transform_0(%arg0: i32) -> (i32, i32, i32) {
    %c0_i32 = arith.constant 0 : i32
    %c0_i32_0 = arith.constant 0 : i32
    %c0_i32_1 = arith.constant 0 : i32
    %c0_i32_2 = arith.constant 0 : i32
    return %c0_i32, %c0_i32_0, %c0_i32_1 : i32, i32, i32
  }
  func.func @transform_1(%arg0: i32) -> (i32, i32) {
    %c0_i32 = arith.constant 0 : i32
    %c0_i32_0 = arith.constant 0 : i32
    %c0_i32_1 = arith.constant 0 : i32
    return %c0_i32, %c0_i32_0 : i32, i32
  }
  func.func @transform_2(%arg0: i32) -> (i32, i32) {
    %c0_i32 = arith.constant 0 : i32
    %c0_i32_0 = arith.constant 0 : i32
    %c0_i32_1 = arith.constant 0 : i32
    return %c0_i32, %c0_i32_0 : i32, i32
  }
  func.func @transform_3(%arg0: i32) -> (i32, i32) {
    %c0_i32 = arith.constant 0 : i32
    %c0_i32_0 = arith.constant 0 : i32
    %c0_i32_1 = arith.constant 0 : i32
    return %c0_i32, %c0_i32_0 : i32, i32
  }
  func.func @transform_4(%arg0: i32) -> (i32, i32) {
    %c0_i32 = arith.constant 0 : i32
    %c0_i32_0 = arith.constant 0 : i32
    %c0_i32_1 = arith.constant 0 : i32
    return %c0_i32, %c0_i32_0 : i32, i32
  }
  func.func @transform_5(%arg0: i32) -> (i32, i32) {
    %c0_i32 = arith.constant 0 : i32
    %c0_i32_0 = arith.constant 0 : i32
    %c0_i32_1 = arith.constant 0 : i32
    return %c0_i32, %c0_i32_0 : i32, i32
  }
  func.func @transform_6(%arg0: i32) -> (i32, i32) {
    %c0_i32 = arith.constant 0 : i32
    %c0_i32_0 = arith.constant 0 : i32
    %c0_i32_1 = arith.constant 0 : i32
    return %c0_i32, %c0_i32_0 : i32, i32
  }
  func.func @transform_7(%arg0: i32) -> (i32, i32, i32) {
    %c0_i32 = arith.constant 0 : i32
    %c0_i32_0 = arith.constant 0 : i32
    %c0_i32_1 = arith.constant 0 : i32
    %c0_i32_2 = arith.constant 0 : i32
    return %c0_i32, %c0_i32_0, %c0_i32_1 : i32, i32, i32
  }
  func.func @transform_8(%arg0: i32) -> (i32, i32, i32) {
    %c0_i32 = arith.constant 0 : i32
    %c0_i32_0 = arith.constant 0 : i32
    %c0_i32_1 = arith.constant 0 : i32
    %c0_i32_2 = arith.constant 0 : i32
    return %c0_i32, %c0_i32_0, %c0_i32_1 : i32, i32, i32
  }
}

module attributes {stable_mosaic.version = 11 : i64} {
  func.func @_decoder_kernel(%arg0: i32, %arg1: memref<4xi32, #tpu.memory_space<smem>>, %arg2: memref<8x8x128xbf16, #tpu.memory_space<vmem>>, %arg3: memref<8x8x128xbf16, #tpu.memory_space<vmem>>, %arg4: memref<4x8x8xf32, #tpu.memory_space<vmem>>, %arg5: memref<8x8xf32, #tpu.memory_space<vmem>>, %arg6: memref<8x128xf32, #tpu.memory_space<vmem>>, %arg7: memref<8x384xf32, #tpu.memory_space<vmem>>, %arg8: memref<128x384xbf16, #tpu.memory_space<vmem>>, %arg9: memref<1x384xf32, #tpu.memory_space<vmem>>, %arg10: memref<1x128xf32, #tpu.memory_space<vmem>>, %arg11: memref<128x128xbf16, #tpu.memory_space<vmem>>, %arg12: memref<1x128xf32, #tpu.memory_space<vmem>>, %arg13: memref<128x8xbf16, #tpu.memory_space<vmem>>, %arg14: memref<128x8xbf16, #tpu.memory_space<vmem>>, %arg15: memref<1x8xf32, #tpu.memory_space<vmem>>, %arg16: memref<4x8x8xf32, #tpu.memory_space<vmem>>, %arg17: memref<4x8x8xf32, #tpu.memory_space<vmem>>) attributes {dimension_semantics = [#tpu.dimension_semantics<arbitrary>], iteration_bounds = array<i64: 1>, scalar_prefetch = 1 : i64, scratch_operands = 0 : i64, tpu.core_type = #tpu.core_type<tc>, window_params = [{pipeline_mode = #tpu.pipeline_mode<synchronous>, transform_indices = @transform_0, window_bounds = array<i64: 8, 8, 128>}, {pipeline_mode = #tpu.pipeline_mode<synchronous>, transform_indices = @transform_1, window_bounds = array<i64: 8, 8, 128>}, {pipeline_mode = #tpu.pipeline_mode<synchronous>, transform_indices = @transform_2, window_bounds = array<i64: 4, 8, 8>}, {pipeline_mode = #tpu.pipeline_mode<synchronous>, transform_indices = @transform_3, window_bounds = array<i64: 8, 8>}, {pipeline_mode = #tpu.pipeline_mode<synchronous>, transform_indices = @transform_4, window_bounds = array<i64: 8, 128>}, {pipeline_mode = #tpu.pipeline_mode<synchronous>, transform_indices = @transform_5, window_bounds = array<i64: 8, 384>}, {pipeline_mode = #tpu.pipeline_mode<synchronous>, transform_indices = @transform_6, window_bounds = array<i64: 128, 384>}, {pipeline_mode = #tpu.pipeline_mode<synchronous>, transform_indices = @transform_7, window_bounds = array<i64: 1, 384>}, {pipeline_mode = #tpu.pipeline_mode<synchronous>, transform_indices = @transform_8, window_bounds = array<i64: 1, 128>}, {pipeline_mode = #tpu.pipeline_mode<synchronous>, transform_indices = @transform_9, window_bounds = array<i64: 128, 128>}, {pipeline_mode = #tpu.pipeline_mode<synchronous>, transform_indices = @transform_10, window_bounds = array<i64: 1, 128>}, {pipeline_mode = #tpu.pipeline_mode<synchronous>, transform_indices = @transform_11, window_bounds = array<i64: 128, 8>}, {pipeline_mode = #tpu.pipeline_mode<synchronous>, transform_indices = @transform_12, window_bounds = array<i64: 128, 8>}, {pipeline_mode = #tpu.pipeline_mode<synchronous>, transform_indices = @transform_13, window_bounds = array<i64: 1, 8>}, {pipeline_mode = #tpu.pipeline_mode<synchronous>, transform_indices = @transform_14, window_bounds = array<i64: 4, 8, 8>}, {pipeline_mode = #tpu.pipeline_mode<synchronous>, transform_indices = @transform_15, window_bounds = array<i64: 4, 8, 8>}]} {
    %c0 = arith.constant 0 : index
    %c0_0 = arith.constant 0 : index
    %c0_1 = arith.constant 0 : index
    %0 = vector.load %arg2[%c0, %c0_0, %c0_1] : memref<8x8x128xbf16, #tpu.memory_space<vmem>>, vector<8x8x128xbf16>
    %c0_2 = arith.constant 0 : index
    %c0_3 = arith.constant 0 : index
    %c0_4 = arith.constant 0 : index
    %1 = vector.load %arg3[%c0_2, %c0_3, %c0_4] : memref<8x8x128xbf16, #tpu.memory_space<vmem>>, vector<8x8x128xbf16>
    %c0_5 = arith.constant 0 : index
    %c0_6 = arith.constant 0 : index
    %2 = vector.load %arg7[%c0_5, %c0_6] : memref<8x384xf32, #tpu.memory_space<vmem>>, vector<8x384xf32>
    %c0_7 = arith.constant 0 : index
    %c0_8 = arith.constant 0 : index
    %3 = vector.load %arg8[%c0_7, %c0_8] : memref<128x384xbf16, #tpu.memory_space<vmem>>, vector<128x384xbf16>
    %c0_9 = arith.constant 0 : index
    %c0_10 = arith.constant 0 : index
    %4 = vector.load %arg9[%c0_9, %c0_10] : memref<1x384xf32, #tpu.memory_space<vmem>>, vector<1x384xf32>
    %c0_11 = arith.constant 0 : index
    %c0_12 = arith.constant 0 : index
    %5 = vector.load %arg10[%c0_11, %c0_12] : memref<1x128xf32, #tpu.memory_space<vmem>>, vector<1x128xf32>
    %c0_13 = arith.constant 0 : index
    %c0_14 = arith.constant 0 : index
    %6 = vector.load %arg11[%c0_13, %c0_14] : memref<128x128xbf16, #tpu.memory_space<vmem>>, vector<128x128xbf16>
    %c0_15 = arith.constant 0 : index
    %c0_16 = arith.constant 0 : index
    %7 = vector.load %arg12[%c0_15, %c0_16] : memref<1x128xf32, #tpu.memory_space<vmem>>, vector<1x128xf32>
    %c0_17 = arith.constant 0 : index
    %c0_18 = arith.constant 0 : index
    %8 = vector.load %arg13[%c0_17, %c0_18] : memref<128x8xbf16, #tpu.memory_space<vmem>>, vector<128x8xbf16>
    %c0_19 = arith.constant 0 : index
    %c0_20 = arith.constant 0 : index
    %9 = vector.load %arg14[%c0_19, %c0_20] : memref<128x8xbf16, #tpu.memory_space<vmem>>, vector<128x8xbf16>
    %c0_21 = arith.constant 0 : index
    %c0_22 = arith.constant 0 : index
    %10 = vector.load %arg15[%c0_21, %c0_22] : memref<1x8xf32, #tpu.memory_space<vmem>>, vector<1x8xf32>
    %c0_23 = arith.constant 0 : index
    %c0_24 = arith.constant 0 : index
    %11 = vector.load %arg6[%c0_23, %c0_24] : memref<8x128xf32, #tpu.memory_space<vmem>>, vector<8x128xf32>
    %c0_25 = arith.constant 0 : index
    %c0_26 = arith.constant 0 : index
    %12 = vector.load %arg5[%c0_25, %c0_26] : memref<8x8xf32, #tpu.memory_space<vmem>>, vector<8x8xf32>
    %c0_i32 = arith.constant 0 : i32
    %cst = arith.constant dense<0.000000e+00> : vector<8x384xf32>
    %13 = tpu.matmul %12, %2, %cst {dimension_numbers = #tpu.dot_dimension_numbers<[1], [0], [0], [1], [0, 0, 1, 1], [], []>} : vector<8x8xf32>, vector<8x384xf32>, vector<8x384xf32> -> vector<8x384xf32>
    %14 = vector.broadcast %4 : vector<1x384xf32> to vector<8x384xf32>
    %15 = arith.addf %13, %14 : vector<8x384xf32>
    %16 = arith.truncf %11 : vector<8x128xf32> to vector<8x128xbf16>
    %cst_27 = arith.constant dense<0.000000e+00> : vector<8x384xf32>
    %17 = tpu.matmul %16, %3, %cst_27 {dimension_numbers = #tpu.dot_dimension_numbers<[1], [0], [0], [1], [0, 0, 1, 1], [], []>} : vector<8x128xbf16>, vector<128x384xbf16>, vector<8x384xf32> -> vector<8x384xf32>
    %18 = vector.extract_strided_slice %15 {offsets = [0, 0], sizes = [8, 128], strides = [1, 1]} : vector<8x384xf32> to vector<8x128xf32>
    %19 = vector.extract_strided_slice %17 {offsets = [0, 0], sizes = [8, 128], strides = [1, 1]} : vector<8x384xf32> to vector<8x128xf32>
    %20 = arith.addf %18, %19 : vector<8x128xf32>
    %21 = arith.negf %20 : vector<8x128xf32>
    %22 = math.exp %21 : vector<8x128xf32>
    %cst_28 = arith.constant 1.000000e+00 : f32
    %23 = vector.broadcast %cst_28 : f32 to vector<8x128xf32>
    %24 = arith.addf %23, %22 : vector<8x128xf32>
    %25 = arith.divf %23, %24 : vector<8x128xf32>
    %26 = vector.extract_strided_slice %15 {offsets = [0, 128], sizes = [8, 128], strides = [1, 1]} : vector<8x384xf32> to vector<8x128xf32>
    %27 = vector.extract_strided_slice %17 {offsets = [0, 128], sizes = [8, 128], strides = [1, 1]} : vector<8x384xf32> to vector<8x128xf32>
    %28 = arith.addf %26, %27 : vector<8x128xf32>
    %29 = arith.negf %28 : vector<8x128xf32>
    %30 = math.exp %29 : vector<8x128xf32>
    %cst_29 = arith.constant 1.000000e+00 : f32
    %31 = vector.broadcast %cst_29 : f32 to vector<8x128xf32>
    %32 = arith.addf %31, %30 : vector<8x128xf32>
    %33 = arith.divf %31, %32 : vector<8x128xf32>
    %34 = vector.extract_strided_slice %15 {offsets = [0, 256], sizes = [8, 128], strides = [1, 1]} : vector<8x384xf32> to vector<8x128xf32>
    %35 = vector.extract_strided_slice %17 {offsets = [0, 256], sizes = [8, 128], strides = [1, 1]} : vector<8x384xf32> to vector<8x128xf32>
    %36 = vector.broadcast %5 : vector<1x128xf32> to vector<8x128xf32>
    %37 = arith.addf %35, %36 : vector<8x128xf32>
    %38 = arith.mulf %25, %37 : vector<8x128xf32>
    %39 = arith.addf %34, %38 : vector<8x128xf32>
    %40 = math.tanh %39 : vector<8x128xf32>
    %cst_30 = arith.constant 1.000000e+00 : f32
    %41 = vector.broadcast %cst_30 : f32 to vector<8x128xf32>
    %42 = arith.subf %41, %33 : vector<8x128xf32>
    %43 = arith.mulf %42, %40 : vector<8x128xf32>
    %44 = arith.mulf %33, %11 : vector<8x128xf32>
    %45 = arith.addf %43, %44 : vector<8x128xf32>
    %46 = arith.truncf %45 : vector<8x128xf32> to vector<8x128xbf16>
    %cst_31 = arith.constant dense<0.000000e+00> : vector<8x128xf32>
    %47 = tpu.matmul %46, %6, %cst_31 {dimension_numbers = #tpu.dot_dimension_numbers<[1], [0], [0], [1], [0, 0, 1, 1], [], []>} : vector<8x128xbf16>, vector<128x128xbf16>, vector<8x128xf32> -> vector<8x128xf32>
    %48 = vector.broadcast %7 : vector<1x128xf32> to vector<8x128xf32>
    %49 = arith.addf %47, %48 : vector<8x128xf32>
    %50 = vector.shape_cast %49 : vector<8x128xf32> to vector<8x1x128xf32>
    %51 = arith.truncf %50 : vector<8x1x128xf32> to vector<8x1x128xbf16>
    "tpu.trace_start"() <{level = 10 : i32, message = "bqh,blh->bql"}> : () -> ()
    %cst_32 = arith.constant dense<0.000000e+00> : vector<8x1x8xf32>
    %52 = tpu.matmul %51, %0, %cst_32 {dimension_numbers = #tpu.dot_dimension_numbers<[2], [2], [1], [1], [0, 0, 0, 1, 1, 1], [0], [0]>} : vector<8x1x128xbf16>, vector<8x8x128xbf16>, vector<8x1x8xf32> -> vector<8x1x8xf32>
    "tpu.trace_stop"() : () -> ()
    %cst_33 = arith.constant dense<0xFF800000> : vector<8x1xf32>
    %53 = vector.multi_reduction <maximumf>, %52, %cst_33 [2] : vector<8x1x8xf32> to vector<8x1xf32>
    %54 = vector.shape_cast %53 : vector<8x1xf32> to vector<8x1x1xf32>
    %55 = vector.broadcast %54 : vector<8x1x1xf32> to vector<8x1x8xf32>
    %56 = arith.subf %52, %55 : vector<8x1x8xf32>
    %57 = math.exp %56 : vector<8x1x8xf32>
    %cst_34 = arith.constant dense<0.000000e+00> : vector<8x1xf32>
    %58 = vector.multi_reduction <add>, %57, %cst_34 [2] : vector<8x1x8xf32> to vector<8x1xf32>
    %59 = vector.shape_cast %58 : vector<8x1xf32> to vector<8x1x1xf32>
    %60 = tpu.reciprocal %59 {approx = true} : vector<8x1x1xf32> -> vector<8x1x1xf32>
    %61 = vector.broadcast %60 : vector<8x1x1xf32> to vector<8x1x8xf32>
    %62 = arith.mulf %57, %61 : vector<8x1x8xf32>
    %63 = vector.shape_cast %62 : vector<8x1x8xf32> to vector<8x8xf32>
    %64 = arith.index_cast %c0_i32 : i32 to index
    %c0_35 = arith.constant 0 : index
    %c0_36 = arith.constant 0 : index
    %65 = vector.load %arg17[%64, %c0_35, %c0_36] : memref<4x8x8xf32, #tpu.memory_space<vmem>>, vector<1x8x8xf32>
    %66 = vector.shape_cast %65 : vector<1x8x8xf32> to vector<8x8xf32>
    %67 = vector.shape_cast %63 : vector<8x8xf32> to vector<1x8x8xf32>
    tpu.vector_store %arg17[%64, %c0_35, %c0_36], %67 {strides = array<i32>} : memref<4x8x8xf32, #tpu.memory_space<vmem>>, vector<1x8x8xf32>,
    %68 = arith.truncf %62 : vector<8x1x8xf32> to vector<8x1x8xbf16>
    "tpu.trace_start"() <{level = 10 : i32, message = "bql,blh->bqh"}> : () -> ()
    %cst_37 = arith.constant dense<0.000000e+00> : vector<8x1x128xf32>
    %69 = tpu.matmul %68, %1, %cst_37 {dimension_numbers = #tpu.dot_dimension_numbers<[2], [1], [1], [2], [0, 0, 0, 1, 1, 2], [0], [0]>} : vector<8x1x8xbf16>, vector<8x8x128xbf16>, vector<8x1x128xf32> -> vector<8x1x128xf32>
    "tpu.trace_stop"() : () -> ()
    %70 = vector.shape_cast %69 : vector<8x1x128xf32> to vector<8x128xf32>
    %71 = arith.truncf %70 : vector<8x128xf32> to vector<8x128xbf16>
    %cst_38 = arith.constant dense<0.000000e+00> : vector<8x8xf32>
    %72 = tpu.matmul %71, %8, %cst_38 {dimension_numbers = #tpu.dot_dimension_numbers<[1], [0], [0], [1], [0, 0, 1, 1], [], []>} : vector<8x128xbf16>, vector<128x8xbf16>, vector<8x8xf32> -> vector<8x8xf32>
    %73 = arith.truncf %45 : vector<8x128xf32> to vector<8x128xbf16>
    %cst_39 = arith.constant dense<0.000000e+00> : vector<8x8xf32>
    %74 = tpu.matmul %73, %9, %cst_39 {dimension_numbers = #tpu.dot_dimension_numbers<[1], [0], [0], [1], [0, 0, 1, 1], [], []>} : vector<8x128xbf16>, vector<128x8xbf16>, vector<8x8xf32> -> vector<8x8xf32>
    %75 = arith.addf %72, %74 : vector<8x8xf32>
    %76 = vector.broadcast %10 : vector<1x8xf32> to vector<8x8xf32>
    %77 = arith.addf %75, %76 : vector<8x8xf32>
    %78 = arith.index_cast %c0_i32 : i32 to index
    %c0_40 = arith.constant 0 : index
    %c0_41 = arith.constant 0 : index
    %79 = vector.load %arg16[%78, %c0_40, %c0_41] : memref<4x8x8xf32, #tpu.memory_space<vmem>>, vector<1x8x8xf32>
    %80 = vector.shape_cast %79 : vector<1x8x8xf32> to vector<8x8xf32>
    %81 = vector.shape_cast %77 : vector<8x8xf32> to vector<1x8x8xf32>
    tpu.vector_store %arg16[%78, %c0_40, %c0_41], %81 {strides = array<i32>} : memref<4x8x8xf32, #tpu.memory_space<vmem>>, vector<1x8x8xf32>,
    %82 = arith.index_cast %c0_i32 : i32 to index
    %83 = memref.load %arg1[%82] : memref<4xi32, #tpu.memory_space<smem>>
    %c0_i32_42 = arith.constant 0 : i32
    %84 = arith.cmpi sgt, %83, %c0_i32_42 : i32
    %85 = arith.extui %84 : i1 to i32
    %86 = arith.sitofp %85 : i32 to f32
    %87 = arith.index_cast %c0_i32 : i32 to index
    %c0_43 = arith.constant 0 : index
    %c0_44 = arith.constant 0 : index
    %88 = vector.load %arg4[%87, %c0_43, %c0_44] : memref<4x8x8xf32, #tpu.memory_space<vmem>>, vector<1x8x8xf32>
    %89 = vector.shape_cast %88 : vector<1x8x8xf32> to vector<8x8xf32>
    %90 = vector.broadcast %86 : f32 to vector<8x8xf32>
    %91 = arith.mulf %90, %89 : vector<8x8xf32>
    %cst_45 = arith.constant 1.000000e+00 : f32
    %92 = arith.subf %cst_45, %86 : f32
    %93 = vector.broadcast %92 : f32 to vector<8x8xf32>
    %94 = arith.mulf %93, %77 : vector<8x8xf32>
    %95 = arith.addf %91, %94 : vector<8x8xf32>
    %c1_i32 = arith.constant 1 : i32
    %cst_46 = arith.constant dense<0.000000e+00> : vector<8x384xf32>
    %96 = tpu.matmul %95, %2, %cst_46 {dimension_numbers = #tpu.dot_dimension_numbers<[1], [0], [0], [1], [0, 0, 1, 1], [], []>} : vector<8x8xf32>, vector<8x384xf32>, vector<8x384xf32> -> vector<8x384xf32>
    %97 = vector.broadcast %4 : vector<1x384xf32> to vector<8x384xf32>
    %98 = arith.addf %96, %97 : vector<8x384xf32>
    %99 = arith.truncf %45 : vector<8x128xf32> to vector<8x128xbf16>
    %cst_47 = arith.constant dense<0.000000e+00> : vector<8x384xf32>
    %100 = tpu.matmul %99, %3, %cst_47 {dimension_numbers = #tpu.dot_dimension_numbers<[1], [0], [0], [1], [0, 0, 1, 1], [], []>} : vector<8x128xbf16>, vector<128x384xbf16>, vector<8x384xf32> -> vector<8x384xf32>
    %101 = vector.extract_strided_slice %98 {offsets = [0, 0], sizes = [8, 128], strides = [1, 1]} : vector<8x384xf32> to vector<8x128xf32>
    %102 = vector.extract_strided_slice %100 {offsets = [0, 0], sizes = [8, 128], strides = [1, 1]} : vector<8x384xf32> to vector<8x128xf32>
    %103 = arith.addf %101, %102 : vector<8x128xf32>
    %104 = arith.negf %103 : vector<8x128xf32>
    %105 = math.exp %104 : vector<8x128xf32>
    %cst_48 = arith.constant 1.000000e+00 : f32
    %106 = vector.broadcast %cst_48 : f32 to vector<8x128xf32>
    %107 = arith.addf %106, %105 : vector<8x128xf32>
    %108 = arith.divf %106, %107 : vector<8x128xf32>
    %109 = vector.extract_strided_slice %98 {offsets = [0, 128], sizes = [8, 128], strides = [1, 1]} : vector<8x384xf32> to vector<8x128xf32>
    %110 = vector.extract_strided_slice %100 {offsets = [0, 128], sizes = [8, 128], strides = [1, 1]} : vector<8x384xf32> to vector<8x128xf32>
    %111 = arith.addf %109, %110 : vector<8x128xf32>
    %112 = arith.negf %111 : vector<8x128xf32>
    %113 = math.exp %112 : vector<8x128xf32>
    %cst_49 = arith.constant 1.000000e+00 : f32
    %114 = vector.broadcast %cst_49 : f32 to vector<8x128xf32>
    %115 = arith.addf %114, %113 : vector<8x128xf32>
    %116 = arith.divf %114, %115 : vector<8x128xf32>
    %117 = vector.extract_strided_slice %98 {offsets = [0, 256], sizes = [8, 128], strides = [1, 1]} : vector<8x384xf32> to vector<8x128xf32>
    %118 = vector.extract_strided_slice %100 {offsets = [0, 256], sizes = [8, 128], strides = [1, 1]} : vector<8x384xf32> to vector<8x128xf32>
    %119 = vector.broadcast %5 : vector<1x128xf32> to vector<8x128xf32>
    %120 = arith.addf %118, %119 : vector<8x128xf32>
    %121 = arith.mulf %108, %120 : vector<8x128xf32>
    %122 = arith.addf %117, %121 : vector<8x128xf32>
    %123 = math.tanh %122 : vector<8x128xf32>
    %cst_50 = arith.constant 1.000000e+00 : f32
    %124 = vector.broadcast %cst_50 : f32 to vector<8x128xf32>
    %125 = arith.subf %124, %116 : vector<8x128xf32>
    %126 = arith.mulf %125, %123 : vector<8x128xf32>
    %127 = arith.mulf %116, %45 : vector<8x128xf32>
    %128 = arith.addf %126, %127 : vector<8x128xf32>
    %129 = arith.truncf %128 : vector<8x128xf32> to vector<8x128xbf16>
    %cst_51 = arith.constant dense<0.000000e+00> : vector<8x128xf32>
    %130 = tpu.matmul %129, %6, %cst_51 {dimension_numbers = #tpu.dot_dimension_numbers<[1], [0], [0], [1], [0, 0, 1, 1], [], []>} : vector<8x128xbf16>, vector<128x128xbf16>, vector<8x128xf32> -> vector<8x128xf32>
    %131 = vector.broadcast %7 : vector<1x128xf32> to vector<8x128xf32>
    %132 = arith.addf %130, %131 : vector<8x128xf32>
    %133 = vector.shape_cast %132 : vector<8x128xf32> to vector<8x1x128xf32>
    %134 = arith.truncf %133 : vector<8x1x128xf32> to vector<8x1x128xbf16>
    "tpu.trace_start"() <{level = 10 : i32, message = "bqh,blh->bql"}> : () -> ()
    %cst_52 = arith.constant dense<0.000000e+00> : vector<8x1x8xf32>
    %135 = tpu.matmul %134, %0, %cst_52 {dimension_numbers = #tpu.dot_dimension_numbers<[2], [2], [1], [1], [0, 0, 0, 1, 1, 1], [0], [0]>} : vector<8x1x128xbf16>, vector<8x8x128xbf16>, vector<8x1x8xf32> -> vector<8x1x8xf32>
    "tpu.trace_stop"() : () -> ()
    %cst_53 = arith.constant dense<0xFF800000> : vector<8x1xf32>
    %136 = vector.multi_reduction <maximumf>, %135, %cst_53 [2] : vector<8x1x8xf32> to vector<8x1xf32>
    %137 = vector.shape_cast %136 : vector<8x1xf32> to vector<8x1x1xf32>
    %138 = vector.broadcast %137 : vector<8x1x1xf32> to vector<8x1x8xf32>
    %139 = arith.subf %135, %138 : vector<8x1x8xf32>
    %140 = math.exp %139 : vector<8x1x8xf32>
    %cst_54 = arith.constant dense<0.000000e+00> : vector<8x1xf32>
    %141 = vector.multi_reduction <add>, %140, %cst_54 [2] : vector<8x1x8xf32> to vector<8x1xf32>
    %142 = vector.shape_cast %141 : vector<8x1xf32> to vector<8x1x1xf32>
    %143 = tpu.reciprocal %142 {approx = true} : vector<8x1x1xf32> -> vector<8x1x1xf32>
    %144 = vector.broadcast %143 : vector<8x1x1xf32> to vector<8x1x8xf32>
    %145 = arith.mulf %140, %144 : vector<8x1x8xf32>
    %146 = vector.shape_cast %145 : vector<8x1x8xf32> to vector<8x8xf32>
    %147 = arith.index_cast %c1_i32 : i32 to index
    %c0_55 = arith.constant 0 : index
    %c0_56 = arith.constant 0 : index
    %148 = vector.load %arg17[%147, %c0_55, %c0_56] : memref<4x8x8xf32, #tpu.memory_space<vmem>>, vector<1x8x8xf32>
    %149 = vector.shape_cast %148 : vector<1x8x8xf32> to vector<8x8xf32>
    %150 = vector.shape_cast %146 : vector<8x8xf32> to vector<1x8x8xf32>
    tpu.vector_store %arg17[%147, %c0_55, %c0_56], %150 {strides = array<i32>} : memref<4x8x8xf32, #tpu.memory_space<vmem>>, vector<1x8x8xf32>,
    %151 = arith.truncf %145 : vector<8x1x8xf32> to vector<8x1x8xbf16>
    "tpu.trace_start"() <{level = 10 : i32, message = "bql,blh->bqh"}> : () -> ()
    %cst_57 = arith.constant dense<0.000000e+00> : vector<8x1x128xf32>
    %152 = tpu.matmul %151, %1, %cst_57 {dimension_numbers = #tpu.dot_dimension_numbers<[2], [1], [1], [2], [0, 0, 0, 1, 1, 2], [0], [0]>} : vector<8x1x8xbf16>, vector<8x8x128xbf16>, vector<8x1x128xf32> -> vector<8x1x128xf32>
    "tpu.trace_stop"() : () -> ()
    %153 = vector.shape_cast %152 : vector<8x1x128xf32> to vector<8x128xf32>
    %154 = arith.truncf %153 : vector<8x128xf32> to vector<8x128xbf16>
    %cst_58 = arith.constant dense<0.000000e+00> : vector<8x8xf32>
    %155 = tpu.matmul %154, %8, %cst_58 {dimension_numbers = #tpu.dot_dimension_numbers<[1], [0], [0], [1], [0, 0, 1, 1], [], []>} : vector<8x128xbf16>, vector<128x8xbf16>, vector<8x8xf32> -> vector<8x8xf32>
    %156 = arith.truncf %128 : vector<8x128xf32> to vector<8x128xbf16>
    %cst_59 = arith.constant dense<0.000000e+00> : vector<8x8xf32>
    %157 = tpu.matmul %156, %9, %cst_59 {dimension_numbers = #tpu.dot_dimension_numbers<[1], [0], [0], [1], [0, 0, 1, 1], [], []>} : vector<8x128xbf16>, vector<128x8xbf16>, vector<8x8xf32> -> vector<8x8xf32>
    %158 = arith.addf %155, %157 : vector<8x8xf32>
    %159 = vector.broadcast %10 : vector<1x8xf32> to vector<8x8xf32>
    %160 = arith.addf %158, %159 : vector<8x8xf32>
    %161 = arith.index_cast %c1_i32 : i32 to index
    %c0_60 = arith.constant 0 : index
    %c0_61 = arith.constant 0 : index
    %162 = vector.load %arg16[%161, %c0_60, %c0_61] : memref<4x8x8xf32, #tpu.memory_space<vmem>>, vector<1x8x8xf32>
    %163 = vector.shape_cast %162 : vector<1x8x8xf32> to vector<8x8xf32>
    %164 = vector.shape_cast %160 : vector<8x8xf32> to vector<1x8x8xf32>
    tpu.vector_store %arg16[%161, %c0_60, %c0_61], %164 {strides = array<i32>} : memref<4x8x8xf32, #tpu.memory_space<vmem>>, vector<1x8x8xf32>,
    %165 = arith.index_cast %c1_i32 : i32 to index
    %166 = memref.load %arg1[%165] : memref<4xi32, #tpu.memory_space<smem>>
    %c0_i32_62 = arith.constant 0 : i32
    %167 = arith.cmpi sgt, %166, %c0_i32_62 : i32
    %168 = arith.extui %167 : i1 to i32
    %169 = arith.sitofp %168 : i32 to f32
    %170 = arith.index_cast %c1_i32 : i32 to index
    %c0_63 = arith.constant 0 : index
    %c0_64 = arith.constant 0 : index
    %171 = vector.load %arg4[%170, %c0_63, %c0_64] : memref<4x8x8xf32, #tpu.memory_space<vmem>>, vector<1x8x8xf32>
    %172 = vector.shape_cast %171 : vector<1x8x8xf32> to vector<8x8xf32>
    %173 = vector.broadcast %169 : f32 to vector<8x8xf32>
    %174 = arith.mulf %173, %172 : vector<8x8xf32>
    %cst_65 = arith.constant 1.000000e+00 : f32
    %175 = arith.subf %cst_65, %169 : f32
    %176 = vector.broadcast %175 : f32 to vector<8x8xf32>
    %177 = arith.mulf %176, %160 : vector<8x8xf32>
    %178 = arith.addf %174, %177 : vector<8x8xf32>
    %c2_i32 = arith.constant 2 : i32
    %cst_66 = arith.constant dense<0.000000e+00> : vector<8x384xf32>
    %179 = tpu.matmul %178, %2, %cst_66 {dimension_numbers = #tpu.dot_dimension_numbers<[1], [0], [0], [1], [0, 0, 1, 1], [], []>} : vector<8x8xf32>, vector<8x384xf32>, vector<8x384xf32> -> vector<8x384xf32>
    %180 = vector.broadcast %4 : vector<1x384xf32> to vector<8x384xf32>
    %181 = arith.addf %179, %180 : vector<8x384xf32>
    %182 = arith.truncf %128 : vector<8x128xf32> to vector<8x128xbf16>
    %cst_67 = arith.constant dense<0.000000e+00> : vector<8x384xf32>
    %183 = tpu.matmul %182, %3, %cst_67 {dimension_numbers = #tpu.dot_dimension_numbers<[1], [0], [0], [1], [0, 0, 1, 1], [], []>} : vector<8x128xbf16>, vector<128x384xbf16>, vector<8x384xf32> -> vector<8x384xf32>
    %184 = vector.extract_strided_slice %181 {offsets = [0, 0], sizes = [8, 128], strides = [1, 1]} : vector<8x384xf32> to vector<8x128xf32>
    %185 = vector.extract_strided_slice %183 {offsets = [0, 0], sizes = [8, 128], strides = [1, 1]} : vector<8x384xf32> to vector<8x128xf32>
    %186 = arith.addf %184, %185 : vector<8x128xf32>
    %187 = arith.negf %186 : vector<8x128xf32>
    %188 = math.exp %187 : vector<8x128xf32>
    %cst_68 = arith.constant 1.000000e+00 : f32
    %189 = vector.broadcast %cst_68 : f32 to vector<8x128xf32>
    %190 = arith.addf %189, %188 : vector<8x128xf32>
    %191 = arith.divf %189, %190 : vector<8x128xf32>
    %192 = vector.extract_strided_slice %181 {offsets = [0, 128], sizes = [8, 128], strides = [1, 1]} : vector<8x384xf32> to vector<8x128xf32>
    %193 = vector.extract_strided_slice %183 {offsets = [0, 128], sizes = [8, 128], strides = [1, 1]} : vector<8x384xf32> to vector<8x128xf32>
    %194 = arith.addf %192, %193 : vector<8x128xf32>
    %195 = arith.negf %194 : vector<8x128xf32>
    %196 = math.exp %195 : vector<8x128xf32>
    %cst_69 = arith.constant 1.000000e+00 : f32
    %197 = vector.broadcast %cst_69 : f32 to vector<8x128xf32>
    %198 = arith.addf %197, %196 : vector<8x128xf32>
    %199 = arith.divf %197, %198 : vector<8x128xf32>
    %200 = vector.extract_strided_slice %181 {offsets = [0, 256], sizes = [8, 128], strides = [1, 1]} : vector<8x384xf32> to vector<8x128xf32>
    %201 = vector.extract_strided_slice %183 {offsets = [0, 256], sizes = [8, 128], strides = [1, 1]} : vector<8x384xf32> to vector<8x128xf32>
    %202 = vector.broadcast %5 : vector<1x128xf32> to vector<8x128xf32>
    %203 = arith.addf %201, %202 : vector<8x128xf32>
    %204 = arith.mulf %191, %203 : vector<8x128xf32>
    %205 = arith.addf %200, %204 : vector<8x128xf32>
    %206 = math.tanh %205 : vector<8x128xf32>
    %cst_70 = arith.constant 1.000000e+00 : f32
    %207 = vector.broadcast %cst_70 : f32 to vector<8x128xf32>
    %208 = arith.subf %207, %199 : vector<8x128xf32>
    %209 = arith.mulf %208, %206 : vector<8x128xf32>
    %210 = arith.mulf %199, %128 : vector<8x128xf32>
    %211 = arith.addf %209, %210 : vector<8x128xf32>
    %212 = arith.truncf %211 : vector<8x128xf32> to vector<8x128xbf16>
    %cst_71 = arith.constant dense<0.000000e+00> : vector<8x128xf32>
    %213 = tpu.matmul %212, %6, %cst_71 {dimension_numbers = #tpu.dot_dimension_numbers<[1], [0], [0], [1], [0, 0, 1, 1], [], []>} : vector<8x128xbf16>, vector<128x128xbf16>, vector<8x128xf32> -> vector<8x128xf32>
    %214 = vector.broadcast %7 : vector<1x128xf32> to vector<8x128xf32>
    %215 = arith.addf %213, %214 : vector<8x128xf32>
    %216 = vector.shape_cast %215 : vector<8x128xf32> to vector<8x1x128xf32>
    %217 = arith.truncf %216 : vector<8x1x128xf32> to vector<8x1x128xbf16>
    "tpu.trace_start"() <{level = 10 : i32, message = "bqh,blh->bql"}> : () -> ()
    %cst_72 = arith.constant dense<0.000000e+00> : vector<8x1x8xf32>
    %218 = tpu.matmul %217, %0, %cst_72 {dimension_numbers = #tpu.dot_dimension_numbers<[2], [2], [1], [1], [0, 0, 0, 1, 1, 1], [0], [0]>} : vector<8x1x128xbf16>, vector<8x8x128xbf16>, vector<8x1x8xf32> -> vector<8x1x8xf32>
    "tpu.trace_stop"() : () -> ()
    %cst_73 = arith.constant dense<0xFF800000> : vector<8x1xf32>
    %219 = vector.multi_reduction <maximumf>, %218, %cst_73 [2] : vector<8x1x8xf32> to vector<8x1xf32>
    %220 = vector.shape_cast %219 : vector<8x1xf32> to vector<8x1x1xf32>
    %221 = vector.broadcast %220 : vector<8x1x1xf32> to vector<8x1x8xf32>
    %222 = arith.subf %218, %221 : vector<8x1x8xf32>
    %223 = math.exp %222 : vector<8x1x8xf32>
    %cst_74 = arith.constant dense<0.000000e+00> : vector<8x1xf32>
    %224 = vector.multi_reduction <add>, %223, %cst_74 [2] : vector<8x1x8xf32> to vector<8x1xf32>
    %225 = vector.shape_cast %224 : vector<8x1xf32> to vector<8x1x1xf32>
    %226 = tpu.reciprocal %225 {approx = true} : vector<8x1x1xf32> -> vector<8x1x1xf32>
    %227 = vector.broadcast %226 : vector<8x1x1xf32> to vector<8x1x8xf32>
    %228 = arith.mulf %223, %227 : vector<8x1x8xf32>
    %229 = vector.shape_cast %228 : vector<8x1x8xf32> to vector<8x8xf32>
    %230 = arith.index_cast %c2_i32 : i32 to index
    %c0_75 = arith.constant 0 : index
    %c0_76 = arith.constant 0 : index
    %231 = vector.load %arg17[%230, %c0_75, %c0_76] : memref<4x8x8xf32, #tpu.memory_space<vmem>>, vector<1x8x8xf32>
    %232 = vector.shape_cast %231 : vector<1x8x8xf32> to vector<8x8xf32>
    %233 = vector.shape_cast %229 : vector<8x8xf32> to vector<1x8x8xf32>
    tpu.vector_store %arg17[%230, %c0_75, %c0_76], %233 {strides = array<i32>} : memref<4x8x8xf32, #tpu.memory_space<vmem>>, vector<1x8x8xf32>,
    %234 = arith.truncf %228 : vector<8x1x8xf32> to vector<8x1x8xbf16>
    "tpu.trace_start"() <{level = 10 : i32, message = "bql,blh->bqh"}> : () -> ()
    %cst_77 = arith.constant dense<0.000000e+00> : vector<8x1x128xf32>
    %235 = tpu.matmul %234, %1, %cst_77 {dimension_numbers = #tpu.dot_dimension_numbers<[2], [1], [1], [2], [0, 0, 0, 1, 1, 2], [0], [0]>} : vector<8x1x8xbf16>, vector<8x8x128xbf16>, vector<8x1x128xf32> -> vector<8x1x128xf32>
    "tpu.trace_stop"() : () -> ()
    %236 = vector.shape_cast %235 : vector<8x1x128xf32> to vector<8x128xf32>
    %237 = arith.truncf %236 : vector<8x128xf32> to vector<8x128xbf16>
    %cst_78 = arith.constant dense<0.000000e+00> : vector<8x8xf32>
    %238 = tpu.matmul %237, %8, %cst_78 {dimension_numbers = #tpu.dot_dimension_numbers<[1], [0], [0], [1], [0, 0, 1, 1], [], []>} : vector<8x128xbf16>, vector<128x8xbf16>, vector<8x8xf32> -> vector<8x8xf32>
    %239 = arith.truncf %211 : vector<8x128xf32> to vector<8x128xbf16>
    %cst_79 = arith.constant dense<0.000000e+00> : vector<8x8xf32>
    %240 = tpu.matmul %239, %9, %cst_79 {dimension_numbers = #tpu.dot_dimension_numbers<[1], [0], [0], [1], [0, 0, 1, 1], [], []>} : vector<8x128xbf16>, vector<128x8xbf16>, vector<8x8xf32> -> vector<8x8xf32>
    %241 = arith.addf %238, %240 : vector<8x8xf32>
    %242 = vector.broadcast %10 : vector<1x8xf32> to vector<8x8xf32>
    %243 = arith.addf %241, %242 : vector<8x8xf32>
    %244 = arith.index_cast %c2_i32 : i32 to index
    %c0_80 = arith.constant 0 : index
    %c0_81 = arith.constant 0 : index
    %245 = vector.load %arg16[%244, %c0_80, %c0_81] : memref<4x8x8xf32, #tpu.memory_space<vmem>>, vector<1x8x8xf32>
    %246 = vector.shape_cast %245 : vector<1x8x8xf32> to vector<8x8xf32>
    %247 = vector.shape_cast %243 : vector<8x8xf32> to vector<1x8x8xf32>
    tpu.vector_store %arg16[%244, %c0_80, %c0_81], %247 {strides = array<i32>} : memref<4x8x8xf32, #tpu.memory_space<vmem>>, vector<1x8x8xf32>,
    %248 = arith.index_cast %c2_i32 : i32 to index
    %249 = memref.load %arg1[%248] : memref<4xi32, #tpu.memory_space<smem>>
    %c0_i32_82 = arith.constant 0 : i32
    %250 = arith.cmpi sgt, %249, %c0_i32_82 : i32
    %251 = arith.extui %250 : i1 to i32
    %252 = arith.sitofp %251 : i32 to f32
    %253 = arith.index_cast %c2_i32 : i32 to index
    %c0_83 = arith.constant 0 : index
    %c0_84 = arith.constant 0 : index
    %254 = vector.load %arg4[%253, %c0_83, %c0_84] : memref<4x8x8xf32, #tpu.memory_space<vmem>>, vector<1x8x8xf32>
    %255 = vector.shape_cast %254 : vector<1x8x8xf32> to vector<8x8xf32>
    %256 = vector.broadcast %252 : f32 to vector<8x8xf32>
    %257 = arith.mulf %256, %255 : vector<8x8xf32>
    %cst_85 = arith.constant 1.000000e+00 : f32
    %258 = arith.subf %cst_85, %252 : f32
    %259 = vector.broadcast %258 : f32 to vector<8x8xf32>
    %260 = arith.mulf %259, %243 : vector<8x8xf32>
    %261 = arith.addf %257, %260 : vector<8x8xf32>
    %c3_i32 = arith.constant 3 : i32
    %cst_86 = arith.constant dense<0.000000e+00> : vector<8x384xf32>
    %262 = tpu.matmul %261, %2, %cst_86 {dimension_numbers = #tpu.dot_dimension_numbers<[1], [0], [0], [1], [0, 0, 1, 1], [], []>} : vector<8x8xf32>, vector<8x384xf32>, vector<8x384xf32> -> vector<8x384xf32>
    %263 = vector.broadcast %4 : vector<1x384xf32> to vector<8x384xf32>
    %264 = arith.addf %262, %263 : vector<8x384xf32>
    %265 = arith.truncf %211 : vector<8x128xf32> to vector<8x128xbf16>
    %cst_87 = arith.constant dense<0.000000e+00> : vector<8x384xf32>
    %266 = tpu.matmul %265, %3, %cst_87 {dimension_numbers = #tpu.dot_dimension_numbers<[1], [0], [0], [1], [0, 0, 1, 1], [], []>} : vector<8x128xbf16>, vector<128x384xbf16>, vector<8x384xf32> -> vector<8x384xf32>
    %267 = vector.extract_strided_slice %264 {offsets = [0, 0], sizes = [8, 128], strides = [1, 1]} : vector<8x384xf32> to vector<8x128xf32>
    %268 = vector.extract_strided_slice %266 {offsets = [0, 0], sizes = [8, 128], strides = [1, 1]} : vector<8x384xf32> to vector<8x128xf32>
    %269 = arith.addf %267, %268 : vector<8x128xf32>
    %270 = arith.negf %269 : vector<8x128xf32>
    %271 = math.exp %270 : vector<8x128xf32>
    %cst_88 = arith.constant 1.000000e+00 : f32
    %272 = vector.broadcast %cst_88 : f32 to vector<8x128xf32>
    %273 = arith.addf %272, %271 : vector<8x128xf32>
    %274 = arith.divf %272, %273 : vector<8x128xf32>
    %275 = vector.extract_strided_slice %264 {offsets = [0, 128], sizes = [8, 128], strides = [1, 1]} : vector<8x384xf32> to vector<8x128xf32>
    %276 = vector.extract_strided_slice %266 {offsets = [0, 128], sizes = [8, 128], strides = [1, 1]} : vector<8x384xf32> to vector<8x128xf32>
    %277 = arith.addf %275, %276 : vector<8x128xf32>
    %278 = arith.negf %277 : vector<8x128xf32>
    %279 = math.exp %278 : vector<8x128xf32>
    %cst_89 = arith.constant 1.000000e+00 : f32
    %280 = vector.broadcast %cst_89 : f32 to vector<8x128xf32>
    %281 = arith.addf %280, %279 : vector<8x128xf32>
    %282 = arith.divf %280, %281 : vector<8x128xf32>
    %283 = vector.extract_strided_slice %264 {offsets = [0, 256], sizes = [8, 128], strides = [1, 1]} : vector<8x384xf32> to vector<8x128xf32>
    %284 = vector.extract_strided_slice %266 {offsets = [0, 256], sizes = [8, 128], strides = [1, 1]} : vector<8x384xf32> to vector<8x128xf32>
    %285 = vector.broadcast %5 : vector<1x128xf32> to vector<8x128xf32>
    %286 = arith.addf %284, %285 : vector<8x128xf32>
    %287 = arith.mulf %274, %286 : vector<8x128xf32>
    %288 = arith.addf %283, %287 : vector<8x128xf32>
    %289 = math.tanh %288 : vector<8x128xf32>
    %cst_90 = arith.constant 1.000000e+00 : f32
    %290 = vector.broadcast %cst_90 : f32 to vector<8x128xf32>
    %291 = arith.subf %290, %282 : vector<8x128xf32>
    %292 = arith.mulf %291, %289 : vector<8x128xf32>
    %293 = arith.mulf %282, %211 : vector<8x128xf32>
    %294 = arith.addf %292, %293 : vector<8x128xf32>
    %295 = arith.truncf %294 : vector<8x128xf32> to vector<8x128xbf16>
    %cst_91 = arith.constant dense<0.000000e+00> : vector<8x128xf32>
    %296 = tpu.matmul %295, %6, %cst_91 {dimension_numbers = #tpu.dot_dimension_numbers<[1], [0], [0], [1], [0, 0, 1, 1], [], []>} : vector<8x128xbf16>, vector<128x128xbf16>, vector<8x128xf32> -> vector<8x128xf32>
    %297 = vector.broadcast %7 : vector<1x128xf32> to vector<8x128xf32>
    %298 = arith.addf %296, %297 : vector<8x128xf32>
    %299 = vector.shape_cast %298 : vector<8x128xf32> to vector<8x1x128xf32>
    %300 = arith.truncf %299 : vector<8x1x128xf32> to vector<8x1x128xbf16>
    "tpu.trace_start"() <{level = 10 : i32, message = "bqh,blh->bql"}> : () -> ()
    %cst_92 = arith.constant dense<0.000000e+00> : vector<8x1x8xf32>
    %301 = tpu.matmul %300, %0, %cst_92 {dimension_numbers = #tpu.dot_dimension_numbers<[2], [2], [1], [1], [0, 0, 0, 1, 1, 1], [0], [0]>} : vector<8x1x128xbf16>, vector<8x8x128xbf16>, vector<8x1x8xf32> -> vector<8x1x8xf32>
    "tpu.trace_stop"() : () -> ()
    %cst_93 = arith.constant dense<0xFF800000> : vector<8x1xf32>
    %302 = vector.multi_reduction <maximumf>, %301, %cst_93 [2] : vector<8x1x8xf32> to vector<8x1xf32>
    %303 = vector.shape_cast %302 : vector<8x1xf32> to vector<8x1x1xf32>
    %304 = vector.broadcast %303 : vector<8x1x1xf32> to vector<8x1x8xf32>
    %305 = arith.subf %301, %304 : vector<8x1x8xf32>
    %306 = math.exp %305 : vector<8x1x8xf32>
    %cst_94 = arith.constant dense<0.000000e+00> : vector<8x1xf32>
    %307 = vector.multi_reduction <add>, %306, %cst_94 [2] : vector<8x1x8xf32> to vector<8x1xf32>
    %308 = vector.shape_cast %307 : vector<8x1xf32> to vector<8x1x1xf32>
    %309 = tpu.reciprocal %308 {approx = true} : vector<8x1x1xf32> -> vector<8x1x1xf32>
    %310 = vector.broadcast %309 : vector<8x1x1xf32> to vector<8x1x8xf32>
    %311 = arith.mulf %306, %310 : vector<8x1x8xf32>
    %312 = vector.shape_cast %311 : vector<8x1x8xf32> to vector<8x8xf32>
    %313 = arith.index_cast %c3_i32 : i32 to index
    %c0_95 = arith.constant 0 : index
    %c0_96 = arith.constant 0 : index
    %314 = vector.load %arg17[%313, %c0_95, %c0_96] : memref<4x8x8xf32, #tpu.memory_space<vmem>>, vector<1x8x8xf32>
    %315 = vector.shape_cast %314 : vector<1x8x8xf32> to vector<8x8xf32>
    %316 = vector.shape_cast %312 : vector<8x8xf32> to vector<1x8x8xf32>
    tpu.vector_store %arg17[%313, %c0_95, %c0_96], %316 {strides = array<i32>} : memref<4x8x8xf32, #tpu.memory_space<vmem>>, vector<1x8x8xf32>,
    %317 = arith.truncf %311 : vector<8x1x8xf32> to vector<8x1x8xbf16>
    "tpu.trace_start"() <{level = 10 : i32, message = "bql,blh->bqh"}> : () -> ()
    %cst_97 = arith.constant dense<0.000000e+00> : vector<8x1x128xf32>
    %318 = tpu.matmul %317, %1, %cst_97 {dimension_numbers = #tpu.dot_dimension_numbers<[2], [1], [1], [2], [0, 0, 0, 1, 1, 2], [0], [0]>} : vector<8x1x8xbf16>, vector<8x8x128xbf16>, vector<8x1x128xf32> -> vector<8x1x128xf32>
    "tpu.trace_stop"() : () -> ()
    %319 = vector.shape_cast %318 : vector<8x1x128xf32> to vector<8x128xf32>
    %320 = arith.truncf %319 : vector<8x128xf32> to vector<8x128xbf16>
    %cst_98 = arith.constant dense<0.000000e+00> : vector<8x8xf32>
    %321 = tpu.matmul %320, %8, %cst_98 {dimension_numbers = #tpu.dot_dimension_numbers<[1], [0], [0], [1], [0, 0, 1, 1], [], []>} : vector<8x128xbf16>, vector<128x8xbf16>, vector<8x8xf32> -> vector<8x8xf32>
    %322 = arith.truncf %294 : vector<8x128xf32> to vector<8x128xbf16>
    %cst_99 = arith.constant dense<0.000000e+00> : vector<8x8xf32>
    %323 = tpu.matmul %322, %9, %cst_99 {dimension_numbers = #tpu.dot_dimension_numbers<[1], [0], [0], [1], [0, 0, 1, 1], [], []>} : vector<8x128xbf16>, vector<128x8xbf16>, vector<8x8xf32> -> vector<8x8xf32>
    %324 = arith.addf %321, %323 : vector<8x8xf32>
    %325 = vector.broadcast %10 : vector<1x8xf32> to vector<8x8xf32>
    %326 = arith.addf %324, %325 : vector<8x8xf32>
    %327 = arith.index_cast %c3_i32 : i32 to index
    %c0_100 = arith.constant 0 : index
    %c0_101 = arith.constant 0 : index
    %328 = vector.load %arg16[%327, %c0_100, %c0_101] : memref<4x8x8xf32, #tpu.memory_space<vmem>>, vector<1x8x8xf32>
    %329 = vector.shape_cast %328 : vector<1x8x8xf32> to vector<8x8xf32>
    %330 = vector.shape_cast %326 : vector<8x8xf32> to vector<1x8x8xf32>
    tpu.vector_store %arg16[%327, %c0_100, %c0_101], %330 {strides = array<i32>} : memref<4x8x8xf32, #tpu.memory_space<vmem>>, vector<1x8x8xf32>,
    %331 = arith.index_cast %c3_i32 : i32 to index
    %332 = memref.load %arg1[%331] : memref<4xi32, #tpu.memory_space<smem>>
    %c0_i32_102 = arith.constant 0 : i32
    %333 = arith.cmpi sgt, %332, %c0_i32_102 : i32
    %334 = arith.extui %333 : i1 to i32
    %335 = arith.sitofp %334 : i32 to f32
    %336 = arith.index_cast %c3_i32 : i32 to index
    %c0_103 = arith.constant 0 : index
    %c0_104 = arith.constant 0 : index
    %337 = vector.load %arg4[%336, %c0_103, %c0_104] : memref<4x8x8xf32, #tpu.memory_space<vmem>>, vector<1x8x8xf32>
    %338 = vector.shape_cast %337 : vector<1x8x8xf32> to vector<8x8xf32>
    %339 = vector.broadcast %335 : f32 to vector<8x8xf32>
    %340 = arith.mulf %339, %338 : vector<8x8xf32>
    %cst_105 = arith.constant 1.000000e+00 : f32
    %341 = arith.subf %cst_105, %335 : f32
    %342 = vector.broadcast %341 : f32 to vector<8x8xf32>
    %343 = arith.mulf %342, %326 : vector<8x8xf32>
    %344 = arith.addf %340, %343 : vector<8x8xf32>
    %c4_i32 = arith.constant 4 : i32
    return
  }
  func.func @transform_0(%arg0: i32, %arg1: memref<4xi32, #tpu.memory_space<smem>>) -> (i32, i32, i32) {
    %c0_i32 = arith.constant 0 : i32
    %c0_i32_0 = arith.constant 0 : i32
    %c0_i32_1 = arith.constant 0 : i32
    %c0_i32_2 = arith.constant 0 : i32
    return %c0_i32, %c0_i32_0, %c0_i32_1 : i32, i32, i32
  }
  func.func @transform_1(%arg0: i32, %arg1: memref<4xi32, #tpu.memory_space<smem>>) -> (i32, i32, i32) {
    %c0_i32 = arith.constant 0 : i32
    %c0_i32_0 = arith.constant 0 : i32
    %c0_i32_1 = arith.constant 0 : i32
    %c0_i32_2 = arith.constant 0 : i32
    return %c0_i32, %c0_i32_0, %c0_i32_1 : i32, i32, i32
  }
  func.func @transform_2(%arg0: i32, %arg1: memref<4xi32, #tpu.memory_space<smem>>) -> (i32, i32, i32) {
    %c0_i32 = arith.constant 0 : i32
    %c0_i32_0 = arith.constant 0 : i32
    %c0_i32_1 = arith.constant 0 : i32
    %c0_i32_2 = arith.constant 0 : i32
    return %c0_i32, %c0_i32_0, %c0_i32_1 : i32, i32, i32
  }
  func.func @transform_3(%arg0: i32, %arg1: memref<4xi32, #tpu.memory_space<smem>>) -> (i32, i32) {
    %c0_i32 = arith.constant 0 : i32
    %c0_i32_0 = arith.constant 0 : i32
    %c0_i32_1 = arith.constant 0 : i32
    return %c0_i32, %c0_i32_0 : i32, i32
  }
  func.func @transform_4(%arg0: i32, %arg1: memref<4xi32, #tpu.memory_space<smem>>) -> (i32, i32) {
    %c0_i32 = arith.constant 0 : i32
    %c0_i32_0 = arith.constant 0 : i32
    %c0_i32_1 = arith.constant 0 : i32
    return %c0_i32, %c0_i32_0 : i32, i32
  }
  func.func @transform_5(%arg0: i32, %arg1: memref<4xi32, #tpu.memory_space<smem>>) -> (i32, i32) {
    %c0_i32 = arith.constant 0 : i32
    %c0_i32_0 = arith.constant 0 : i32
    %c0_i32_1 = arith.constant 0 : i32
    return %c0_i32, %c0_i32_0 : i32, i32
  }
  func.func @transform_6(%arg0: i32, %arg1: memref<4xi32, #tpu.memory_space<smem>>) -> (i32, i32) {
    %c0_i32 = arith.constant 0 : i32
    %c0_i32_0 = arith.constant 0 : i32
    %c0_i32_1 = arith.constant 0 : i32
    return %c0_i32, %c0_i32_0 : i32, i32
  }
  func.func @transform_7(%arg0: i32, %arg1: memref<4xi32, #tpu.memory_space<smem>>) -> (i32, i32) {
    %c0_i32 = arith.constant 0 : i32
    %c0_i32_0 = arith.constant 0 : i32
    %c0_i32_1 = arith.constant 0 : i32
    return %c0_i32, %c0_i32_0 : i32, i32
  }
  func.func @transform_8(%arg0: i32, %arg1: memref<4xi32, #tpu.memory_space<smem>>) -> (i32, i32) {
    %c0_i32 = arith.constant 0 : i32
    %c0_i32_0 = arith.constant 0 : i32
    %c0_i32_1 = arith.constant 0 : i32
    return %c0_i32, %c0_i32_0 : i32, i32
  }
  func.func @transform_9(%arg0: i32, %arg1: memref<4xi32, #tpu.memory_space<smem>>) -> (i32, i32) {
    %c0_i32 = arith.constant 0 : i32
    %c0_i32_0 = arith.constant 0 : i32
    %c0_i32_1 = arith.constant 0 : i32
    return %c0_i32, %c0_i32_0 : i32, i32
  }
  func.func @transform_10(%arg0: i32, %arg1: memref<4xi32, #tpu.memory_space<smem>>) -> (i32, i32) {
    %c0_i32 = arith.constant 0 : i32
    %c0_i32_0 = arith.constant 0 : i32
    %c0_i32_1 = arith.constant 0 : i32
    return %c0_i32, %c0_i32_0 : i32, i32
  }
  func.func @transform_11(%arg0: i32, %arg1: memref<4xi32, #tpu.memory_space<smem>>) -> (i32, i32) {
    %c0_i32 = arith.constant 0 : i32
    %c0_i32_0 = arith.constant 0 : i32
    %c0_i32_1 = arith.constant 0 : i32
    return %c0_i32, %c0_i32_0 : i32, i32
  }
  func.func @transform_12(%arg0: i32, %arg1: memref<4xi32, #tpu.memory_space<smem>>) -> (i32, i32) {
    %c0_i32 = arith.constant 0 : i32
    %c0_i32_0 = arith.constant 0 : i32
    %c0_i32_1 = arith.constant 0 : i32
    return %c0_i32, %c0_i32_0 : i32, i32
  }
  func.func @transform_13(%arg0: i32, %arg1: memref<4xi32, #tpu.memory_space<smem>>) -> (i32, i32) {
    %c0_i32 = arith.constant 0 : i32
    %c0_i32_0 = arith.constant 0 : i32
    %c0_i32_1 = arith.constant 0 : i32
    return %c0_i32, %c0_i32_0 : i32, i32
  }
  func.func @transform_14(%arg0: i32, %arg1: memref<4xi32, #tpu.memory_space<smem>>) -> (i32, i32, i32) {
    %c0_i32 = arith.constant 0 : i32
    %c0_i32_0 = arith.constant 0 : i32
    %c0_i32_1 = arith.constant 0 : i32
    %c0_i32_2 = arith.constant 0 : i32
    return %c0_i32, %c0_i32_0, %c0_i32_1 : i32, i32, i32
  }
  func.func @transform_15(%arg0: i32, %arg1: memref<4xi32, #tpu.memory_space<smem>>) -> (i32, i32, i32) {
    %c0_i32 = arith.constant 0 : i32
    %c0_i32_0 = arith.constant 0 : i32
    %c0_i32_1 = arith.constant 0 : i32
    %c0_i32_2 = arith.constant 0 : i32
    return %c0_i32, %c0_i32_0, %c0_i32_1 : i32, i32, i32
  }
}

</mosaic_0001>

<bundles_post_ra>
// kernel: _forward_impl.2
= control target key start
LH: loop header
LB: loop body
LE: loop exit
PB: predicated region body
PF: predicated region fallthrough
CT: control target
= control target key end

     0   :  { %14 = vsyncpa [#allocation4], 0  ;;  %s2077_s27 = smov [#allocation3]   ;;  %s2759_s0 = inlined_call_operand.vmem [shape: f32[8,8,8], index: 0, kind: input, shape index: {}]   ;;  %s2760_s1 = inlined_call_operand.vmem [shape: f32[8,384], index: 1, kind: input, shape index: {}]   ;;  %s2761_s2 = inlined_call_operand.hbm [shape: bf16[128,384], index: 2, kind: input, shape index: {}]   ;;  %s2762_s3 = inlined_call_operand.vmem [shape: f32[1,384], index: 3, kind: input, shape index: {}]   ;;  %s2763_s4 = inlined_call_operand.vmem [shape: f32[1,128], index: 4, kind: input, shape index: {}]   ;;  %s2764_s5 = inlined_call_operand.vmem [shape: bf16[128,128], index: 5, kind: input, shape index: {}]   ;;  %s2765_s6 = inlined_call_operand.vmem [shape: f32[1,128], index: 6, kind: input, shape index: {}]   ;;  %s2766_s7 = inlined_call_operand.vmem [shape: f32[8,8,128], index: 7, kind: output, shape index: {0}]   ;;  %s2767_s8 = inlined_call_operand.vmem [shape: f32[8,8,128], index: 8, kind: output, shape index: {1}]  }
   0x1   :  { %s24_s28 = sshll.u32 %s2077_s27, 4  ;;  %s2053_s9 = scalar_lea.hbm %s2761_s2, 3072  ;;  %s25_s28 = int_to_ptr.vmem [resolvable:$true] %s24_s28 }
   0x2   :  { %p2054_p0 = scmp.ne.s32.totalorder %s2761_s2, %s2053_s9  ;;  %p2057_p1 = scmp.lt.u32.totalorder %s2053_s9, %s2761_s2 }
   0x4   :  { %p2059_p2 = pnand %p2057_p1, %p2054_p0 }
   0x6   :  { %2062 = shalt.err (!%p2059_p2)
}
   0x7   :  { %s2063_s14 = scalar_lea.vmem %s25_s28, 3072  ;;  %p2068_p4 = scmp.lt.s32.totalorder %s25_s28, %s25_s28 }
   0x8   :  { %p2064_p3 = scmp.ne.s32.totalorder %s25_s28, %s2063_s14  ;;  %p2069_p5 = scmp.lt.s32.totalorder %s2063_s14, %s2063_s14 }
   0xa   :  { %p2070_p6 = por %p2069_p5, %p2068_p4 }
   0xc   :  { %p2071_p7 = pnand %p2070_p6, %p2064_p3 }
   0xe   :  { %2074 = shalt.err (!%p2071_p7)
}
   0xf   :  { %s2078_s15 = smov 192   ;;  %s2079_s16 = smov 12  }
  0x10   :  { %30 = dma.hbm_to_vmem [thread:$0]  %s2761_s2, 3072, %s25_s28, [#allocation4], %s2078_s15, %s2078_s15, %s2079_s16  }
  0x11   :  { %2075 = dma.done.wait [#allocation4], 3072  }
  0x12   :  { %2076 = vsyncadd [#allocation4], 4294964224  ;;  %v2770_v0 = vmov 0.0   ;;  %vm71_vm0 = vcmask 64512   ;;  %v53_v1 = vld [vmem:[%s2760_s1 + $0x10] sm:$0xff]  ;;  %v43_v2 = vld [vmem:[%s2759_s0] sm:$0xff]  ;;  %v56_v37 = vlaneseq }
  0x13   :  { %160 = vmatprep.mubr.f32.mxu0 %v2770_v0  ;;  %v44_v3 = vld [vmem:[%s2759_s0 + $0x8] sm:$0xff]  ;;  %1713 = vmatprep.subr.mxu1 %v53_v1  ;;  %v2151_v4 = vld [vmem:[#allocation3 + $0x4] ss:$12 sps:$4 sm:$0xff]   ;;  %v2163_v8 = vld [vmem:[#allocation3 + $0x34] ss:$12 sps:$4 sm:$0xff]   ;;  %v2768_v23 = vmov 0  }
  0x14   :  { %1715 = vmatprep.mubr.msk.f32.mxu1 %vm71_vm0, %v43_v2  ;;  %1714 = vmatpush3.msra.mxu1 %v53_v1  ;;  %v2153_v5 = vld [vmem:[#allocation3] ss:$12 sps:$4 sm:$0xff]   ;;  %v2157_v6 = vld [vmem:[#allocation3 + $0x1c] ss:$12 sps:$4 sm:$0xff]   ;;  %v2160_v7 = vld [vmem:[#allocation3 + $0x18] ss:$12 sps:$4 sm:$0xff]  }
  0x15   :  { %1716 = vmatmul.mubr.msk.f32.vlgmr.msra.gmra.mrb[0].mxu1 %vm71_vm0, %v44_v3  ;;  %499 = vmatprep.subr.bf16.mxu1 %v2151_v4  ;;  %v2165_v9 = vld [vmem:[#allocation3 + $0x30] ss:$12 sps:$4 sm:$0xff]   ;;  %v2176_v12 = vld [vmem:[#allocation3 + $0x4c] ss:$12 sps:$4 sm:$0xff]   ;;  %v47_v13 = vld [vmem:[%s2759_s0 + $0x20] sm:$0xff]  ;;  %vm2082_vm1 = vmmov 0  }
  0x16   :  { %500 = vmatpush1.bf16.msra.mxu1 %v2153_v5  ;;  %v45_v10 = vld [vmem:[%s2759_s0 + $0x10] sm:$0xff]  ;;  %v46_v11 = vld [vmem:[%s2759_s0 + $0x18] sm:$0xff]  ;;  %v48_v14 = vld [vmem:[%s2759_s0 + $0x28] sm:$0xff]  ;;  %v57_v38 = vshrl.u32 %v56_v37, 7 }
  0x17   :  { %501 = vmatprep.subr.bf16.mxu1 %v2157_v6  ;;  %1718 = vmatprep.mubr.msk.f32.mxu1 %vm71_vm0, %v45_v10  ;;  %v2189_v15 = vld [vmem:[%s2759_s0 + $0x30] sm:$0xff]  ;;  %v52_v17 = vld [vmem:[%s2760_s1 + $0x8] sm:$0xff]  ;;  %v51_v19 = vld [vmem:[%s2760_s1] sm:$0xff] }
  0x18   :  { %v2192_v16 = vld [vmem:[#allocation3 + $0x48] ss:$12 sps:$4 sm:$0xff]   ;;  %v2198_v18 = vld [vmem:[#allocation3 + $0x64] ss:$12 sps:$4 sm:$0xff]   ;;  %96 = vmatprep.subr.mxu0 %v52_v17  ;;  %v2209_v20 = vld [vmem:[%s2759_s0 + $0x38] sm:$0xff]  ;;  %v66_v39 = vsub.s32 2, %v57_v38 }
  0x19   :  { %1719 = vmatmul.mubr.msk.f32.gmra.mrb[2].mxu1 %vm71_vm0, %v46_v11  ;;  %97 = vmatpush1.msra.mxu0 %v51_v19  ;;  %v2212_v21 = vld [vmem:[#allocation3 + $0x60] ss:$12 sps:$4 sm:$0xff]   ;;  %v2216_v22 = vld [vmem:[#allocation3 + $0x7c] ss:$12 sps:$4 sm:$0xff]   ;;  %v2225_v24 = vld [vmem:[#allocation3 + $0x78] ss:$12 sps:$4 sm:$0xff]  }
  0x1a   :  { %502 = vmatpush1.bf16.msra.mxu1 %v2160_v7  ;;  %1721 = vmatprep.mubr.msk.f32.mxu1 %vm71_vm0, %v47_v13  ;;  %v2229_v25 = vld [vmem:[#allocation3 + $0x94] ss:$12 sps:$4 sm:$0xff]   ;;  %v2232_v26 = vld [vmem:[#allocation3 + $0x90] ss:$12 sps:$4 sm:$0xff]   ;;  %v2235_v27 = vld [vmem:[#allocation3 + $0xac] ss:$12 sps:$4 sm:$0xff]  }
  0x1b   :  { %503 = vmatprep.subr.bf16.mxu1 %v2163_v8  ;;  %1547 = vmatmul.mubr.msk.f32.vlgmr.msra.gmra.mrb[0].mxu0 %vm71_vm0, %v43_v2  ;;  %v2245_v28 = vld [vmem:[#allocation3 + $0xa8] ss:$12 sps:$4 sm:$0xff]   ;;  %v2262_v30 = vld [vmem:[#allocation3 + $0x20] ss:$12 sps:$4 sm:$0xff]   ;;  %v2272_v31 = vld [vmem:[#allocation3 + $0x38] ss:$12 sps:$4 sm:$0xff]  }
  0x1c   :  { %613 = vmatprep.subr.bf16.mxu0 %v2151_v4  ;;  %166 = vmatprep.mubr.f32.mxu0 %v2770_v0  ;;  %v2253_v29 = vld [vmem:[#allocation3 + $0x8] ss:$12 sps:$4 sm:$0xff]   ;;  %v2281_v32 = vld [vmem:[#allocation3 + $0x50] ss:$12 sps:$4 sm:$0xff]   ;;  %v2295_v34 = vld [vmem:[#allocation3 + $0x80] ss:$12 sps:$4 sm:$0xff]  }
  0x1d   :  { %1722 = vmatmul.mubr.msk.f32.gmra.mrb[4].mxu1 %vm71_vm0, %v48_v14  ;;  %614 = vmatpush1.bf16.msra.mxu0 %v2153_v5  ;;  %v2290_v33 = vld [vmem:[#allocation3 + $0x68] ss:$12 sps:$4 sm:$0xff]   ;;  %v2299_v35 = vld [vmem:[#allocation3 + $0x98] ss:$12 sps:$4 sm:$0xff]   ;;  %v2303_v36 = vld [vmem:[#allocation3 + $0xb0] ss:$12 sps:$4 sm:$0xff]  }
  0x1e   :  { %504 = vmatpush1.bf16.msra.mxu1 %v2165_v9  ;;  %1724 = vmatprep.mubr.msk.f32.mxu1 %vm71_vm0, %v2189_v15  ;;  %v54_v40 = vld [vmem:[%s2762_s3] sm:$0x7]  ;;  %v58_v53 = vsub.s32 0, %v57_v38  ;;  %v62_v55 = vsub.s32 1, %v57_v38 }
  0x1f   :  { %505 = vmatprep.subr.bf16.mxu1 %v2176_v12  ;;  %1548 = vmatmul.mubr.msk.f32.gmra.mrb[2].mxu0 %vm71_vm0, %v44_v3  ;;  %v2330_v41 = vrot.slane %v54_v40, %v66_v39 }
  0x20   :  { %615 = vmatprep.subr.bf16.mxu0 %v2157_v6  ;;  %172 = vmatprep.mubr.f32.mxu0 %v2770_v0  ;;  %v59_v61 = vrot.slane %v54_v40, %v58_v53  ;;  %v63_v62 = vrot.slane %v54_v40, %v62_v55 }
  0x21   :  { %1725 = vmatmul.mubr.msk.f32.gmra.mrb[6].mxu1 %vm71_vm0, %v2209_v20  ;;  %616 = vmatpush1.bf16.msra.mxu0 %v2160_v7 }
  0x22   :  { %506 = vmatpush1.bf16.msra.mxu1 %v2192_v16  ;;  %531 = vmatprep.mubr.bf16.mxu1 %v2768_v23 }
  0x23   :  { %507 = vmatprep.subr.bf16.mxu1 %v2198_v18  ;;  %1549 = vmatmul.mubr.msk.f32.gmra.mrb[4].mxu0 %vm71_vm0, %v45_v10 }
  0x24   :  { %617 = vmatprep.subr.bf16.mxu0 %v2163_v8  ;;  %178 = vmatprep.mubr.f32.mxu0 %v2770_v0 }
  0x25   :  { %618 = vmatpush1.bf16.msra.mxu0 %v2165_v9 }
  0x26   :  { %508 = vmatpush1.bf16.msra.mxu1 %v2212_v21  ;;  %619 = vmatprep.subr.bf16.mxu0 %v2176_v12 }
  0x27   :  { %509 = vmatprep.subr.bf16.mxu1 %v2216_v22  ;;  %1550 = vmatmul.mubr.msk.f32.gmra.mrb[6].mxu0 %vm71_vm0, %v46_v11 }
  0x28   :  { %184 = vmatprep.mubr.f32.mxu0 %v2770_v0 }
  0x29   :  { %620 = vmatpush1.bf16.msra.mxu0 %v2192_v16 }
  0x2a   :  { %510 = vmatpush1.bf16.msra.mxu1 %v2225_v24  ;;  %621 = vmatprep.subr.bf16.mxu0 %v2198_v18 }
  0x2b   :  { %511 = vmatprep.subr.bf16.mxu1 %v2229_v25  ;;  %1551 = vmatmul.mubr.msk.f32.gmra.mrb[8].mxu0 %vm71_vm0, %v47_v13 }
  0x2c   :  { %190 = vmatprep.mubr.f32.mxu0 %v2770_v0 }
  0x2d   :  { %622 = vmatpush1.bf16.msra.mxu0 %v2212_v21 }
  0x2e   :  { %512 = vmatpush1.bf16.msra.mxu1 %v2232_v26  ;;  %623 = vmatprep.subr.bf16.mxu0 %v2216_v22 }
  0x2f   :  { %513 = vmatprep.subr.bf16.mxu1 %v2235_v27  ;;  %1552 = vmatmul.mubr.msk.f32.gmra.mrb[10].mxu0 %vm71_vm0, %v48_v14 }
  0x30   :  { %196 = vmatprep.mubr.f32.mxu0 %v2770_v0 }
  0x31   :  { %624 = vmatpush1.bf16.msra.mxu0 %v2225_v24 }
  0x32   :  { %514 = vmatpush1.bf16.msra.mxu1 %v2245_v28  ;;  %625 = vmatprep.subr.bf16.mxu0 %v2229_v25 }
  0x33   :  { %1727 = vmatprep.subr.bf16.mxu1 %v2770_v0  ;;  %1553 = vmatmul.mubr.msk.f32.gmra.mrb[12].mxu0 %vm71_vm0, %v2189_v15 }
  0x34   :  { %202 = vmatprep.mubr.f32.mxu0 %v2770_v0 }
  0x35   :  { %532 = vmatmul.mubr.bf16.vlgmr.msra.gmra.mrb[8].mxu1 %v2768_v23  ;;  %626 = vmatpush1.bf16.msra.mxu0 %v2232_v26 }
  0x36   :  { %1728 = vmatpush3.bf16.msra.mxu1 %v2253_v29  ;;  %1743 = vmatprep.mubr.msk.bf16.mxu1 %vm2082_vm1, %v2770_v0 }
  0x37   :  { %1729 = vmatprep.subr.bf16.mxu1 %v2770_v0  ;;  %627 = vmatprep.subr.bf16.mxu0 %v2235_v27 }
  0x38   :  { %1554 = vmatmul.mubr.msk.f32.gmra.mrb[14].mxu0 %vm71_vm0, %v2209_v20 }
  0x39   :  { %645 = vmatprep.mubr.bf16.mxu0 %v2768_v23  ;;  %628 = vmatpush1.bf16.msra.mxu0 %v2245_v28 }
  0x3a   :  { %1730 = vmatpush3.bf16.msra.mxu1 %v2262_v30  ;;  %723 = vmatprep.subr.bf16.mxu0 %v2151_v4 }
  0x3b   :  { %1731 = vmatprep.subr.bf16.mxu1 %v2770_v0 }
  0x3e   :  { %1732 = vmatpush3.bf16.msra.mxu1 %v2272_v31 }
  0x3f   :  { %1733 = vmatprep.subr.bf16.mxu1 %v2770_v0 }
  0x42   :  { %1734 = vmatpush3.bf16.msra.mxu1 %v2281_v32 }
  0x43   :  { %1735 = vmatprep.subr.bf16.mxu1 %v2770_v0 }
  0x46   :  { %1736 = vmatpush3.bf16.msra.mxu1 %v2290_v33 }
  0x47   :  { %1737 = vmatprep.subr.bf16.mxu1 %v2770_v0 }
  0x4a   :  { %1738 = vmatpush3.bf16.msra.mxu1 %v2295_v34 }
  0x4b   :  { %1739 = vmatprep.subr.bf16.mxu1 %v2770_v0 }
  0x4e   :  { %1740 = vmatpush3.bf16.msra.mxu1 %v2299_v35 }
  0x4f   :  { %1741 = vmatprep.subr.bf16.mxu1 %v2770_v0 }
  0x52   :  { %1742 = vmatpush3.bf16.msra.mxu1 %v2303_v36 }
  0x53   :  { %1747 = vmatprep.subr.bf16.mxu1 %v2770_v0 }
  0x55   :  { %1744 = vmatmul.mubr.bf16.vlgmr.msra.gmra.mrb[12].mxu1 %v2768_v23 }
  0x56   :  { %1748 = vmatpush3.bf16.msra.mxu1 %v2253_v29  ;;  %1763 = vmatprep.mubr.msk.bf16.mxu1 %vm2082_vm1, %v2770_v0 }
  0x57   :  { %1749 = vmatprep.subr.bf16.mxu1 %v2770_v0 }
  0x5a   :  { %1750 = vmatpush3.bf16.msra.mxu1 %v2262_v30 }
  0x5b   :  { %1751 = vmatprep.subr.bf16.mxu1 %v2770_v0 }
  0x5e   :  { %1752 = vmatpush3.bf16.msra.mxu1 %v2272_v31 }
  0x5f   :  { %1753 = vmatprep.subr.bf16.mxu1 %v2770_v0 }
  0x62   :  { %1754 = vmatpush3.bf16.msra.mxu1 %v2281_v32 }
  0x63   :  { %1755 = vmatprep.subr.bf16.mxu1 %v2770_v0 }
  0x66   :  { %1756 = vmatpush3.bf16.msra.mxu1 %v2290_v33 }
  0x67   :  { %1757 = vmatprep.subr.bf16.mxu1 %v2770_v0 }
  0x6a   :  { %1758 = vmatpush3.bf16.msra.mxu1 %v2295_v34 }
  0x6b   :  { %1759 = vmatprep.subr.bf16.mxu1 %v2770_v0 }
  0x6e   :  { %1760 = vmatpush3.bf16.msra.mxu1 %v2299_v35 }
  0x6f   :  { %1761 = vmatprep.subr.bf16.mxu1 %v2770_v0 }
  0x72   :  { %1762 = vmatpush3.bf16.msra.mxu1 %v2303_v36 }
  0x73   :  { %1767 = vmatprep.subr.bf16.mxu1 %v2770_v0 }
  0xe8   :  { %v1717_v42 = vpop.f32.mrb[0].mxu1 }
  0xe9   :  { %v2333_v43 = vadd.f32 %v1717_v42, %v2330_v41  ;;  %v2335_v44 = vpop.f32.mrb[1].mxu1 }
  0xec   :  { %v1720_v45 = vpop.f32.mrb[2].mxu1 }
  0xed   :  { %v2338_v46 = vadd.f32 %v1720_v45, %v2330_v41  ;;  %v285_v47 = vpop.f32.mrb[3].mxu1 }
  0xee   :  { %v2341_v48 = vadd.f32 %v285_v47, %v2330_v41  ;;  %v162_v54 = vpop.f32.mrb[0].mxu0 }
  0xef   :  { %v164_v57 = vpop.f32.mrb[1].mxu0  ;;  %v163_v37 = vadd.f32 %v162_v54, %v59_v61 }
  0xf0   :  { %v1723_v49 = vpop.f32.mrb[4].mxu1  ;;  %v165_v39 = vadd.f32 %v164_v57, %v63_v62 }
  0xf1   :  { %v2344_v50 = vadd.f32 %v1723_v49, %v2330_v41  ;;  %v295_v51 = vpop.f32.mrb[5].mxu1 }
  0xf2   :  { %v2347_v52 = vadd.f32 %v295_v51, %v2330_v41  ;;  %v168_v63 = vpop.f32.mrb[2].mxu0 }
  0xf3   :  { %v2355_v1 = vadd.f32 %v168_v63, %v59_v61  ;;  %v170_v2 = vpop.f32.mrb[3].mxu0 }
  0xf4   :  { %v1726_v56 = vpop.f32.mrb[6].mxu1  ;;  %v2357_v3 = vadd.f32 %v170_v2, %v63_v62 }
  0xf5   :  { %v2350_v58 = vadd.f32 %v1726_v56, %v2330_v41  ;;  %v305_v59 = vpop.f32.mrb[7].mxu1 }
  0xf6   :  { %v2353_v60 = vadd.f32 %v305_v59, %v2330_v41  ;;  %v174_v10 = vpop.f32.mrb[4].mxu0 }
  0xf7   :  { %2772 = vst [vmem:[#allocation6_spill] sm:$0xff] %v2350_v58  ;;  %v2359_v11 = vadd.f32 %v174_v10, %v59_v61  ;;  %v176_v13 = vpop.f32.mrb[5].mxu0 }
  0xf8   :  { %v2361_v14 = vadd.f32 %v176_v13, %v63_v62 }
  0xfa   :  { %v180_v15 = vpop.f32.mrb[6].mxu0 }
  0xfb   :  { %v2363_v17 = vadd.f32 %v180_v15, %v59_v61  ;;  %v182_v19 = vpop.f32.mrb[7].mxu0 }
  0xfc   :  { %v2365_v20 = vadd.f32 %v182_v19, %v63_v62 }
  0xfe   :  { %v186_v38 = vpop.f32.mrb[8].mxu0 }
  0xff   :  { %v2367_v40 = vadd.f32 %v186_v38, %v59_v61  ;;  %v188_v42 = vpop.f32.mrb[9].mxu0 }
 0x100   :  { %v2369_v45 = vadd.f32 %v188_v42, %v63_v62 }
 0x102   :  { %v192_v56 = vpop.f32.mrb[10].mxu0 }
 0x103   :  { %v2371_v2 = vadd.f32 %v192_v56, %v59_v61  ;;  %v194_v10 = vpop.f32.mrb[11].mxu0  ;;  %v2386_v56 = vld [vmem:[%s2763_s4] ss:$0 sm:$0xff] }
 0x104   :  { %v2373_v13 = vadd.f32 %v194_v10, %v63_v62 }
 0x106   :  { %v198_v54 = vpop.f32.mrb[12].mxu0 }
 0x107   :  { %v2375_v57 = vadd.f32 %v198_v54, %v59_v61  ;;  %v200_v15 = vpop.f32.mrb[13].mxu0 }
 0x108   :  { %v533_v47 = vpop.f32.mrb[8].mxu1  ;;  %v2377_v19 = vadd.f32 %v200_v15, %v63_v62 }
 0x109   :  { %v583_v49 = vadd.f32 %v533_v47, %v163_v37  ;;  %v535_v51 = vpop.f32.mrb[9].mxu1 }
 0x10a   :  { %v590_v53 = vadd.f32 %v535_v51, %v165_v39  ;;  %v537_v55 = vpop.f32.mrb[10].mxu1 }
 0x10b   :  { %v1587_v59 = vmul.f32 -1.442695, %v583_v49  ;;  %v538_v63 = vpop.f32.mrb[11].mxu1  ;;  %v204_v38 = vpop.f32.mrb[14].mxu0 }
 0x10c   :  { %v2379_v37 = vadd.f32 %v204_v38, %v59_v61  ;;  %v206_v39 = vpop.f32.mrb[15].mxu0  ;;  %v1588_v47 = vmul.f32 -1.442695, %v590_v53 }
 0x10d   :  { %1957 = vpow2.f32 %v1587_v59  ;;  %v2381_v42 = vadd.f32 %v206_v39, %v63_v62  ;;  %v276_v62 = vadd.f32 %v2335_v44, %v2330_v41  ;;  %v2774_v44 = vmov 0.0  }
 0x10e   :  { %1959 = vpow2.f32 %v1588_v47 }
 0x10f   :  { %2773 = vst [vmem:[#allocation7_spill] sm:$0xff] %v2381_v42 }
 0x117   :  { %v1958_v49 = vpop.eup %1957 }
 0x118   :  { %v587_v51 = vadd.f32 1.0, %v1958_v49  ;;  %v1960_v55 = vpop.eup %1959 }
 0x119   :  { %v594_v59 = vadd.f32 1.0, %v1960_v55 }
 0x11a   :  { %1961 = vrcp.f32 %v587_v51 }
 0x11b   :  { %1963 = vrcp.f32 %v594_v59 }
 0x124   :  { %v1962_v54 = vpop.eup %1961 }
 0x125   :  { %v1964_v47 = vpop.eup %1963 }
 0x126   :  { %v607_v49 = vsub.f32 1.0, %v1964_v47  ;;  %v609_v23 = vmul.f32 0.0, %v1964_v47 }
 0x128   :  { %v574_v63 = vpop.f32.mrb[12].mxu1 }
 0x129   :  { %v603_v10 = vadd.f32 %v2386_v56, %v574_v63  ;;  %v1745_v61 = vpop.f32.mrb[13].mxu1 }
 0x12a   :  { %v577_v15 = vpop.f32.mrb[14].mxu1 }
 0x12b   :  { %v604_v53 = vmul.f32 %v1962_v54, %v603_v10  ;;  %v1746_v38 = vpop.f32.mrb[15].mxu1 }
 0x12d   :  { %v605_v39 = vadd.f32 %v604_v53, %v276_v62 }
 0x12f   :  { %1965 = vtanh.f32 %v605_v39 }
 0x139   :  { %v1966_v51 = vpop.eup %1965 }
 0x13a   :  { %v608_v0 = vmul.f32 %v1966_v51, %v607_v49 }
 0x13c   :  { %v2391_v55 = vadd.f32 %v609_v23, %v608_v0  ;;  %v2775_v0 = vmov 0  }
 0x13e   :  { %611 = vst [vmem:[%s2766_s7] sm:$0xff] %v2391_v55  ;;  %v612_v41 = vpack.c.bf16 %v2391_v55, %v2391_v55 }
 0x140   :  { %646 = vmatmul.mubr.bf16.vlgmr.msra.gmra.mrb[16].mxu0 %v612_v41  ;;  %1764 = vmatmul.mubr.bf16.vlgmr.msra.gmra.mrb[16].mxu1 %v612_v41 }
 0x141   :  { %724 = vmatpush1.bf16.msra.mxu0 %v2153_v5  ;;  %1768 = vmatpush3.bf16.msra.mxu1 %v2253_v29 }
 0x142   :  { %725 = vmatprep.subr.bf16.mxu0 %v2157_v6  ;;  %1769 = vmatprep.subr.bf16.mxu1 %v2774_v44 }
 0x143   :  { %755 = vmatprep.mubr.bf16.mxu0 %v2775_v0  ;;  %1783 = vmatprep.mubr.msk.bf16.mxu1 %vm2082_vm1, %v2774_v44 }
 0x145   :  { %726 = vmatpush1.bf16.msra.mxu0 %v2160_v7  ;;  %1770 = vmatpush3.bf16.msra.mxu1 %v2262_v30 }
 0x146   :  { %727 = vmatprep.subr.bf16.mxu0 %v2163_v8  ;;  %1771 = vmatprep.subr.bf16.mxu1 %v2774_v44 }
 0x149   :  { %728 = vmatpush1.bf16.msra.mxu0 %v2165_v9  ;;  %1772 = vmatpush3.bf16.msra.mxu1 %v2272_v31 }
 0x14a   :  { %729 = vmatprep.subr.bf16.mxu0 %v2176_v12  ;;  %1773 = vmatprep.subr.bf16.mxu1 %v2774_v44 }
 0x14d   :  { %730 = vmatpush1.bf16.msra.mxu0 %v2192_v16  ;;  %1774 = vmatpush3.bf16.msra.mxu1 %v2281_v32 }
 0x14e   :  { %731 = vmatprep.subr.bf16.mxu0 %v2198_v18  ;;  %1775 = vmatprep.subr.bf16.mxu1 %v2774_v44 }
 0x151   :  { %732 = vmatpush1.bf16.msra.mxu0 %v2212_v21  ;;  %1776 = vmatpush3.bf16.msra.mxu1 %v2290_v33 }
 0x152   :  { %733 = vmatprep.subr.bf16.mxu0 %v2216_v22  ;;  %1777 = vmatprep.subr.bf16.mxu1 %v2774_v44 }
 0x155   :  { %734 = vmatpush1.bf16.msra.mxu0 %v2225_v24  ;;  %1778 = vmatpush3.bf16.msra.mxu1 %v2295_v34 }
 0x156   :  { %735 = vmatprep.subr.bf16.mxu0 %v2229_v25  ;;  %1779 = vmatprep.subr.bf16.mxu1 %v2774_v44 }
 0x159   :  { %736 = vmatpush1.bf16.msra.mxu0 %v2232_v26  ;;  %1780 = vmatpush3.bf16.msra.mxu1 %v2299_v35 }
 0x15a   :  { %737 = vmatprep.subr.bf16.mxu0 %v2235_v27  ;;  %1781 = vmatprep.subr.bf16.mxu1 %v2774_v44 }
 0x15d   :  { %738 = vmatpush1.bf16.msra.mxu0 %v2245_v28  ;;  %1782 = vmatpush3.bf16.msra.mxu1 %v2303_v36 }
 0x15e   :  { %833 = vmatprep.subr.bf16.mxu0 %v2151_v4  ;;  %1787 = vmatprep.subr.bf16.mxu1 %v2774_v44 }
 0x213   :  { %v647_v23 = vpop.f32.mrb[16].mxu0  ;;  %v688_v59 = vpop.f32.mrb[16].mxu1 }
 0x214   :  { %v698_v63 = vadd.f32 %v647_v23, %v2355_v1  ;;  %v649_v10 = vpop.f32.mrb[17].mxu0  ;;  %v1765_v61 = vpop.f32.mrb[17].mxu1  ;;  %v712_v42 = vadd.f32 %v2386_v56, %v688_v59 }
 0x215   :  { %v705_v54 = vadd.f32 %v649_v10, %v2357_v3  ;;  %v651_v15 = vpop.f32.mrb[18].mxu0  ;;  %v691_v62 = vpop.f32.mrb[18].mxu1 }
 0x216   :  { %v1590_v53 = vmul.f32 -1.442695, %v698_v63  ;;  %v652_v38 = vpop.f32.mrb[19].mxu0  ;;  %v1766_v39 = vpop.f32.mrb[19].mxu1 }
 0x217   :  { %v1591_v47 = vmul.f32 -1.442695, %v705_v54 }
 0x218   :  { %1967 = vpow2.f32 %v1590_v53 }
 0x219   :  { %1969 = vpow2.f32 %v1591_v47 }
 0x222   :  { %v1968_v49 = vpop.eup %1967 }
 0x223   :  { %v702_v51 = vadd.f32 1.0, %v1968_v49  ;;  %v1970_v41 = vpop.eup %1969 }
 0x224   :  { %v709_v58 = vadd.f32 1.0, %v1970_v41 }
 0x225   :  { %1971 = vrcp.f32 %v702_v51 }
 0x226   :  { %1973 = vrcp.f32 %v709_v58 }
 0x22f   :  { %v1972_v1 = vpop.eup %1971 }
 0x230   :  { %v713_v23 = vmul.f32 %v1972_v1, %v712_v42  ;;  %v1974_v10 = vpop.eup %1973 }
 0x231   :  { %v716_v63 = vsub.f32 1.0, %v1974_v10  ;;  %v718_v54 = vmul.f32 %v1974_v10, %v2391_v55 }
 0x232   :  { %v714_v3 = vadd.f32 %v713_v23, %v2333_v43 }
 0x234   :  { %1975 = vtanh.f32 %v714_v3 }
 0x23e   :  { %v1976_v61 = vpop.eup %1975 }
 0x23f   :  { %v717_v15 = vmul.f32 %v1976_v61, %v716_v63 }
 0x241   :  { %v2439_v62 = vadd.f32 %v718_v54, %v717_v15 }
 0x243   :  { %1592 = vst [vmem:[%s2766_s7 + $0x8] sm:$0xff] %v2439_v62  ;;  %v722_v42 = vpack.c.bf16 %v2439_v62, %v2439_v62 }
 0x245   :  { %756 = vmatmul.mubr.bf16.vlgmr.msra.gmra.mrb[20].mxu0 %v722_v42  ;;  %1784 = vmatmul.mubr.bf16.vlgmr.msra.gmra.mrb[20].mxu1 %v722_v42 }
 0x246   :  { %834 = vmatpush1.bf16.msra.mxu0 %v2153_v5  ;;  %1788 = vmatpush3.bf16.msra.mxu1 %v2253_v29 }
 0x247   :  { %835 = vmatprep.subr.bf16.mxu0 %v2157_v6  ;;  %1789 = vmatprep.subr.bf16.mxu1 %v2774_v44 }
 0x248   :  { %865 = vmatprep.mubr.bf16.mxu0 %v2775_v0  ;;  %1803 = vmatprep.mubr.msk.bf16.mxu1 %vm2082_vm1, %v2774_v44 }
 0x24a   :  { %836 = vmatpush1.bf16.msra.mxu0 %v2160_v7  ;;  %1790 = vmatpush3.bf16.msra.mxu1 %v2262_v30 }
 0x24b   :  { %837 = vmatprep.subr.bf16.mxu0 %v2163_v8  ;;  %1791 = vmatprep.subr.bf16.mxu1 %v2774_v44 }
 0x24e   :  { %838 = vmatpush1.bf16.msra.mxu0 %v2165_v9  ;;  %1792 = vmatpush3.bf16.msra.mxu1 %v2272_v31 }
 0x24f   :  { %839 = vmatprep.subr.bf16.mxu0 %v2176_v12  ;;  %1793 = vmatprep.subr.bf16.mxu1 %v2774_v44 }
 0x252   :  { %840 = vmatpush1.bf16.msra.mxu0 %v2192_v16  ;;  %1794 = vmatpush3.bf16.msra.mxu1 %v2281_v32 }
 0x253   :  { %841 = vmatprep.subr.bf16.mxu0 %v2198_v18  ;;  %1795 = vmatprep.subr.bf16.mxu1 %v2774_v44 }
 0x256   :  { %842 = vmatpush1.bf16.msra.mxu0 %v2212_v21  ;;  %1796 = vmatpush3.bf16.msra.mxu1 %v2290_v33 }
 0x257   :  { %843 = vmatprep.subr.bf16.mxu0 %v2216_v22  ;;  %1797 = vmatprep.subr.bf16.mxu1 %v2774_v44 }
 0x25a   :  { %844 = vmatpush1.bf16.msra.mxu0 %v2225_v24  ;;  %1798 = vmatpush3.bf16.msra.mxu1 %v2295_v34 }
 0x25b   :  { %845 = vmatprep.subr.bf16.mxu0 %v2229_v25  ;;  %1799 = vmatprep.subr.bf16.mxu1 %v2774_v44 }
 0x25e   :  { %846 = vmatpush1.bf16.msra.mxu0 %v2232_v26  ;;  %1800 = vmatpush3.bf16.msra.mxu1 %v2299_v35 }
 0x25f   :  { %847 = vmatprep.subr.bf16.mxu0 %v2235_v27  ;;  %1801 = vmatprep.subr.bf16.mxu1 %v2774_v44 }
 0x262   :  { %848 = vmatpush1.bf16.msra.mxu0 %v2245_v28  ;;  %1802 = vmatpush3.bf16.msra.mxu1 %v2303_v36 }
 0x263   :  { %943 = vmatprep.subr.bf16.mxu0 %v2151_v4  ;;  %1807 = vmatprep.subr.bf16.mxu1 %v2774_v44 }
 0x318   :  { %v757_v43 = vpop.f32.mrb[20].mxu0  ;;  %v798_v58 = vpop.f32.mrb[20].mxu1 }
 0x319   :  { %v808_v59 = vadd.f32 %v757_v43, %v2359_v11  ;;  %v759_v53 = vpop.f32.mrb[21].mxu0  ;;  %v1785_v38 = vpop.f32.mrb[21].mxu1  ;;  %v822_v15 = vadd.f32 %v2386_v56, %v798_v58 }
 0x31a   :  { %v815_v39 = vadd.f32 %v759_v53, %v2361_v14  ;;  %v761_v47 = vpop.f32.mrb[22].mxu0  ;;  %v801_v49 = vpop.f32.mrb[22].mxu1 }
 0x31b   :  { %v1593_v51 = vmul.f32 -1.442695, %v808_v59  ;;  %v762_v41 = vpop.f32.mrb[23].mxu0  ;;  %v1786_v1 = vpop.f32.mrb[23].mxu1 }
 0x31c   :  { %v1594_v23 = vmul.f32 -1.442695, %v815_v39 }
 0x31d   :  { %1977 = vpow2.f32 %v1593_v51 }
 0x31e   :  { %1979 = vpow2.f32 %v1594_v23 }
 0x327   :  { %v1978_v3 = vpop.eup %1977 }
 0x328   :  { %v812_v10 = vadd.f32 1.0, %v1978_v3  ;;  %v1980_v63 = vpop.eup %1979 }
 0x329   :  { %v819_v61 = vadd.f32 1.0, %v1980_v63 }
 0x32a   :  { %1981 = vrcp.f32 %v812_v10 }
 0x32b   :  { %1983 = vrcp.f32 %v819_v61 }
 0x334   :  { %v1982_v11 = vpop.eup %1981 }
 0x335   :  { %v823_v54 = vmul.f32 %v1982_v11, %v822_v15  ;;  %v1984_v42 = vpop.eup %1983 }
 0x336   :  { %v826_v43 = vsub.f32 1.0, %v1984_v42  ;;  %v828_v38 = vmul.f32 %v1984_v42, %v2439_v62 }
 0x337   :  { %v824_v14 = vadd.f32 %v823_v54, %v2341_v48 }
 0x339   :  { %1985 = vtanh.f32 %v824_v14 }
 0x343   :  { %v1986_v59 = vpop.eup %1985 }
 0x344   :  { %v827_v53 = vmul.f32 %v1986_v59, %v826_v43 }
 0x346   :  { %v2487_v39 = vadd.f32 %v828_v38, %v827_v53 }
 0x348   :  { %1595 = vst [vmem:[%s2766_s7 + $0x10] sm:$0xff] %v2487_v39  ;;  %v832_v58 = vpack.c.bf16 %v2487_v39, %v2487_v39 }
 0x34a   :  { %866 = vmatmul.mubr.bf16.vlgmr.msra.gmra.mrb[24].mxu0 %v832_v58  ;;  %1804 = vmatmul.mubr.bf16.vlgmr.msra.gmra.mrb[24].mxu1 %v832_v58 }
 0x34b   :  { %944 = vmatpush1.bf16.msra.mxu0 %v2153_v5  ;;  %1808 = vmatpush3.bf16.msra.mxu1 %v2253_v29 }
 0x34c   :  { %945 = vmatprep.subr.bf16.mxu0 %v2157_v6  ;;  %1809 = vmatprep.subr.bf16.mxu1 %v2774_v44 }
 0x34d   :  { %975 = vmatprep.mubr.bf16.mxu0 %v2775_v0  ;;  %1823 = vmatprep.mubr.msk.bf16.mxu1 %vm2082_vm1, %v2774_v44 }
 0x34f   :  { %946 = vmatpush1.bf16.msra.mxu0 %v2160_v7  ;;  %1810 = vmatpush3.bf16.msra.mxu1 %v2262_v30 }
 0x350   :  { %947 = vmatprep.subr.bf16.mxu0 %v2163_v8  ;;  %1811 = vmatprep.subr.bf16.mxu1 %v2774_v44 }
 0x353   :  { %948 = vmatpush1.bf16.msra.mxu0 %v2165_v9  ;;  %1812 = vmatpush3.bf16.msra.mxu1 %v2272_v31 }
 0x354   :  { %949 = vmatprep.subr.bf16.mxu0 %v2176_v12  ;;  %1813 = vmatprep.subr.bf16.mxu1 %v2774_v44 }
 0x357   :  { %950 = vmatpush1.bf16.msra.mxu0 %v2192_v16  ;;  %1814 = vmatpush3.bf16.msra.mxu1 %v2281_v32 }
 0x358   :  { %951 = vmatprep.subr.bf16.mxu0 %v2198_v18  ;;  %1815 = vmatprep.subr.bf16.mxu1 %v2774_v44 }
 0x35b   :  { %952 = vmatpush1.bf16.msra.mxu0 %v2212_v21  ;;  %1816 = vmatpush3.bf16.msra.mxu1 %v2290_v33 }
 0x35c   :  { %953 = vmatprep.subr.bf16.mxu0 %v2216_v22  ;;  %1817 = vmatprep.subr.bf16.mxu1 %v2774_v44 }
 0x35f   :  { %954 = vmatpush1.bf16.msra.mxu0 %v2225_v24  ;;  %1818 = vmatpush3.bf16.msra.mxu1 %v2295_v34 }
 0x360   :  { %955 = vmatprep.subr.bf16.mxu0 %v2229_v25  ;;  %1819 = vmatprep.subr.bf16.mxu1 %v2774_v44 }
 0x363   :  { %956 = vmatpush1.bf16.msra.mxu0 %v2232_v26  ;;  %1820 = vmatpush3.bf16.msra.mxu1 %v2299_v35 }
 0x364   :  { %957 = vmatprep.subr.bf16.mxu0 %v2235_v27  ;;  %1821 = vmatprep.subr.bf16.mxu1 %v2774_v44 }
 0x367   :  { %958 = vmatpush1.bf16.msra.mxu0 %v2245_v28  ;;  %1822 = vmatpush3.bf16.msra.mxu1 %v2303_v36 }
 0x368   :  { %1053 = vmatprep.subr.bf16.mxu0 %v2151_v4  ;;  %1827 = vmatprep.subr.bf16.mxu1 %v2774_v44 }
 0x41d   :  { %v867_v48 = vpop.f32.mrb[24].mxu0  ;;  %v908_v47 = vpop.f32.mrb[24].mxu1 }
 0x41e   :  { %v918_v49 = vadd.f32 %v867_v48, %v2363_v17  ;;  %v869_v51 = vpop.f32.mrb[25].mxu0  ;;  %v1805_v41 = vpop.f32.mrb[25].mxu1  ;;  %v932_v43 = vadd.f32 %v2386_v56, %v908_v47 }
 0x41f   :  { %v925_v1 = vadd.f32 %v869_v51, %v2365_v20  ;;  %v871_v23 = vpop.f32.mrb[26].mxu0  ;;  %v911_v3 = vpop.f32.mrb[26].mxu1 }
 0x420   :  { %v1596_v10 = vmul.f32 -1.442695, %v918_v49  ;;  %v872_v63 = vpop.f32.mrb[27].mxu0  ;;  %v1806_v61 = vpop.f32.mrb[27].mxu1 }
 0x421   :  { %v1597_v15 = vmul.f32 -1.442695, %v925_v1 }
 0x422   :  { %1987 = vpow2.f32 %v1596_v10 }
 0x423   :  { %1989 = vpow2.f32 %v1597_v15 }
 0x42c   :  { %v1988_v11 = vpop.eup %1987 }
 0x42d   :  { %v922_v54 = vadd.f32 1.0, %v1988_v11  ;;  %v1990_v14 = vpop.eup %1989 }
 0x42e   :  { %v929_v42 = vadd.f32 1.0, %v1990_v14 }
 0x42f   :  { %1991 = vrcp.f32 %v922_v54 }
 0x430   :  { %1993 = vrcp.f32 %v929_v42 }
 0x439   :  { %v1992_v17 = vpop.eup %1991 }
 0x43a   :  { %v933_v59 = vmul.f32 %v1992_v17, %v932_v43  ;;  %v1994_v53 = vpop.eup %1993 }
 0x43b   :  { %v936_v38 = vsub.f32 1.0, %v1994_v53  ;;  %v938_v49 = vmul.f32 %v1994_v53, %v2487_v39  ;;  %v2602_v53 = vld [vmem:[#allocation3 + $0x18] ss:$12 sps:$4 sm:$0xff]  }
 0x43c   :  { %v934_v20 = vadd.f32 %v933_v59, %v2338_v46 }
 0x43e   :  { %1995 = vtanh.f32 %v934_v20  ;;  %v2595_v20 = vld [vmem:[#allocation3 + $0x1c] ss:$12 sps:$4 sm:$0xff]  }
 0x448   :  { %v1996_v58 = vpop.eup %1995 }
 0x449   :  { %v937_v48 = vmul.f32 %v1996_v58, %v936_v38  ;;  %v2606_v38 = vld [vmem:[#allocation3 + $0x34] ss:$12 sps:$4 sm:$0xff]   ;;  %v2610_v58 = vld [vmem:[#allocation3 + $0x30] ss:$12 sps:$4 sm:$0xff]  }
 0x44b   :  { %v2535_v51 = vadd.f32 %v938_v49, %v937_v48  ;;  %v2614_v48 = vld [vmem:[#allocation3 + $0x4c] ss:$12 sps:$4 sm:$0xff]   ;;  %v2618_v49 = vld [vmem:[#allocation3 + $0x48] ss:$12 sps:$4 sm:$0xff]  }
 0x44d   :  { %1598 = vst [vmem:[%s2766_s7 + $0x18] sm:$0xff] %v2535_v51  ;;  %v942_v47 = vpack.c.bf16 %v2535_v51, %v2535_v51 }
 0x44f   :  { %976 = vmatmul.mubr.bf16.vlgmr.msra.gmra.mrb[28].mxu0 %v942_v47  ;;  %1824 = vmatmul.mubr.bf16.vlgmr.msra.gmra.mrb[28].mxu1 %v942_v47  ;;  %v2622_v47 = vld [vmem:[#allocation3 + $0x64] ss:$12 sps:$4 sm:$0xff]  }
 0x450   :  { %1054 = vmatpush1.bf16.msra.mxu0 %v2153_v5  ;;  %1828 = vmatpush3.bf16.msra.mxu1 %v2253_v29 }
 0x451   :  { %1055 = vmatprep.subr.bf16.mxu0 %v2157_v6  ;;  %1829 = vmatprep.subr.bf16.mxu1 %v2774_v44 }
 0x452   :  { %1085 = vmatprep.mubr.bf16.mxu0 %v2775_v0  ;;  %1843 = vmatprep.mubr.msk.bf16.mxu1 %vm2082_vm1, %v2774_v44 }
 0x454   :  { %1056 = vmatpush1.bf16.msra.mxu0 %v2160_v7  ;;  %1830 = vmatpush3.bf16.msra.mxu1 %v2262_v30 }
 0x455   :  { %1057 = vmatprep.subr.bf16.mxu0 %v2163_v8  ;;  %1831 = vmatprep.subr.bf16.mxu1 %v2774_v44 }
 0x458   :  { %1058 = vmatpush1.bf16.msra.mxu0 %v2165_v9  ;;  %1832 = vmatpush3.bf16.msra.mxu1 %v2272_v31 }
 0x459   :  { %1059 = vmatprep.subr.bf16.mxu0 %v2176_v12  ;;  %1833 = vmatprep.subr.bf16.mxu1 %v2774_v44 }
 0x45c   :  { %1060 = vmatpush1.bf16.msra.mxu0 %v2192_v16  ;;  %1834 = vmatpush3.bf16.msra.mxu1 %v2281_v32 }
 0x45d   :  { %1061 = vmatprep.subr.bf16.mxu0 %v2198_v18  ;;  %1835 = vmatprep.subr.bf16.mxu1 %v2774_v44 }
 0x460   :  { %1062 = vmatpush1.bf16.msra.mxu0 %v2212_v21  ;;  %1836 = vmatpush3.bf16.msra.mxu1 %v2290_v33 }
 0x461   :  { %1063 = vmatprep.subr.bf16.mxu0 %v2216_v22  ;;  %1837 = vmatprep.subr.bf16.mxu1 %v2774_v44 }
 0x464   :  { %1064 = vmatpush1.bf16.msra.mxu0 %v2225_v24  ;;  %1838 = vmatpush3.bf16.msra.mxu1 %v2295_v34 }
 0x465   :  { %1065 = vmatprep.subr.bf16.mxu0 %v2229_v25  ;;  %1839 = vmatprep.subr.bf16.mxu1 %v2774_v44 }
 0x468   :  { %1066 = vmatpush1.bf16.msra.mxu0 %v2232_v26  ;;  %1840 = vmatpush3.bf16.msra.mxu1 %v2299_v35 }
 0x469   :  { %1067 = vmatprep.subr.bf16.mxu0 %v2235_v27  ;;  %1841 = vmatprep.subr.bf16.mxu1 %v2774_v44 }
 0x46c   :  { %1068 = vmatpush1.bf16.msra.mxu0 %v2245_v28  ;;  %1842 = vmatpush3.bf16.msra.mxu1 %v2303_v36 }
 0x46d   :  { %1163 = vmatprep.subr.bf16.mxu0 %v2151_v4  ;;  %1847 = vmatprep.subr.bf16.mxu1 %v2774_v44 }
 0x522   :  { %v977_v5 = vpop.f32.mrb[28].mxu0  ;;  %v1018_v6 = vpop.f32.mrb[28].mxu1 }
 0x523   :  { %v1028_v7 = vadd.f32 %v977_v5, %v2367_v40  ;;  %v979_v8 = vpop.f32.mrb[29].mxu0  ;;  %v1825_v9 = vpop.f32.mrb[29].mxu1  ;;  %v1042_v61 = vadd.f32 %v2386_v56, %v1018_v6 }
 0x524   :  { %v1035_v12 = vadd.f32 %v979_v8, %v2369_v45  ;;  %v981_v16 = vpop.f32.mrb[30].mxu0  ;;  %v1021_v18 = vpop.f32.mrb[30].mxu1 }
 0x525   :  { %v1599_v46 = vmul.f32 -1.442695, %v1028_v7  ;;  %v982_v41 = vpop.f32.mrb[31].mxu0  ;;  %v1826_v1 = vpop.f32.mrb[31].mxu1 }
 0x526   :  { %v1600_v23 = vmul.f32 -1.442695, %v1035_v12 }
 0x527   :  { %1997 = vpow2.f32 %v1599_v46 }
 0x528   :  { %1999 = vpow2.f32 %v1600_v23 }
 0x531   :  { %v1998_v3 = vpop.eup %1997 }
 0x532   :  { %v1032_v4 = vadd.f32 1.0, %v1998_v3  ;;  %v2000_v10 = vpop.eup %1999 }
 0x533   :  { %v1039_v63 = vadd.f32 1.0, %v2000_v10 }
 0x534   :  { %2001 = vrcp.f32 %v1032_v4 }
 0x535   :  { %2003 = vrcp.f32 %v1039_v63 }
 0x53e   :  { %v2002_v40 = vpop.eup %2001 }
 0x53f   :  { %v1043_v15 = vmul.f32 %v2002_v40, %v1042_v61  ;;  %v2004_v11 = vpop.eup %2003 }
 0x540   :  { %v1046_v54 = vsub.f32 1.0, %v2004_v11  ;;  %v1048_v43 = vmul.f32 %v2004_v11, %v2535_v51 }
 0x541   :  { %v1044_v45 = vadd.f32 %v1043_v15, %v2347_v52  ;;  %v2591_v52 = vld [vmem:[#allocation3] ss:$12 sps:$4 sm:$0xff]  }
 0x543   :  { %2005 = vtanh.f32 %v1044_v45 }
 0x54d   :  { %v2006_v14 = vpop.eup %2005 }
 0x54e   :  { %v1047_v42 = vmul.f32 %v2006_v14, %v1046_v54 }
 0x550   :  { %v2583_v17 = vadd.f32 %v1048_v43, %v1047_v42 }
 0x552   :  { %1601 = vst [vmem:[%s2766_s7 + $0x20] sm:$0xff] %v2583_v17  ;;  %v1052_v59 = vpack.c.bf16 %v2583_v17, %v2583_v17 }
 0x554   :  { %1086 = vmatmul.mubr.bf16.vlgmr.msra.gmra.mrb[32].mxu0 %v1052_v59  ;;  %1844 = vmatmul.mubr.bf16.vlgmr.msra.gmra.mrb[32].mxu1 %v1052_v59 }
 0x555   :  { %1164 = vmatpush1.bf16.msra.mxu0 %v2591_v52  ;;  %1848 = vmatpush3.bf16.msra.mxu1 %v2253_v29 }
 0x556   :  { %1165 = vmatprep.subr.bf16.mxu0 %v2595_v20  ;;  %1849 = vmatprep.subr.bf16.mxu1 %v2774_v44 }
 0x557   :  { %1195 = vmatprep.mubr.bf16.mxu0 %v2775_v0  ;;  %1863 = vmatprep.mubr.msk.bf16.mxu1 %vm2082_vm1, %v2774_v44 }
 0x559   :  { %1166 = vmatpush1.bf16.msra.mxu0 %v2602_v53  ;;  %1850 = vmatpush3.bf16.msra.mxu1 %v2262_v30 }
 0x55a   :  { %1167 = vmatprep.subr.bf16.mxu0 %v2606_v38  ;;  %1851 = vmatprep.subr.bf16.mxu1 %v2774_v44 }
 0x55d   :  { %1168 = vmatpush1.bf16.msra.mxu0 %v2610_v58  ;;  %1852 = vmatpush3.bf16.msra.mxu1 %v2272_v31 }
 0x55e   :  { %1169 = vmatprep.subr.bf16.mxu0 %v2614_v48  ;;  %1853 = vmatprep.subr.bf16.mxu1 %v2774_v44 }
 0x561   :  { %1170 = vmatpush1.bf16.msra.mxu0 %v2618_v49  ;;  %1854 = vmatpush3.bf16.msra.mxu1 %v2281_v32 }
 0x562   :  { %1171 = vmatprep.subr.bf16.mxu0 %v2622_v47  ;;  %1855 = vmatprep.subr.bf16.mxu1 %v2774_v44 }
 0x565   :  { %1172 = vmatpush1.bf16.msra.mxu0 %v2212_v21  ;;  %1856 = vmatpush3.bf16.msra.mxu1 %v2290_v33  ;;  %v2045_v21 = vld [vmem:[#allocation3 + $0x4] ss:$12 sps:$4 sm:$0xff]  }
 0x566   :  { %1173 = vmatprep.subr.bf16.mxu0 %v2216_v22  ;;  %1857 = vmatprep.subr.bf16.mxu1 %v2774_v44 }
 0x569   :  { %1174 = vmatpush1.bf16.msra.mxu0 %v2225_v24  ;;  %1858 = vmatpush3.bf16.msra.mxu1 %v2295_v34 }
 0x56a   :  { %1175 = vmatprep.subr.bf16.mxu0 %v2229_v25  ;;  %1859 = vmatprep.subr.bf16.mxu1 %v2774_v44 }
 0x56d   :  { %1176 = vmatpush1.bf16.msra.mxu0 %v2232_v26  ;;  %1860 = vmatpush3.bf16.msra.mxu1 %v2299_v35 }
 0x56e   :  { %1177 = vmatprep.subr.bf16.mxu0 %v2235_v27  ;;  %1861 = vmatprep.subr.bf16.mxu1 %v2774_v44 }
 0x571   :  { %1178 = vmatpush1.bf16.msra.mxu0 %v2245_v28  ;;  %1862 = vmatpush3.bf16.msra.mxu1 %v2303_v36 }
 0x572   :  { %1273 = vmatprep.subr.bf16.mxu0 %v2045_v21  ;;  %1867 = vmatprep.subr.bf16.mxu1 %v2774_v44 }
 0x627   :  { %v1087_v22 = vpop.f32.mrb[32].mxu0  ;;  %v1128_v24 = vpop.f32.mrb[32].mxu1 }
 0x628   :  { %v1138_v25 = vadd.f32 %v1087_v22, %v2371_v2  ;;  %v1089_v5 = vpop.f32.mrb[33].mxu0  ;;  %v1845_v26 = vpop.f32.mrb[33].mxu1  ;;  %v1152_v1 = vadd.f32 %v2386_v56, %v1128_v24 }
 0x629   :  { %v1145_v6 = vadd.f32 %v1089_v5, %v2373_v13  ;;  %v1091_v7 = vpop.f32.mrb[34].mxu0  ;;  %v1131_v27 = vpop.f32.mrb[34].mxu1 }
 0x62a   :  { %v1602_v8 = vmul.f32 -1.442695, %v1138_v25  ;;  %v1092_v9 = vpop.f32.mrb[35].mxu0  ;;  %v1846_v12 = vpop.f32.mrb[35].mxu1  ;;  %v1406_v7 = vpack.c.bf16 %v2439_v62, %v2391_v55  ;;  %v1951_v27 = vld [vmem:[%s2764_s5 + $0x10] sm:$0xff]   ;;  %v1953_v55 = vld [vmem:[%s2764_s5 + $0x20] sm:$0xff]  }
 0x62b   :  { %v1603_v28 = vmul.f32 -1.442695, %v1145_v6  ;;  %v1954_v62 = vld [vmem:[%s2764_s5 + $0x28] sm:$0xff]   ;;  %v1955_v9 = vld [vmem:[%s2764_s5 + $0x30] sm:$0xff]   ;;  %v1956_v12 = vld [vmem:[%s2764_s5 + $0x38] sm:$0xff]  }
 0x62c   :  { %2007 = vpow2.f32 %v1602_v8  ;;  %v1952_v8 = vld [vmem:[%s2764_s5 + $0x18] sm:$0xff]  }
 0x62d   :  { %2009 = vpow2.f32 %v1603_v28  ;;  %v1407_v28 = vpack.c.bf16 %v2535_v51, %v2487_v39 }
 0x636   :  { %v2008_v16 = vpop.eup %2007 }
 0x637   :  { %v1142_v18 = vadd.f32 1.0, %v2008_v16  ;;  %v2010_v46 = vpop.eup %2009 }
 0x638   :  { %v1149_v41 = vadd.f32 1.0, %v2010_v46 }
 0x639   :  { %2011 = vrcp.f32 %v1142_v18 }
 0x63a   :  { %2013 = vrcp.f32 %v1149_v41 }
 0x643   :  { %v2012_v2 = vpop.eup %2011 }
 0x644   :  { %v1153_v23 = vmul.f32 %v2012_v2, %v1152_v1  ;;  %v2014_v3 = vpop.eup %2013 }
 0x645   :  { %v1156_v4 = vsub.f32 1.0, %v2014_v3  ;;  %v1158_v61 = vmul.f32 %v2014_v3, %v2583_v17 }
 0x646   :  { %v1154_v13 = vadd.f32 %v1153_v23, %v2344_v50  ;;  %v2049_v50 = vld [vmem:[#allocation3 + $0x94] ss:$12 sps:$4 sm:$0xff]   ;;  %v2776_v23 = vld [vmem:[#allocation7_spill] sm:$0xff] }
 0x648   :  { %2015 = vtanh.f32 %v1154_v13 }
 0x652   :  { %v2016_v10 = vpop.eup %2015 }
 0x653   :  { %v1157_v63 = vmul.f32 %v2016_v10, %v1156_v4 }
 0x655   :  { %v2646_v40 = vadd.f32 %v1158_v61, %v1157_v63 }
 0x657   :  { %1604 = vst [vmem:[%s2766_s7 + $0x28] sm:$0xff] %v2646_v40  ;;  %v1162_v15 = vpack.c.bf16 %v2646_v40, %v2646_v40  ;;  %v1408_v16 = vpack.c.bf16 %v2646_v40, %v2583_v17 }
 0x659   :  { %1196 = vmatmul.mubr.bf16.vlgmr.msra.gmra.mrb[36].mxu0 %v1162_v15  ;;  %1864 = vmatmul.mubr.bf16.vlgmr.msra.gmra.mrb[36].mxu1 %v1162_v15 }
 0x65a   :  { %1274 = vmatpush1.bf16.msra.mxu0 %v2591_v52  ;;  %1868 = vmatpush3.bf16.msra.mxu1 %v2253_v29  ;;  %v2046_v29 = vld [vmem:[#allocation3 + $0x60] ss:$12 sps:$4 sm:$0xff]  }
 0x65b   :  { %1275 = vmatprep.subr.bf16.mxu0 %v2595_v20  ;;  %1869 = vmatprep.subr.bf16.mxu1 %v2774_v44 }
 0x65c   :  { %1305 = vmatprep.mubr.bf16.mxu0 %v2775_v0  ;;  %1883 = vmatprep.mubr.msk.bf16.mxu1 %vm2082_vm1, %v2774_v44  ;;  %v2051_v0 = vld [vmem:[#allocation3 + $0xac] ss:$12 sps:$4 sm:$0xff]  }
 0x65e   :  { %1276 = vmatpush1.bf16.msra.mxu0 %v2602_v53  ;;  %1870 = vmatpush3.bf16.msra.mxu1 %v2262_v30  ;;  %v2047_v30 = vld [vmem:[#allocation3 + $0x7c] ss:$12 sps:$4 sm:$0xff]  }
 0x65f   :  { %1277 = vmatprep.subr.bf16.mxu0 %v2606_v38  ;;  %1871 = vmatprep.subr.bf16.mxu1 %v2774_v44 }
 0x662   :  { %1278 = vmatpush1.bf16.msra.mxu0 %v2610_v58  ;;  %1872 = vmatpush3.bf16.msra.mxu1 %v2272_v31  ;;  %v2048_v31 = vld [vmem:[#allocation3 + $0x78] ss:$12 sps:$4 sm:$0xff]  }
 0x663   :  { %1279 = vmatprep.subr.bf16.mxu0 %v2614_v48  ;;  %1873 = vmatprep.subr.bf16.mxu1 %v2774_v44 }
 0x666   :  { %1280 = vmatpush1.bf16.msra.mxu0 %v2618_v49  ;;  %1874 = vmatpush3.bf16.msra.mxu1 %v2281_v32  ;;  %v2050_v32 = vld [vmem:[#allocation3 + $0x90] ss:$12 sps:$4 sm:$0xff]  }
 0x667   :  { %1281 = vmatprep.subr.bf16.mxu0 %v2622_v47  ;;  %1875 = vmatprep.subr.bf16.mxu1 %v2774_v44 }
 0x66a   :  { %1282 = vmatpush1.bf16.msra.mxu0 %v2046_v29  ;;  %1876 = vmatpush3.bf16.msra.mxu1 %v2290_v33  ;;  %v2052_v33 = vld [vmem:[#allocation3 + $0xa8] ss:$12 sps:$4 sm:$0xff]  }
 0x66b   :  { %1283 = vmatprep.subr.bf16.mxu0 %v2047_v30  ;;  %1877 = vmatprep.subr.bf16.mxu1 %v2774_v44 }
 0x66e   :  { %1284 = vmatpush1.bf16.msra.mxu0 %v2048_v31  ;;  %1878 = vmatpush3.bf16.msra.mxu1 %v2295_v34  ;;  %v1949_v34 = vld [vmem:[%s2764_s5] sm:$0xff]  }
 0x66f   :  { %1285 = vmatprep.subr.bf16.mxu0 %v2049_v50  ;;  %1879 = vmatprep.subr.bf16.mxu1 %v2774_v44  ;;  %v1611_v31 = vld [vmem:[%s2765_s6] ss:$0 sm:$0xff] }
 0x670   :  { %v2777_v50 = vld [vmem:[#allocation6_spill] sm:$0xff] }
 0x672   :  { %1286 = vmatpush1.bf16.msra.mxu0 %v2050_v32  ;;  %1880 = vmatpush3.bf16.msra.mxu1 %v2299_v35 }
 0x673   :  { %1287 = vmatprep.subr.bf16.mxu0 %v2051_v0  ;;  %1881 = vmatprep.subr.bf16.mxu1 %v2774_v44 }
 0x676   :  { %1288 = vmatpush1.bf16.msra.mxu0 %v2052_v33  ;;  %1882 = vmatpush3.bf16.msra.mxu1 %v2303_v36 }
 0x677   :  { %1887 = vmatprep.subr.bf16.mxu0 %v1949_v34 }
 0x72c   :  { %v1197_v45 = vpop.f32.mrb[36].mxu0  ;;  %v1238_v11 = vpop.f32.mrb[36].mxu1 }
 0x72d   :  { %v1248_v54 = vadd.f32 %v1197_v45, %v2375_v57  ;;  %v1199_v14 = vpop.f32.mrb[37].mxu0  ;;  %v1865_v42 = vpop.f32.mrb[37].mxu1  ;;  %v1262_v49 = vadd.f32 %v2386_v56, %v1238_v11 }
 0x72e   :  { %v1255_v35 = vadd.f32 %v1199_v14, %v2377_v19  ;;  %v1201_v43 = vpop.f32.mrb[38].mxu0  ;;  %v1241_v59 = vpop.f32.mrb[38].mxu1 }
 0x72f   :  { %v1605_v44 = vmul.f32 -1.442695, %v1248_v54  ;;  %v1202_v52 = vpop.f32.mrb[39].mxu0  ;;  %v1866_v20 = vpop.f32.mrb[39].mxu1 }
 0x730   :  { %v1606_v36 = vmul.f32 -1.442695, %v1255_v35 }
 0x731   :  { %2017 = vpow2.f32 %v1605_v44 }
 0x732   :  { %2019 = vpow2.f32 %v1606_v36 }
 0x73b   :  { %v2018_v53 = vpop.eup %2017 }
 0x73c   :  { %v1252_v38 = vadd.f32 1.0, %v2018_v53  ;;  %v2020_v58 = vpop.eup %2019 }
 0x73d   :  { %v1259_v48 = vadd.f32 1.0, %v2020_v58 }
 0x73e   :  { %2021 = vrcp.f32 %v1252_v38 }
 0x73f   :  { %2023 = vrcp.f32 %v1259_v48 }
 0x748   :  { %v2022_v57 = vpop.eup %2021 }
 0x749   :  { %v1263_v47 = vmul.f32 %v2022_v57, %v1262_v49  ;;  %v2024_v21 = vpop.eup %2023 }
 0x74a   :  { %v1266_v22 = vsub.f32 1.0, %v2024_v21  ;;  %v1268_v5 = vmul.f32 %v2024_v21, %v2646_v40 }
 0x74b   :  { %v1264_v19 = vadd.f32 %v1263_v47, %v2353_v60  ;;  %v1950_v60 = vld [vmem:[%s2764_s5 + $0x8] sm:$0xff]  }
 0x74d   :  { %2025 = vtanh.f32 %v1264_v19 }
 0x757   :  { %v2026_v24 = vpop.eup %2025 }
 0x758   :  { %v1267_v25 = vmul.f32 %v2026_v24, %v1266_v22 }
 0x75a   :  { %v2688_v26 = vadd.f32 %v1268_v5, %v1267_v25 }
 0x75c   :  { %1607 = vst [vmem:[%s2766_s7 + $0x30] sm:$0xff] %v2688_v26  ;;  %v1272_v6 = vpack.c.bf16 %v2688_v26, %v2688_v26 }
 0x75e   :  { %1306 = vmatmul.mubr.bf16.vlgmr.msra.gmra.mrb[40].mxu0 %v1272_v6  ;;  %1884 = vmatmul.mubr.bf16.vlgmr.msra.gmra.mrb[40].mxu1 %v1272_v6 }
 0x75f   :  { %1888 = vmatpush3.bf16.msra.mxu0 %v1949_v34  ;;  %1903 = vmatprep.mubr.bf16.mxu0 %v1406_v7 }
 0x760   :  { %1889 = vmatprep.subr.bf16.mxu0 %v1950_v60 }
 0x763   :  { %1890 = vmatpush3.bf16.msra.mxu0 %v1950_v60 }
 0x764   :  { %1891 = vmatprep.subr.bf16.mxu0 %v1951_v27 }
 0x767   :  { %1892 = vmatpush3.bf16.msra.mxu0 %v1951_v27 }
 0x768   :  { %1893 = vmatprep.subr.bf16.mxu0 %v1952_v8 }
 0x76b   :  { %1894 = vmatpush3.bf16.msra.mxu0 %v1952_v8 }
 0x76c   :  { %1895 = vmatprep.subr.bf16.mxu0 %v1953_v55 }
 0x76f   :  { %1896 = vmatpush3.bf16.msra.mxu0 %v1953_v55 }
 0x770   :  { %1897 = vmatprep.subr.bf16.mxu0 %v1954_v62 }
 0x773   :  { %1898 = vmatpush3.bf16.msra.mxu0 %v1954_v62 }
 0x774   :  { %1899 = vmatprep.subr.bf16.mxu0 %v1955_v9 }
 0x777   :  { %1900 = vmatpush3.bf16.msra.mxu0 %v1955_v9 }
 0x778   :  { %1901 = vmatprep.subr.bf16.mxu0 %v1956_v12 }
 0x77b   :  { %1902 = vmatpush3.bf16.msra.mxu0 %v1956_v12 }
 0x77e   :  { %1904 = vmatmul.mubr.bf16.vlgmr.msra.gmra.mrb[44].mxu0 %v1407_v28 }
 0x77f   :  { %1907 = vmatprep.mubr.bf16.mxu0 %v1408_v16 }
 0x831   :  { %v1307_v18 = vpop.f32.mrb[40].mxu0  ;;  %v1348_v46 = vpop.f32.mrb[40].mxu1 }
 0x832   :  { %v1358_v41 = vadd.f32 %v1307_v18, %v2379_v37  ;;  %v1309_v1 = vpop.f32.mrb[41].mxu0  ;;  %v1885_v2 = vpop.f32.mrb[41].mxu1  ;;  %v1372_v29 = vadd.f32 %v2386_v56, %v1348_v46 }
 0x833   :  { %v1365_v13 = vadd.f32 %v1309_v1, %v2776_v23  ;;  %v1311_v3 = vpop.f32.mrb[42].mxu0  ;;  %v1351_v4 = vpop.f32.mrb[42].mxu1 }
 0x834   :  { %v1608_v10 = vmul.f32 -1.442695, %v1358_v41  ;;  %v1312_v63 = vpop.f32.mrb[43].mxu0  ;;  %v1886_v61 = vpop.f32.mrb[43].mxu1 }
 0x835   :  { %v1609_v39 = vmul.f32 -1.442695, %v1365_v13 }
 0x836   :  { %2027 = vpow2.f32 %v1608_v10 }
 0x837   :  { %2029 = vpow2.f32 %v1609_v39 }
 0x840   :  { %v2028_v51 = vpop.eup %2027 }
 0x841   :  { %v1362_v17 = vadd.f32 1.0, %v2028_v51  ;;  %v2030_v40 = vpop.eup %2029 }
 0x842   :  { %v1369_v15 = vadd.f32 1.0, %v2030_v40 }
 0x843   :  { %2031 = vrcp.f32 %v1362_v17 }
 0x844   :  { %2033 = vrcp.f32 %v1369_v15 }
 0x84d   :  { %v2032_v37 = vpop.eup %2031 }
 0x84e   :  { %v1373_v30 = vmul.f32 %v2032_v37, %v1372_v29  ;;  %v2034_v42 = vpop.eup %2033 }
 0x84f   :  { %v1376_v35 = vsub.f32 1.0, %v2034_v42  ;;  %v1378_v44 = vmul.f32 %v2034_v42, %v2688_v26 }
 0x850   :  { %v1374_v32 = vadd.f32 %v1373_v30, %v2777_v50 }
 0x851   :  { %v1905_v0 = vpop.f32.mrb[44].mxu0 }
 0x852   :  { %2035 = vtanh.f32 %v1374_v32  ;;  %v1508_v33 = vadd.f32 %v1905_v0, %v1611_v31  ;;  %v1499_v34 = vpop.f32.mrb[45].mxu0 }
 0x853   :  { %v1500_v45 = vadd.f32 %v1611_v31, %v1499_v34  ;;  %v1906_v11 = vpop.f32.mrb[46].mxu0 }
 0x854   :  { %1532 = vst [vmem:[%s2767_s8 + $0x10] sm:$0xff] %v1508_v33  ;;  %v1511_v56 = vadd.f32 %v1906_v11, %v1611_v31  ;;  %v1502_v54 = vpop.f32.mrb[47].mxu0 }
 0x855   :  { %1530 = vst [vmem:[%s2767_s8] sm:$0xff] %v1500_v45  ;;  %v1503_v14 = vadd.f32 %v1611_v31, %v1502_v54 }
 0x856   :  { %1533 = vst [vmem:[%s2767_s8 + $0x18] sm:$0xff] %v1511_v56 }
 0x857   :  { %1531 = vst [vmem:[%s2767_s8 + $0x8] sm:$0xff] %v1503_v14 }
 0x85c   :  { %v2036_v43 = vpop.eup %2035 }
 0x85d   :  { %v1377_v59 = vmul.f32 %v2036_v43, %v1376_v35 }
 0x85f   :  { %v1379_v52 = vadd.f32 %v1378_v44, %v1377_v59 }
 0x861   :  { %1610 = vst [vmem:[%s2766_s7 + $0x38] sm:$0xff] %v1379_v52  ;;  %v1409_v20 = vpack.c.bf16 %v1379_v52, %v2688_v26 }
 0x863   :  { %1908 = vmatmul.mubr.bf16.gmra.mrb[48].mxu0 %v1409_v20 }
 0x936   :  { %v1909_v36 = vpop.f32.mrb[48].mxu0 }
 0x937   :  { %v1524_v53 = vadd.f32 %v1909_v36, %v1611_v31  ;;  %v1515_v38 = vpop.f32.mrb[49].mxu0 }
 0x938   :  { %v1516_v58 = vadd.f32 %v1611_v31, %v1515_v38  ;;  %v1910_v48 = vpop.f32.mrb[50].mxu0 }
 0x939   :  { %1536 = vst [vmem:[%s2767_s8 + $0x30] sm:$0xff] %v1524_v53  ;;  %v1527_v49 = vadd.f32 %v1910_v48, %v1611_v31  ;;  %v1518_v57 = vpop.f32.mrb[51].mxu0 }
 0x93a   :  { %1534 = vst [vmem:[%s2767_s8 + $0x20] sm:$0xff] %v1516_v58  ;;  %v1519_v47 = vadd.f32 %v1611_v31, %v1518_v57 }
 0x93b   :  { %1537 = vst [vmem:[%s2767_s8 + $0x38] sm:$0xff] %v1527_v49 }
 0x93c   :  { %1535 = vst [vmem:[%s2767_s8 + $0x28] sm:$0xff] %v1519_v47 }
 0x93d   :  { %1546 = vsyncpa [#allocation4], 1 }

// kernel: _forward_impl.3
= control target key start
LH: loop header
LB: loop body
LE: loop exit
PB: predicated region body
PF: predicated region fallthrough
CT: control target
= control target key end

     0   :  { %s8788_s0 = inlined_call_operand.vmem [shape: s32[4], index: 0, kind: input, shape index: {}]   ;;  %s8789_s1 = inlined_call_operand.vmem [shape: bf16[8,8,128], index: 1, kind: input, shape index: {}]   ;;  %s8790_s2 = inlined_call_operand.vmem [shape: bf16[8,8,128], index: 2, kind: input, shape index: {}]   ;;  %s8791_s3 = inlined_call_operand.vmem [shape: f32[4,8,8], index: 3, kind: input, shape index: {}]   ;;  %s8792_s4 = inlined_call_operand.vmem [shape: f32[8,8], index: 4, kind: input, shape index: {}]   ;;  %s8793_s5 = inlined_call_operand.vmem [shape: f32[8,128], index: 5, kind: input, shape index: {}]   ;;  %s8794_s6 = inlined_call_operand.vmem [shape: f32[8,384], index: 6, kind: input, shape index: {}]   ;;  %s8795_s7 = inlined_call_operand.vmem [shape: bf16[128,384], index: 7, kind: input, shape index: {}]   ;;  %s8796_s8 = inlined_call_operand.vmem [shape: f32[1,384], index: 8, kind: input, shape index: {}]   ;;  %s8797_s9 = inlined_call_operand.vmem [shape: f32[1,128], index: 9, kind: input, shape index: {}]   ;;  %s8798_s10 = inlined_call_operand.vmem [shape: bf16[128,128], index: 10, kind: input, shape index: {}]   ;;  %s8799_s11 = inlined_call_operand.vmem [shape: f32[1,128], index: 11, kind: input, shape index: {}]   ;;  %s8800_s12 = inlined_call_operand.vmem [shape: bf16[128,8], index: 12, kind: input, shape index: {}]   ;;  %s8801_s13 = inlined_call_operand.vmem [shape: bf16[128,8], index: 13, kind: input, shape index: {}]   ;;  %s8802_s14 = inlined_call_operand.vmem [shape: f32[1,8], index: 14, kind: input, shape index: {}]   ;;  %s8803_s15 = inlined_call_operand.vmem [shape: f32[4,8,8], index: 15, kind: output, shape index: {0}]   ;;  %s8804_s16 = inlined_call_operand.vmem [shape: f32[4,8,8], index: 16, kind: output, shape index: {1}]  }
   0x1   :  { %8850 = sst [smem:[#allocation40_spill]] %s8788_s0 }
   0x2   :  { %8851 = sst [smem:[#allocation41_spill]] %s8791_s3  ;;  %s8852_s23 = sld [smem:[#allocation40_spill]] }
   0x8   :  { %s22_s3 = sshll.u32 %s8852_s23, 4  ;;  %s23_s3 = int_to_ptr.vmem [resolvable:$true] %s22_s3 }
   0x9   :  { %s7040_s24 = scalar_lea.vmem %s23_s3, 16  ;;  %p7045_p1 = scmp.lt.s32.totalorder %s23_s3, %s23_s3 }
   0xa   :  { %p7041_p0 = scmp.ne.s32.totalorder %s23_s3, %s7040_s24  ;;  %p7046_p2 = scmp.lt.s32.totalorder %s7040_s24, %s7040_s24 }
   0xc   :  { %p7047_p3 = por %p7046_p2, %p7045_p1 }
   0xe   :  { %p7048_p4 = pnand %p7047_p3, %p7041_p0 }
  0x10   :  { %7051 = shalt.err (!%p7048_p4)  }
  0x11   :  { %s7054_s25 = smov [#allocation3]  }
  0x12   :  { %25 = dma.vmem_to_smem %s23_s3, 16, %s7054_s25, [#allocation2] }
  0x13   :  { %7052 = dma.done.wait [#allocation2], 16 }
  0x14   :  { %7053 = vsyncadd [#allocation2], 4294967280 }
  0x15   :  { %27 = sfence }
  0x16   :  { %v74_v0 = vld [vmem:[%s8794_s6 + $0x8] sm:$0xff]  ;;  %v73_v1 = vld [vmem:[%s8794_s6] sm:$0xff]  ;;  %vm178_vm0 = vcmask 64512   ;;  %v8827_v3 = vmov 0.0   ;;  %vm7056_vm1 = vmmov 0   ;;  %v8806_v9 = vmov 0  }
  0x17   :  { %v161_v2 = vld [vmem:[%s8792_s4] sm:$0xff]  ;;  %182 = vmatprep.subr.mxu0 %v74_v0  ;;  %246 = vmatprep.mubr.f32.mxu0 %v8827_v3  ;;  %v6713_v6 = vld [vmem:[%s8795_s7 + $0x1c] ss:$12 sps:$4 sm:$0xff]   ;;  %v6719_v11 = vld [vmem:[%s8795_s7 + $0x4c] ss:$12 sps:$4 sm:$0xff]   ;;  %v163_v44 = vlaneseq  ;;  %vm1042_vm2 = vcmask 57344  }
  0x18   :  { %v6710_v4 = vld [vmem:[%s8795_s7 + $0x4] ss:$12 sps:$4 sm:$0xff]   ;;  %183 = vmatpush1.msra.mxu0 %v73_v1  ;;  %v6712_v5 = vld [vmem:[%s8795_s7] ss:$12 sps:$4 sm:$0xff]   ;;  %5981 = vmatprep.subr.mxu1 %v8827_v3  ;;  %v6730_v13 = vld [vmem:[%s8795_s7 + $0x8] ss:$12 sps:$4 sm:$0xff]  }
  0x19   :  { %5592 = vmatmul.mubr.msk.f32.vlgmr.msra.gmra.mrb[0].mxu0 %vm178_vm0, %v161_v2  ;;  %452 = vmatprep.subr.bf16.mxu0 %v6710_v4  ;;  %v6715_v7 = vld [vmem:[%s8795_s7 + $0x18] ss:$12 sps:$4 sm:$0xff]   ;;  %v6716_v8 = vld [vmem:[%s8795_s7 + $0x34] ss:$12 sps:$4 sm:$0xff]   ;;  %v6718_v10 = vld [vmem:[%s8795_s7 + $0x30] ss:$12 sps:$4 sm:$0xff]  }
  0x1a   :  { %453 = vmatpush1.bf16.msra.mxu0 %v6712_v5  ;;  %5983 = vmatprep.mubr.msk.f32.mxu1 %vm7056_vm1, %v8827_v3  ;;  %v75_v12 = vld [vmem:[%s8794_s6 + $0x10] sm:$0xff]  ;;  %v6734_v16 = vld [vmem:[%s8795_s7 + $0x20] ss:$12 sps:$4 sm:$0xff]   ;;  %v6725_v18 = vld [vmem:[%s8795_s7 + $0x7c] ss:$12 sps:$4 sm:$0xff]   ;;  %v164_v45 = vshrl.u32 %v163_v44, 7 }
  0x1b   :  { %454 = vmatprep.subr.bf16.mxu0 %v6713_v6  ;;  %484 = vmatprep.mubr.bf16.mxu0 %v8806_v9  ;;  %v6721_v14 = vld [vmem:[%s8795_s7 + $0x48] ss:$12 sps:$4 sm:$0xff]   ;;  %v6722_v15 = vld [vmem:[%s8795_s7 + $0x64] ss:$12 sps:$4 sm:$0xff]   ;;  %v6724_v17 = vld [vmem:[%s8795_s7 + $0x60] ss:$12 sps:$4 sm:$0xff]  }
  0x1c   :  { %5982 = vmatpush3.msra.mxu1 %v75_v12  ;;  %v6736_v19 = vld [vmem:[%s8795_s7 + $0x38] ss:$12 sps:$4 sm:$0xff]   ;;  %v6728_v21 = vld [vmem:[%s8795_s7 + $0x94] ss:$12 sps:$4 sm:$0xff]   ;;  %v6737_v22 = vld [vmem:[%s8795_s7 + $0x50] ss:$12 sps:$4 sm:$0xff]  }
  0x1d   :  { %5986 = vmatprep.subr.bf16.mxu1 %v8827_v3  ;;  %5984 = vmatmul.mubr.msk.f32.vlgmr.msra.gmra.mrb[0].mxu1 %vm178_vm0, %v161_v2  ;;  %v6727_v20 = vld [vmem:[%s8795_s7 + $0x78] ss:$12 sps:$4 sm:$0xff]   ;;  %v6731_v23 = vld [vmem:[%s8795_s7 + $0x90] ss:$12 sps:$4 sm:$0xff]   ;;  %v6738_v25 = vld [vmem:[%s8795_s7 + $0x68] ss:$12 sps:$4 sm:$0xff]  }
  0x1e   :  { %455 = vmatpush1.bf16.msra.mxu0 %v6715_v7  ;;  %6002 = vmatprep.mubr.msk.bf16.mxu1 %vm7056_vm1, %v8827_v3  ;;  %v6732_v24 = vld [vmem:[%s8795_s7 + $0xac] ss:$12 sps:$4 sm:$0xff]   ;;  %v6735_v26 = vld [vmem:[%s8795_s7 + $0xa8] ss:$12 sps:$4 sm:$0xff]   ;;  %v7238_v27 = vld [vmem:[%s8793_s5] sm:$0xff]  ;;  %v165_v46 = vsub.s32 0, %v164_v45 }
  0x1f   :  { %456 = vmatprep.subr.bf16.mxu0 %v6716_v8  ;;  %5987 = vmatpush3.bf16.msra.mxu1 %v6730_v13  ;;  %v6739_v28 = vld [vmem:[%s8795_s7 + $0x80] ss:$12 sps:$4 sm:$0xff]   ;;  %v323_v29 = vpack.c.bf16 %v7238_v27, %v7238_v27  ;;  %v6740_v30 = vld [vmem:[%s8795_s7 + $0x98] ss:$12 sps:$4 sm:$0xff]   ;;  %v6741_v31 = vld [vmem:[%s8795_s7 + $0xb0] ss:$12 sps:$4 sm:$0xff]  }
  0x20   :  { %5988 = vmatprep.subr.bf16.mxu1 %v8827_v3  ;;  %v6742_v32 = vld [vmem:[%s8798_s10] sm:$0xff]   ;;  %v6743_v33 = vld [vmem:[%s8798_s10 + $0x8] sm:$0xff]   ;;  %v6744_v34 = vld [vmem:[%s8798_s10 + $0x10] sm:$0xff]   ;;  %v169_v48 = vsub.s32 1, %v164_v45  ;;  %v173_v4 = vsub.s32 2, %v164_v45  ;;  %vm1173_vm3 = vcmask 1043456  }
  0x21   :  { %v6745_v35 = vld [vmem:[%s8798_s10 + $0x18] sm:$0xff]   ;;  %v6746_v36 = vld [vmem:[%s8798_s10 + $0x20] sm:$0xff]   ;;  %v6747_v37 = vld [vmem:[%s8798_s10 + $0x28] sm:$0xff]   ;;  %vm1140_vm4 = vcmask 1041409   ;;  %vm1143_vm5 = vcmask 1042434   ;;  %vm1146_vm6 = vcmask 1043459  }
  0x22   :  { %457 = vmatpush1.bf16.msra.mxu0 %v6718_v10  ;;  %v6748_v38 = vld [vmem:[%s8798_s10 + $0x30] sm:$0xff]   ;;  %v6749_v39 = vld [vmem:[%s8798_s10 + $0x38] sm:$0xff]   ;;  %v108_v47 = vld [vmem:[%s8796_s8] sm:$0x7]  ;;  %vm1149_vm7 = vcmask 1044484   ;;  %vm1152_vm8 = vcmask 1045509  }
  0x23   :  { %458 = vmatprep.subr.bf16.mxu0 %v6719_v11  ;;  %5989 = vmatpush3.bf16.msra.mxu1 %v6734_v16  ;;  %v7296_v49 = vrot.slane %v108_v47, %v165_v46  ;;  %v7298_v50 = vrot.slane %v108_v47, %v169_v48  ;;  %v5620_v6 = vld [vmem:[%s8797_s9] ss:$0 sm:$0xff]  ;;  %v7305_v7 = vrot.slane %v108_v47, %v173_v4  ;;  %v59_v47 = vld [vmem:[%s8789_s1 + $0x8] sm:$0xf]  ;;  %vm1155_vm9 = vcmask 1046534   ;;  %s8858_s21 = sld [smem:[#allocation41_spill]] }
  0x24   :  { %5990 = vmatprep.subr.bf16.mxu1 %v8827_v3  ;;  %vm1158_vm10 = vcmask 1047559   ;;  %s5669_s30 = sld [smem:[#allocation3 + $0x1]]  ;;  %s5685_s23 = sld [smem:[#allocation3 + $0x2]] }
  0x25   :  { %8853 = vst [vmem:[#allocation5_spill] sm:$0xff] %v7296_v49  ;;  %8854 = vst [vmem:[#allocation6_spill] sm:$0xff] %v7305_v7 }
  0x26   :  { %459 = vmatpush1.bf16.msra.mxu0 %v6721_v14 }
  0x27   :  { %460 = vmatprep.subr.bf16.mxu0 %v6722_v15  ;;  %5991 = vmatpush3.bf16.msra.mxu1 %v6736_v19 }
  0x28   :  { %5992 = vmatprep.subr.bf16.mxu1 %v8827_v3 }
  0x2a   :  { %461 = vmatpush1.bf16.msra.mxu0 %v6724_v17  ;;  %p3037_p6 = scmp.gt.s32.totalorder %s5669_s30, 0  ;;  %p4311_p7 = scmp.gt.s32.totalorder %s5685_s23, 0 }
  0x2b   :  { %462 = vmatprep.subr.bf16.mxu0 %v6725_v18  ;;  %5993 = vmatpush3.bf16.msra.mxu1 %v6737_v22  ;;  %v7321_v22 = vld [vmem:[%s8789_s1] sm:$0xf] }
  0x2c   :  { %5994 = vmatprep.subr.bf16.mxu1 %v8827_v3  ;;  %s3038_s5 = scalar_select %p3037_p6, 1, 0 }
  0x2d   :  { %s4312_s24 = scalar_select %p4311_p7, 1, 0 }
  0x2e   :  { %463 = vmatpush1.bf16.msra.mxu0 %v6727_v20  ;;  %s3039_s0 = scvt.s32.f32 %s3038_s5 }
  0x2f   :  { %464 = vmatprep.subr.bf16.mxu0 %v6728_v21  ;;  %5995 = vmatpush3.bf16.msra.mxu1 %v6738_v25  ;;  %s4313_s25 = scvt.s32.f32 %s4312_s24 }
  0x30   :  { %5996 = vmatprep.subr.bf16.mxu1 %v8827_v3 }
  0x31   :  { %s4318_s26 = ssub.f32 1.0, %s4313_s25 }
  0x32   :  { %465 = vmatpush1.bf16.msra.mxu0 %v6731_v23  ;;  %v61_v23 = vld [vmem:[%s8789_s1 + $0x10] sm:$0xf] }
  0x33   :  { %466 = vmatprep.subr.bf16.mxu0 %v6732_v24  ;;  %5997 = vmatpush3.bf16.msra.mxu1 %v6739_v28  ;;  %v7058_v24 = vmov 1966171168  }
  0x34   :  { %5998 = vmatprep.subr.bf16.mxu1 %v8827_v3  ;;  %v659_v25 = vunpack.c.l.s4 %v7058_v24 }
  0x36   :  { %467 = vmatpush1.bf16.msra.mxu0 %v6735_v26  ;;  %v660_v26 = vunpack.c.0.s8 %v659_v25 }
  0x37   :  { %6006 = vmatprep.subr.bf16.mxu0 %v8827_v3  ;;  %5999 = vmatpush3.bf16.msra.mxu1 %v6740_v30 }
  0x38   :  { %6000 = vmatprep.subr.bf16.mxu1 %v8827_v3  ;;  %v7332_v28 = vsub.s32 %v660_v26, %v164_v45 }
  0x39   :  { %485 = vmatmul.mubr.bf16.vlgmr.msra.gmra.mrb[4].mxu0 %v323_v29 }
  0x3a   :  { %6022 = vmatprep.mubr.msk.bf16.mxu0 %vm7056_vm1, %v8827_v3  ;;  %6007 = vmatpush3.bf16.msra.mxu0 %v6742_v32  ;;  %8855 = vst [vmem:[#allocation7_spill] sm:$0xff] %v7332_v28 }
  0x3b   :  { %6001 = vmatpush3.bf16.msra.mxu1 %v6741_v31  ;;  %6008 = vmatprep.subr.bf16.mxu0 %v8827_v3 }
  0x3c   :  { %6026 = vmatprep.subr.bf16.mxu1 %v8827_v3 }
  0x3e   :  { %6003 = vmatmul.mubr.bf16.vlgmr.msra.gmra.mrb[4].mxu1 %v323_v29  ;;  %6009 = vmatpush3.bf16.msra.mxu0 %v6743_v33 }
  0x3f   :  { %6028 = vmatprep.mubr.msk.bf16.mxu1 %vm7056_vm1, %v8827_v3  ;;  %6010 = vmatprep.subr.bf16.mxu0 %v8827_v3 }
  0x42   :  { %6011 = vmatpush3.bf16.msra.mxu0 %v6744_v34 }
  0x43   :  { %6012 = vmatprep.subr.bf16.mxu0 %v8827_v3 }
  0x44   :  { %6027 = vmatpush3.bf16.xpose.msra.mxu1 %v7321_v22 }
  0x45   :  { %6032 = vmatprep.subr.bf16.mxu1 %v8827_v3 }
  0x46   :  { %6013 = vmatpush3.bf16.msra.mxu0 %v6745_v35 }
  0x47   :  { %6014 = vmatprep.subr.bf16.mxu0 %v8827_v3 }
  0x4a   :  { %6015 = vmatpush3.bf16.msra.mxu0 %v6746_v36 }
  0x4b   :  { %6016 = vmatprep.subr.bf16.mxu0 %v8827_v3 }
  0x4e   :  { %6017 = vmatpush3.bf16.msra.mxu0 %v6747_v37 }
  0x4f   :  { %6018 = vmatprep.subr.bf16.mxu0 %v8827_v3 }
  0x52   :  { %6019 = vmatpush3.bf16.msra.mxu0 %v6748_v38 }
  0x53   :  { %6020 = vmatprep.subr.bf16.mxu0 %v8827_v3 }
  0x56   :  { %6021 = vmatpush3.bf16.msra.mxu0 %v6749_v39 }
  0x57   :  { %6050 = vmatprep.subr.bf16.mxu0 %v8827_v3 }
  0xec   :  { %v248_v40 = vpop.f32.mrb[0].mxu0 }
  0xed   :  { %v250_v41 = vpop.f32.mrb[1].mxu0  ;;  %v249_v51 = vadd.f32 %v248_v40, %v7296_v49 }
  0xee   :  { %v251_v52 = vadd.f32 %v250_v41, %v7298_v50  ;;  %v58_v41 = vld [vmem:[%s8789_s1 + $0x4] sm:$0xf] }
  0xf0   :  { %v319_v42 = vpop.f32.mrb[0].mxu1 }
  0xf1   :  { %v5985_v43 = vpop.f32.mrb[1].mxu1  ;;  %v320_v12 = vadd.f32 %v319_v42, %v7305_v7 }
  0xf2   :  { %v63_v43 = vld [vmem:[%s8789_s1 + $0x18] sm:$0xf] }
 0x10c   :  { %v486_v53 = vpop.f32.mrb[4].mxu0 }
 0x10d   :  { %v533_v54 = vadd.f32 %v486_v53, %v249_v51  ;;  %v488_v55 = vpop.f32.mrb[5].mxu0  ;;  %v60_v53 = vld [vmem:[%s8789_s1 + $0xc] sm:$0xf] }
 0x10e   :  { %v540_v56 = vadd.f32 %v488_v55, %v251_v52  ;;  %v490_v57 = vpop.f32.mrb[6].mxu0 }
 0x10f   :  { %v5618_v58 = vmul.f32 -1.442695, %v533_v54  ;;  %v491_v59 = vpop.f32.mrb[7].mxu0  ;;  %v62_v57 = vld [vmem:[%s8789_s1 + $0x14] sm:$0xf] }
 0x110   :  { %v5619_v60 = vmul.f32 -1.442695, %v540_v56 }
 0x111   :  { %6766 = vpow2.f32 %v5618_v58  ;;  %v527_v61 = vpop.f32.mrb[4].mxu1 }
 0x112   :  { %v6004_v62 = vpop.f32.mrb[5].mxu1  ;;  %6768 = vpow2.f32 %v5619_v60  ;;  %v553_v10 = vadd.f32 %v5620_v6, %v527_v61  ;;  %v64_v60 = vld [vmem:[%s8789_s1 + $0x1c] sm:$0xf] }
 0x113   :  { %v530_v63 = vpop.f32.mrb[6].mxu1 }
 0x114   :  { %v6005_v0 = vpop.f32.mrb[7].mxu1 }
 0x11b   :  { %v6767_v1 = vpop.eup %6766 }
 0x11c   :  { %v537_v2 = vadd.f32 1.0, %v6767_v1  ;;  %v6769_v5 = vpop.eup %6768 }
 0x11d   :  { %v544_v8 = vadd.f32 1.0, %v6769_v5 }
 0x11e   :  { %6770 = vrcp.f32 %v537_v2 }
 0x11f   :  { %6772 = vrcp.f32 %v544_v8 }
 0x128   :  { %v6771_v11 = vpop.eup %6770 }
 0x129   :  { %v554_v13 = vmul.f32 %v6771_v11, %v553_v10  ;;  %v6773_v15 = vpop.eup %6772 }
 0x12a   :  { %v557_v16 = vsub.f32 1.0, %v6773_v15  ;;  %v559_v19 = vmul.f32 %v6773_v15, %v7238_v27  ;;  %v5621_v27 = vld [vmem:[%s8799_s11] ss:$0 sm:$0xff] }
 0x12b   :  { %v555_v14 = vadd.f32 %v554_v13, %v320_v12 }
 0x12d   :  { %6774 = vtanh.f32 %v555_v14 }
 0x137   :  { %v6775_v17 = vpop.eup %6774 }
 0x138   :  { %v558_v18 = vmul.f32 %v6775_v17, %v557_v16 }
 0x13a   :  { %v7309_v20 = vadd.f32 %v559_v19, %v558_v18 }
 0x13c   :  { %v7313_v21 = vpack.c.bf16 %v7309_v20, %v7309_v20 }
 0x13e   :  { %6023 = vmatmul.mubr.bf16.vlgmr.msra.gmra.mrb[8].mxu0 %v7313_v21 }
 0x13f   :  { %6052 = vmatprep.mubr.msk.bf16.mxu0 %vm7056_vm1, %v8827_v3  ;;  %6051 = vmatpush3.bf16.xpose.msra.mxu0 %v61_v23 }
 0x140   :  { %6062 = vmatprep.subr.bf16.mxu0 %v8827_v3 }
 0x211   :  { %v650_v29 = vpop.f32.mrb[8].mxu0 }
 0x212   :  { %v651_v30 = vadd.f32 %v5621_v27, %v650_v29  ;;  %v6024_v31 = vpop.f32.mrb[9].mxu0 }
 0x213   :  { %v653_v32 = vpop.f32.mrb[10].mxu0 }
 0x214   :  { %v657_v33 = vcombine.high %v651_v30, %v651_v30  ;;  %v664_v34 = vrot.slane %v651_v30, %v7332_v28  ;;  %v6025_v35 = vpop.f32.mrb[11].mxu0 }
 0x216   :  { %v671_v36 = vrot.slane %v657_v33, %v7332_v28  ;;  %v680_v37 = vrot.slane %v664_v34, %v7332_v28  ;;  %v672_v39 = vcombine.high %v664_v34, %v664_v34 }
 0x218   :  { %v687_v38 = vrot.slane %v671_v36, %v7332_v28  ;;  %v714_v40 = vpack.c.bf16 %v680_v37, %v680_v37  ;;  %v694_v44 = vrot.slane %v672_v39, %v7332_v28  ;;  %v702_v51 = vcombine.high %v680_v37, %v680_v37 }
 0x219   :  { %v673_v55 = vcombine.high %v671_v36, %v671_v36 }
 0x21a   :  { %v718_v42 = vpack.c.bf16 %v687_v38, %v687_v38  ;;  %6029 = vmatmul.mubr.bf16.vlgmr.msra.gmra.mrb[8].mxu1 %v714_v40  ;;  %v703_v45 = vcombine.high %v687_v38, %v687_v38  ;;  %v715_v46 = vpack.c.bf16 %v694_v44, %v694_v44  ;;  %v716_v52 = vpack.c.bf16 %v702_v51, %v702_v51 }
 0x21b   :  { %6033 = vmatpush3.bf16.xpose.msra.mxu1 %v58_v41  ;;  %6034 = vmatprep.mubr.msk.bf16.mxu1 %vm7056_vm1, %v8827_v3  ;;  %v704_v54 = vcombine.high %v694_v44, %v694_v44  ;;  %v701_v58 = vrot.slane %v673_v55, %v7332_v28 }
 0x21c   :  { %6053 = vmatmul.mubr.bf16.vlgmr.msra.gmra.mrb[12].mxu0 %v718_v42  ;;  %6038 = vmatprep.subr.bf16.mxu1 %v8827_v3  ;;  %v720_v48 = vpack.c.bf16 %v703_v45, %v703_v45 }
 0x21d   :  { %6063 = vmatpush3.bf16.xpose.msra.mxu0 %v63_v43  ;;  %6064 = vmatprep.mubr.msk.bf16.mxu0 %vm7056_vm1, %v8827_v3  ;;  %v717_v56 = vpack.c.bf16 %v704_v54, %v704_v54  ;;  %v719_v59 = vpack.c.bf16 %v701_v58, %v701_v58  ;;  %v705_v61 = vcombine.high %v701_v58, %v701_v58 }
 0x21e   :  { %6074 = vmatprep.subr.bf16.mxu0 %v8827_v3 }
 0x21f   :  { %v721_v62 = vpack.c.bf16 %v705_v61, %v705_v61 }
 0x222   :  { %6035 = vmatmul.mubr.bf16.vlgmr.msra.gmra.mrb[12].mxu1 %v715_v46 }
 0x223   :  { %6039 = vmatpush3.bf16.xpose.msra.mxu1 %v59_v47  ;;  %6040 = vmatprep.mubr.msk.bf16.mxu1 %vm7056_vm1, %v8827_v3 }
 0x224   :  { %6065 = vmatmul.mubr.bf16.vlgmr.msra.gmra.mrb[16].mxu0 %v720_v48  ;;  %6044 = vmatprep.subr.bf16.mxu1 %v8827_v3 }
 0x225   :  { %6076 = vmatprep.mubr.msk.bf16.mxu0 %vm7056_vm1, %v8827_v3 }
 0x22a   :  { %6041 = vmatmul.mubr.bf16.vlgmr.msra.gmra.mrb[16].mxu1 %v716_v52 }
 0x22b   :  { %6045 = vmatpush3.bf16.xpose.msra.mxu1 %v60_v53  ;;  %6046 = vmatprep.mubr.msk.bf16.mxu1 %vm7056_vm1, %v8827_v3 }
 0x22c   :  { %6056 = vmatprep.subr.bf16.mxu1 %v8827_v3 }
 0x232   :  { %6047 = vmatmul.mubr.bf16.vlgmr.msra.gmra.mrb[20].mxu1 %v717_v56 }
 0x233   :  { %6057 = vmatpush3.bf16.xpose.msra.mxu1 %v62_v57  ;;  %6058 = vmatprep.mubr.msk.bf16.mxu1 %vm7056_vm1, %v8827_v3 }
 0x234   :  { %6068 = vmatprep.subr.bf16.mxu1 %v8827_v3 }
 0x23a   :  { %6059 = vmatmul.mubr.bf16.vlgmr.msra.gmra.mrb[24].mxu1 %v719_v59 }
 0x23b   :  { %6069 = vmatpush3.bf16.xpose.msra.mxu1 %v64_v60  ;;  %6070 = vmatprep.mubr.msk.bf16.mxu1 %vm7056_vm1, %v8827_v3 }
 0x23c   :  { %6080 = vmatprep.subr.bf16.mxu1 %v8827_v3 }
 0x242   :  { %6071 = vmatmul.mubr.bf16.vlgmr.msra.gmra.mrb[28].mxu1 %v721_v62 }
 0x243   :  { %6082 = vmatprep.mubr.msk.bf16.mxu1 %vm7056_vm1, %v8827_v3 }
 0x2ed   :  { %v756_v63 = vpop.f32.mrb[8].mxu1 }
 0x2ee   :  { %v6030_v0 = vpop.f32.mrb[9].mxu1  ;;  %v1043_v2 = vsel %vm1042_vm2, %v756_v63, -inf }
 0x2ef   :  { %v7380_v1 = vpop.f32.mrb[12].mxu0  ;;  %1044 = vmax.xlane.f32.xlu0 %v1043_v2  ;;  %v759_v4 = vpop.f32.mrb[10].mxu1 }
 0x2f0   :  { %v6054_v5 = vpop.f32.mrb[13].mxu0  ;;  %v6031_v6 = vpop.f32.mrb[11].mxu1  ;;  %v1055_v23 = vsel %vm1042_vm2, %v7380_v1, -inf }
 0x2f1   :  { %v919_v8 = vpop.f32.mrb[14].mxu0 }
 0x2f2   :  { %v6055_v10 = vpop.f32.mrb[15].mxu0 }
 0x2f5   :  { %v796_v11 = vpop.f32.mrb[12].mxu1 }
 0x2f6   :  { %v6036_v12 = vpop.f32.mrb[13].mxu1  ;;  %v1046_v14 = vsel %vm1042_vm2, %v796_v11, -inf }
 0x2f7   :  { %v996_v13 = vpop.f32.mrb[16].mxu0  ;;  %1047 = vmax.xlane.f32.xlu0 %v1046_v14  ;;  %v799_v15 = vpop.f32.mrb[14].mxu1 }
 0x2f8   :  { %v6066_v16 = vpop.f32.mrb[17].mxu0  ;;  %v6037_v17 = vpop.f32.mrb[15].mxu1  ;;  %v1061_v26 = vsel %vm1042_vm2, %v996_v13, -inf }
 0x2f9   :  { %v999_v18 = vpop.f32.mrb[18].mxu0 }
 0x2fa   :  { %v6067_v19 = vpop.f32.mrb[19].mxu0 }
 0x2fb   :  { %1056 = vmax.xlane.f32.xlu0 %v1055_v23 }
 0x2fd   :  { %v836_v24 = vpop.f32.mrb[16].mxu1 }
 0x2fe   :  { %v6042_v25 = vpop.f32.mrb[17].mxu1  ;;  %v1049_v27 = vsel %vm1042_vm2, %v836_v24, -inf }
 0x2ff   :  { %1062 = vmax.xlane.f32.xlu0 %v1061_v26  ;;  %1050 = vmax.xlane.f32.xlu1 %v1049_v27  ;;  %v839_v29 = vpop.f32.mrb[18].mxu1  ;;  %v65_v25 = vld [vmem:[%s8790_s2] sm:$0xf] }
 0x300   :  { %v6043_v30 = vpop.f32.mrb[19].mxu1  ;;  %v7414_v27 = vsel %vm1173_vm3, %v65_v25, 0 }
 0x301   :  { %8856 = vst [vmem:[#allocation8_spill] sm:$0xff] %v7414_v27  ;;  %6075 = vmatpush3.bf16.msra.mxu0 %v7414_v27 }
 0x302   :  { %6086 = vmatprep.subr.bf16.mxu0 %v8827_v3 }
 0x305   :  { %v876_v31 = vpop.f32.mrb[20].mxu1 }
 0x306   :  { %v6048_v32 = vpop.f32.mrb[21].mxu1  ;;  %v1052_v33 = vsel %vm1042_vm2, %v876_v31, -inf }
 0x307   :  { %1053 = vmax.xlane.f32.xlu1 %v1052_v33  ;;  %v879_v34 = vpop.f32.mrb[22].mxu1 }
 0x308   :  { %v6049_v35 = vpop.f32.mrb[23].mxu1 }
 0x30d   :  { %v956_v36 = vpop.f32.mrb[24].mxu1 }
 0x30e   :  { %v6060_v37 = vpop.f32.mrb[25].mxu1  ;;  %v1058_v38 = vsel %vm1042_vm2, %v956_v36, -inf }
 0x30f   :  { %1059 = vmax.xlane.f32.xlu1 %v1058_v38  ;;  %v959_v39 = vpop.f32.mrb[26].mxu1  ;;  %v67_v38 = vld [vmem:[%s8790_s2 + $0x8] sm:$0xf] }
 0x310   :  { %v6061_v40 = vpop.f32.mrb[27].mxu1 }
 0x315   :  { %v1036_v41 = vpop.f32.mrb[28].mxu1 }
 0x316   :  { %v6072_v42 = vpop.f32.mrb[29].mxu1  ;;  %v1064_v43 = vsel %vm1042_vm2, %v1036_v41, -inf }
 0x317   :  { %1065 = vmax.xlane.f32.xlu1 %v1064_v43  ;;  %v1039_v44 = vpop.f32.mrb[30].mxu1 }
 0x318   :  { %v6073_v45 = vpop.f32.mrb[31].mxu1  ;;  %v68_v44 = vld [vmem:[%s8790_s2 + $0xc] sm:$0xf] }
 0x37c   :  { %v1045_v46 = vpop.xlane.xlu0 %1044 }
 0x37d   :  { %v1067_v47 = vsub.f32 %v756_v63, %v1045_v46 }
 0x37f   :  { %v1075_v48 = vmul.f32 1.442695, %v1067_v47 }
 0x381   :  { %6776 = vpow2.f32 %v1075_v48  ;;  %v7453_v48 = vsel %vm1173_vm3, %v68_v44, 0 }
 0x384   :  { %v1048_v51 = vpop.xlane.xlu0 %1047 }
 0x385   :  { %v1068_v52 = vsub.f32 %v796_v11, %v1048_v51 }
 0x387   :  { %v1077_v53 = vmul.f32 1.442695, %v1068_v52 }
 0x388   :  { %v1057_v54 = vpop.xlane.xlu0 %1056 }
 0x389   :  { %6778 = vpow2.f32 %v1077_v53  ;;  %v1071_v56 = vsub.f32 %v7380_v1, %v1057_v54  ;;  %v69_v54 = vld [vmem:[%s8790_s2 + $0x10] sm:$0xf] }
 0x38b   :  { %v6777_v55 = vpop.eup %6776  ;;  %v1083_v62 = vmul.f32 1.442695, %v1071_v56 }
 0x38c   :  { %v1051_v57 = vpop.xlane.xlu1 %1050  ;;  %v1091_v58 = vsel %vm1042_vm2, %v6777_v55, 0.0  ;;  %v1063_v59 = vpop.xlane.xlu0 %1062 }
 0x38d   :  { %v1069_v60 = vsub.f32 %v836_v24, %v1051_v57  ;;  %1092 = vadd.xlane.f32.xlu0 %v1091_v58  ;;  %v1073_v0 = vsub.f32 %v996_v13, %v1063_v59  ;;  %v7465_v57 = vsel %vm1173_vm3, %v69_v54, 0  ;;  %v7600_v54 = vld [vmem:[%s8795_s7 + $0x4] ss:$12 sps:$4 sm:$0xff]  }
 0x38f   :  { %v1079_v61 = vmul.f32 1.442695, %v1069_v60  ;;  %v1087_v2 = vmul.f32 1.442695, %v1073_v0 }
 0x391   :  { %6780 = vpow2.f32 %v1079_v61 }
 0x392   :  { %6782 = vpow2.f32 %v1083_v62  ;;  %v70_v62 = vld [vmem:[%s8790_s2 + $0x14] sm:$0xf] }
 0x393   :  { %v6779_v63 = vpop.eup %6778  ;;  %6784 = vpow2.f32 %v1087_v2 }
 0x394   :  { %v1054_v4 = vpop.xlane.xlu1 %1053  ;;  %v1094_v5 = vsel %vm1042_vm2, %v6779_v63, 0.0 }
 0x395   :  { %v1070_v6 = vsub.f32 %v876_v31, %v1054_v4  ;;  %1095 = vadd.xlane.f32.xlu1 %v1094_v5  ;;  %v66_v31 = vld [vmem:[%s8790_s2 + $0x4] sm:$0xf]  ;;  %v7481_v4 = vsel %vm1173_vm3, %v70_v62, 0  ;;  %v7648_v62 = vld [vmem:[%s8800_s12 + $0x30] sm:$0xff]  }
 0x396   :  { %v7426_v32 = vsel %vm1173_vm3, %v66_v31, 0  ;;  %v7520_v31 = vld [vmem:[%s8801_s13 + $0x8] sm:$0xff]  }
 0x397   :  { %v1081_v8 = vmul.f32 1.442695, %v1070_v6  ;;  %8857 = vst [vmem:[#allocation9_spill] sm:$0xff] %v7426_v32  ;;  %6081 = vmatpush3.bf16.msra.mxu1 %v7426_v32 }
 0x398   :  { %6092 = vmatprep.subr.bf16.mxu1 %v8827_v3 }
 0x399   :  { %6786 = vpow2.f32 %v1081_v8 }
 0x39b   :  { %v7394_v1 = vpop.eup %6780 }
 0x39c   :  { %v1060_v10 = vpop.xlane.xlu1 %1059  ;;  %v1097_v12 = vsel %vm1042_vm2, %v7394_v1, 0.0  ;;  %v7398_v13 = vpop.eup %6782 }
 0x39d   :  { %v1072_v11 = vsub.f32 %v956_v36, %v1060_v10  ;;  %1098 = vadd.xlane.f32.xlu0 %v1097_v12  ;;  %v1103_v15 = vsel %vm1042_vm2, %v7398_v13, 0.0  ;;  %v7402_v16 = vpop.eup %6784 }
 0x39e   :  { %v1109_v24 = vsel %vm1042_vm2, %v7402_v16, 0.0 }
 0x39f   :  { %v1085_v14 = vmul.f32 1.442695, %v1072_v11 }
 0x3a1   :  { %6788 = vpow2.f32 %v1085_v14  ;;  %1104 = vadd.xlane.f32.xlu0 %v1103_v15  ;;  %v72_v14 = vld [vmem:[%s8790_s2 + $0x1c] sm:$0xf] }
 0x3a3   :  { %v7404_v17 = vpop.eup %6786 }
 0x3a4   :  { %v1066_v18 = vpop.xlane.xlu1 %1065  ;;  %v1100_v19 = vsel %vm1042_vm2, %v7404_v17, 0.0 }
 0x3a5   :  { %v1074_v23 = vsub.f32 %v1036_v41, %v1066_v18  ;;  %1101 = vadd.xlane.f32.xlu1 %v1100_v19  ;;  %1110 = vadd.xlane.f32.xlu0 %v1109_v24  ;;  %v7442_v41 = vsel %vm1173_vm3, %v67_v38, 0  ;;  %v7504_v19 = vsel %vm1173_vm3, %v72_v14, 0 }
 0x3a7   :  { %v1089_v26 = vmul.f32 1.442695, %v1074_v23  ;;  %v7509_v23 = vld [vmem:[%s8801_s13] sm:$0xff]  }
 0x3a9   :  { %6790 = vpow2.f32 %v1089_v26 }
 0x3ab   :  { %v7418_v29 = vpop.eup %6788 }
 0x3ac   :  { %v1106_v30 = vsel %vm1042_vm2, %v7418_v29, 0.0 }
 0x3ad   :  { %1107 = vadd.xlane.f32.xlu1 %v1106_v30 }
 0x3b3   :  { %v7430_v33 = vpop.eup %6790 }
 0x3b4   :  { %v1112_v34 = vsel %vm1042_vm2, %v7430_v33, 0.0 }
 0x3b5   :  { %1113 = vadd.xlane.f32.xlu1 %v1112_v34 }
 0x41a   :  { %v1093_v35 = vpop.xlane.xlu0 %1092 }
 0x41b   :  { %6792 = vrcp.f32 %v1093_v35 }
 0x422   :  { %v1096_v36 = vpop.xlane.xlu1 %1095 }
 0x423   :  { %6794 = vrcp.f32 %v1096_v36 }
 0x425   :  { %v6793_v37 = vpop.eup %6792 }
 0x426   :  { %v7437_v39 = vmul.f32 %v6793_v37, %v6777_v55 }
 0x428   :  { %v1162_v40 = vpack.c.bf16 %v7437_v39, %v7437_v39 }
 0x42a   :  { %6077 = vmatmul.mubr.msk.bf16.vlgmr.msra.gmra.mrb[20].mxu0 %vm178_vm0, %v1162_v40  ;;  %v1099_v42 = vpop.xlane.xlu0 %1098 }
 0x42b   :  { %6087 = vmatpush3.bf16.msra.mxu0 %v7442_v41  ;;  %6088 = vmatprep.mubr.msk.bf16.mxu0 %vm7056_vm1, %v8827_v3  ;;  %6796 = vrcp.f32 %v1099_v42  ;;  %v7535_v42 = vld [vmem:[%s8801_s13 + $0x10] sm:$0xff]  }
 0x42c   :  { %6098 = vmatprep.subr.bf16.mxu0 %v8827_v3 }
 0x42d   :  { %v6795_v43 = vpop.eup %6794 }
 0x42e   :  { %v1124_v45 = vmul.f32 %v6795_v43, %v6779_v63  ;;  %v1105_v46 = vpop.xlane.xlu0 %1104  ;;  %v71_v63 = vld [vmem:[%s8790_s2 + $0x18] sm:$0xf]  ;;  %s1763_s2 = sld [smem:[#allocation3]] }
 0x42f   :  { %6798 = vrcp.f32 %v1105_v46  ;;  %v7484_v6 = vsel %vm1173_vm3, %v71_v63, 0  ;;  %v7565_v46 = vld [vmem:[%s8801_s13 + $0x28] sm:$0xff]  }
 0x430   :  { %v1163_v47 = vpack.c.bf16 %v1124_v45, %v1124_v45  ;;  %v1139_v10 = vrot.slane %v1124_v45, 7  ;;  %v7558_v45 = vld [vmem:[%s8801_s13 + $0x20] sm:$0xff]  }
 0x432   :  { %6083 = vmatmul.mubr.msk.bf16.vlgmr.msra.gmra.mrb[32].mxu1 %vm178_vm0, %v1163_v47  ;;  %v1102_v51 = vpop.xlane.xlu1 %1101  ;;  %v1111_v52 = vpop.xlane.xlu0 %1110  ;;  %v1141_v18 = vsel %vm1140_vm4, %v1139_v10, %v7437_v39  ;;  %v7572_v47 = vld [vmem:[%s8801_s13 + $0x30] sm:$0xff]  }
 0x433   :  { %6800 = vrcp.f32 %v1102_v51  ;;  %6093 = vmatpush3.bf16.msra.mxu1 %v7453_v48  ;;  %6094 = vmatprep.mubr.msk.bf16.mxu1 %vm7056_vm1, %v8827_v3  ;;  %v7579_v51 = vld [vmem:[%s8801_s13 + $0x38] sm:$0xff]  }
 0x434   :  { %6104 = vmatprep.subr.bf16.mxu1 %v8827_v3  ;;  %6802 = vrcp.f32 %v1111_v52  ;;  %v7586_v52 = vld [vmem:[%s8794_s6 + $0x8] sm:$0xff]  ;;  %p1764_p5 = scmp.gt.s32.totalorder %s1763_s2, 0  ;;  %s3044_s2 = ssub.f32 1.0, %s3039_s0 }
 0x435   :  { %v6797_v53 = vpop.eup %6796 }
 0x436   :  { %v1125_v55 = vmul.f32 %v6797_v53, %v7394_v1  ;;  %v7593_v53 = vld [vmem:[%s8794_s6] sm:$0xff]  ;;  %s1765_s8 = scalar_select %p1764_p5, 1, 0 }
 0x438   :  { %v1164_v56 = vpack.c.bf16 %v1125_v55, %v1125_v55  ;;  %v1142_v12 = vrot.slane %v1125_v55, 6  ;;  %v7606_v55 = vld [vmem:[%s8800_s12] sm:$0xff]   ;;  %s1766_s3 = scvt.s32.f32 %s1765_s8 }
 0x439   :  { %v6799_v58 = vpop.eup %6798 }
 0x43a   :  { %v1108_v59 = vpop.xlane.xlu1 %1107  ;;  %6089 = vmatmul.mubr.msk.bf16.vlgmr.msra.gmra.mrb[24].mxu0 %vm178_vm0, %v1164_v56  ;;  %v1127_v61 = vmul.f32 %v6799_v58, %v7398_v13  ;;  %v1144_v24 = vsel %vm1143_vm5, %v1142_v12, %v1141_v18  ;;  %v7613_v56 = vld [vmem:[%s8800_s12 + $0x8] sm:$0xff]   ;;  %v7620_v58 = vld [vmem:[%s8800_s12 + $0x10] sm:$0xff]   ;;  %s1770_s17 = ssub.f32 1.0, %s1766_s3 }
 0x43b   :  { %6804 = vrcp.f32 %v1108_v59  ;;  %6099 = vmatpush3.bf16.msra.mxu0 %v7465_v57  ;;  %6100 = vmatprep.mubr.msk.bf16.mxu0 %vm7056_vm1, %v8827_v3  ;;  %v7627_v59 = vld [vmem:[%s8800_s12 + $0x18] sm:$0xff]  }
 0x43c   :  { %6110 = vmatprep.subr.bf16.mxu0 %v8827_v3  ;;  %v1166_v5 = vpack.c.bf16 %v1127_v61, %v1127_v61  ;;  %v1148_v30 = vrot.slane %v1127_v61, 4  ;;  %v7641_v61 = vld [vmem:[%s8800_s12 + $0x28] sm:$0xff]  }
 0x43d   :  { %v6801_v60 = vpop.eup %6800 }
 0x43e   :  { %v1126_v0 = vmul.f32 %v6801_v60, %v7404_v17  ;;  %v6803_v8 = vpop.eup %6802  ;;  %v7634_v60 = vld [vmem:[%s8800_s12 + $0x20] sm:$0xff]  }
 0x43f   :  { %v1129_v13 = vmul.f32 %v6803_v8, %v7402_v16 }
 0x440   :  { %v1165_v2 = vpack.c.bf16 %v1126_v0, %v1126_v0  ;;  %v1145_v15 = vrot.slane %v1126_v0, 5  ;;  %v7655_v0 = vld [vmem:[%s8800_s12 + $0x38] sm:$0xff]  }
 0x441   :  { %v1168_v25 = vpack.c.bf16 %v1129_v13, %v1129_v13  ;;  %v1154_v38 = vrot.slane %v1129_v13, 2 }
 0x442   :  { %6095 = vmatmul.mubr.msk.bf16.vlgmr.msra.gmra.mrb[36].mxu1 %vm178_vm0, %v1165_v2  ;;  %v1114_v1 = vpop.xlane.xlu1 %1113  ;;  %6101 = vmatmul.mubr.msk.bf16.vlgmr.msra.gmra.mrb[28].mxu0 %vm178_vm0, %v1166_v5  ;;  %v1147_v26 = vsel %vm1146_vm6, %v1145_v15, %v1144_v24 }
 0x443   :  { %6105 = vmatpush3.bf16.msra.mxu1 %v7481_v4  ;;  %6806 = vrcp.f32 %v1114_v1  ;;  %6111 = vmatpush3.bf16.msra.mxu0 %v7484_v6  ;;  %v1150_v35 = vsel %vm1149_vm7, %v1148_v30, %v1147_v26 }
 0x444   :  { %6106 = vmatprep.mubr.msk.bf16.mxu1 %vm7056_vm1, %v8827_v3  ;;  %6112 = vmatprep.mubr.msk.bf16.mxu0 %vm7056_vm1, %v8827_v3 }
 0x445   :  { %v6805_v11 = vpop.eup %6804  ;;  %6116 = vmatprep.subr.bf16.mxu1 %v8827_v3  ;;  %6122 = vmatprep.subr.bf16.mxu0 %v8827_v3 }
 0x446   :  { %v1128_v17 = vmul.f32 %v6805_v11, %v7418_v29 }
 0x448   :  { %v1167_v16 = vpack.c.bf16 %v1128_v17, %v1128_v17  ;;  %v1151_v29 = vrot.slane %v1128_v17, 3 }
 0x44a   :  { %6107 = vmatmul.mubr.msk.bf16.vlgmr.msra.gmra.mrb[40].mxu1 %vm178_vm0, %v1167_v16  ;;  %6113 = vmatmul.mubr.msk.bf16.vlgmr.msra.gmra.mrb[32].mxu0 %vm178_vm0, %v1168_v25  ;;  %v1153_v36 = vsel %vm1152_vm8, %v1151_v29, %v1150_v35 }
 0x44b   :  { %6117 = vmatpush3.bf16.msra.mxu1 %v7504_v19  ;;  %6123 = vmatpush3.bf16.msra.mxu0 %v7509_v23  ;;  %v1156_v43 = vsel %vm1155_vm9, %v1154_v38, %v1153_v36 }
 0x44c   :  { %6118 = vmatprep.mubr.msk.bf16.mxu1 %vm7056_vm1, %v8827_v3  ;;  %6124 = vmatprep.subr.bf16.mxu0 %v8827_v3 }
 0x44d   :  { %v6807_v34 = vpop.eup %6806  ;;  %6138 = vmatprep.mubr.msk.bf16.mxu0 %vm7056_vm1, %v8827_v3  ;;  %6142 = vmatprep.subr.bf16.mxu1 %v8827_v3 }
 0x44e   :  { %v1130_v37 = vmul.f32 %v6807_v34, %v7430_v33  ;;  %v7551_v33 = vld [vmem:[%s8801_s13 + $0x18] sm:$0xff]  }
 0x44f   :  { %6125 = vmatpush3.bf16.msra.mxu0 %v7520_v31 }
 0x450   :  { %v1157_v39 = vrot.slane %v1130_v37, 1  ;;  %v1169_v40 = vpack.c.bf16 %v1130_v37, %v1130_v37  ;;  %6126 = vmatprep.subr.bf16.mxu0 %v8827_v3 }
 0x452   :  { %v1159_v44 = vsel %vm1158_vm10, %v1157_v39, %v1156_v43  ;;  %6119 = vmatmul.mubr.msk.bf16.vlgmr.msra.gmra.mrb[44].mxu1 %vm178_vm0, %v1169_v40 }
 0x453   :  { %1161 = vst.msk [vmem:[%s8804_s16] sm:$0xff] %vm178_vm0, %v1159_v44  ;;  %6158 = vmatprep.mubr.msk.bf16.mxu1 %vm7056_vm1, %v8827_v3  ;;  %6127 = vmatpush3.bf16.msra.mxu0 %v7535_v42 }
 0x454   :  { %6128 = vmatprep.subr.bf16.mxu0 %v8827_v3  ;;  %6143 = vmatpush3.bf16.msra.mxu1 %v7606_v55 }
 0x455   :  { %6144 = vmatprep.subr.bf16.mxu1 %v8827_v3 }
 0x457   :  { %6129 = vmatpush3.bf16.msra.mxu0 %v7551_v33 }
 0x458   :  { %6130 = vmatprep.subr.bf16.mxu0 %v8827_v3  ;;  %6145 = vmatpush3.bf16.msra.mxu1 %v7613_v56 }
 0x459   :  { %6146 = vmatprep.subr.bf16.mxu1 %v8827_v3 }
 0x45b   :  { %6131 = vmatpush3.bf16.msra.mxu0 %v7558_v45 }
 0x45c   :  { %6132 = vmatprep.subr.bf16.mxu0 %v8827_v3  ;;  %6147 = vmatpush3.bf16.msra.mxu1 %v7620_v58 }
 0x45d   :  { %6148 = vmatprep.subr.bf16.mxu1 %v8827_v3 }
 0x45f   :  { %6133 = vmatpush3.bf16.msra.mxu0 %v7565_v46 }
 0x460   :  { %6134 = vmatprep.subr.bf16.mxu0 %v8827_v3  ;;  %6149 = vmatpush3.bf16.msra.mxu1 %v7627_v59 }
 0x461   :  { %6150 = vmatprep.subr.bf16.mxu1 %v8827_v3 }
 0x463   :  { %6135 = vmatpush3.bf16.msra.mxu0 %v7572_v47 }
 0x464   :  { %6136 = vmatprep.subr.bf16.mxu0 %v8827_v3  ;;  %6151 = vmatpush3.bf16.msra.mxu1 %v7634_v60 }
 0x465   :  { %6152 = vmatprep.subr.bf16.mxu1 %v8827_v3 }
 0x467   :  { %6137 = vmatpush3.bf16.msra.mxu0 %v7579_v51 }
 0x468   :  { %1777 = vmatprep.subr.mxu0 %v7586_v52  ;;  %6153 = vmatpush3.bf16.msra.mxu1 %v7641_v61 }
 0x469   :  { %6154 = vmatprep.subr.bf16.mxu1 %v8827_v3 }
 0x46a   :  { %6139 = vmatmul.mubr.bf16.vlgmr.msra.gmra.mrb[36].mxu0 %v7313_v21 }
 0x46b   :  { %1778 = vmatpush1.msra.mxu0 %v7593_v53  ;;  %1841 = vmatprep.mubr.f32.mxu0 %v8827_v3 }
 0x46c   :  { %1918 = vmatprep.subr.bf16.mxu0 %v7600_v54  ;;  %6155 = vmatpush3.bf16.msra.mxu1 %v7648_v62 }
 0x46d   :  { %6156 = vmatprep.subr.bf16.mxu1 %v8827_v3 }
 0x470   :  { %6157 = vmatpush3.bf16.msra.mxu1 %v7655_v0 }
 0x471   :  { %6162 = vmatprep.subr.mxu1 %v8827_v3 }
 0x4fd   :  { %v1211_v63 = vpop.f32.mrb[20].mxu0 }
 0x4fe   :  { %v6078_v2 = vpop.f32.mrb[21].mxu0  ;;  %v1539_v10 = vpack.c.bf16 %v1211_v63, %v1211_v63 }
 0x4ff   :  { %v1214_v5 = vpop.f32.mrb[22].mxu0 }
 0x500   :  { %v6079_v8 = vpop.f32.mrb[23].mxu0  ;;  %v1643_v17 = vunpack.c.l.b16 %v1539_v10 }
 0x505   :  { %v1257_v1 = vpop.f32.mrb[32].mxu1 }
 0x506   :  { %v1540_v11 = vpack.c.bf16 %v1257_v1, %v1257_v1  ;;  %v6084_v12 = vpop.f32.mrb[33].mxu1 }
 0x507   :  { %v1260_v13 = vpop.f32.mrb[34].mxu1 }
 0x508   :  { %v1644_v14 = vunpack.c.l.b16 %v1540_v11  ;;  %v6085_v15 = vpop.f32.mrb[35].mxu1 }
 0x50a   :  { %v1651_v18 = vrot.slane %v1644_v14, 7 }
 0x50c   :  { %v1652_v16 = vsel %vm1140_vm4, %v1651_v18, %v1643_v17 }
 0x50d   :  { %v1303_v24 = vpop.f32.mrb[24].mxu0 }
 0x50e   :  { %v1541_v25 = vpack.c.bf16 %v1303_v24, %v1303_v24  ;;  %v6090_v26 = vpop.f32.mrb[25].mxu0 }
 0x50f   :  { %v1306_v29 = vpop.f32.mrb[26].mxu0 }
 0x510   :  { %v1645_v30 = vunpack.c.l.b16 %v1541_v25  ;;  %v6091_v34 = vpop.f32.mrb[27].mxu0 }
 0x512   :  { %v1653_v35 = vrot.slane %v1645_v30, 6 }
 0x514   :  { %v1654_v36 = vsel %vm1143_vm5, %v1653_v35, %v1652_v16 }
 0x515   :  { %v1349_v37 = vpop.f32.mrb[36].mxu1  ;;  %v1395_v39 = vpop.f32.mrb[28].mxu0 }
 0x516   :  { %v1542_v38 = vpack.c.bf16 %v1349_v37, %v1349_v37  ;;  %v6096_v40 = vpop.f32.mrb[37].mxu1  ;;  %v1543_v43 = vpack.c.bf16 %v1395_v39, %v1395_v39  ;;  %v6102_v44 = vpop.f32.mrb[29].mxu0 }
 0x517   :  { %v1352_v63 = vpop.f32.mrb[38].mxu1  ;;  %v1398_v5 = vpop.f32.mrb[30].mxu0 }
 0x518   :  { %v1646_v2 = vunpack.c.l.b16 %v1542_v38  ;;  %v6097_v8 = vpop.f32.mrb[39].mxu1  ;;  %v1647_v1 = vunpack.c.l.b16 %v1543_v43  ;;  %v6103_v10 = vpop.f32.mrb[31].mxu0 }
 0x51a   :  { %v1655_v11 = vrot.slane %v1646_v2, 5  ;;  %v1657_v12 = vrot.slane %v1647_v1, 4 }
 0x51c   :  { %v1656_v13 = vsel %vm1146_vm6, %v1655_v11, %v1654_v36 }
 0x51d   :  { %v1658_v14 = vsel %vm1149_vm7, %v1657_v12, %v1656_v13  ;;  %v1441_v15 = vpop.f32.mrb[40].mxu1  ;;  %v1487_v18 = vpop.f32.mrb[32].mxu0  ;;  %v7669_v12 = vld [vmem:[%s8794_s6 + $0x10] sm:$0xff] }
 0x51e   :  { %v1544_v17 = vpack.c.bf16 %v1441_v15, %v1441_v15  ;;  %v6108_v16 = vpop.f32.mrb[41].mxu1  ;;  %v1545_v24 = vpack.c.bf16 %v1487_v18, %v1487_v18  ;;  %v6114_v25 = vpop.f32.mrb[33].mxu0  ;;  %v7678_v18 = vld [vmem:[%s8802_s14] ss:$0 sm:$0xff] }
 0x51f   :  { %v1444_v26 = vpop.f32.mrb[42].mxu1  ;;  %v1490_v30 = vpop.f32.mrb[34].mxu0  ;;  %v1768_v25 = vstv %s1766_s3 }
 0x520   :  { %v1648_v29 = vunpack.c.l.b16 %v1544_v17  ;;  %v6109_v34 = vpop.f32.mrb[43].mxu1  ;;  %v1649_v35 = vunpack.c.l.b16 %v1545_v24  ;;  %v6115_v37 = vpop.f32.mrb[35].mxu0  ;;  %v1767_v24 = vld [vmem:[%s8858_s21] sm:$0xff]  ;;  %v1771_v30 = vstv %s1770_s17 }
 0x521   :  { %v1769_v37 = vmul.f32 %v1768_v25, %v1767_v24  ;;  %v7791_v24 = vld [vmem:[%s8795_s7 + $0x78] ss:$12 sps:$4 sm:$0xff]   ;;  %v7797_v25 = vld [vmem:[%s8795_s7 + $0x80] ss:$12 sps:$4 sm:$0xff]  }
 0x522   :  { %v1659_v38 = vrot.slane %v1648_v29, 3  ;;  %v1661_v39 = vrot.slane %v1649_v35, 2  ;;  %8863 = vst [vmem:[#allocation14_spill] sm:$0xff] %v7791_v24  ;;  %8864 = vst [vmem:[#allocation15_spill] sm:$0xff] %v7797_v25 }
 0x524   :  { %v1660_v40 = vsel %vm1152_vm8, %v1659_v38, %v1658_v14 }
 0x525   :  { %v1662_v36 = vsel %vm1155_vm9, %v1661_v39, %v1660_v40  ;;  %v1533_v43 = vpop.f32.mrb[44].mxu1 }
 0x526   :  { %v1546_v44 = vpack.c.bf16 %v1533_v43, %v1533_v43  ;;  %v6120_v63 = vpop.f32.mrb[45].mxu1  ;;  %v7699_v43 = vld [vmem:[%s8795_s7 + $0x8] ss:$12 sps:$4 sm:$0xff]  }
 0x527   :  { %v1536_v2 = vpop.f32.mrb[46].mxu1  ;;  %v7715_v63 = vld [vmem:[%s8795_s7 + $0x18] ss:$12 sps:$4 sm:$0xff]  }
 0x528   :  { %v1650_v5 = vunpack.c.l.b16 %v1546_v44  ;;  %v6121_v8 = vpop.f32.mrb[47].mxu1  ;;  %v7705_v44 = vld [vmem:[%s8795_s7 + $0x1c] ss:$12 sps:$4 sm:$0xff]   ;;  %v7721_v2 = vld [vmem:[%s8795_s7 + $0x20] ss:$12 sps:$4 sm:$0xff]  }
 0x529   :  { %v7734_v8 = vld [vmem:[%s8795_s7 + $0x30] ss:$12 sps:$4 sm:$0xff]  }
 0x52a   :  { %v1663_v1 = vrot.slane %v1650_v5, 1  ;;  %v7727_v5 = vld [vmem:[%s8795_s7 + $0x34] ss:$12 sps:$4 sm:$0xff]  }
 0x52c   :  { %v1664_v10 = vsel %vm1158_vm10, %v1663_v1, %v1662_v36  ;;  %v7693_v36 = vld [vmem:[%s8795_s7] ss:$12 sps:$4 sm:$0xff]   ;;  %v7740_v1 = vld [vmem:[%s8795_s7 + $0x38] ss:$12 sps:$4 sm:$0xff]  }
 0x52d   :  { %v1665_v11 = vpack.c.b16 %v1664_v10, %v1664_v10  ;;  %v7746_v10 = vld [vmem:[%s8795_s7 + $0x4c] ss:$12 sps:$4 sm:$0xff]  }
 0x52f   :  { %6159 = vmatmul.mubr.bf16.vlgmr.msra.gmra.mrb[48].mxu1 %v1665_v11  ;;  %v7753_v11 = vld [vmem:[%s8795_s7 + $0x48] ss:$12 sps:$4 sm:$0xff]  }
 0x530   :  { %6163 = vmatpush3.msra.mxu1 %v7669_v12  ;;  %6164 = vmatprep.mubr.msk.f32.mxu1 %vm7056_vm1, %v8827_v3 }
 0x531   :  { %6167 = vmatprep.subr.bf16.mxu1 %v8827_v3 }
 0x53d   :  { %v1629_v13 = vpop.f32.mrb[36].mxu0 }
 0x53e   :  { %v6140_v14 = vpop.f32.mrb[37].mxu0 }
 0x53f   :  { %v1632_v15 = vpop.f32.mrb[38].mxu0  ;;  %v7765_v14 = vld [vmem:[%s8795_s7 + $0x64] ss:$12 sps:$4 sm:$0xff]  }
 0x540   :  { %v6141_v17 = vpop.f32.mrb[39].mxu0  ;;  %8859 = vst [vmem:[#allocation10_spill] sm:$0xff] %v7765_v14  ;;  %v7772_v15 = vld [vmem:[%s8795_s7 + $0x60] ss:$12 sps:$4 sm:$0xff]  }
 0x541   :  { %8860 = vst [vmem:[#allocation11_spill] sm:$0xff] %v7772_v15  ;;  %v7778_v17 = vld [vmem:[%s8795_s7 + $0x68] ss:$12 sps:$4 sm:$0xff]  }
 0x542   :  { %8861 = vst [vmem:[#allocation12_spill] sm:$0xff] %v7778_v17 }
 0x602   :  { %v1749_v16 = vpop.f32.mrb[48].mxu1 }
 0x603   :  { %v1750_v26 = vadd.f32 %v1749_v16, %v1629_v13  ;;  %v6160_v29 = vpop.f32.mrb[49].mxu1  ;;  %v7759_v13 = vld [vmem:[%s8795_s7 + $0x50] ss:$12 sps:$4 sm:$0xff]  }
 0x604   :  { %v1752_v34 = vpop.f32.mrb[50].mxu1  ;;  %v7784_v16 = vld [vmem:[%s8795_s7 + $0x7c] ss:$12 sps:$4 sm:$0xff]  }
 0x605   :  { %v1761_v35 = vadd.f32 %v7678_v18, %v1750_v26  ;;  %v6161_v38 = vpop.f32.mrb[51].mxu1  ;;  %8862 = vst [vmem:[#allocation13_spill] sm:$0xff] %v7784_v16  ;;  %v7803_v26 = vld [vmem:[%s8795_s7 + $0x94] ss:$12 sps:$4 sm:$0xff]   ;;  %v7810_v29 = vld [vmem:[%s8795_s7 + $0x90] ss:$12 sps:$4 sm:$0xff]  }
 0x606   :  { %8865 = vst [vmem:[#allocation16_spill] sm:$0xff] %v7803_v26  ;;  %8866 = vst [vmem:[#allocation17_spill] sm:$0xff] %v7810_v29  ;;  %v7822_v34 = vld [vmem:[%s8795_s7 + $0xac] ss:$12 sps:$4 sm:$0xff]   ;;  %v7845_v38 = vld [vmem:[%s8798_s10] sm:$0xff]  }
 0x607   :  { %1762 = vst.msk [vmem:[%s8803_s15] sm:$0xff] %vm178_vm0, %v1761_v35  ;;  %v1772_v39 = vmul.f32 %v1771_v30, %v1761_v35  ;;  %v7816_v30 = vld [vmem:[%s8795_s7 + $0x98] ss:$12 sps:$4 sm:$0xff]   ;;  %8868 = vst [vmem:[#allocation19_spill] sm:$0xff] %v7822_v34  ;;  %v7829_v35 = vld [vmem:[%s8795_s7 + $0xa8] ss:$12 sps:$4 sm:$0xff]  }
 0x608   :  { %8867 = vst [vmem:[#allocation18_spill] sm:$0xff] %v7816_v30  ;;  %8869 = vst [vmem:[#allocation20_spill] sm:$0xff] %v7829_v35 }
 0x609   :  { %v1773_v40 = vadd.f32 %v1772_v39, %v1769_v37  ;;  %v7835_v37 = vld [vmem:[%s8795_s7 + $0xb0] ss:$12 sps:$4 sm:$0xff]   ;;  %8871 = vst [vmem:[#allocation22_spill] sm:$0xff] %v7845_v38  ;;  %v7856_v39 = vld [vmem:[%s8798_s10 + $0x8] sm:$0xff]  }
 0x60a   :  { %8870 = vst [vmem:[#allocation21_spill] sm:$0xff] %v7835_v37  ;;  %8872 = vst [vmem:[#allocation23_spill] sm:$0xff] %v7856_v39 }
 0x60b   :  { %5655 = vmatmul.mubr.msk.f32.vlgmr.msra.gmra.mrb[2].mxu0 %vm178_vm0, %v1773_v40  ;;  %6165 = vmatmul.mubr.msk.f32.vlgmr.msra.gmra.mrb[2].mxu1 %vm178_vm0, %v1773_v40  ;;  %v7872_v40 = vld [vmem:[%s8798_s10 + $0x18] sm:$0xff]  }
 0x60c   :  { %1919 = vmatpush1.bf16.msra.mxu0 %v7693_v36  ;;  %6168 = vmatpush3.bf16.msra.mxu1 %v7699_v43  ;;  %8874 = vst [vmem:[#allocation25_spill] sm:$0xff] %v7872_v40 }
 0x60d   :  { %1920 = vmatprep.subr.bf16.mxu0 %v7705_v44  ;;  %6169 = vmatprep.subr.bf16.mxu1 %v8827_v3 }
 0x60e   :  { %1950 = vmatprep.mubr.bf16.mxu0 %v8806_v9  ;;  %6183 = vmatprep.mubr.msk.bf16.mxu1 %vm7056_vm1, %v8827_v3  ;;  %v7886_v9 = vld [vmem:[%s8798_s10 + $0x28] sm:$0xff]  }
 0x60f   :  { %8876 = vst [vmem:[#allocation27_spill] sm:$0xff] %v7886_v9 }
 0x610   :  { %1921 = vmatpush1.bf16.msra.mxu0 %v7715_v63  ;;  %6170 = vmatpush3.bf16.msra.mxu1 %v7721_v2 }
 0x611   :  { %1922 = vmatprep.subr.bf16.mxu0 %v7727_v5  ;;  %6171 = vmatprep.subr.bf16.mxu1 %v8827_v3 }
 0x614   :  { %1923 = vmatpush1.bf16.msra.mxu0 %v7734_v8  ;;  %6172 = vmatpush3.bf16.msra.mxu1 %v7740_v1 }
 0x615   :  { %1924 = vmatprep.subr.bf16.mxu0 %v7746_v10  ;;  %6173 = vmatprep.subr.bf16.mxu1 %v8827_v3 }
 0x618   :  { %1925 = vmatpush1.bf16.msra.mxu0 %v7753_v11  ;;  %6174 = vmatpush3.bf16.msra.mxu1 %v7759_v13 }
 0x619   :  { %1926 = vmatprep.subr.bf16.mxu0 %v7765_v14  ;;  %6175 = vmatprep.subr.bf16.mxu1 %v8827_v3 }
 0x61c   :  { %1927 = vmatpush1.bf16.msra.mxu0 %v7772_v15  ;;  %6176 = vmatpush3.bf16.msra.mxu1 %v7778_v17 }
 0x61d   :  { %1928 = vmatprep.subr.bf16.mxu0 %v7784_v16  ;;  %6177 = vmatprep.subr.bf16.mxu1 %v8827_v3 }
 0x620   :  { %1929 = vmatpush1.bf16.msra.mxu0 %v7791_v24  ;;  %6178 = vmatpush3.bf16.msra.mxu1 %v7797_v25 }
 0x621   :  { %1930 = vmatprep.subr.bf16.mxu0 %v7803_v26  ;;  %6179 = vmatprep.subr.bf16.mxu1 %v8827_v3 }
 0x624   :  { %1931 = vmatpush1.bf16.msra.mxu0 %v7810_v29  ;;  %6180 = vmatpush3.bf16.msra.mxu1 %v7816_v30 }
 0x625   :  { %1932 = vmatprep.subr.bf16.mxu0 %v7822_v34  ;;  %6181 = vmatprep.subr.bf16.mxu1 %v8827_v3 }
 0x628   :  { %1933 = vmatpush1.bf16.msra.mxu0 %v7829_v35  ;;  %6182 = vmatpush3.bf16.msra.mxu1 %v7835_v37 }
 0x629   :  { %6187 = vmatprep.subr.bf16.mxu0 %v8827_v3  ;;  %6207 = vmatprep.subr.bf16.mxu1 %v8827_v3 }
 0x62b   :  { %1951 = vmatmul.mubr.bf16.vlgmr.msra.gmra.mrb[40].mxu0 %v7313_v21  ;;  %6184 = vmatmul.mubr.bf16.vlgmr.msra.gmra.mrb[52].mxu1 %v7313_v21  ;;  %v7865_v21 = vld [vmem:[%s8798_s10 + $0x10] sm:$0xff]  }
 0x62c   :  { %6188 = vmatpush3.bf16.msra.mxu0 %v7845_v38  ;;  %6203 = vmatprep.mubr.msk.bf16.mxu0 %vm7056_vm1, %v8827_v3  ;;  %8873 = vst [vmem:[#allocation24_spill] sm:$0xff] %v7865_v21 }
 0x62d   :  { %6189 = vmatprep.subr.bf16.mxu0 %v8827_v3  ;;  %6209 = vmatprep.mubr.msk.bf16.mxu1 %vm7056_vm1, %v8827_v3 }
 0x630   :  { %6190 = vmatpush3.bf16.msra.mxu0 %v7856_v39 }
 0x631   :  { %6191 = vmatprep.subr.bf16.mxu0 %v8827_v3  ;;  %6208 = vmatpush3.bf16.xpose.msra.mxu1 %v7321_v22  ;;  %v7879_v22 = vld [vmem:[%s8798_s10 + $0x20] sm:$0xff]  }
 0x632   :  { %6213 = vmatprep.subr.bf16.mxu1 %v8827_v3  ;;  %8875 = vst [vmem:[#allocation26_spill] sm:$0xff] %v7879_v22 }
 0x634   :  { %6192 = vmatpush3.bf16.msra.mxu0 %v7865_v21 }
 0x635   :  { %6193 = vmatprep.subr.bf16.mxu0 %v8827_v3 }
 0x638   :  { %6194 = vmatpush3.bf16.msra.mxu0 %v7872_v40  ;;  %v7893_v40 = vld [vmem:[%s8798_s10 + $0x30] sm:$0xff]  }
 0x639   :  { %6195 = vmatprep.subr.bf16.mxu0 %v8827_v3  ;;  %8877 = vst [vmem:[#allocation28_spill] sm:$0xff] %v7893_v40 }
 0x63c   :  { %6196 = vmatpush3.bf16.msra.mxu0 %v7879_v22  ;;  %v7900_v22 = vld [vmem:[%s8798_s10 + $0x38] sm:$0xff]  }
 0x63d   :  { %6197 = vmatprep.subr.bf16.mxu0 %v8827_v3  ;;  %8878 = vst [vmem:[#allocation29_spill] sm:$0xff] %v7900_v22 }
 0x640   :  { %6198 = vmatpush3.bf16.msra.mxu0 %v7886_v9 }
 0x641   :  { %6199 = vmatprep.subr.bf16.mxu0 %v8827_v3 }
 0x644   :  { %6200 = vmatpush3.bf16.msra.mxu0 %v7893_v40 }
 0x645   :  { %6201 = vmatprep.subr.bf16.mxu0 %v8827_v3 }
 0x648   :  { %6202 = vmatpush3.bf16.msra.mxu0 %v7900_v22 }
 0x649   :  { %6231 = vmatprep.subr.bf16.mxu0 %v8827_v3 }
 0x6de   :  { %v1843_v9 = vpop.f32.mrb[2].mxu0  ;;  %v1914_v21 = vpop.f32.mrb[2].mxu1 }
 0x6df   :  { %v1845_v39 = vpop.f32.mrb[3].mxu0  ;;  %v6166_v38 = vpop.f32.mrb[3].mxu1  ;;  %v1844_v37 = vadd.f32 %v1843_v9, %v7296_v49 }
 0x6e0   :  { %v1846_v35 = vadd.f32 %v1845_v39, %v7298_v50 }
 0x6fe   :  { %v1952_v40 = vpop.f32.mrb[40].mxu0  ;;  %v1993_v34 = vpop.f32.mrb[52].mxu1 }
 0x6ff   :  { %v1999_v30 = vadd.f32 %v1952_v40, %v1844_v37  ;;  %v1954_v29 = vpop.f32.mrb[41].mxu0  ;;  %v6185_v26 = vpop.f32.mrb[53].mxu1  ;;  %v7909_v37 = vld [vmem:[%s8797_s9] ss:$0 sm:$0xff] }
 0x700   :  { %v2006_v25 = vadd.f32 %v1954_v29, %v1846_v35  ;;  %v1956_v24 = vpop.f32.mrb[42].mxu0  ;;  %v1996_v16 = vpop.f32.mrb[54].mxu1  ;;  %8879 = vst [vmem:[#allocation30_spill] sm:$0xff] %v7909_v37  ;;  %v2013_v26 = vadd.f32 %v7909_v37, %v1993_v34  ;;  %v8882_v34 = vmov 0.0  }
 0x701   :  { %v5657_v17 = vmul.f32 -1.442695, %v1999_v30  ;;  %v1957_v22 = vpop.f32.mrb[43].mxu0  ;;  %v6186_v15 = vpop.f32.mrb[55].mxu1  ;;  %v1915_v16 = vadd.f32 %v1914_v21, %v7305_v7  ;;  %v7933_v21 = vld [vmem:[%s8799_s11] ss:$0 sm:$0xff] }
 0x702   :  { %v5658_v3 = vmul.f32 -1.442695, %v2006_v25  ;;  %8883 = vst [vmem:[#allocation33_spill] sm:$0xff] %v7933_v21 }
 0x703   :  { %6808 = vpow2.f32 %v5657_v17 }
 0x704   :  { %6810 = vpow2.f32 %v5658_v3 }
 0x70d   :  { %v6809_v14 = vpop.eup %6808 }
 0x70e   :  { %v2003_v38 = vadd.f32 1.0, %v6809_v14  ;;  %v6811_v9 = vpop.eup %6810 }
 0x70f   :  { %v2010_v49 = vadd.f32 1.0, %v6811_v9 }
 0x710   :  { %6812 = vrcp.f32 %v2003_v38 }
 0x711   :  { %6814 = vrcp.f32 %v2010_v49  ;;  %v7924_v49 = vld [vmem:[%s8789_s1 + $0x10] sm:$0xf] }
 0x712   :  { %8881 = vst [vmem:[#allocation32_spill] sm:$0xff] %v7924_v49 }
 0x71a   :  { %v6813_v24 = vpop.eup %6812 }
 0x71b   :  { %v2014_v29 = vmul.f32 %v6813_v24, %v2013_v26  ;;  %v6815_v3 = vpop.eup %6814 }
 0x71c   :  { %v2017_v17 = vsub.f32 1.0, %v6815_v3  ;;  %v2019_v30 = vmul.f32 %v6815_v3, %v7309_v20 }
 0x71d   :  { %v2015_v15 = vadd.f32 %v2014_v29, %v1915_v16 }
 0x71f   :  { %6816 = vtanh.f32 %v2015_v15 }
 0x729   :  { %v6817_v14 = vpop.eup %6816 }
 0x72a   :  { %v2018_v25 = vmul.f32 %v6817_v14, %v2017_v17 }
 0x72c   :  { %v7914_v35 = vadd.f32 %v2019_v30, %v2018_v25  ;;  %v7943_v25 = vld [vmem:[%s8789_s1 + $0x4] sm:$0xf] }
 0x72d   :  { %8884 = vst [vmem:[#allocation34_spill] sm:$0xff] %v7943_v25 }
 0x72e   :  { %8880 = vst [vmem:[#allocation31_spill] sm:$0xff] %v7914_v35  ;;  %v7918_v39 = vpack.c.bf16 %v7914_v35, %v7914_v35 }
 0x730   :  { %6204 = vmatmul.mubr.bf16.vlgmr.msra.gmra.mrb[44].mxu0 %v7918_v39 }
 0x731   :  { %6232 = vmatpush3.bf16.xpose.msra.mxu0 %v7924_v49  ;;  %6233 = vmatprep.mubr.msk.bf16.mxu0 %vm7056_vm1, %v8882_v34 }
 0x732   :  { %6243 = vmatprep.subr.bf16.mxu0 %v8882_v34 }
 0x803   :  { %v2056_v20 = vpop.f32.mrb[44].mxu0 }
 0x804   :  { %v2057_v40 = vadd.f32 %v7933_v21, %v2056_v20  ;;  %v6205_v22 = vpop.f32.mrb[45].mxu0  ;;  %v7950_v20 = vld [vmem:[%s8789_s1 + $0x18] sm:$0xf] }
 0x805   :  { %v2059_v38 = vpop.f32.mrb[46].mxu0  ;;  %8885 = vst [vmem:[#allocation35_spill] sm:$0xff] %v7950_v20 }
 0x806   :  { %v2063_v9 = vcombine.high %v2057_v40, %v2057_v40  ;;  %v2070_v26 = vrot.slane %v2057_v40, %v7332_v28  ;;  %v6206_v24 = vpop.f32.mrb[47].mxu0 }
 0x808   :  { %v2077_v16 = vrot.slane %v2063_v9, %v7332_v28  ;;  %v2086_v29 = vrot.slane %v2070_v26, %v7332_v28  ;;  %v2078_v3 = vcombine.high %v2070_v26, %v2070_v26  ;;  %v7962_v9 = vld [vmem:[%s8789_s1 + $0x8] sm:$0xf] }
 0x809   :  { %8886 = vst [vmem:[#allocation36_spill] sm:$0xff] %v7962_v9 }
 0x80a   :  { %v2093_v15 = vrot.slane %v2077_v16, %v7332_v28  ;;  %v2120_v17 = vpack.c.bf16 %v2086_v29, %v2086_v29  ;;  %v2100_v30 = vrot.slane %v2078_v3, %v7332_v28  ;;  %v2108_v26 = vcombine.high %v2086_v29, %v2086_v29 }
 0x80b   :  { %v2079_v3 = vcombine.high %v2077_v16, %v2077_v16  ;;  %v7994_v16 = vld [vmem:[%s8789_s1 + $0x1c] sm:$0xf] }
 0x80c   :  { %v2124_v14 = vpack.c.bf16 %v2093_v15, %v2093_v15  ;;  %6210 = vmatmul.mubr.bf16.vlgmr.msra.gmra.mrb[56].mxu1 %v2120_v17  ;;  %v2109_v40 = vcombine.high %v2093_v15, %v2093_v15  ;;  %v2121_v22 = vpack.c.bf16 %v2100_v30, %v2100_v30  ;;  %v2122_v24 = vpack.c.bf16 %v2108_v26, %v2108_v26  ;;  %v7975_v15 = vld [vmem:[%s8789_s1 + $0xc] sm:$0xf] }
 0x80d   :  { %6214 = vmatpush3.bf16.xpose.msra.mxu1 %v7943_v25  ;;  %6215 = vmatprep.mubr.msk.bf16.mxu1 %vm7056_vm1, %v8882_v34  ;;  %8887 = vst [vmem:[#allocation37_spill] sm:$0xff] %v7975_v15  ;;  %v2110_v29 = vcombine.high %v2100_v30, %v2100_v30  ;;  %8889 = vst [vmem:[#allocation39_spill] sm:$0xff] %v7994_v16 }
 0x80e   :  { %6234 = vmatmul.mubr.bf16.vlgmr.msra.gmra.mrb[48].mxu0 %v2124_v14  ;;  %6219 = vmatprep.subr.bf16.mxu1 %v8882_v34  ;;  %v2126_v38 = vpack.c.bf16 %v2109_v40, %v2109_v40  ;;  %v7984_v14 = vld [vmem:[%s8789_s1 + $0x14] sm:$0xf]  ;;  %v2107_v40 = vrot.slane %v2079_v3, %v7332_v28 }
 0x80f   :  { %6244 = vmatpush3.bf16.xpose.msra.mxu0 %v7950_v20  ;;  %6245 = vmatprep.mubr.msk.bf16.mxu0 %vm7056_vm1, %v8882_v34  ;;  %v2123_v17 = vpack.c.bf16 %v2110_v29, %v2110_v29  ;;  %8888 = vst [vmem:[#allocation38_spill] sm:$0xff] %v7984_v14 }
 0x810   :  { %6255 = vmatprep.subr.bf16.mxu0 %v8882_v34  ;;  %v2111_v30 = vcombine.high %v2107_v40, %v2107_v40 }
 0x814   :  { %6216 = vmatmul.mubr.bf16.vlgmr.msra.gmra.mrb[60].mxu1 %v2121_v22  ;;  %v2125_v22 = vpack.c.bf16 %v2107_v40, %v2107_v40 }
 0x815   :  { %6220 = vmatpush3.bf16.xpose.msra.mxu1 %v7962_v9  ;;  %6221 = vmatprep.mubr.msk.bf16.mxu1 %vm7056_vm1, %v8882_v34 }
 0x816   :  { %6246 = vmatmul.mubr.bf16.vlgmr.msra.gmra.mrb[52].mxu0 %v2126_v38  ;;  %6225 = vmatprep.subr.bf16.mxu1 %v8882_v34  ;;  %v2127_v38 = vpack.c.bf16 %v2111_v30, %v2111_v30 }
 0x817   :  { %6256 = vmatpush3.bf16.msra.mxu0 %v7414_v27  ;;  %6257 = vmatprep.mubr.msk.bf16.mxu0 %vm7056_vm1, %v8882_v34 }
 0x818   :  { %6267 = vmatprep.subr.bf16.mxu0 %v8882_v34 }
 0x81c   :  { %6222 = vmatmul.mubr.bf16.vlgmr.msra.gmra.mrb[64].mxu1 %v2122_v24 }
 0x81d   :  { %6226 = vmatpush3.bf16.xpose.msra.mxu1 %v7975_v15  ;;  %6227 = vmatprep.mubr.msk.bf16.mxu1 %vm7056_vm1, %v8882_v34 }
 0x81e   :  { %6237 = vmatprep.subr.bf16.mxu1 %v8882_v34 }
 0x824   :  { %6228 = vmatmul.mubr.bf16.vlgmr.msra.gmra.mrb[68].mxu1 %v2123_v17 }
 0x825   :  { %6238 = vmatpush3.bf16.xpose.msra.mxu1 %v7984_v14  ;;  %6239 = vmatprep.mubr.msk.bf16.mxu1 %vm7056_vm1, %v8882_v34 }
 0x826   :  { %6249 = vmatprep.subr.bf16.mxu1 %v8882_v34 }
 0x82c   :  { %6240 = vmatmul.mubr.bf16.vlgmr.msra.gmra.mrb[72].mxu1 %v2125_v22 }
 0x82d   :  { %6250 = vmatpush3.bf16.xpose.msra.mxu1 %v7994_v16  ;;  %6251 = vmatprep.mubr.msk.bf16.mxu1 %vm7056_vm1, %v8882_v34 }
 0x82e   :  { %6261 = vmatprep.subr.bf16.mxu1 %v8882_v34 }
 0x834   :  { %6252 = vmatmul.mubr.bf16.vlgmr.msra.gmra.mrb[76].mxu1 %v2127_v38 }
 0x835   :  { %6262 = vmatpush3.bf16.msra.mxu1 %v7426_v32  ;;  %6263 = vmatprep.mubr.msk.bf16.mxu1 %vm7056_vm1, %v8882_v34 }
 0x836   :  { %6273 = vmatprep.subr.bf16.mxu1 %v8882_v34 }
 0x8df   :  { %v2162_v26 = vpop.f32.mrb[56].mxu1 }
 0x8e0   :  { %v6211_v24 = vpop.f32.mrb[57].mxu1  ;;  %v2448_v3 = vsel %vm1042_vm2, %v2162_v26, -inf }
 0x8e1   :  { %v8004_v29 = vpop.f32.mrb[48].mxu0  ;;  %2449 = vmax.xlane.f32.xlu0 %v2448_v3  ;;  %v2165_v17 = vpop.f32.mrb[58].mxu1 }
 0x8e2   :  { %v6235_v40 = vpop.f32.mrb[49].mxu0  ;;  %v6212_v22 = vpop.f32.mrb[59].mxu1 }
 0x8e3   :  { %v2325_v16 = vpop.f32.mrb[50].mxu0 }
 0x8e4   :  { %v6236_v30 = vpop.f32.mrb[51].mxu0  ;;  %v2460_v16 = vsel %vm1042_vm2, %v8004_v29, -inf }
 0x8e7   :  { %v2202_v38 = vpop.f32.mrb[60].mxu1 }
 0x8e8   :  { %v6217_v14 = vpop.f32.mrb[61].mxu1  ;;  %v2451_v15 = vsel %vm1042_vm2, %v2202_v38, -inf }
 0x8e9   :  { %v2402_v32 = vpop.f32.mrb[52].mxu0  ;;  %2452 = vmax.xlane.f32.xlu1 %v2451_v15  ;;  %v2205_v27 = vpop.f32.mrb[62].mxu1 }
 0x8ea   :  { %v6247_v9 = vpop.f32.mrb[53].mxu0  ;;  %v6218_v20 = vpop.f32.mrb[63].mxu1  ;;  %v2466_v15 = vsel %vm1042_vm2, %v2402_v32, -inf }
 0x8eb   :  { %v2405_v24 = vpop.f32.mrb[54].mxu0 }
 0x8ec   :  { %v6248_v25 = vpop.f32.mrb[55].mxu0 }
 0x8ef   :  { %v2242_v28 = vpop.f32.mrb[64].mxu1 }
 0x8f0   :  { %v6223_v21 = vpop.f32.mrb[65].mxu1  ;;  %v2454_v3 = vsel %vm1042_vm2, %v2242_v28, -inf }
 0x8f1   :  { %2455 = vmax.xlane.f32.xlu0 %v2454_v3  ;;  %v2245_v17 = vpop.f32.mrb[66].mxu1 }
 0x8f2   :  { %v6224_v40 = vpop.f32.mrb[67].mxu1 }
 0x8f5   :  { %2461 = vmax.xlane.f32.xlu0 %v2460_v16 }
 0x8f7   :  { %v2282_v14 = vpop.f32.mrb[68].mxu1 }
 0x8f8   :  { %v6229_v22 = vpop.f32.mrb[69].mxu1  ;;  %v2457_v27 = vsel %vm1042_vm2, %v2282_v14, -inf }
 0x8f9   :  { %2467 = vmax.xlane.f32.xlu0 %v2466_v15  ;;  %2458 = vmax.xlane.f32.xlu1 %v2457_v27  ;;  %v2285_v25 = vpop.f32.mrb[70].mxu1 }
 0x8fa   :  { %v6230_v20 = vpop.f32.mrb[71].mxu1 }
 0x8ff   :  { %v2362_v21 = vpop.f32.mrb[72].mxu1 }
 0x900   :  { %v6241_v9 = vpop.f32.mrb[73].mxu1  ;;  %v2463_v30 = vsel %vm1042_vm2, %v2362_v21, -inf }
 0x901   :  { %2464 = vmax.xlane.f32.xlu1 %v2463_v30  ;;  %v2365_v24 = vpop.f32.mrb[74].mxu1 }
 0x902   :  { %v6242_v3 = vpop.f32.mrb[75].mxu1 }
 0x907   :  { %v2442_v17 = vpop.f32.mrb[76].mxu1 }
 0x908   :  { %v6253_v40 = vpop.f32.mrb[77].mxu1  ;;  %v2469_v16 = vsel %vm1042_vm2, %v2442_v17, -inf }
 0x909   :  { %2470 = vmax.xlane.f32.xlu1 %v2469_v16  ;;  %v2445_v22 = vpop.f32.mrb[78].mxu1 }
 0x90a   :  { %v6254_v49 = vpop.f32.mrb[79].mxu1 }
 0x96e   :  { %v2450_v35 = vpop.xlane.xlu0 %2449 }
 0x96f   :  { %v2472_v7 = vsub.f32 %v2162_v26, %v2450_v35 }
 0x971   :  { %v2480_v15 = vmul.f32 1.442695, %v2472_v7 }
 0x973   :  { %6818 = vpow2.f32 %v2480_v15 }
 0x976   :  { %v2453_v27 = vpop.xlane.xlu1 %2452 }
 0x977   :  { %v2473_v25 = vsub.f32 %v2202_v38, %v2453_v27 }
 0x979   :  { %v2482_v20 = vmul.f32 1.442695, %v2473_v25 }
 0x97b   :  { %6820 = vpow2.f32 %v2482_v20 }
 0x97d   :  { %v6819_v9 = vpop.eup %6818 }
 0x97e   :  { %v2456_v37 = vpop.xlane.xlu0 %2455  ;;  %v2496_v30 = vsel %vm1042_vm2, %v6819_v9, 0.0 }
 0x97f   :  { %v2474_v24 = vsub.f32 %v2242_v28, %v2456_v37  ;;  %2497 = vadd.xlane.f32.xlu0 %v2496_v30 }
 0x981   :  { %v2484_v3 = vmul.f32 1.442695, %v2474_v24 }
 0x982   :  { %v2462_v40 = vpop.xlane.xlu0 %2461 }
 0x983   :  { %6822 = vpow2.f32 %v2484_v3  ;;  %v2476_v16 = vsub.f32 %v8004_v29, %v2462_v40 }
 0x985   :  { %v6821_v49 = vpop.eup %6820  ;;  %v2488_v22 = vmul.f32 1.442695, %v2476_v16 }
 0x986   :  { %v2468_v35 = vpop.xlane.xlu0 %2467  ;;  %v2459_v7 = vpop.xlane.xlu1 %2458  ;;  %v2499_v26 = vsel %vm1042_vm2, %v6821_v49, 0.0 }
 0x987   :  { %6824 = vpow2.f32 %v2488_v22  ;;  %v2478_v38 = vsub.f32 %v2402_v32, %v2468_v35  ;;  %v2475_v15 = vsub.f32 %v2282_v14, %v2459_v7  ;;  %2500 = vadd.xlane.f32.xlu1 %v2499_v26 }
 0x989   :  { %v2492_v27 = vmul.f32 1.442695, %v2478_v38  ;;  %v2486_v25 = vmul.f32 1.442695, %v2475_v15 }
 0x98b   :  { %6826 = vpow2.f32 %v2492_v27 }
 0x98c   :  { %6828 = vpow2.f32 %v2486_v25 }
 0x98d   :  { %v6823_v28 = vpop.eup %6822 }
 0x98e   :  { %v2465_v37 = vpop.xlane.xlu1 %2464  ;;  %v2502_v20 = vsel %vm1042_vm2, %v6823_v28, 0.0 }
 0x98f   :  { %v2477_v30 = vsub.f32 %v2362_v21, %v2465_v37  ;;  %2503 = vadd.xlane.f32.xlu0 %v2502_v20 }
 0x991   :  { %v6825_v29 = vpop.eup %6824  ;;  %v2490_v24 = vmul.f32 1.442695, %v2477_v30 }
 0x992   :  { %v2508_v3 = vsel %vm1042_vm2, %v6825_v29, 0.0 }
 0x993   :  { %6830 = vpow2.f32 %v2490_v24  ;;  %2509 = vadd.xlane.f32.xlu0 %v2508_v3 }
 0x995   :  { %v8020_v40 = vpop.eup %6826 }
 0x996   :  { %v6829_v32 = vpop.eup %6828  ;;  %v2471_v14 = vpop.xlane.xlu1 %2470  ;;  %v2514_v16 = vsel %vm1042_vm2, %v8020_v40, 0.0 }
 0x997   :  { %v2479_v22 = vsub.f32 %v2442_v17, %v2471_v14  ;;  %2515 = vadd.xlane.f32.xlu0 %v2514_v16  ;;  %v2505_v35 = vsel %vm1042_vm2, %v6829_v32, 0.0 }
 0x998   :  { %2506 = vadd.xlane.f32.xlu1 %v2505_v35 }
 0x999   :  { %v2494_v21 = vmul.f32 1.442695, %v2479_v22 }
 0x99b   :  { %6832 = vpow2.f32 %v2494_v21 }
 0x99d   :  { %v6831_v7 = vpop.eup %6830 }
 0x99e   :  { %v2511_v26 = vsel %vm1042_vm2, %v6831_v7, 0.0 }
 0x99f   :  { %2512 = vadd.xlane.f32.xlu1 %v2511_v26 }
 0x9a5   :  { %v8026_v38 = vpop.eup %6832 }
 0x9a6   :  { %v2517_v15 = vsel %vm1042_vm2, %v8026_v38, 0.0 }
 0x9a7   :  { %2518 = vadd.xlane.f32.xlu1 %v2517_v15 }
 0xa0c   :  { %v2498_v27 = vpop.xlane.xlu0 %2497 }
 0xa0d   :  { %6834 = vrcp.f32 %v2498_v27 }
 0xa14   :  { %v2501_v25 = vpop.xlane.xlu1 %2500 }
 0xa15   :  { %6836 = vrcp.f32 %v2501_v25 }
 0xa17   :  { %v6835_v17 = vpop.eup %6834 }
 0xa18   :  { %v2528_v37 = vmul.f32 %v6835_v17, %v6819_v9 }
 0xa1a   :  { %v2561_v20 = vpack.c.bf16 %v2528_v37, %v2528_v37 }
 0xa1c   :  { %6258 = vmatmul.mubr.msk.bf16.vlgmr.msra.gmra.mrb[56].mxu0 %vm178_vm0, %v2561_v20  ;;  %v2504_v30 = vpop.xlane.xlu0 %2503 }
 0xa1d   :  { %6838 = vrcp.f32 %v2504_v30  ;;  %6268 = vmatpush3.bf16.msra.mxu0 %v7442_v41  ;;  %6269 = vmatprep.mubr.msk.bf16.mxu0 %vm7056_vm1, %v8882_v34 }
 0xa1e   :  { %6279 = vmatprep.subr.bf16.mxu0 %v8882_v34 }
 0xa1f   :  { %v6837_v24 = vpop.eup %6836 }
 0xa20   :  { %v2529_v3 = vmul.f32 %v6837_v24, %v6821_v49  ;;  %v2510_v14 = vpop.xlane.xlu0 %2509 }
 0xa21   :  { %6840 = vrcp.f32 %v2510_v14 }
 0xa22   :  { %v2562_v16 = vpack.c.bf16 %v2529_v3, %v2529_v3  ;;  %v2544_v14 = vrot.slane %v2529_v3, 7 }
 0xa24   :  { %6264 = vmatmul.mubr.msk.bf16.vlgmr.msra.gmra.mrb[80].mxu1 %vm178_vm0, %v2562_v16  ;;  %v2516_v22 = vpop.xlane.xlu0 %2515  ;;  %v2545_v3 = vsel %vm1140_vm4, %v2544_v14, %v2528_v37 }
 0xa25   :  { %v2507_v9 = vpop.xlane.xlu1 %2506  ;;  %6274 = vmatpush3.bf16.msra.mxu1 %v7453_v48  ;;  %6275 = vmatprep.mubr.msk.bf16.mxu1 %vm7056_vm1, %v8882_v34 }
 0xa26   :  { %6842 = vrcp.f32 %v2507_v9  ;;  %6285 = vmatprep.subr.bf16.mxu1 %v8882_v34 }
 0xa27   :  { %v6839_v35 = vpop.eup %6838  ;;  %6844 = vrcp.f32 %v2516_v22 }
 0xa28   :  { %v2530_v21 = vmul.f32 %v6839_v35, %v6823_v28 }
 0xa2a   :  { %v2563_v26 = vpack.c.bf16 %v2530_v21, %v2530_v21 }
 0xa2b   :  { %v6841_v49 = vpop.eup %6840 }
 0xa2c   :  { %6270 = vmatmul.mubr.msk.bf16.vlgmr.msra.gmra.mrb[60].mxu0 %vm178_vm0, %v2563_v26  ;;  %v2513_v15 = vpop.xlane.xlu1 %2512  ;;  %v2532_v27 = vmul.f32 %v6841_v49, %v6825_v29 }
 0xa2d   :  { %6846 = vrcp.f32 %v2513_v15  ;;  %6280 = vmatpush3.bf16.msra.mxu0 %v7465_v57  ;;  %6281 = vmatprep.mubr.msk.bf16.mxu0 %vm7056_vm1, %v8882_v34 }
 0xa2e   :  { %6291 = vmatprep.subr.bf16.mxu0 %v8882_v34  ;;  %v2565_v20 = vpack.c.bf16 %v2532_v27, %v2532_v27 }
 0xa30   :  { %v6843_v25 = vpop.eup %6842 }
 0xa31   :  { %v2531_v17 = vmul.f32 %v6843_v25, %v6829_v32  ;;  %v6845_v30 = vpop.eup %6844  ;;  %v2546_v32 = vrot.slane %v2530_v21, 6  ;;  %v2550_v21 = vrot.slane %v2532_v27, 4 }
 0xa32   :  { %v2534_v16 = vmul.f32 %v6845_v30, %v8020_v40 }
 0xa33   :  { %v2564_v28 = vpack.c.bf16 %v2531_v17, %v2531_v17  ;;  %v2548_v9 = vrot.slane %v2531_v17, 5  ;;  %v2547_v26 = vsel %vm1143_vm5, %v2546_v32, %v2545_v3 }
 0xa34   :  { %6282 = vmatmul.mubr.msk.bf16.vlgmr.msra.gmra.mrb[64].mxu0 %vm178_vm0, %v2565_v20  ;;  %v2519_v24 = vpop.xlane.xlu1 %2518  ;;  %v2567_v40 = vpack.c.bf16 %v2534_v16, %v2534_v16 }
 0xa35   :  { %6276 = vmatmul.mubr.msk.bf16.vlgmr.msra.gmra.mrb[84].mxu1 %vm178_vm0, %v2564_v28  ;;  %6848 = vrcp.f32 %v2519_v24  ;;  %6292 = vmatpush3.bf16.msra.mxu0 %v7484_v6  ;;  %v2549_v49 = vsel %vm1146_vm6, %v2548_v9, %v2547_v26 }
 0xa36   :  { %6286 = vmatpush3.bf16.msra.mxu1 %v7481_v4  ;;  %6287 = vmatprep.mubr.msk.bf16.mxu1 %vm7056_vm1, %v8882_v34  ;;  %v2551_v37 = vsel %vm1149_vm7, %v2550_v21, %v2549_v49 }
 0xa37   :  { %v6847_v29 = vpop.eup %6846  ;;  %6293 = vmatprep.mubr.msk.bf16.mxu0 %vm7056_vm1, %v8882_v34  ;;  %6297 = vmatprep.subr.bf16.mxu1 %v8882_v34 }
 0xa38   :  { %v2533_v22 = vmul.f32 %v6847_v29, %v6831_v7  ;;  %6303 = vmatprep.subr.bf16.mxu0 %v8882_v34 }
 0xa3a   :  { %v2566_v35 = vpack.c.bf16 %v2533_v22, %v2533_v22  ;;  %v2552_v15 = vrot.slane %v2533_v22, 3 }
 0xa3c   :  { %6294 = vmatmul.mubr.msk.bf16.vlgmr.msra.gmra.mrb[68].mxu0 %vm178_vm0, %v2567_v40  ;;  %v2553_v25 = vsel %vm1152_vm8, %v2552_v15, %v2551_v37 }
 0xa3d   :  { %6288 = vmatmul.mubr.msk.bf16.vlgmr.msra.gmra.mrb[88].mxu1 %vm178_vm0, %v2566_v35  ;;  %6304 = vmatpush3.bf16.msra.mxu0 %v7509_v23  ;;  %v2554_v23 = vrot.slane %v2534_v16, 2 }
 0xa3e   :  { %6298 = vmatpush3.bf16.msra.mxu1 %v7504_v19  ;;  %6305 = vmatprep.subr.bf16.mxu0 %v8882_v34 }
 0xa3f   :  { %v6849_v7 = vpop.eup %6848  ;;  %6299 = vmatprep.mubr.msk.bf16.mxu1 %vm7056_vm1, %v8882_v34  ;;  %6319 = vmatprep.mubr.msk.bf16.mxu0 %vm7056_vm1, %v8882_v34  ;;  %v2555_v30 = vsel %vm1155_vm9, %v2554_v23, %v2553_v25 }
 0xa40   :  { %v2535_v27 = vmul.f32 %v6849_v7, %v8026_v38  ;;  %6323 = vmatprep.subr.bf16.mxu1 %v8882_v34 }
 0xa41   :  { %6306 = vmatpush3.bf16.msra.mxu0 %v7520_v31 }
 0xa42   :  { %v2556_v17 = vrot.slane %v2535_v27, 1  ;;  %6307 = vmatprep.subr.bf16.mxu0 %v8882_v34  ;;  %v2568_v20 = vpack.c.bf16 %v2535_v27, %v2535_v27 }
 0xa44   :  { %v2557_v28 = vsel %vm1158_vm10, %v2556_v17, %v2555_v30 }
 0xa45   :  { %5659 = vst.msk [vmem:[%s8804_s16 + $0x8] sm:$0xff] %vm178_vm0, %v2557_v28  ;;  %6300 = vmatmul.mubr.msk.bf16.vlgmr.msra.gmra.mrb[92].mxu1 %vm178_vm0, %v2568_v20  ;;  %6308 = vmatpush3.bf16.msra.mxu0 %v7535_v42 }
 0xa46   :  { %6309 = vmatprep.subr.bf16.mxu0 %v8882_v34  ;;  %6324 = vmatpush3.bf16.msra.mxu1 %v7606_v55 }
 0xa47   :  { %6325 = vmatprep.subr.bf16.mxu1 %v8882_v34  ;;  %6339 = vmatprep.mubr.msk.bf16.mxu1 %vm7056_vm1, %v8882_v34 }
 0xa49   :  { %6310 = vmatpush3.bf16.msra.mxu0 %v7551_v33 }
 0xa4a   :  { %6311 = vmatprep.subr.bf16.mxu0 %v8882_v34  ;;  %6326 = vmatpush3.bf16.msra.mxu1 %v7613_v56 }
 0xa4b   :  { %6327 = vmatprep.subr.bf16.mxu1 %v8882_v34 }
 0xa4d   :  { %6312 = vmatpush3.bf16.msra.mxu0 %v7558_v45 }
 0xa4e   :  { %6313 = vmatprep.subr.bf16.mxu0 %v8882_v34  ;;  %6328 = vmatpush3.bf16.msra.mxu1 %v7620_v58 }
 0xa4f   :  { %6329 = vmatprep.subr.bf16.mxu1 %v8882_v34 }
 0xa51   :  { %6314 = vmatpush3.bf16.msra.mxu0 %v7565_v46 }
 0xa52   :  { %6315 = vmatprep.subr.bf16.mxu0 %v8882_v34  ;;  %6330 = vmatpush3.bf16.msra.mxu1 %v7627_v59 }
 0xa53   :  { %6331 = vmatprep.subr.bf16.mxu1 %v8882_v34 }
 0xa55   :  { %6316 = vmatpush3.bf16.msra.mxu0 %v7572_v47 }
 0xa56   :  { %6317 = vmatprep.subr.bf16.mxu0 %v8882_v34  ;;  %6332 = vmatpush3.bf16.msra.mxu1 %v7634_v60 }
 0xa57   :  { %6333 = vmatprep.subr.bf16.mxu1 %v8882_v34 }
 0xa59   :  { %6318 = vmatpush3.bf16.msra.mxu0 %v7579_v51 }
 0xa5a   :  { %6334 = vmatpush3.bf16.msra.mxu1 %v7641_v61  ;;  %3051 = vmatprep.subr.mxu0 %v7586_v52 }
 0xa5b   :  { %6335 = vmatprep.subr.bf16.mxu1 %v8882_v34 }
 0xa5c   :  { %6320 = vmatmul.mubr.bf16.vlgmr.msra.gmra.mrb[72].mxu0 %v7918_v39 }
 0xa5d   :  { %3052 = vmatpush1.msra.mxu0 %v7593_v53  ;;  %3115 = vmatprep.mubr.f32.mxu0 %v8882_v34 }
 0xa5e   :  { %6336 = vmatpush3.bf16.msra.mxu1 %v7648_v62  ;;  %3192 = vmatprep.subr.bf16.mxu0 %v7600_v54 }
 0xa5f   :  { %6337 = vmatprep.subr.bf16.mxu1 %v8882_v34 }
 0xa62   :  { %6338 = vmatpush3.bf16.msra.mxu1 %v7655_v0 }
 0xa63   :  { %6343 = vmatprep.subr.mxu1 %v8882_v34 }
 0xaef   :  { %v2606_v31 = vpop.f32.mrb[56].mxu0 }
 0xaf0   :  { %v6259_v42 = vpop.f32.mrb[57].mxu0  ;;  %v2913_v47 = vpack.c.bf16 %v2606_v31, %v2606_v31 }
 0xaf1   :  { %v2609_v33 = vpop.f32.mrb[58].mxu0 }
 0xaf2   :  { %v6260_v45 = vpop.f32.mrb[59].mxu0  ;;  %v2969_v58 = vunpack.c.l.b16 %v2913_v47 }
 0xaf7   :  { %v2649_v46 = vpop.f32.mrb[80].mxu1 }
 0xaf8   :  { %v2914_v51 = vpack.c.bf16 %v2649_v46, %v2649_v46  ;;  %v6265_v52 = vpop.f32.mrb[81].mxu1 }
 0xaf9   :  { %v2652_v53 = vpop.f32.mrb[82].mxu1 }
 0xafa   :  { %v2970_v55 = vunpack.c.l.b16 %v2914_v51  ;;  %v6266_v56 = vpop.f32.mrb[83].mxu1 }
 0xafc   :  { %v2977_v59 = vrot.slane %v2970_v55, 7 }
 0xafe   :  { %v2978_v54 = vsel %vm1140_vm4, %v2977_v59, %v2969_v58 }
 0xaff   :  { %v2692_v60 = vpop.f32.mrb[60].mxu0 }
 0xb00   :  { %v2915_v61 = vpack.c.bf16 %v2692_v60, %v2692_v60  ;;  %v6271_v62 = vpop.f32.mrb[61].mxu0 }
 0xb01   :  { %v2695_v0 = vpop.f32.mrb[62].mxu0 }
 0xb02   :  { %v2971_v38 = vunpack.c.l.b16 %v2915_v61  ;;  %v6272_v24 = vpop.f32.mrb[63].mxu0 }
 0xb04   :  { %v2979_v14 = vrot.slane %v2971_v38, 6 }
 0xb06   :  { %v2980_v16 = vsel %vm1143_vm5, %v2979_v14, %v2978_v54 }
 0xb07   :  { %v2778_v29 = vpop.f32.mrb[64].mxu0 }
 0xb08   :  { %v2735_v32 = vpop.f32.mrb[84].mxu1  ;;  %v2917_v9 = vpack.c.bf16 %v2778_v29, %v2778_v29  ;;  %v6283_v22 = vpop.f32.mrb[65].mxu0 }
 0xb09   :  { %v2916_v3 = vpack.c.bf16 %v2735_v32, %v2735_v32  ;;  %v6277_v35 = vpop.f32.mrb[85].mxu1  ;;  %v2781_v40 = vpop.f32.mrb[66].mxu0 }
 0xb0a   :  { %v2973_v26 = vunpack.c.l.b16 %v2917_v9  ;;  %v2738_v49 = vpop.f32.mrb[86].mxu1  ;;  %v6284_v15 = vpop.f32.mrb[67].mxu0 }
 0xb0b   :  { %v2972_v21 = vunpack.c.l.b16 %v2916_v3  ;;  %v6278_v7 = vpop.f32.mrb[87].mxu1  ;;  %v5670_v3 = vld [vmem:[%s8858_s21 + $0x8] sm:$0xff] }
 0xb0c   :  { %v2983_v37 = vrot.slane %v2973_v26, 4  ;;  %v3045_v26 = vstv %s3044_s2 }
 0xb0d   :  { %v2981_v25 = vrot.slane %v2972_v21, 5 }
 0xb0f   :  { %v2982_v27 = vsel %vm1146_vm6, %v2981_v25, %v2980_v16  ;;  %v2864_v23 = vpop.f32.mrb[68].mxu0 }
 0xb10   :  { %v2984_v17 = vsel %vm1149_vm7, %v2983_v37, %v2982_v27  ;;  %v2821_v20 = vpop.f32.mrb[88].mxu1  ;;  %v2919_v30 = vpack.c.bf16 %v2864_v23, %v2864_v23  ;;  %v6295_v28 = vpop.f32.mrb[69].mxu0  ;;  %v8902_v27 = vld [vmem:[#allocation21_spill] sm:$0xff]  ;;  %v8903_v23 = vld [vmem:[#allocation22_spill] sm:$0xff] }
 0xb11   :  { %v2918_v31 = vpack.c.bf16 %v2821_v20, %v2821_v20  ;;  %v6289_v42 = vpop.f32.mrb[89].mxu1  ;;  %v2867_v33 = vpop.f32.mrb[70].mxu0  ;;  %v8184_v20 = vld [vmem:[%s8789_s1] sm:$0xf]  ;;  %v8907_v28 = vld [vmem:[#allocation26_spill] sm:$0xff] }
 0xb12   :  { %v2975_v45 = vunpack.c.l.b16 %v2919_v30  ;;  %v2824_v46 = vpop.f32.mrb[90].mxu1  ;;  %v6296_v47 = vpop.f32.mrb[71].mxu0  ;;  %v8906_v30 = vld [vmem:[#allocation25_spill] sm:$0xff]  ;;  %v8909_v42 = vld [vmem:[#allocation28_spill] sm:$0xff] }
 0xb13   :  { %v2974_v51 = vunpack.c.l.b16 %v2918_v31  ;;  %v6290_v52 = vpop.f32.mrb[91].mxu1  ;;  %v8908_v31 = vld [vmem:[#allocation27_spill] sm:$0xff]  ;;  %v8910_v33 = vld [vmem:[#allocation29_spill] sm:$0xff] }
 0xb14   :  { %v2987_v53 = vrot.slane %v2975_v45, 2  ;;  %v8911_v52 = vld [vmem:[#allocation5_spill] sm:$0xff] }
 0xb15   :  { %v2985_v55 = vrot.slane %v2974_v51, 3 }
 0xb17   :  { %v2986_v56 = vsel %vm1152_vm8, %v2985_v55, %v2984_v17  ;;  %v8904_v17 = vld [vmem:[#allocation23_spill] sm:$0xff] }
 0xb18   :  { %v2988_v58 = vsel %vm1155_vm9, %v2987_v53, %v2986_v56  ;;  %v2907_v59 = vpop.f32.mrb[92].mxu1 }
 0xb19   :  { %v2920_v54 = vpack.c.bf16 %v2907_v59, %v2907_v59  ;;  %v6301_v60 = vpop.f32.mrb[93].mxu1 }
 0xb1a   :  { %v2910_v61 = vpop.f32.mrb[94].mxu1 }
 0xb1b   :  { %v2976_v62 = vunpack.c.l.b16 %v2920_v54  ;;  %v6302_v0 = vpop.f32.mrb[95].mxu1 }
 0xb1d   :  { %v2989_v38 = vrot.slane %v2976_v62, 1 }
 0xb1f   :  { %v2990_v24 = vsel %vm1158_vm10, %v2989_v38, %v2988_v58 }
 0xb20   :  { %v2991_v14 = vpack.c.b16 %v2990_v24, %v2990_v24 }
 0xb22   :  { %6340 = vmatmul.mubr.bf16.vlgmr.msra.gmra.mrb[96].mxu1 %v2991_v14 }
 0xb23   :  { %6344 = vmatpush3.msra.mxu1 %v7669_v12  ;;  %6345 = vmatprep.mubr.msk.f32.mxu1 %vm7056_vm1, %v8882_v34  ;;  %v3042_v12 = vstv %s3039_s0 }
 0xb24   :  { %6348 = vmatprep.subr.bf16.mxu1 %v8882_v34  ;;  %v3043_v21 = vmul.f32 %v5670_v3, %v3042_v12  ;;  %v8912_v3 = vld [vmem:[#allocation30_spill] sm:$0xff] }
 0xb2f   :  { %v2955_v16 = vpop.f32.mrb[72].mxu0 }
 0xb30   :  { %v6321_v29 = vpop.f32.mrb[73].mxu0 }
 0xb31   :  { %v2958_v32 = vpop.f32.mrb[74].mxu0 }
 0xb32   :  { %v6322_v9 = vpop.f32.mrb[75].mxu0 }
 0xbf5   :  { %v3027_v22 = vpop.f32.mrb[96].mxu1 }
 0xbf6   :  { %v3028_v35 = vadd.f32 %v3027_v22, %v2955_v16  ;;  %v6341_v40 = vpop.f32.mrb[97].mxu1 }
 0xbf7   :  { %v3030_v49 = vpop.f32.mrb[98].mxu1  ;;  %v8913_v40 = vld [vmem:[#allocation6_spill] sm:$0xff] }
 0xbf8   :  { %v3033_v15 = vadd.f32 %v7678_v18, %v3028_v35  ;;  %v6342_v7 = vpop.f32.mrb[99].mxu1  ;;  %v8890_v18 = vmov 0  }
 0xbfa   :  { %5668 = vst.msk [vmem:[%s8803_s15 + $0x8] sm:$0xff] %vm178_vm0, %v3033_v15  ;;  %v3046_v37 = vmul.f32 %v3045_v26, %v3033_v15 }
 0xbfc   :  { %v3047_v25 = vadd.f32 %v3046_v37, %v3043_v21 }
 0xbfe   :  { %5671 = vmatmul.mubr.msk.f32.vlgmr.msra.gmra.mrb[76].mxu0 %vm178_vm0, %v3047_v25  ;;  %6346 = vmatmul.mubr.msk.f32.vlgmr.msra.gmra.mrb[100].mxu1 %vm178_vm0, %v3047_v25 }
 0xbff   :  { %3193 = vmatpush1.bf16.msra.mxu0 %v7693_v36  ;;  %6349 = vmatpush3.bf16.msra.mxu1 %v7699_v43  ;;  %v8891_v36 = vld [vmem:[#allocation10_spill] sm:$0xff]  ;;  %v8892_v43 = vld [vmem:[#allocation11_spill] sm:$0xff] }
 0xc00   :  { %3194 = vmatprep.subr.bf16.mxu0 %v7705_v44  ;;  %6350 = vmatprep.subr.bf16.mxu1 %v8882_v34  ;;  %v8893_v44 = vld [vmem:[#allocation12_spill] sm:$0xff] }
 0xc01   :  { %3224 = vmatprep.mubr.bf16.mxu0 %v8890_v18  ;;  %6364 = vmatprep.mubr.msk.bf16.mxu1 %vm7056_vm1, %v8882_v34 }
 0xc03   :  { %3195 = vmatpush1.bf16.msra.mxu0 %v7715_v63  ;;  %6351 = vmatpush3.bf16.msra.mxu1 %v7721_v2  ;;  %v8894_v63 = vld [vmem:[#allocation13_spill] sm:$0xff]  ;;  %v8895_v2 = vld [vmem:[#allocation14_spill] sm:$0xff] }
 0xc04   :  { %3196 = vmatprep.subr.bf16.mxu0 %v7727_v5  ;;  %6352 = vmatprep.subr.bf16.mxu1 %v8882_v34  ;;  %v8896_v5 = vld [vmem:[#allocation15_spill] sm:$0xff] }
 0xc07   :  { %3197 = vmatpush1.bf16.msra.mxu0 %v7734_v8  ;;  %6353 = vmatpush3.bf16.msra.mxu1 %v7740_v1  ;;  %v8897_v8 = vld [vmem:[#allocation16_spill] sm:$0xff]  ;;  %v8898_v1 = vld [vmem:[#allocation17_spill] sm:$0xff] }
 0xc08   :  { %3198 = vmatprep.subr.bf16.mxu0 %v7746_v10  ;;  %6354 = vmatprep.subr.bf16.mxu1 %v8882_v34  ;;  %v8899_v10 = vld [vmem:[#allocation18_spill] sm:$0xff] }
 0xc0b   :  { %3199 = vmatpush1.bf16.msra.mxu0 %v7753_v11  ;;  %6355 = vmatpush3.bf16.msra.mxu1 %v7759_v13  ;;  %v8900_v11 = vld [vmem:[#allocation19_spill] sm:$0xff]  ;;  %v8901_v13 = vld [vmem:[#allocation20_spill] sm:$0xff] }
 0xc0c   :  { %3200 = vmatprep.subr.bf16.mxu0 %v8891_v36  ;;  %6356 = vmatprep.subr.bf16.mxu1 %v8882_v34  ;;  %v8914_v36 = vld [vmem:[#allocation31_spill] sm:$0xff] }
 0xc0f   :  { %3201 = vmatpush1.bf16.msra.mxu0 %v8892_v43  ;;  %6357 = vmatpush3.bf16.msra.mxu1 %v8893_v44 }
 0xc10   :  { %3202 = vmatprep.subr.bf16.mxu0 %v8894_v63  ;;  %6358 = vmatprep.subr.bf16.mxu1 %v8882_v34 }
 0xc13   :  { %3203 = vmatpush1.bf16.msra.mxu0 %v8895_v2  ;;  %6359 = vmatpush3.bf16.msra.mxu1 %v8896_v5  ;;  %v8915_v2 = vld [vmem:[#allocation32_spill] sm:$0xff] }
 0xc14   :  { %3204 = vmatprep.subr.bf16.mxu0 %v8897_v8  ;;  %6360 = vmatprep.subr.bf16.mxu1 %v8882_v34  ;;  %v8916_v8 = vld [vmem:[#allocation33_spill] sm:$0xff] }
 0xc17   :  { %3205 = vmatpush1.bf16.msra.mxu0 %v8898_v1  ;;  %6361 = vmatpush3.bf16.msra.mxu1 %v8899_v10 }
 0xc18   :  { %3206 = vmatprep.subr.bf16.mxu0 %v8900_v11  ;;  %6362 = vmatprep.subr.bf16.mxu1 %v8882_v34 }
 0xc1b   :  { %3207 = vmatpush1.bf16.msra.mxu0 %v8901_v13  ;;  %6363 = vmatpush3.bf16.msra.mxu1 %v8902_v27  ;;  %v8917_v27 = vld [vmem:[#allocation7_spill] sm:$0xff] }
 0xc1c   :  { %6368 = vmatprep.subr.bf16.mxu0 %v8882_v34  ;;  %6388 = vmatprep.subr.bf16.mxu1 %v8882_v34 }
 0xc1e   :  { %3225 = vmatmul.mubr.bf16.vlgmr.msra.gmra.mrb[80].mxu0 %v7918_v39  ;;  %6365 = vmatmul.mubr.bf16.vlgmr.msra.gmra.mrb[104].mxu1 %v7918_v39  ;;  %v8905_v39 = vld [vmem:[#allocation24_spill] sm:$0xff] }
 0xc1f   :  { %6369 = vmatpush3.bf16.msra.mxu0 %v8903_v23  ;;  %6384 = vmatprep.mubr.msk.bf16.mxu0 %vm7056_vm1, %v8882_v34 }
 0xc20   :  { %6370 = vmatprep.subr.bf16.mxu0 %v8882_v34  ;;  %6390 = vmatprep.mubr.msk.bf16.mxu1 %vm7056_vm1, %v8882_v34 }
 0xc23   :  { %6371 = vmatpush3.bf16.msra.mxu0 %v8904_v17 }
 0xc24   :  { %6372 = vmatprep.subr.bf16.mxu0 %v8882_v34  ;;  %6389 = vmatpush3.bf16.xpose.msra.mxu1 %v8184_v20 }
 0xc25   :  { %6394 = vmatprep.subr.bf16.mxu1 %v8882_v34 }
 0xc27   :  { %6373 = vmatpush3.bf16.msra.mxu0 %v8905_v39 }
 0xc28   :  { %6374 = vmatprep.subr.bf16.mxu0 %v8882_v34 }
 0xc2b   :  { %6375 = vmatpush3.bf16.msra.mxu0 %v8906_v30 }
 0xc2c   :  { %6376 = vmatprep.subr.bf16.mxu0 %v8882_v34 }
 0xc2f   :  { %6377 = vmatpush3.bf16.msra.mxu0 %v8907_v28 }
 0xc30   :  { %6378 = vmatprep.subr.bf16.mxu0 %v8882_v34 }
 0xc33   :  { %6379 = vmatpush3.bf16.msra.mxu0 %v8908_v31 }
 0xc34   :  { %6380 = vmatprep.subr.bf16.mxu0 %v8882_v34 }
 0xc37   :  { %6381 = vmatpush3.bf16.msra.mxu0 %v8909_v42 }
 0xc38   :  { %6382 = vmatprep.subr.bf16.mxu0 %v8882_v34 }
 0xc3b   :  { %6383 = vmatpush3.bf16.msra.mxu0 %v8910_v33 }
 0xc3c   :  { %6412 = vmatprep.subr.bf16.mxu0 %v8882_v34 }
 0xcd1   :  { %v3117_v45 = vpop.f32.mrb[76].mxu0  ;;  %v3188_v46 = vpop.f32.mrb[100].mxu1 }
 0xcd2   :  { %v3119_v47 = vpop.f32.mrb[77].mxu0  ;;  %v6347_v51 = vpop.f32.mrb[101].mxu1  ;;  %v3118_v53 = vadd.f32 %v3117_v45, %v8911_v52  ;;  %v3189_v26 = vadd.f32 %v3188_v46, %v8913_v40  ;;  %v8918_v45 = vld [vmem:[#allocation34_spill] sm:$0xff] }
 0xcd3   :  { %v3120_v55 = vadd.f32 %v3119_v47, %v7298_v50  ;;  %v8919_v47 = vld [vmem:[#allocation35_spill] sm:$0xff] }
 0xcf1   :  { %v3226_v56 = vpop.f32.mrb[80].mxu0  ;;  %v3267_v58 = vpop.f32.mrb[104].mxu1 }
 0xcf2   :  { %v3273_v59 = vadd.f32 %v3226_v56, %v3118_v53  ;;  %v3228_v54 = vpop.f32.mrb[81].mxu0  ;;  %v6366_v60 = vpop.f32.mrb[105].mxu1  ;;  %v3287_v12 = vadd.f32 %v8912_v3, %v3267_v58  ;;  %v8920_v56 = vld [vmem:[#allocation36_spill] sm:$0xff] }
 0xcf3   :  { %v3280_v61 = vadd.f32 %v3228_v54, %v3120_v55  ;;  %v3230_v62 = vpop.f32.mrb[82].mxu0  ;;  %v3270_v0 = vpop.f32.mrb[106].mxu1  ;;  %v8922_v60 = vld [vmem:[#allocation37_spill] sm:$0xff] }
 0xcf4   :  { %v5673_v38 = vmul.f32 -1.442695, %v3273_v59  ;;  %v3231_v24 = vpop.f32.mrb[83].mxu0  ;;  %v6367_v14 = vpop.f32.mrb[107].mxu1  ;;  %v8921_v59 = vld [vmem:[#allocation8_spill] sm:$0xff] }
 0xcf5   :  { %v5674_v16 = vmul.f32 -1.442695, %v3280_v61 }
 0xcf6   :  { %6850 = vpow2.f32 %v5673_v38  ;;  %v8923_v38 = vld [vmem:[#allocation38_spill] sm:$0xff] }
 0xcf7   :  { %6852 = vpow2.f32 %v5674_v16  ;;  %v8924_v16 = vld [vmem:[#allocation39_spill] sm:$0xff] }
 0xd00   :  { %v6851_v29 = vpop.eup %6850 }
 0xd01   :  { %v3277_v32 = vadd.f32 1.0, %v6851_v29  ;;  %v6853_v9 = vpop.eup %6852 }
 0xd02   :  { %v3284_v22 = vadd.f32 1.0, %v6853_v9  ;;  %v8925_v9 = vld [vmem:[#allocation9_spill] sm:$0xff] }
 0xd03   :  { %6854 = vrcp.f32 %v3277_v32 }
 0xd04   :  { %6856 = vrcp.f32 %v3284_v22 }
 0xd0d   :  { %v6855_v35 = vpop.eup %6854 }
 0xd0e   :  { %v3288_v49 = vmul.f32 %v6855_v35, %v3287_v12  ;;  %v6857_v21 = vpop.eup %6856 }
 0xd0f   :  { %v3291_v7 = vsub.f32 1.0, %v6857_v21  ;;  %v3293_v43 = vmul.f32 %v6857_v21, %v8914_v36 }
 0xd10   :  { %v3289_v15 = vadd.f32 %v3288_v49, %v3189_v26 }
 0xd12   :  { %6858 = vtanh.f32 %v3289_v15 }
 0xd1c   :  { %v6859_v37 = vpop.eup %6858 }
 0xd1d   :  { %v3292_v25 = vmul.f32 %v6859_v37, %v3291_v7 }
 0xd1f   :  { %v8205_v44 = vadd.f32 %v3293_v43, %v3292_v25 }
 0xd21   :  { %v8209_v63 = vpack.c.bf16 %v8205_v44, %v8205_v44 }
 0xd23   :  { %6385 = vmatmul.mubr.bf16.vlgmr.msra.gmra.mrb[84].mxu0 %v8209_v63 }
 0xd24   :  { %6413 = vmatpush3.bf16.xpose.msra.mxu0 %v8915_v2  ;;  %6414 = vmatprep.mubr.msk.bf16.mxu0 %vm7056_vm1, %v8882_v34 }
 0xd25   :  { %6424 = vmatprep.subr.bf16.mxu0 %v8882_v34 }
 0xdf6   :  { %v3330_v5 = vpop.f32.mrb[84].mxu0 }
 0xdf7   :  { %v3331_v1 = vadd.f32 %v8916_v8, %v3330_v5  ;;  %v6386_v10 = vpop.f32.mrb[85].mxu0 }
 0xdf8   :  { %v3333_v11 = vpop.f32.mrb[86].mxu0 }
 0xdf9   :  { %v3337_v13 = vcombine.high %v3331_v1, %v3331_v1  ;;  %v3344_v23 = vrot.slane %v3331_v1, %v8917_v27  ;;  %v6387_v17 = vpop.f32.mrb[87].mxu0 }
 0xdfb   :  { %v3351_v39 = vrot.slane %v3337_v13, %v8917_v27  ;;  %v3360_v30 = vrot.slane %v3344_v23, %v8917_v27  ;;  %v3352_v31 = vcombine.high %v3344_v23, %v3344_v23 }
 0xdfd   :  { %v3367_v28 = vrot.slane %v3351_v39, %v8917_v27  ;;  %v3394_v42 = vpack.c.bf16 %v3360_v30, %v3360_v30  ;;  %v3374_v46 = vrot.slane %v3352_v31, %v8917_v27  ;;  %v3382_v58 = vcombine.high %v3360_v30, %v3360_v30 }
 0xdfe   :  { %v3353_v62 = vcombine.high %v3351_v39, %v3351_v39 }
 0xdff   :  { %v3398_v33 = vpack.c.bf16 %v3367_v28, %v3367_v28  ;;  %6391 = vmatmul.mubr.bf16.vlgmr.msra.gmra.mrb[108].mxu1 %v3394_v42  ;;  %v3383_v51 = vcombine.high %v3367_v28, %v3367_v28  ;;  %v3395_v53 = vpack.c.bf16 %v3374_v46, %v3374_v46  ;;  %v3396_v54 = vpack.c.bf16 %v3382_v58, %v3382_v58 }
 0xe00   :  { %6395 = vmatpush3.bf16.xpose.msra.mxu1 %v8918_v45  ;;  %6396 = vmatprep.mubr.msk.bf16.mxu1 %vm7056_vm1, %v8882_v34  ;;  %v3384_v61 = vcombine.high %v3374_v46, %v3374_v46  ;;  %v3381_v24 = vrot.slane %v3353_v62, %v8917_v27 }
 0xe01   :  { %6415 = vmatmul.mubr.bf16.vlgmr.msra.gmra.mrb[88].mxu0 %v3398_v33  ;;  %6400 = vmatprep.subr.bf16.mxu1 %v8882_v34  ;;  %v3400_v55 = vpack.c.bf16 %v3383_v51, %v3383_v51 }
 0xe02   :  { %6425 = vmatpush3.bf16.xpose.msra.mxu0 %v8919_v47  ;;  %6426 = vmatprep.mubr.msk.bf16.mxu0 %vm7056_vm1, %v8882_v34  ;;  %v3397_v0 = vpack.c.bf16 %v3384_v61, %v3384_v61  ;;  %v3399_v14 = vpack.c.bf16 %v3381_v24, %v3381_v24  ;;  %v3385_v29 = vcombine.high %v3381_v24, %v3381_v24 }
 0xe03   :  { %6436 = vmatprep.subr.bf16.mxu0 %v8882_v34 }
 0xe04   :  { %v3401_v32 = vpack.c.bf16 %v3385_v29, %v3385_v29 }
 0xe07   :  { %6397 = vmatmul.mubr.bf16.vlgmr.msra.gmra.mrb[112].mxu1 %v3395_v53 }
 0xe08   :  { %6401 = vmatpush3.bf16.xpose.msra.mxu1 %v8920_v56  ;;  %6402 = vmatprep.mubr.msk.bf16.mxu1 %vm7056_vm1, %v8882_v34 }
 0xe09   :  { %6427 = vmatmul.mubr.bf16.vlgmr.msra.gmra.mrb[92].mxu0 %v3400_v55  ;;  %6406 = vmatprep.subr.bf16.mxu1 %v8882_v34 }
 0xe0a   :  { %6437 = vmatpush3.bf16.msra.mxu0 %v8921_v59  ;;  %6438 = vmatprep.mubr.msk.bf16.mxu0 %vm7056_vm1, %v8882_v34 }
 0xe0b   :  { %6448 = vmatprep.subr.bf16.mxu0 %v8882_v34 }
 0xe0f   :  { %6403 = vmatmul.mubr.bf16.vlgmr.msra.gmra.mrb[116].mxu1 %v3396_v54 }
 0xe10   :  { %6407 = vmatpush3.bf16.xpose.msra.mxu1 %v8922_v60  ;;  %6408 = vmatprep.mubr.msk.bf16.mxu1 %vm7056_vm1, %v8882_v34 }
 0xe11   :  { %6418 = vmatprep.subr.bf16.mxu1 %v8882_v34 }
 0xe17   :  { %6409 = vmatmul.mubr.bf16.vlgmr.msra.gmra.mrb[120].mxu1 %v3397_v0 }
 0xe18   :  { %6419 = vmatpush3.bf16.xpose.msra.mxu1 %v8923_v38  ;;  %6420 = vmatprep.mubr.msk.bf16.mxu1 %vm7056_vm1, %v8882_v34 }
 0xe19   :  { %6430 = vmatprep.subr.bf16.mxu1 %v8882_v34 }
 0xe1f   :  { %6421 = vmatmul.mubr.bf16.vlgmr.msra.gmra.mrb[124].mxu1 %v3399_v14 }
 0xe20   :  { %6431 = vmatpush3.bf16.xpose.msra.mxu1 %v8924_v16  ;;  %6432 = vmatprep.mubr.msk.bf16.mxu1 %vm7056_vm1, %v8882_v34 }
 0xe21   :  { %6442 = vmatprep.subr.bf16.mxu1 %v8882_v34 }
 0xe27   :  { %6433 = vmatmul.mubr.bf16.vlgmr.msra.gmra.mrb[128].mxu1 %v3401_v32 }
 0xe28   :  { %6443 = vmatpush3.bf16.msra.mxu1 %v8925_v9  ;;  %6444 = vmatprep.mubr.msk.bf16.mxu1 %vm7056_vm1, %v8882_v34 }
 0xe29   :  { %6454 = vmatprep.subr.bf16.mxu1 %v8882_v34 }
 0xed2   :  { %v3436_v22 = vpop.f32.mrb[108].mxu1 }
 0xed3   :  { %v6392_v3 = vpop.f32.mrb[109].mxu1  ;;  %v3722_v35 = vsel %vm1042_vm2, %v3436_v22, -inf }
 0xed4   :  { %v8255_v12 = vpop.f32.mrb[88].mxu0  ;;  %3723 = vmax.xlane.f32.xlu0 %v3722_v35  ;;  %v3439_v26 = vpop.f32.mrb[110].mxu1 }
 0xed5   :  { %v6416_v49 = vpop.f32.mrb[89].mxu0  ;;  %v6393_v15 = vpop.f32.mrb[111].mxu1  ;;  %v3734_v30 = vsel %vm1042_vm2, %v8255_v12, -inf }
 0xed6   :  { %v3599_v21 = vpop.f32.mrb[90].mxu0 }
 0xed7   :  { %v6417_v7 = vpop.f32.mrb[91].mxu0 }
 0xeda   :  { %v3476_v37 = vpop.f32.mrb[112].mxu1 }
 0xedb   :  { %v6398_v25 = vpop.f32.mrb[113].mxu1  ;;  %v3725_v43 = vsel %vm1042_vm2, %v3476_v37, -inf }
 0xedc   :  { %v3676_v36 = vpop.f32.mrb[92].mxu0  ;;  %3726 = vmax.xlane.f32.xlu1 %v3725_v43  ;;  %v3479_v2 = vpop.f32.mrb[114].mxu1 }
 0xedd   :  { %v6428_v5 = vpop.f32.mrb[93].mxu0  ;;  %v6399_v8 = vpop.f32.mrb[115].mxu1  ;;  %v3740_v42 = vsel %vm1042_vm2, %v3676_v36, -inf }
 0xede   :  { %v3679_v1 = vpop.f32.mrb[94].mxu0 }
 0xedf   :  { %v6429_v10 = vpop.f32.mrb[95].mxu0 }
 0xee2   :  { %v3516_v11 = vpop.f32.mrb[116].mxu1 }
 0xee3   :  { %v6404_v13 = vpop.f32.mrb[117].mxu1  ;;  %v3728_v23 = vsel %vm1042_vm2, %v3516_v11, -inf }
 0xee4   :  { %3729 = vmax.xlane.f32.xlu0 %v3728_v23  ;;  %v3519_v17 = vpop.f32.mrb[118].mxu1 }
 0xee5   :  { %v6405_v39 = vpop.f32.mrb[119].mxu1 }
 0xee8   :  { %3735 = vmax.xlane.f32.xlu0 %v3734_v30 }
 0xeea   :  { %v3556_v28 = vpop.f32.mrb[120].mxu1 }
 0xeeb   :  { %v6410_v31 = vpop.f32.mrb[121].mxu1  ;;  %v3731_v33 = vsel %vm1042_vm2, %v3556_v28, -inf }
 0xeec   :  { %3741 = vmax.xlane.f32.xlu0 %v3740_v42  ;;  %3732 = vmax.xlane.f32.xlu1 %v3731_v33  ;;  %v3559_v45 = vpop.f32.mrb[122].mxu1 }
 0xeed   :  { %v6411_v46 = vpop.f32.mrb[123].mxu1 }
 0xef2   :  { %v3636_v47 = vpop.f32.mrb[124].mxu1 }
 0xef3   :  { %v6422_v51 = vpop.f32.mrb[125].mxu1  ;;  %v3737_v53 = vsel %vm1042_vm2, %v3636_v47, -inf }
 0xef4   :  { %3738 = vmax.xlane.f32.xlu1 %v3737_v53  ;;  %v3639_v55 = vpop.f32.mrb[126].mxu1 }
 0xef5   :  { %v6423_v56 = vpop.f32.mrb[127].mxu1 }
 0xefa   :  { %v3716_v58 = vpop.f32.mrb[128].mxu1 }
 0xefb   :  { %v6434_v54 = vpop.f32.mrb[129].mxu1  ;;  %v3743_v60 = vsel %vm1042_vm2, %v3716_v58, -inf }
 0xefc   :  { %3744 = vmax.xlane.f32.xlu1 %v3743_v60  ;;  %v3719_v61 = vpop.f32.mrb[130].mxu1 }
 0xefd   :  { %v6435_v62 = vpop.f32.mrb[131].mxu1 }
 0xf61   :  { %v3724_v0 = vpop.xlane.xlu0 %3723 }
 0xf62   :  { %v3746_v38 = vsub.f32 %v3436_v22, %v3724_v0 }
 0xf64   :  { %v3754_v24 = vmul.f32 1.442695, %v3746_v38 }
 0xf66   :  { %6860 = vpow2.f32 %v3754_v24 }
 0xf69   :  { %v3727_v14 = vpop.xlane.xlu1 %3726 }
 0xf6a   :  { %v3747_v16 = vsub.f32 %v3476_v37, %v3727_v14 }
 0xf6c   :  { %v3756_v29 = vmul.f32 1.442695, %v3747_v16 }
 0xf6e   :  { %6862 = vpow2.f32 %v3756_v29 }
 0xf70   :  { %v6861_v32 = vpop.eup %6860 }
 0xf71   :  { %v3730_v3 = vpop.xlane.xlu0 %3729  ;;  %v3770_v35 = vsel %vm1042_vm2, %v6861_v32, 0.0 }
 0xf72   :  { %v3748_v26 = vsub.f32 %v3516_v11, %v3730_v3  ;;  %3771 = vadd.xlane.f32.xlu0 %v3770_v35 }
 0xf74   :  { %v3758_v49 = vmul.f32 1.442695, %v3748_v26 }
 0xf75   :  { %v3736_v15 = vpop.xlane.xlu0 %3735 }
 0xf76   :  { %6864 = vpow2.f32 %v3758_v49  ;;  %v3750_v21 = vsub.f32 %v8255_v12, %v3736_v15 }
 0xf78   :  { %v6863_v7 = vpop.eup %6862  ;;  %v3762_v25 = vmul.f32 1.442695, %v3750_v21 }
 0xf79   :  { %v3742_v22 = vpop.xlane.xlu0 %3741  ;;  %v3733_v43 = vpop.xlane.xlu1 %3732  ;;  %v3773_v2 = vsel %vm1042_vm2, %v6863_v7, 0.0 }
 0xf7a   :  { %6866 = vpow2.f32 %v3762_v25  ;;  %v3752_v37 = vsub.f32 %v3676_v36, %v3742_v22  ;;  %v3749_v5 = vsub.f32 %v3556_v28, %v3733_v43  ;;  %3774 = vadd.xlane.f32.xlu1 %v3773_v2 }
 0xf7c   :  { %v3766_v8 = vmul.f32 1.442695, %v3752_v37  ;;  %v3760_v1 = vmul.f32 1.442695, %v3749_v5 }
 0xf7e   :  { %6868 = vpow2.f32 %v3766_v8 }
 0xf7f   :  { %6870 = vpow2.f32 %v3760_v1 }
 0xf80   :  { %v6865_v10 = vpop.eup %6864 }
 0xf81   :  { %v3739_v11 = vpop.xlane.xlu1 %3738  ;;  %v3776_v13 = vsel %vm1042_vm2, %v6865_v10, 0.0 }
 0xf82   :  { %v3751_v23 = vsub.f32 %v3636_v47, %v3739_v11  ;;  %3777 = vadd.xlane.f32.xlu0 %v3776_v13 }
 0xf84   :  { %v6867_v12 = vpop.eup %6866  ;;  %v3764_v17 = vmul.f32 1.442695, %v3751_v23 }
 0xf85   :  { %v3782_v39 = vsel %vm1042_vm2, %v6867_v12, 0.0 }
 0xf86   :  { %6872 = vpow2.f32 %v3764_v17  ;;  %3783 = vadd.xlane.f32.xlu0 %v3782_v39 }
 0xf88   :  { %v8271_v30 = vpop.eup %6868 }
 0xf89   :  { %v6871_v36 = vpop.eup %6870  ;;  %v3745_v28 = vpop.xlane.xlu1 %3744  ;;  %v3788_v31 = vsel %vm1042_vm2, %v8271_v30, 0.0 }
 0xf8a   :  { %v3753_v42 = vsub.f32 %v3716_v58, %v3745_v28  ;;  %3789 = vadd.xlane.f32.xlu0 %v3788_v31  ;;  %v3779_v33 = vsel %vm1042_vm2, %v6871_v36, 0.0 }
 0xf8b   :  { %3780 = vadd.xlane.f32.xlu1 %v3779_v33 }
 0xf8c   :  { %v3768_v45 = vmul.f32 1.442695, %v3753_v42 }
 0xf8e   :  { %6874 = vpow2.f32 %v3768_v45 }
 0xf90   :  { %v6873_v46 = vpop.eup %6872 }
 0xf91   :  { %v3785_v47 = vsel %vm1042_vm2, %v6873_v46, 0.0 }
 0xf92   :  { %3786 = vadd.xlane.f32.xlu1 %v3785_v47 }
 0xf98   :  { %v8277_v51 = vpop.eup %6874 }
 0xf99   :  { %v3791_v53 = vsel %vm1042_vm2, %v8277_v51, 0.0 }
 0xf9a   :  { %3792 = vadd.xlane.f32.xlu1 %v3791_v53 }
 0xfff   :  { %v3772_v55 = vpop.xlane.xlu0 %3771 }
0x1000   :  { %6876 = vrcp.f32 %v3772_v55 }
0x1007   :  { %v3775_v56 = vpop.xlane.xlu1 %3774 }
0x1008   :  { %6878 = vrcp.f32 %v3775_v56 }
0x100a   :  { %v6877_v58 = vpop.eup %6876 }
0x100b   :  { %v3802_v54 = vmul.f32 %v6877_v58, %v6861_v32  ;;  %v8352_v58 = vld [vmem:[%s8800_s12] sm:$0xff]  }
0x100d   :  { %v3835_v60 = vpack.c.bf16 %v3802_v54, %v3802_v54 }
0x100f   :  { %6439 = vmatmul.mubr.msk.bf16.vlgmr.msra.gmra.mrb[96].mxu0 %vm178_vm0, %v3835_v60  ;;  %v3778_v61 = vpop.xlane.xlu0 %3777  ;;  %v8368_v60 = vld [vmem:[%s8800_s12 + $0x8] sm:$0xff]  }
0x1010   :  { %6880 = vrcp.f32 %v3778_v61  ;;  %6449 = vmatpush3.bf16.msra.mxu0 %v7442_v41  ;;  %6450 = vmatprep.mubr.msk.bf16.mxu0 %vm7056_vm1, %v8882_v34  ;;  %v8375_v61 = vld [vmem:[%s8801_s13 + $0x20] sm:$0xff]  }
0x1011   :  { %6460 = vmatprep.subr.bf16.mxu0 %v8882_v34 }
0x1012   :  { %v6879_v62 = vpop.eup %6878 }
0x1013   :  { %v3803_v0 = vmul.f32 %v6879_v62, %v6863_v7  ;;  %v3784_v38 = vpop.xlane.xlu0 %3783  ;;  %v8382_v62 = vld [vmem:[%s8800_s12 + $0x10] sm:$0xff]  }
0x1014   :  { %6882 = vrcp.f32 %v3784_v38  ;;  %v8396_v38 = vld [vmem:[%s8800_s12 + $0x18] sm:$0xff]  }
0x1015   :  { %v3836_v24 = vpack.c.bf16 %v3803_v0, %v3803_v0  ;;  %v3818_v2 = vrot.slane %v3803_v0, 7  ;;  %v8389_v0 = vld [vmem:[%s8801_s13 + $0x28] sm:$0xff]  }
0x1017   :  { %6445 = vmatmul.mubr.msk.bf16.vlgmr.msra.gmra.mrb[132].mxu1 %vm178_vm0, %v3836_v24  ;;  %v3790_v16 = vpop.xlane.xlu0 %3789  ;;  %v3819_v11 = vsel %vm1140_vm4, %v3818_v2, %v3802_v54  ;;  %v8361_v54 = vld [vmem:[%s8801_s13 + $0x18] sm:$0xff]   ;;  %v8403_v24 = vld [vmem:[%s8801_s13 + $0x30] sm:$0xff]  }
0x1018   :  { %v3781_v14 = vpop.xlane.xlu1 %3780  ;;  %6455 = vmatpush3.bf16.msra.mxu1 %v7453_v48  ;;  %6456 = vmatprep.mubr.msk.bf16.mxu1 %vm7056_vm1, %v8882_v34 }
0x1019   :  { %6884 = vrcp.f32 %v3781_v14  ;;  %6466 = vmatprep.subr.bf16.mxu1 %v8882_v34  ;;  %v8410_v14 = vld [vmem:[%s8800_s12 + $0x20] sm:$0xff]  }
0x101a   :  { %v6881_v29 = vpop.eup %6880  ;;  %6886 = vrcp.f32 %v3790_v16  ;;  %v8417_v16 = vld [vmem:[%s8801_s13 + $0x38] sm:$0xff]  }
0x101b   :  { %v3804_v32 = vmul.f32 %v6881_v29, %v6865_v10  ;;  %v8423_v29 = vld [vmem:[%s8800_s12 + $0x28] sm:$0xff]  }
0x101d   :  { %v3837_v3 = vpack.c.bf16 %v3804_v32, %v3804_v32  ;;  %v3820_v8 = vrot.slane %v3804_v32, 6  ;;  %v6993_v32 = vld [vmem:[%s8794_s6 + $0x8] sm:$0xff] }
0x101e   :  { %v6883_v35 = vpop.eup %6882 }
0x101f   :  { %6451 = vmatmul.mubr.msk.bf16.vlgmr.msra.gmra.mrb[100].mxu0 %vm178_vm0, %v3837_v3  ;;  %v3787_v26 = vpop.xlane.xlu1 %3786  ;;  %v3806_v49 = vmul.f32 %v6883_v35, %v6867_v12  ;;  %v3821_v12 = vsel %vm1143_vm5, %v3820_v8, %v3819_v11  ;;  %v6994_v3 = vld [vmem:[%s8794_s6] sm:$0xff]  ;;  %v8438_v35 = vld [vmem:[%s8800_s12 + $0x30] sm:$0xff]  }
0x1020   :  { %6888 = vrcp.f32 %v3787_v26  ;;  %6461 = vmatpush3.bf16.msra.mxu0 %v7465_v57  ;;  %6462 = vmatprep.mubr.msk.bf16.mxu0 %vm7056_vm1, %v8882_v34  ;;  %v6996_v26 = vld [vmem:[%s8795_s7 + $0x4] ss:$12 sps:$4 sm:$0xff]  }
0x1021   :  { %6472 = vmatprep.subr.bf16.mxu0 %v8882_v34  ;;  %v3839_v7 = vpack.c.bf16 %v3806_v49, %v3806_v49 }
0x1023   :  { %v6885_v15 = vpop.eup %6884 }
0x1024   :  { %v3805_v21 = vmul.f32 %v6885_v15, %v6871_v36  ;;  %v6887_v25 = vpop.eup %6886  ;;  %v8315_v36 = vld [vmem:[%s8801_s13] sm:$0xff]  }
0x1025   :  { %v3808_v37 = vmul.f32 %v6887_v25, %v8271_v30  ;;  %v3824_v30 = vrot.slane %v3806_v49, 4  ;;  %v8448_v49 = vld [vmem:[%s8800_s12 + $0x38] sm:$0xff]  }
0x1026   :  { %v3838_v22 = vpack.c.bf16 %v3805_v21, %v3805_v21  ;;  %v3822_v1 = vrot.slane %v3805_v21, 5 }
0x1027   :  { %6463 = vmatmul.mubr.msk.bf16.vlgmr.msra.gmra.mrb[104].mxu0 %vm178_vm0, %v3839_v7  ;;  %v3793_v43 = vpop.xlane.xlu1 %3792  ;;  %v3841_v23 = vpack.c.bf16 %v3808_v37, %v3808_v37  ;;  %v3828_v45 = vrot.slane %v3808_v37, 2 }
0x1028   :  { %6457 = vmatmul.mubr.msk.bf16.vlgmr.msra.gmra.mrb[136].mxu1 %vm178_vm0, %v3838_v22  ;;  %6890 = vrcp.f32 %v3793_v43  ;;  %6473 = vmatpush3.bf16.msra.mxu0 %v7484_v6  ;;  %v3823_v17 = vsel %vm1146_vm6, %v3822_v1, %v3821_v12 }
0x1029   :  { %6467 = vmatpush3.bf16.msra.mxu1 %v7481_v4  ;;  %6468 = vmatprep.mubr.msk.bf16.mxu1 %vm7056_vm1, %v8882_v34  ;;  %v3825_v31 = vsel %vm1149_vm7, %v3824_v30, %v3823_v17 }
0x102a   :  { %v6889_v5 = vpop.eup %6888  ;;  %6474 = vmatprep.mubr.msk.bf16.mxu0 %vm7056_vm1, %v8882_v34  ;;  %6478 = vmatprep.subr.bf16.mxu1 %v8882_v34 }
0x102b   :  { %v3807_v10 = vmul.f32 %v6889_v5, %v6873_v46  ;;  %6484 = vmatprep.subr.bf16.mxu0 %v8882_v34  ;;  %v8331_v46 = vld [vmem:[%s8801_s13 + $0x8] sm:$0xff]  }
0x102d   :  { %v3840_v13 = vpack.c.bf16 %v3807_v10, %v3807_v10  ;;  %v3826_v39 = vrot.slane %v3807_v10, 3 }
0x102f   :  { %6475 = vmatmul.mubr.msk.bf16.vlgmr.msra.gmra.mrb[108].mxu0 %vm178_vm0, %v3841_v23  ;;  %v3827_v42 = vsel %vm1152_vm8, %v3826_v39, %v3825_v31 }
0x1030   :  { %6469 = vmatmul.mubr.msk.bf16.vlgmr.msra.gmra.mrb[140].mxu1 %vm178_vm0, %v3840_v13  ;;  %6485 = vmatpush3.bf16.msra.mxu0 %v8315_v36  ;;  %v3829_v55 = vsel %vm1155_vm9, %v3828_v45, %v3827_v42 }
0x1031   :  { %6479 = vmatpush3.bf16.msra.mxu1 %v7504_v19  ;;  %6486 = vmatprep.subr.bf16.mxu0 %v8882_v34 }
0x1032   :  { %v6891_v28 = vpop.eup %6890  ;;  %6480 = vmatprep.mubr.msk.bf16.mxu1 %vm7056_vm1, %v8882_v34  ;;  %6500 = vmatprep.mubr.msk.bf16.mxu0 %vm7056_vm1, %v8882_v34 }
0x1033   :  { %v3809_v33 = vmul.f32 %v6891_v28, %v8277_v51  ;;  %6504 = vmatprep.subr.bf16.mxu1 %v8882_v34  ;;  %v8345_v51 = vld [vmem:[%s8801_s13 + $0x10] sm:$0xff]  }
0x1034   :  { %6487 = vmatpush3.bf16.msra.mxu0 %v8331_v46 }
0x1035   :  { %v3830_v47 = vrot.slane %v3809_v33, 1  ;;  %6488 = vmatprep.subr.bf16.mxu0 %v8882_v34  ;;  %v3842_v53 = vpack.c.bf16 %v3809_v33, %v3809_v33 }
0x1037   :  { %v3831_v56 = vsel %vm1158_vm10, %v3830_v47, %v3829_v55 }
0x1038   :  { %5675 = vst.msk [vmem:[%s8804_s16 + $0x10] sm:$0xff] %vm178_vm0, %v3831_v56  ;;  %6481 = vmatmul.mubr.msk.bf16.vlgmr.msra.gmra.mrb[144].mxu1 %vm178_vm0, %v3842_v53  ;;  %6489 = vmatpush3.bf16.msra.mxu0 %v8345_v51 }
0x1039   :  { %6490 = vmatprep.subr.bf16.mxu0 %v8882_v34  ;;  %6505 = vmatpush3.bf16.msra.mxu1 %v8352_v58 }
0x103a   :  { %6506 = vmatprep.subr.bf16.mxu1 %v8882_v34  ;;  %6520 = vmatprep.mubr.msk.bf16.mxu1 %vm7056_vm1, %v8882_v34 }
0x103c   :  { %6491 = vmatpush3.bf16.msra.mxu0 %v8361_v54 }
0x103d   :  { %6492 = vmatprep.subr.bf16.mxu0 %v8882_v34  ;;  %6507 = vmatpush3.bf16.msra.mxu1 %v8368_v60 }
0x103e   :  { %6508 = vmatprep.subr.bf16.mxu1 %v8882_v34 }
0x1040   :  { %6493 = vmatpush3.bf16.msra.mxu0 %v8375_v61 }
0x1041   :  { %6494 = vmatprep.subr.bf16.mxu0 %v8882_v34  ;;  %6509 = vmatpush3.bf16.msra.mxu1 %v8382_v62 }
0x1042   :  { %6510 = vmatprep.subr.bf16.mxu1 %v8882_v34 }
0x1044   :  { %6495 = vmatpush3.bf16.msra.mxu0 %v8389_v0 }
0x1045   :  { %6496 = vmatprep.subr.bf16.mxu0 %v8882_v34  ;;  %6511 = vmatpush3.bf16.msra.mxu1 %v8396_v38 }
0x1046   :  { %6512 = vmatprep.subr.bf16.mxu1 %v8882_v34 }
0x1048   :  { %6497 = vmatpush3.bf16.msra.mxu0 %v8403_v24 }
0x1049   :  { %6498 = vmatprep.subr.bf16.mxu0 %v8882_v34  ;;  %6513 = vmatpush3.bf16.msra.mxu1 %v8410_v14 }
0x104a   :  { %6514 = vmatprep.subr.bf16.mxu1 %v8882_v34 }
0x104c   :  { %6499 = vmatpush3.bf16.msra.mxu0 %v8417_v16 }
0x104d   :  { %6515 = vmatpush3.bf16.msra.mxu1 %v8423_v29  ;;  %4325 = vmatprep.subr.mxu0 %v6993_v32 }
0x104e   :  { %6516 = vmatprep.subr.bf16.mxu1 %v8882_v34 }
0x104f   :  { %6501 = vmatmul.mubr.bf16.vlgmr.msra.gmra.mrb[112].mxu0 %v8209_v63 }
0x1050   :  { %4326 = vmatpush1.msra.mxu0 %v6994_v3  ;;  %4389 = vmatprep.mubr.f32.mxu0 %v8882_v34 }
0x1051   :  { %6517 = vmatpush3.bf16.msra.mxu1 %v8438_v35  ;;  %4466 = vmatprep.subr.bf16.mxu0 %v6996_v26 }
0x1052   :  { %6518 = vmatprep.subr.bf16.mxu1 %v8882_v34 }
0x1055   :  { %6519 = vmatpush3.bf16.msra.mxu1 %v8448_v49 }
0x1056   :  { %6524 = vmatprep.subr.mxu1 %v8882_v34 }
0x10e2   :  { %v3880_v15 = vpop.f32.mrb[96].mxu0 }
0x10e3   :  { %v6440_v21 = vpop.f32.mrb[97].mxu0  ;;  %v4187_v43 = vpack.c.bf16 %v3880_v15, %v3880_v15 }
0x10e4   :  { %v3883_v7 = vpop.f32.mrb[98].mxu0 }
0x10e5   :  { %v6441_v25 = vpop.f32.mrb[99].mxu0  ;;  %v4243_v10 = vunpack.c.l.b16 %v4187_v43 }
0x10ea   :  { %v3923_v22 = vpop.f32.mrb[132].mxu1 }
0x10eb   :  { %v4188_v2 = vpack.c.bf16 %v3923_v22, %v3923_v22  ;;  %v6446_v37 = vpop.f32.mrb[133].mxu1 }
0x10ec   :  { %v3926_v5 = vpop.f32.mrb[134].mxu1 }
0x10ed   :  { %v4244_v8 = vunpack.c.l.b16 %v4188_v2  ;;  %v6447_v1 = vpop.f32.mrb[135].mxu1 }
0x10ef   :  { %v4251_v11 = vrot.slane %v4244_v8, 7 }
0x10f1   :  { %v4252_v13 = vsel %vm1140_vm4, %v4251_v11, %v4243_v10 }
0x10f2   :  { %v3966_v23 = vpop.f32.mrb[100].mxu0 }
0x10f3   :  { %v4189_v12 = vpack.c.bf16 %v3966_v23, %v3966_v23  ;;  %v6452_v17 = vpop.f32.mrb[101].mxu0 }
0x10f4   :  { %v3969_v39 = vpop.f32.mrb[102].mxu0 }
0x10f5   :  { %v4245_v30 = vunpack.c.l.b16 %v4189_v12  ;;  %v6453_v28 = vpop.f32.mrb[103].mxu0 }
0x10f7   :  { %v4253_v31 = vrot.slane %v4245_v30, 6 }
0x10f9   :  { %v4254_v42 = vsel %vm1143_vm5, %v4253_v31, %v4252_v13 }
0x10fa   :  { %v4052_v33 = vpop.f32.mrb[104].mxu0 }
0x10fb   :  { %v4009_v45 = vpop.f32.mrb[136].mxu1  ;;  %v4191_v47 = vpack.c.bf16 %v4052_v33, %v4052_v33  ;;  %v6464_v53 = vpop.f32.mrb[105].mxu0 }
0x10fc   :  { %v4190_v55 = vpack.c.bf16 %v4009_v45, %v4009_v45  ;;  %v6458_v56 = vpop.f32.mrb[137].mxu1  ;;  %v4055_v32 = vpop.f32.mrb[106].mxu0 }
0x10fd   :  { %v4247_v3 = vunpack.c.l.b16 %v4191_v47  ;;  %v4012_v26 = vpop.f32.mrb[138].mxu1  ;;  %v6465_v15 = vpop.f32.mrb[107].mxu0 }
0x10fe   :  { %v4246_v21 = vunpack.c.l.b16 %v4190_v55  ;;  %v6459_v7 = vpop.f32.mrb[139].mxu1 }
0x10ff   :  { %v4257_v25 = vrot.slane %v4247_v3, 4 }
0x1100   :  { %v4255_v22 = vrot.slane %v4246_v21, 5  ;;  %v6998_v21 = vld [vmem:[%s8794_s6 + $0x10] sm:$0xff] }
0x1102   :  { %v4256_v43 = vsel %vm1146_vm6, %v4255_v22, %v4254_v42  ;;  %v4138_v2 = vpop.f32.mrb[108].mxu0 }
0x1103   :  { %v4258_v37 = vsel %vm1149_vm7, %v4257_v25, %v4256_v43  ;;  %v4095_v5 = vpop.f32.mrb[140].mxu1  ;;  %v4193_v8 = vpack.c.bf16 %v4138_v2, %v4138_v2  ;;  %v6476_v1 = vpop.f32.mrb[109].mxu0 }
0x1104   :  { %v4192_v10 = vpack.c.bf16 %v4095_v5, %v4095_v5  ;;  %v6470_v11 = vpop.f32.mrb[141].mxu1  ;;  %v4141_v13 = vpop.f32.mrb[110].mxu0  ;;  %v4316_v5 = vstv %s4313_s25 }
0x1105   :  { %v4249_v23 = vunpack.c.l.b16 %v4193_v8  ;;  %v4098_v12 = vpop.f32.mrb[142].mxu1  ;;  %v6477_v17 = vpop.f32.mrb[111].mxu0  ;;  %v8471_v13 = vld [vmem:[%s8802_s14] ss:$0 sm:$0xff] }
0x1106   :  { %v4248_v39 = vunpack.c.l.b16 %v4192_v10  ;;  %v6471_v30 = vpop.f32.mrb[143].mxu1  ;;  %v4319_v10 = vstv %s4318_s26 }
0x1107   :  { %v4261_v28 = vrot.slane %v4249_v23, 2 }
0x1108   :  { %v4259_v31 = vrot.slane %v4248_v39, 3 }
0x110a   :  { %v4260_v33 = vsel %vm1152_vm8, %v4259_v31, %v4258_v37  ;;  %v5686_v37 = vld [vmem:[%s8858_s21 + $0x10] sm:$0xff] }
0x110b   :  { %v4262_v42 = vsel %vm1155_vm9, %v4261_v28, %v4260_v33  ;;  %v4181_v45 = vpop.f32.mrb[144].mxu1  ;;  %v4317_v12 = vmul.f32 %v5686_v37, %v4316_v5  ;;  %v7000_v28 = vld [vmem:[%s8795_s7] ss:$12 sps:$4 sm:$0xff]   ;;  %v7001_v31 = vld [vmem:[%s8795_s7 + $0x8] ss:$12 sps:$4 sm:$0xff]  }
0x110c   :  { %v4194_v47 = vpack.c.bf16 %v4181_v45, %v4181_v45  ;;  %v6482_v53 = vpop.f32.mrb[145].mxu1  ;;  %v7002_v33 = vld [vmem:[%s8795_s7 + $0x1c] ss:$12 sps:$4 sm:$0xff]   ;;  %v7004_v45 = vld [vmem:[%s8795_s7 + $0x20] ss:$12 sps:$4 sm:$0xff]  }
0x110d   :  { %v4184_v55 = vpop.f32.mrb[146].mxu1  ;;  %v7007_v53 = vld [vmem:[%s8795_s7 + $0x38] ss:$12 sps:$4 sm:$0xff]   ;;  %v7021_v5 = vld [vmem:[%s8795_s7 + $0xa8] ss:$12 sps:$4 sm:$0xff]  }
0x110e   :  { %v4250_v56 = vunpack.c.l.b16 %v4194_v47  ;;  %v6483_v32 = vpop.f32.mrb[147].mxu1  ;;  %v7005_v47 = vld [vmem:[%s8795_s7 + $0x34] ss:$12 sps:$4 sm:$0xff]   ;;  %v7008_v55 = vld [vmem:[%s8795_s7 + $0x4c] ss:$12 sps:$4 sm:$0xff]  }
0x110f   :  { %v7010_v32 = vld [vmem:[%s8795_s7 + $0x50] ss:$12 sps:$4 sm:$0xff]   ;;  %v7020_v37 = vld [vmem:[%s8795_s7 + $0xac] ss:$12 sps:$4 sm:$0xff]  }
0x1110   :  { %v4263_v3 = vrot.slane %v4250_v56, 1  ;;  %v7009_v56 = vld [vmem:[%s8795_s7 + $0x48] ss:$12 sps:$4 sm:$0xff]  }
0x1112   :  { %v4264_v26 = vsel %vm1158_vm10, %v4263_v3, %v4262_v42  ;;  %v7003_v42 = vld [vmem:[%s8795_s7 + $0x18] ss:$12 sps:$4 sm:$0xff]  }
0x1113   :  { %v4265_v15 = vpack.c.b16 %v4264_v26, %v4264_v26  ;;  %v7011_v3 = vld [vmem:[%s8795_s7 + $0x64] ss:$12 sps:$4 sm:$0xff]   ;;  %v7012_v26 = vld [vmem:[%s8795_s7 + $0x60] ss:$12 sps:$4 sm:$0xff]  }
0x1115   :  { %6521 = vmatmul.mubr.bf16.vlgmr.msra.gmra.mrb[148].mxu1 %v4265_v15  ;;  %v7013_v15 = vld [vmem:[%s8795_s7 + $0x68] ss:$12 sps:$4 sm:$0xff]  }
0x1116   :  { %6525 = vmatpush3.msra.mxu1 %v6998_v21  ;;  %6526 = vmatprep.mubr.msk.f32.mxu1 %vm7056_vm1, %v8882_v34  ;;  %v7014_v21 = vld [vmem:[%s8795_s7 + $0x7c] ss:$12 sps:$4 sm:$0xff]  }
0x1117   :  { %6529 = vmatprep.subr.bf16.mxu1 %v8882_v34 }
0x1122   :  { %v4229_v7 = vpop.f32.mrb[112].mxu0 }
0x1123   :  { %v6502_v25 = vpop.f32.mrb[113].mxu0 }
0x1124   :  { %v4232_v22 = vpop.f32.mrb[114].mxu0  ;;  %v7016_v25 = vld [vmem:[%s8795_s7 + $0x80] ss:$12 sps:$4 sm:$0xff]  }
0x1125   :  { %v6503_v43 = vpop.f32.mrb[115].mxu0  ;;  %v7017_v22 = vld [vmem:[%s8795_s7 + $0x94] ss:$12 sps:$4 sm:$0xff]  }
0x1126   :  { %v7018_v43 = vld [vmem:[%s8795_s7 + $0x90] ss:$12 sps:$4 sm:$0xff]  }
0x11e8   :  { %v4301_v2 = vpop.f32.mrb[148].mxu1 }
0x11e9   :  { %v4302_v8 = vadd.f32 %v4301_v2, %v4229_v7  ;;  %v6522_v1 = vpop.f32.mrb[149].mxu1  ;;  %v7015_v7 = vld [vmem:[%s8795_s7 + $0x78] ss:$12 sps:$4 sm:$0xff]  }
0x11ea   :  { %v4304_v11 = vpop.f32.mrb[150].mxu1  ;;  %v7019_v2 = vld [vmem:[%s8795_s7 + $0x98] ss:$12 sps:$4 sm:$0xff]  }
0x11eb   :  { %v4307_v23 = vadd.f32 %v8471_v13, %v4302_v8  ;;  %v6523_v17 = vpop.f32.mrb[151].mxu1  ;;  %v7022_v8 = vld [vmem:[%s8795_s7 + $0xb0] ss:$12 sps:$4 sm:$0xff]   ;;  %v7023_v1 = vld [vmem:[%s8798_s10] sm:$0xff]  }
0x11ec   :  { %v7026_v11 = vld [vmem:[%s8798_s10 + $0x18] sm:$0xff]  }
0x11ed   :  { %5684 = vst.msk [vmem:[%s8803_s15 + $0x10] sm:$0xff] %vm178_vm0, %v4307_v23  ;;  %v4320_v39 = vmul.f32 %v4319_v10, %v4307_v23  ;;  %v7024_v10 = vld [vmem:[%s8798_s10 + $0x8] sm:$0xff]   ;;  %v7030_v17 = vld [vmem:[%s8798_s10 + $0x38] sm:$0xff]  }
0x11ee   :  { %v7028_v23 = vld [vmem:[%s8798_s10 + $0x28] sm:$0xff]  }
0x11ef   :  { %v4321_v30 = vadd.f32 %v4320_v39, %v4317_v12  ;;  %v7029_v12 = vld [vmem:[%s8798_s10 + $0x30] sm:$0xff]  }
0x11f1   :  { %5687 = vmatmul.mubr.msk.f32.vlgmr.msra.gmra.mrb[78].mxu0 %vm178_vm0, %v4321_v30  ;;  %6527 = vmatmul.mubr.msk.f32.vlgmr.msra.gmra.mrb[102].mxu1 %vm178_vm0, %v4321_v30 }
0x11f2   :  { %4467 = vmatpush1.bf16.msra.mxu0 %v7000_v28  ;;  %6530 = vmatpush3.bf16.msra.mxu1 %v7001_v31 }
0x11f3   :  { %4468 = vmatprep.subr.bf16.mxu0 %v7002_v33  ;;  %6531 = vmatprep.subr.bf16.mxu1 %v8882_v34 }
0x11f4   :  { %4498 = vmatprep.mubr.bf16.mxu0 %v8890_v18  ;;  %6545 = vmatprep.mubr.msk.bf16.mxu1 %vm7056_vm1, %v8882_v34  ;;  %v7006_v18 = vld [vmem:[%s8795_s7 + $0x30] ss:$12 sps:$4 sm:$0xff]  }
0x11f6   :  { %4469 = vmatpush1.bf16.msra.mxu0 %v7003_v42  ;;  %6532 = vmatpush3.bf16.msra.mxu1 %v7004_v45 }
0x11f7   :  { %4470 = vmatprep.subr.bf16.mxu0 %v7005_v47  ;;  %6533 = vmatprep.subr.bf16.mxu1 %v8882_v34 }
0x11fa   :  { %4471 = vmatpush1.bf16.msra.mxu0 %v7006_v18  ;;  %6534 = vmatpush3.bf16.msra.mxu1 %v7007_v53 }
0x11fb   :  { %4472 = vmatprep.subr.bf16.mxu0 %v7008_v55  ;;  %6535 = vmatprep.subr.bf16.mxu1 %v8882_v34 }
0x11fe   :  { %4473 = vmatpush1.bf16.msra.mxu0 %v7009_v56  ;;  %6536 = vmatpush3.bf16.msra.mxu1 %v7010_v32 }
0x11ff   :  { %4474 = vmatprep.subr.bf16.mxu0 %v7011_v3  ;;  %6537 = vmatprep.subr.bf16.mxu1 %v8882_v34 }
0x1202   :  { %4475 = vmatpush1.bf16.msra.mxu0 %v7012_v26  ;;  %6538 = vmatpush3.bf16.msra.mxu1 %v7013_v15 }
0x1203   :  { %4476 = vmatprep.subr.bf16.mxu0 %v7014_v21  ;;  %6539 = vmatprep.subr.bf16.mxu1 %v8882_v34 }
0x1206   :  { %4477 = vmatpush1.bf16.msra.mxu0 %v7015_v7  ;;  %6540 = vmatpush3.bf16.msra.mxu1 %v7016_v25 }
0x1207   :  { %4478 = vmatprep.subr.bf16.mxu0 %v7017_v22  ;;  %6541 = vmatprep.subr.bf16.mxu1 %v8882_v34 }
0x120a   :  { %4479 = vmatpush1.bf16.msra.mxu0 %v7018_v43  ;;  %6542 = vmatpush3.bf16.msra.mxu1 %v7019_v2 }
0x120b   :  { %4480 = vmatprep.subr.bf16.mxu0 %v7020_v37  ;;  %6543 = vmatprep.subr.bf16.mxu1 %v8882_v34 }
0x120e   :  { %4481 = vmatpush1.bf16.msra.mxu0 %v7021_v5  ;;  %6544 = vmatpush3.bf16.msra.mxu1 %v7022_v8 }
0x120f   :  { %6549 = vmatprep.subr.bf16.mxu0 %v8882_v34  ;;  %6569 = vmatprep.subr.bf16.mxu1 %v8882_v34 }
0x1211   :  { %4499 = vmatmul.mubr.bf16.vlgmr.msra.gmra.mrb[116].mxu0 %v8209_v63  ;;  %6546 = vmatmul.mubr.bf16.vlgmr.msra.gmra.mrb[152].mxu1 %v8209_v63  ;;  %v7025_v63 = vld [vmem:[%s8798_s10 + $0x10] sm:$0xff]  }
0x1212   :  { %6550 = vmatpush3.bf16.msra.mxu0 %v7023_v1  ;;  %6565 = vmatprep.mubr.msk.bf16.mxu0 %vm7056_vm1, %v8882_v34 }
0x1213   :  { %6551 = vmatprep.subr.bf16.mxu0 %v8882_v34  ;;  %6571 = vmatprep.mubr.msk.bf16.mxu1 %vm7056_vm1, %v8882_v34 }
0x1216   :  { %6552 = vmatpush3.bf16.msra.mxu0 %v7024_v10 }
0x1217   :  { %6553 = vmatprep.subr.bf16.mxu0 %v8882_v34  ;;  %6570 = vmatpush3.bf16.xpose.msra.mxu1 %v8184_v20  ;;  %v7027_v20 = vld [vmem:[%s8798_s10 + $0x20] sm:$0xff]  }
0x1218   :  { %6575 = vmatprep.subr.bf16.mxu1 %v8882_v34 }
0x121a   :  { %6554 = vmatpush3.bf16.msra.mxu0 %v7025_v63 }
0x121b   :  { %6555 = vmatprep.subr.bf16.mxu0 %v8882_v34 }
0x121e   :  { %6556 = vmatpush3.bf16.msra.mxu0 %v7026_v11 }
0x121f   :  { %6557 = vmatprep.subr.bf16.mxu0 %v8882_v34 }
0x1222   :  { %6558 = vmatpush3.bf16.msra.mxu0 %v7027_v20 }
0x1223   :  { %6559 = vmatprep.subr.bf16.mxu0 %v8882_v34 }
0x1226   :  { %6560 = vmatpush3.bf16.msra.mxu0 %v7028_v23 }
0x1227   :  { %6561 = vmatprep.subr.bf16.mxu0 %v8882_v34 }
0x122a   :  { %6562 = vmatpush3.bf16.msra.mxu0 %v7029_v12 }
0x122b   :  { %6563 = vmatprep.subr.bf16.mxu0 %v8882_v34 }
0x122e   :  { %6564 = vmatpush3.bf16.msra.mxu0 %v7030_v17 }
0x122f   :  { %6593 = vmatprep.subr.bf16.mxu0 %v8882_v34 }
0x12c4   :  { %v4391_v39 = vpop.f32.mrb[78].mxu0  ;;  %v4462_v30 = vpop.f32.mrb[102].mxu1 }
0x12c5   :  { %v4393_v28 = vpop.f32.mrb[79].mxu0  ;;  %v6528_v31 = vpop.f32.mrb[103].mxu1  ;;  %v4392_v33 = vadd.f32 %v4391_v39, %v8911_v52  ;;  %v4463_v5 = vadd.f32 %v4462_v30, %v8913_v40  ;;  %v7032_v39 = vld [vmem:[%s8789_s1 + $0x10] sm:$0xf] }
0x12c6   :  { %v4394_v42 = vadd.f32 %v4393_v28, %v7298_v50  ;;  %v7031_v50 = vld [vmem:[%s8797_s9] ss:$0 sm:$0xff] }
0x12e4   :  { %v4500_v45 = vpop.f32.mrb[116].mxu0  ;;  %v4541_v47 = vpop.f32.mrb[152].mxu1 }
0x12e5   :  { %v4547_v18 = vadd.f32 %v4500_v45, %v4392_v33  ;;  %v4502_v53 = vpop.f32.mrb[117].mxu0  ;;  %v6547_v55 = vpop.f32.mrb[153].mxu1  ;;  %v4561_v2 = vadd.f32 %v7031_v50, %v4541_v47  ;;  %v7037_v50 = vld [vmem:[%s8789_s1 + $0xc] sm:$0xf] }
0x12e6   :  { %v4554_v56 = vadd.f32 %v4502_v53, %v4394_v42  ;;  %v4504_v32 = vpop.f32.mrb[118].mxu0  ;;  %v4544_v3 = vpop.f32.mrb[154].mxu1 }
0x12e7   :  { %v5689_v26 = vmul.f32 -1.442695, %v4547_v18  ;;  %v4505_v15 = vpop.f32.mrb[119].mxu0  ;;  %v6548_v21 = vpop.f32.mrb[155].mxu1  ;;  %v7034_v3 = vld [vmem:[%s8789_s1 + $0x4] sm:$0xf] }
0x12e8   :  { %v5690_v7 = vmul.f32 -1.442695, %v4554_v56  ;;  %v7035_v15 = vld [vmem:[%s8789_s1 + $0x18] sm:$0xf] }
0x12e9   :  { %6892 = vpow2.f32 %v5689_v26 }
0x12ea   :  { %6894 = vpow2.f32 %v5690_v7 }
0x12f3   :  { %v6893_v25 = vpop.eup %6892 }
0x12f4   :  { %v4551_v22 = vadd.f32 1.0, %v6893_v25  ;;  %v6895_v52 = vpop.eup %6894 }
0x12f5   :  { %v4558_v43 = vadd.f32 1.0, %v6895_v52 }
0x12f6   :  { %6896 = vrcp.f32 %v4551_v22  ;;  %v7036_v22 = vld [vmem:[%s8789_s1 + $0x8] sm:$0xf] }
0x12f7   :  { %6898 = vrcp.f32 %v4558_v43 }
0x1300   :  { %v6897_v37 = vpop.eup %6896 }
0x1301   :  { %v4562_v8 = vmul.f32 %v6897_v37, %v4561_v2  ;;  %v6899_v10 = vpop.eup %6898 }
0x1302   :  { %v4565_v63 = vsub.f32 1.0, %v6899_v10  ;;  %v4567_v23 = vmul.f32 %v6899_v10, %v8205_v44  ;;  %v7033_v44 = vld [vmem:[%s8799_s11] ss:$0 sm:$0xff]  ;;  %v7039_v10 = vld [vmem:[%s8789_s1 + $0x1c] sm:$0xf] }
0x1303   :  { %v4563_v1 = vadd.f32 %v4562_v8, %v4463_v5  ;;  %v7038_v5 = vld [vmem:[%s8789_s1 + $0x14] sm:$0xf] }
0x1305   :  { %6900 = vtanh.f32 %v4563_v1 }
0x130f   :  { %v6901_v11 = vpop.eup %6900 }
0x1310   :  { %v4566_v20 = vmul.f32 %v6901_v11, %v4565_v63 }
0x1312   :  { %v4568_v12 = vadd.f32 %v4567_v23, %v4566_v20 }
0x1314   :  { %v8608_v17 = vpack.c.bf16 %v4568_v12, %v4568_v12 }
0x1316   :  { %6566 = vmatmul.mubr.bf16.vlgmr.msra.gmra.mrb[120].mxu0 %v8608_v17 }
0x1317   :  { %6594 = vmatpush3.bf16.xpose.msra.mxu0 %v7032_v39  ;;  %6595 = vmatprep.mubr.msk.bf16.mxu0 %vm7056_vm1, %v8882_v34 }
0x1318   :  { %6605 = vmatprep.subr.bf16.mxu0 %v8882_v34 }
0x13e9   :  { %v4604_v40 = vpop.f32.mrb[120].mxu0 }
0x13ea   :  { %v4605_v30 = vadd.f32 %v7033_v44, %v4604_v40  ;;  %v6567_v28 = vpop.f32.mrb[121].mxu0 }
0x13eb   :  { %v4607_v31 = vpop.f32.mrb[122].mxu0 }
0x13ec   :  { %v4611_v33 = vcombine.high %v4605_v30, %v4605_v30  ;;  %v4618_v42 = vrot.slane %v4605_v30, %v8917_v27  ;;  %v6568_v45 = vpop.f32.mrb[123].mxu0 }
0x13ee   :  { %v4625_v47 = vrot.slane %v4611_v33, %v8917_v27  ;;  %v4634_v18 = vrot.slane %v4618_v42, %v8917_v27  ;;  %v4626_v55 = vcombine.high %v4618_v42, %v4618_v42 }
0x13f0   :  { %v4641_v53 = vrot.slane %v4625_v47, %v8917_v27  ;;  %v4668_v56 = vpack.c.bf16 %v4634_v18, %v4634_v18  ;;  %v4648_v26 = vrot.slane %v4626_v55, %v8917_v27  ;;  %v4656_v52 = vcombine.high %v4634_v18, %v4634_v18 }
0x13f1   :  { %v4627_v37 = vcombine.high %v4625_v47, %v4625_v47 }
0x13f2   :  { %v4672_v32 = vpack.c.bf16 %v4641_v53, %v4641_v53  ;;  %6572 = vmatmul.mubr.bf16.vlgmr.msra.gmra.mrb[156].mxu1 %v4668_v56  ;;  %v4657_v21 = vcombine.high %v4641_v53, %v4641_v53  ;;  %v4669_v7 = vpack.c.bf16 %v4648_v26, %v4648_v26  ;;  %v4670_v43 = vpack.c.bf16 %v4656_v52, %v4656_v52 }
0x13f3   :  { %6576 = vmatpush3.bf16.xpose.msra.mxu1 %v7034_v3  ;;  %6577 = vmatprep.mubr.msk.bf16.mxu1 %vm7056_vm1, %v8882_v34  ;;  %v4658_v2 = vcombine.high %v4648_v26, %v4648_v26  ;;  %v4655_v8 = vrot.slane %v4627_v37, %v8917_v27 }
0x13f4   :  { %6596 = vmatmul.mubr.bf16.vlgmr.msra.gmra.mrb[124].mxu0 %v4672_v32  ;;  %6581 = vmatprep.subr.bf16.mxu1 %v8882_v34  ;;  %v4674_v25 = vpack.c.bf16 %v4657_v21, %v4657_v21 }
0x13f5   :  { %6606 = vmatpush3.bf16.xpose.msra.mxu0 %v7035_v15  ;;  %6607 = vmatprep.mubr.msk.bf16.mxu0 %vm7056_vm1, %v8882_v34  ;;  %v4673_v1 = vpack.c.bf16 %v4655_v8, %v4655_v8  ;;  %v4659_v63 = vcombine.high %v4655_v8, %v4655_v8 }
0x13f6   :  { %6617 = vmatprep.subr.bf16.mxu0 %v8882_v34 }
0x13f7   :  { %v4675_v11 = vpack.c.bf16 %v4659_v63, %v4659_v63 }
0x13fa   :  { %6578 = vmatmul.mubr.bf16.vlgmr.msra.gmra.mrb[160].mxu1 %v4669_v7 }
0x13fb   :  { %6582 = vmatpush3.bf16.xpose.msra.mxu1 %v7036_v22  ;;  %6583 = vmatprep.mubr.msk.bf16.mxu1 %vm7056_vm1, %v8882_v34 }
0x13fc   :  { %6608 = vmatmul.mubr.bf16.vlgmr.msra.gmra.mrb[128].mxu0 %v4674_v25  ;;  %6587 = vmatprep.subr.bf16.mxu1 %v8882_v34 }
0x13fd   :  { %6618 = vmatpush3.bf16.msra.mxu0 %v8921_v59  ;;  %6619 = vmatprep.mubr.msk.bf16.mxu0 %vm7056_vm1, %v8882_v34  ;;  %v4671_v59 = vpack.c.bf16 %v4658_v2, %v4658_v2 }
0x13fe   :  { %6629 = vmatprep.subr.bf16.mxu0 %v8882_v34 }
0x1402   :  { %6584 = vmatmul.mubr.bf16.vlgmr.msra.gmra.mrb[164].mxu1 %v4670_v43 }
0x1403   :  { %6588 = vmatpush3.bf16.xpose.msra.mxu1 %v7037_v50  ;;  %6589 = vmatprep.mubr.msk.bf16.mxu1 %vm7056_vm1, %v8882_v34 }
0x1404   :  { %6599 = vmatprep.subr.bf16.mxu1 %v8882_v34 }
0x140a   :  { %6590 = vmatmul.mubr.bf16.vlgmr.msra.gmra.mrb[168].mxu1 %v4671_v59 }
0x140b   :  { %6600 = vmatpush3.bf16.xpose.msra.mxu1 %v7038_v5  ;;  %6601 = vmatprep.mubr.msk.bf16.mxu1 %vm7056_vm1, %v8882_v34 }
0x140c   :  { %6611 = vmatprep.subr.bf16.mxu1 %v8882_v34 }
0x1412   :  { %6602 = vmatmul.mubr.bf16.vlgmr.msra.gmra.mrb[172].mxu1 %v4673_v1 }
0x1413   :  { %6612 = vmatpush3.bf16.xpose.msra.mxu1 %v7039_v10  ;;  %6613 = vmatprep.mubr.msk.bf16.mxu1 %vm7056_vm1, %v8882_v34 }
0x1414   :  { %6623 = vmatprep.subr.bf16.mxu1 %v8882_v34 }
0x141a   :  { %6614 = vmatmul.mubr.bf16.vlgmr.msra.gmra.mrb[176].mxu1 %v4675_v11 }
0x141b   :  { %6624 = vmatpush3.bf16.msra.mxu1 %v8925_v9  ;;  %6625 = vmatprep.mubr.msk.bf16.mxu1 %vm7056_vm1, %v8882_v34 }
0x141c   :  { %6635 = vmatprep.subr.bf16.mxu1 %v8882_v34 }
0x14c5   :  { %v4710_v27 = vpop.f32.mrb[156].mxu1 }
0x14c6   :  { %v6573_v20 = vpop.f32.mrb[157].mxu1  ;;  %v4996_v12 = vsel %vm1042_vm2, %v4710_v27, -inf }
0x14c7   :  { %v8670_v23 = vpop.f32.mrb[124].mxu0  ;;  %4997 = vmax.xlane.f32.xlu0 %v4996_v12  ;;  %v4713_v39 = vpop.f32.mrb[158].mxu1 }
0x14c8   :  { %v6597_v40 = vpop.f32.mrb[125].mxu0  ;;  %v6574_v44 = vpop.f32.mrb[159].mxu1  ;;  %v5008_v21 = vsel %vm1042_vm2, %v8670_v23, -inf }
0x14c9   :  { %v4873_v30 = vpop.f32.mrb[126].mxu0 }
0x14ca   :  { %v6598_v28 = vpop.f32.mrb[127].mxu0 }
0x14cd   :  { %v4750_v31 = vpop.f32.mrb[160].mxu1 }
0x14ce   :  { %v6579_v33 = vpop.f32.mrb[161].mxu1  ;;  %v4999_v42 = vsel %vm1042_vm2, %v4750_v31, -inf }
0x14cf   :  { %v4950_v9 = vpop.f32.mrb[128].mxu0  ;;  %5000 = vmax.xlane.f32.xlu1 %v4999_v42  ;;  %v4753_v45 = vpop.f32.mrb[162].mxu1 }
0x14d0   :  { %v6609_v47 = vpop.f32.mrb[129].mxu0  ;;  %v6580_v18 = vpop.f32.mrb[163].mxu1  ;;  %v5014_v22 = vsel %vm1042_vm2, %v4950_v9, -inf }
0x14d1   :  { %v4953_v53 = vpop.f32.mrb[130].mxu0 }
0x14d2   :  { %v6610_v55 = vpop.f32.mrb[131].mxu0 }
0x14d5   :  { %v4790_v56 = vpop.f32.mrb[164].mxu1 }
0x14d6   :  { %v6585_v32 = vpop.f32.mrb[165].mxu1  ;;  %v5002_v3 = vsel %vm1042_vm2, %v4790_v56, -inf }
0x14d7   :  { %5003 = vmax.xlane.f32.xlu0 %v5002_v3  ;;  %v4793_v26 = vpop.f32.mrb[166].mxu1 }
0x14d8   :  { %v6586_v15 = vpop.f32.mrb[167].mxu1 }
0x14db   :  { %5009 = vmax.xlane.f32.xlu0 %v5008_v21 }
0x14dd   :  { %v4830_v7 = vpop.f32.mrb[168].mxu1 }
0x14de   :  { %v6591_v25 = vpop.f32.mrb[169].mxu1  ;;  %v5005_v52 = vsel %vm1042_vm2, %v4830_v7, -inf }
0x14df   :  { %5015 = vmax.xlane.f32.xlu0 %v5014_v22  ;;  %5006 = vmax.xlane.f32.xlu1 %v5005_v52  ;;  %v4833_v43 = vpop.f32.mrb[170].mxu1 }
0x14e0   :  { %v6592_v50 = vpop.f32.mrb[171].mxu1 }
0x14e5   :  { %v4910_v2 = vpop.f32.mrb[172].mxu1 }
0x14e6   :  { %v6603_v37 = vpop.f32.mrb[173].mxu1  ;;  %v5011_v59 = vsel %vm1042_vm2, %v4910_v2, -inf }
0x14e7   :  { %5012 = vmax.xlane.f32.xlu1 %v5011_v59  ;;  %v4913_v5 = vpop.f32.mrb[174].mxu1 }
0x14e8   :  { %v6604_v8 = vpop.f32.mrb[175].mxu1 }
0x14ed   :  { %v4990_v1 = vpop.f32.mrb[176].mxu1 }
0x14ee   :  { %v6615_v10 = vpop.f32.mrb[177].mxu1  ;;  %v5017_v63 = vsel %vm1042_vm2, %v4990_v1, -inf }
0x14ef   :  { %5018 = vmax.xlane.f32.xlu1 %v5017_v63  ;;  %v4993_v11 = vpop.f32.mrb[178].mxu1 }
0x14f0   :  { %v6616_v20 = vpop.f32.mrb[179].mxu1 }
0x1554   :  { %v4998_v12 = vpop.xlane.xlu0 %4997 }
0x1555   :  { %v5020_v39 = vsub.f32 %v4710_v27, %v4998_v12 }
0x1557   :  { %v5028_v40 = vmul.f32 1.442695, %v5020_v39 }
0x1559   :  { %6902 = vpow2.f32 %v5028_v40 }
0x155c   :  { %v5001_v44 = vpop.xlane.xlu1 %5000 }
0x155d   :  { %v5021_v30 = vsub.f32 %v4750_v31, %v5001_v44 }
0x155f   :  { %v5030_v28 = vmul.f32 1.442695, %v5021_v30 }
0x1561   :  { %6904 = vpow2.f32 %v5030_v28 }
0x1563   :  { %v6903_v33 = vpop.eup %6902 }
0x1564   :  { %v5004_v42 = vpop.xlane.xlu0 %5003  ;;  %v5044_v45 = vsel %vm1042_vm2, %v6903_v33, 0.0 }
0x1565   :  { %v5022_v47 = vsub.f32 %v4790_v56, %v5004_v42  ;;  %5045 = vadd.xlane.f32.xlu0 %v5044_v45 }
0x1567   :  { %v5032_v18 = vmul.f32 1.442695, %v5022_v47 }
0x1568   :  { %v5010_v53 = vpop.xlane.xlu0 %5009 }
0x1569   :  { %6906 = vpow2.f32 %v5032_v18  ;;  %v5024_v55 = vsub.f32 %v8670_v23, %v5010_v53 }
0x156b   :  { %v6905_v32 = vpop.eup %6904  ;;  %v5036_v3 = vmul.f32 1.442695, %v5024_v55 }
0x156c   :  { %v5016_v27 = vpop.xlane.xlu0 %5015  ;;  %v5007_v26 = vpop.xlane.xlu1 %5006  ;;  %v5047_v15 = vsel %vm1042_vm2, %v6905_v32, 0.0 }
0x156d   :  { %6908 = vpow2.f32 %v5036_v3  ;;  %v5026_v31 = vsub.f32 %v4950_v9, %v5016_v27  ;;  %v5023_v21 = vsub.f32 %v4830_v7, %v5007_v26  ;;  %5048 = vadd.xlane.f32.xlu1 %v5047_v15 }
0x156f   :  { %v5040_v25 = vmul.f32 1.442695, %v5026_v31  ;;  %v5034_v22 = vmul.f32 1.442695, %v5023_v21 }
0x1571   :  { %6910 = vpow2.f32 %v5040_v25 }
0x1572   :  { %6912 = vpow2.f32 %v5034_v22 }
0x1573   :  { %v6907_v56 = vpop.eup %6906 }
0x1574   :  { %v5013_v52 = vpop.xlane.xlu1 %5012  ;;  %v5050_v43 = vsel %vm1042_vm2, %v6907_v56, 0.0 }
0x1575   :  { %v5025_v50 = vsub.f32 %v4910_v2, %v5013_v52  ;;  %5051 = vadd.xlane.f32.xlu0 %v5050_v43 }
0x1577   :  { %v6909_v23 = vpop.eup %6908  ;;  %v5038_v37 = vmul.f32 1.442695, %v5025_v50 }
0x1578   :  { %v5056_v59 = vsel %vm1042_vm2, %v6909_v23, 0.0 }
0x1579   :  { %6914 = vpow2.f32 %v5038_v37  ;;  %5057 = vadd.xlane.f32.xlu0 %v5056_v59 }
0x157b   :  { %v8686_v5 = vpop.eup %6910 }
0x157c   :  { %v6913_v9 = vpop.eup %6912  ;;  %v5019_v7 = vpop.xlane.xlu1 %5018  ;;  %v5062_v8 = vsel %vm1042_vm2, %v8686_v5, 0.0 }
0x157d   :  { %v5027_v10 = vsub.f32 %v4990_v1, %v5019_v7  ;;  %5063 = vadd.xlane.f32.xlu0 %v5062_v8  ;;  %v5053_v63 = vsel %vm1042_vm2, %v6913_v9, 0.0 }
0x157e   :  { %5054 = vadd.xlane.f32.xlu1 %v5053_v63 }
0x157f   :  { %v5042_v2 = vmul.f32 1.442695, %v5027_v10 }
0x1581   :  { %6916 = vpow2.f32 %v5042_v2 }
0x1583   :  { %v6915_v11 = vpop.eup %6914 }
0x1584   :  { %v5059_v20 = vsel %vm1042_vm2, %v6915_v11, 0.0 }
0x1585   :  { %5060 = vadd.xlane.f32.xlu1 %v5059_v20 }
0x158b   :  { %v8692_v12 = vpop.eup %6916 }
0x158c   :  { %v5065_v39 = vsel %vm1042_vm2, %v8692_v12, 0.0 }
0x158d   :  { %5066 = vadd.xlane.f32.xlu1 %v5065_v39 }
0x15f2   :  { %v5046_v40 = vpop.xlane.xlu0 %5045 }
0x15f3   :  { %6918 = vrcp.f32 %v5046_v40 }
0x15fa   :  { %v5049_v44 = vpop.xlane.xlu1 %5048 }
0x15fb   :  { %6920 = vrcp.f32 %v5049_v44 }
0x15fd   :  { %v6919_v1 = vpop.eup %6918 }
0x15fe   :  { %v5076_v30 = vmul.f32 %v6919_v1, %v6903_v33 }
0x1600   :  { %v5109_v28 = vpack.c.bf16 %v5076_v30, %v5076_v30 }
0x1602   :  { %6620 = vmatmul.mubr.msk.bf16.vlgmr.msra.gmra.mrb[132].mxu0 %vm178_vm0, %v5109_v28  ;;  %v5052_v42 = vpop.xlane.xlu0 %5051 }
0x1603   :  { %6922 = vrcp.f32 %v5052_v42  ;;  %6630 = vmatpush3.bf16.msra.mxu0 %v7442_v41  ;;  %6631 = vmatprep.mubr.msk.bf16.mxu0 %vm7056_vm1, %v8882_v34 }
0x1604   :  { %6641 = vmatprep.subr.bf16.mxu0 %v8882_v34 }
0x1605   :  { %v6921_v45 = vpop.eup %6920 }
0x1606   :  { %v5077_v47 = vmul.f32 %v6921_v45, %v6905_v32  ;;  %v5058_v18 = vpop.xlane.xlu0 %5057 }
0x1607   :  { %6924 = vrcp.f32 %v5058_v18 }
0x1608   :  { %v5110_v53 = vpack.c.bf16 %v5077_v47, %v5077_v47 }
0x160a   :  { %6626 = vmatmul.mubr.msk.bf16.vlgmr.msra.gmra.mrb[180].mxu1 %vm178_vm0, %v5110_v53  ;;  %v5064_v55 = vpop.xlane.xlu0 %5063 }
0x160b   :  { %v5055_v33 = vpop.xlane.xlu1 %5054  ;;  %6636 = vmatpush3.bf16.msra.mxu1 %v7453_v48  ;;  %6637 = vmatprep.mubr.msk.bf16.mxu1 %vm7056_vm1, %v8882_v34 }
0x160c   :  { %6926 = vrcp.f32 %v5055_v33  ;;  %6647 = vmatprep.subr.bf16.mxu1 %v8882_v34 }
0x160d   :  { %v6923_v41 = vpop.eup %6922  ;;  %6928 = vrcp.f32 %v5064_v55 }
0x160e   :  { %v5078_v3 = vmul.f32 %v6923_v41, %v6907_v56 }
0x1610   :  { %v5111_v27 = vpack.c.bf16 %v5078_v3, %v5078_v3  ;;  %v5094_v50 = vrot.slane %v5078_v3, 6 }
0x1611   :  { %v6925_v32 = vpop.eup %6924 }
0x1612   :  { %6632 = vmatmul.mubr.msk.bf16.vlgmr.msra.gmra.mrb[136].mxu0 %vm178_vm0, %v5111_v27  ;;  %v5061_v26 = vpop.xlane.xlu1 %5060  ;;  %v5080_v48 = vmul.f32 %v6925_v32, %v6909_v23 }
0x1613   :  { %6930 = vrcp.f32 %v5061_v26  ;;  %6642 = vmatpush3.bf16.msra.mxu0 %v7465_v57  ;;  %6643 = vmatprep.mubr.msk.bf16.mxu0 %vm7056_vm1, %v8882_v34  ;;  %v5092_v57 = vrot.slane %v5077_v47, 7 }
0x1614   :  { %6653 = vmatprep.subr.bf16.mxu0 %v8882_v34  ;;  %v5113_v21 = vpack.c.bf16 %v5080_v48, %v5080_v48  ;;  %v5098_v8 = vrot.slane %v5080_v48, 4 }
0x1616   :  { %v6927_v15 = vpop.eup %6926 }
0x1617   :  { %v5079_v31 = vmul.f32 %v6927_v15, %v6913_v9  ;;  %v6929_v25 = vpop.eup %6928 }
0x1618   :  { %v5082_v52 = vmul.f32 %v6929_v25, %v8686_v5 }
0x1619   :  { %v5112_v22 = vpack.c.bf16 %v5079_v31, %v5079_v31  ;;  %v5096_v23 = vrot.slane %v5079_v31, 5 }
0x161a   :  { %6644 = vmatmul.mubr.msk.bf16.vlgmr.msra.gmra.mrb[140].mxu0 %vm178_vm0, %v5113_v21  ;;  %v5067_v56 = vpop.xlane.xlu1 %5066  ;;  %v5115_v5 = vpack.c.bf16 %v5082_v52, %v5082_v52 }
0x161b   :  { %6638 = vmatmul.mubr.msk.bf16.vlgmr.msra.gmra.mrb[184].mxu1 %vm178_vm0, %v5112_v22  ;;  %6932 = vrcp.f32 %v5067_v56  ;;  %6654 = vmatpush3.bf16.msra.mxu0 %v7484_v6  ;;  %v5093_v6 = vsel %vm1140_vm4, %v5092_v57, %v5076_v30 }
0x161c   :  { %6648 = vmatpush3.bf16.msra.mxu1 %v7481_v4  ;;  %6649 = vmatprep.mubr.msk.bf16.mxu1 %vm7056_vm1, %v8882_v34  ;;  %v5095_v4 = vsel %vm1143_vm5, %v5094_v50, %v5093_v6 }
0x161d   :  { %v6931_v43 = vpop.eup %6930  ;;  %6655 = vmatprep.mubr.msk.bf16.mxu0 %vm7056_vm1, %v8882_v34  ;;  %6659 = vmatprep.subr.bf16.mxu1 %v8882_v34  ;;  %v5097_v9 = vsel %vm1146_vm6, %v5096_v23, %v5095_v4 }
0x161e   :  { %v5081_v37 = vmul.f32 %v6931_v43, %v6915_v11  ;;  %6665 = vmatprep.subr.bf16.mxu0 %v8882_v34  ;;  %v5099_v63 = vsel %vm1149_vm7, %v5098_v8, %v5097_v9 }
0x1620   :  { %v5114_v59 = vpack.c.bf16 %v5081_v37, %v5081_v37  ;;  %v5100_v7 = vrot.slane %v5081_v37, 3 }
0x1622   :  { %6656 = vmatmul.mubr.msk.bf16.vlgmr.msra.gmra.mrb[144].mxu0 %vm178_vm0, %v5115_v5  ;;  %v5101_v2 = vsel %vm1152_vm8, %v5100_v7, %v5099_v63 }
0x1623   :  { %6650 = vmatmul.mubr.msk.bf16.vlgmr.msra.gmra.mrb[188].mxu1 %vm178_vm0, %v5114_v59  ;;  %6666 = vmatpush3.bf16.msra.mxu0 %v8315_v36  ;;  %v5102_v36 = vrot.slane %v5082_v52, 2 }
0x1624   :  { %6660 = vmatpush3.bf16.msra.mxu1 %v7504_v19  ;;  %6667 = vmatprep.subr.bf16.mxu0 %v8882_v34 }
0x1625   :  { %v6933_v10 = vpop.eup %6932  ;;  %6661 = vmatprep.mubr.msk.bf16.mxu1 %vm7056_vm1, %v8882_v34  ;;  %6681 = vmatprep.mubr.msk.bf16.mxu0 %vm7056_vm1, %v8882_v34  ;;  %v5103_v39 = vsel %vm1155_vm9, %v5102_v36, %v5101_v2 }
0x1626   :  { %v5083_v11 = vmul.f32 %v6933_v10, %v8692_v12  ;;  %6685 = vmatprep.subr.bf16.mxu1 %v8882_v34 }
0x1627   :  { %6668 = vmatpush3.bf16.msra.mxu0 %v8331_v46 }
0x1628   :  { %v5104_v19 = vrot.slane %v5083_v11, 1  ;;  %6669 = vmatprep.subr.bf16.mxu0 %v8882_v34  ;;  %v5116_v20 = vpack.c.bf16 %v5083_v11, %v5083_v11 }
0x162a   :  { %v5105_v40 = vsel %vm1158_vm10, %v5104_v19, %v5103_v39 }
0x162b   :  { %5691 = vst.msk [vmem:[%s8804_s16 + $0x18] sm:$0xff] %vm178_vm0, %v5105_v40  ;;  %6662 = vmatmul.mubr.msk.bf16.vlgmr.msra.gmra.mrb[192].mxu1 %vm178_vm0, %v5116_v20  ;;  %6670 = vmatpush3.bf16.msra.mxu0 %v8345_v51 }
0x162c   :  { %6671 = vmatprep.subr.bf16.mxu0 %v8882_v34  ;;  %6686 = vmatpush3.bf16.msra.mxu1 %v8352_v58 }
0x162d   :  { %6687 = vmatprep.subr.bf16.mxu1 %v8882_v34  ;;  %6701 = vmatprep.mubr.msk.bf16.mxu1 %vm7056_vm1, %v8882_v34 }
0x162f   :  { %6672 = vmatpush3.bf16.msra.mxu0 %v8361_v54 }
0x1630   :  { %6673 = vmatprep.subr.bf16.mxu0 %v8882_v34  ;;  %6688 = vmatpush3.bf16.msra.mxu1 %v8368_v60 }
0x1631   :  { %6689 = vmatprep.subr.bf16.mxu1 %v8882_v34 }
0x1633   :  { %6674 = vmatpush3.bf16.msra.mxu0 %v8375_v61 }
0x1634   :  { %6675 = vmatprep.subr.bf16.mxu0 %v8882_v34  ;;  %6690 = vmatpush3.bf16.msra.mxu1 %v8382_v62 }
0x1635   :  { %6691 = vmatprep.subr.bf16.mxu1 %v8882_v34 }
0x1637   :  { %6676 = vmatpush3.bf16.msra.mxu0 %v8389_v0 }
0x1638   :  { %6677 = vmatprep.subr.bf16.mxu0 %v8882_v34  ;;  %6692 = vmatpush3.bf16.msra.mxu1 %v8396_v38 }
0x1639   :  { %6693 = vmatprep.subr.bf16.mxu1 %v8882_v34 }
0x163b   :  { %6678 = vmatpush3.bf16.msra.mxu0 %v8403_v24 }
0x163c   :  { %6679 = vmatprep.subr.bf16.mxu0 %v8882_v34  ;;  %6694 = vmatpush3.bf16.msra.mxu1 %v8410_v14 }
0x163d   :  { %6695 = vmatprep.subr.bf16.mxu1 %v8882_v34 }
0x163f   :  { %6680 = vmatpush3.bf16.msra.mxu0 %v8417_v16 }
0x1640   :  { %6696 = vmatpush3.bf16.msra.mxu1 %v8423_v29 }
0x1641   :  { %6697 = vmatprep.subr.bf16.mxu1 %v8882_v34 }
0x1642   :  { %6682 = vmatmul.mubr.bf16.vlgmr.msra.gmra.mrb[148].mxu0 %v8608_v17 }
0x1644   :  { %6698 = vmatpush3.bf16.msra.mxu1 %v8438_v35 }
0x1645   :  { %6699 = vmatprep.subr.bf16.mxu1 %v8882_v34 }
0x1648   :  { %6700 = vmatpush3.bf16.msra.mxu1 %v8448_v49 }
0x16d5   :  { %v5154_v46 = vpop.f32.mrb[132].mxu0 }
0x16d6   :  { %v6621_v51 = vpop.f32.mrb[133].mxu0  ;;  %v5461_v61 = vpack.c.bf16 %v5154_v46, %v5154_v46 }
0x16d7   :  { %v5157_v58 = vpop.f32.mrb[134].mxu0 }
0x16d8   :  { %v6622_v54 = vpop.f32.mrb[135].mxu0  ;;  %v5517_v16 = vunpack.c.l.b16 %v5461_v61 }
0x16dd   :  { %v5197_v60 = vpop.f32.mrb[180].mxu1 }
0x16de   :  { %v5462_v62 = vpack.c.bf16 %v5197_v60, %v5197_v60  ;;  %v6627_v0 = vpop.f32.mrb[181].mxu1 }
0x16df   :  { %v5200_v38 = vpop.f32.mrb[182].mxu1 }
0x16e0   :  { %v5518_v24 = vunpack.c.l.b16 %v5462_v62  ;;  %v6628_v14 = vpop.f32.mrb[183].mxu1 }
0x16e2   :  { %v5525_v29 = vrot.slane %v5518_v24, 7 }
0x16e4   :  { %v5526_v17 = vsel %vm1140_vm4, %v5525_v29, %v5517_v16 }
0x16e5   :  { %v5240_v35 = vpop.f32.mrb[136].mxu0 }
0x16e6   :  { %v5463_v12 = vpack.c.bf16 %v5240_v35, %v5240_v35  ;;  %v6633_v34 = vpop.f32.mrb[137].mxu0 }
0x16e7   :  { %v5243_v44 = vpop.f32.mrb[138].mxu0 }
0x16e8   :  { %v5519_v49 = vunpack.c.l.b16 %v5463_v12  ;;  %v6634_v1 = vpop.f32.mrb[139].mxu0 }
0x16ea   :  { %v5527_v30 = vrot.slane %v5519_v49, 6 }
0x16ec   :  { %v5528_v28 = vsel %vm1143_vm5, %v5527_v30, %v5526_v17 }
0x16ed   :  { %v5326_v42 = vpop.f32.mrb[140].mxu0 }
0x16ee   :  { %v5283_v45 = vpop.f32.mrb[184].mxu1  ;;  %v5465_v47 = vpack.c.bf16 %v5326_v42, %v5326_v42  ;;  %v6645_v18 = vpop.f32.mrb[141].mxu0 }
0x16ef   :  { %v5464_v53 = vpack.c.bf16 %v5283_v45, %v5283_v45  ;;  %v6639_v33 = vpop.f32.mrb[185].mxu1  ;;  %v5329_v55 = vpop.f32.mrb[142].mxu0 }
0x16f0   :  { %v5521_v41 = vunpack.c.l.b16 %v5465_v47  ;;  %v5286_v3 = vpop.f32.mrb[186].mxu1  ;;  %v6646_v27 = vpop.f32.mrb[143].mxu0 }
0x16f1   :  { %v5520_v32 = vunpack.c.l.b16 %v5464_v53  ;;  %v6640_v26 = vpop.f32.mrb[187].mxu1 }
0x16f2   :  { %v5531_v48 = vrot.slane %v5521_v41, 4 }
0x16f3   :  { %v5529_v15 = vrot.slane %v5520_v32, 5 }
0x16f5   :  { %v5530_v31 = vsel %vm1146_vm6, %v5529_v15, %v5528_v28  ;;  %v5412_v21 = vpop.f32.mrb[144].mxu0 }
0x16f6   :  { %v5532_v25 = vsel %vm1149_vm7, %v5531_v48, %v5530_v31  ;;  %v5369_v22 = vpop.f32.mrb[188].mxu1  ;;  %v5467_v56 = vpack.c.bf16 %v5412_v21, %v5412_v21  ;;  %v6657_v57 = vpop.f32.mrb[145].mxu0 }
0x16f7   :  { %v5466_v52 = vpack.c.bf16 %v5369_v22, %v5369_v22  ;;  %v6651_v43 = vpop.f32.mrb[189].mxu1  ;;  %v5415_v50 = vpop.f32.mrb[146].mxu0 }
0x16f8   :  { %v5523_v23 = vunpack.c.l.b16 %v5467_v56  ;;  %v5372_v37 = vpop.f32.mrb[190].mxu1  ;;  %v6658_v6 = vpop.f32.mrb[147].mxu0 }
0x16f9   :  { %v5522_v59 = vunpack.c.l.b16 %v5466_v52  ;;  %v6652_v5 = vpop.f32.mrb[191].mxu1 }
0x16fa   :  { %v5535_v4 = vrot.slane %v5523_v23, 2 }
0x16fb   :  { %v5533_v9 = vrot.slane %v5522_v59, 3 }
0x16fd   :  { %v5534_v7 = vsel %vm1152_vm8, %v5533_v9, %v5532_v25 }
0x16fe   :  { %v5536_v8 = vsel %vm1155_vm9, %v5535_v4, %v5534_v7  ;;  %v5455_v10 = vpop.f32.mrb[192].mxu1 }
0x16ff   :  { %v5468_v63 = vpack.c.bf16 %v5455_v10, %v5455_v10  ;;  %v6663_v2 = vpop.f32.mrb[193].mxu1 }
0x1700   :  { %v5458_v11 = vpop.f32.mrb[194].mxu1 }
0x1701   :  { %v5524_v36 = vunpack.c.l.b16 %v5468_v63  ;;  %v6664_v19 = vpop.f32.mrb[195].mxu1 }
0x1703   :  { %v5537_v20 = vrot.slane %v5524_v36, 1 }
0x1705   :  { %v5538_v39 = vsel %vm1158_vm10, %v5537_v20, %v5536_v8 }
0x1706   :  { %v5539_v40 = vpack.c.b16 %v5538_v39, %v5538_v39 }
0x1708   :  { %6702 = vmatmul.mubr.bf16.vlgmr.msra.gmra.mrb[196].mxu1 %v5539_v40 }
0x1715   :  { %v5503_v46 = vpop.f32.mrb[148].mxu0 }
0x1716   :  { %v6683_v51 = vpop.f32.mrb[149].mxu0 }
0x1717   :  { %v5506_v58 = vpop.f32.mrb[150].mxu0 }
0x1718   :  { %v6684_v54 = vpop.f32.mrb[151].mxu0 }
0x17db   :  { %v5575_v60 = vpop.f32.mrb[196].mxu1 }
0x17dc   :  { %v5576_v61 = vadd.f32 %v5575_v60, %v5503_v46  ;;  %v6703_v62 = vpop.f32.mrb[197].mxu1 }
0x17dd   :  { %v5578_v0 = vpop.f32.mrb[198].mxu1 }
0x17de   :  { %v5581_v38 = vadd.f32 %v8471_v13, %v5576_v61  ;;  %v6704_v24 = vpop.f32.mrb[199].mxu1 }
0x17e0   :  { %5700 = vst.msk [vmem:[%s8803_s15 + $0x18] sm:$0xff] %vm178_vm0, %v5581_v38 }

</bundles_post_ra>
